<compile_context>
chip_gen: v6e
topology: v6e:2x2x1
jax: 0.10.0
libtpu: 0.0.40
codegen_flags: <defaults>
</compile_context>

<pallas_src>
import functools

import jax
import jax.numpy as jnp
from jax.experimental import pallas as pl
from jax.experimental.pallas import tpu as pltpu


def _round_up(x, m):
    return ((x + m - 1) // m) * m


def _linear_lrelu_kernel(x_ref, w_ref, b_ref, o_ref, acc_ref, *, negative_slope):
    k = pl.program_id(2)

    @pl.when(k == 0)
    def _():
        acc_ref[...] = jnp.zeros_like(acc_ref)

    # x_ref: (tm, tk) bf16, w_ref: (tk, tn) bf16  ->  f32 accumulate on the MXU.
    acc_ref[...] += jnp.dot(
        x_ref[...], w_ref[...], preferred_element_type=jnp.float32
    )

    # Epilogue only on the final K step: f32 bias add + LeakyReLU + cast + store.
    @pl.when(k == pl.num_programs(2) - 1)
    def _():
        acc = acc_ref[...] + b_ref[...]          # (1, tn) broadcasts over rows
        out = jnp.where(acc >= 0.0, acc, negative_slope * acc)
        o_ref[...] = out.astype(o_ref.dtype)


def linear_block_forward(x, weight, bias, *, negative_slope=0.01,
                         tm=512, tn=512, tk=1024):
    """y = LeakyReLU(x @ weight.T + bias)

    x:      (..., in_features)
    weight: (out_features, in_features)   PyTorch nn.Linear convention
    bias:   (out_features,) or None
    """
    orig_shape = x.shape
    x2d = x.reshape(-1, orig_shape[-1])

    M, K = x2d.shape
    N, K2 = weight.shape
    assert K == K2, "in_features mismatch between x and weight"

    def _leaky(v):
        return jnp.where(v >= 0.0, v, negative_slope * v)

    # Clamp tiles for small problems; keep bf16-friendly (16, 128) alignment.
    tm = min(tm, _round_up(M, 16))
    tn = min(tn, _round_up(N, 128))
    tk = min(tk, _round_up(K, 128))

    Mp, Np, Kp = _round_up(M, tm), _round_up(N, tn), _round_up(K, tk)
    grid_m, grid_n, grid_k = Mp // tm, Np // tn, Kp // tk

    # Small-problem fallback: a single-block launch is dominated by fixed
    # pallas_call / pipeline overhead and padding; XLA's fused linear wins.
    if grid_m * grid_n * grid_k == 1:
        y = x2d @ weight.T
        if bias is not None:
            y = y + bias
        y = _leaky(y).astype(x.dtype)
        return y.reshape(*orig_shape[:-1], N)

    # Keep >= 2 blocks on a parallel axis so v7x's two TensorCores both work.
    if grid_m == 1 and grid_n == 1:
        if M > 16:
            tm = _round_up((M + 1) // 2, 16)
            Mp = _round_up(M, tm)
        elif N > 128:
            tn = _round_up((N + 1) // 2, 128)
            Np = _round_up(N, tn)
        grid_m, grid_n = Mp // tm, Np // tn

    # bf16 operands (half the HBM bytes, bf16-native MXU); f32 accumulation and
    # f32 bias preserve accuracy. Zero padding keeps the K reduction exact.
    x_c = x2d.astype(jnp.bfloat16)
    w_t = weight.T.astype(jnp.bfloat16)                       # (K, N), one-time
    x_p = x_c if (Mp == M and Kp == K) else jnp.pad(x_c, ((0, Mp - M), (0, Kp - K)))
    w_p = w_t if (Kp == K and Np == N) else jnp.pad(w_t, ((0, Kp - K), (0, Np - N)))
    if bias is None:
        b_p = jnp.zeros((1, Np), dtype=jnp.float32)
    else:
        b_p = jnp.pad(bias.astype(jnp.float32), ((0, Np - N),)).reshape(1, Np)

    out_itemsize = jnp.dtype(x.dtype).itemsize
    cost = pl.CostEstimate(
        flops=2 * Mp * Np * Kp,
        transcendentals=0,
        # Count re-streaming: x is read once per N-block, W once per M-block.
        bytes_accessed=(Mp * Kp * 2) * grid_n
        + (Kp * Np * 2) * grid_m
        + Np * 4
        + Mp * Np * out_itemsize,
    )

    kernel = functools.partial(_linear_lrelu_kernel,
                               negative_slope=negative_slope)

    out = pl.pallas_call(
        kernel,
        out_shape=jax.ShapeDtypeStruct((Mp, Np), x.dtype),
        grid_spec=pltpu.PrefetchScalarGridSpec(
            num_scalar_prefetch=0,
            grid=(grid_m, grid_n, grid_k),
            in_specs=[
                pl.BlockSpec((tm, tk), lambda i, j, k: (i, k)),   # x tile (bf16)
                pl.BlockSpec((tk, tn), lambda i, j, k: (k, j)),   # W^T tile (bf16)
                pl.BlockSpec((1, tn), lambda i, j, k: (0, j)),    # bias tile (f32)
            ],
            out_specs=pl.BlockSpec((tm, tn), lambda i, j, k: (i, j)),
            scratch_shapes=[pltpu.VMEM((tm, tn), jnp.float32)],
        ),
        compiler_params=pltpu.CompilerParams(
            dimension_semantics=("parallel", "parallel", "arbitrary"),
            vmem_limit_bytes=32 * 1024 * 1024,
        ),
        cost_estimate=cost,
    )(x_p, w_p, b_p)

    return out[:M, :N].reshape(*orig_shape[:-1], N)


if __name__ == "__main__":
    key = jax.random.PRNGKey(0)
    k1, k2, k3, k4, k5, k6 = jax.random.split(key, 6)

    # --- Small shape consistent with the module (takes the XLA fallback). ---
    batch, in_features, out_features = 8, 32, 64
    x = jax.random.normal(k1, (batch, in_features), dtype=jnp.float32)
    bound = 1.0 / (in_features ** 0.5)
    weight = jax.random.uniform(k2, (out_features, in_features),
                                dtype=jnp.float32, minval=-bound, maxval=bound)
    bias = jax.random.uniform(k3, (out_features,),
                              dtype=jnp.float32, minval=-bound, maxval=bound)

    y = linear_block_forward(x, weight, bias)
    jax.block_until_ready(y)
    ref = x @ weight.T + bias
    ref = jnp.where(ref >= 0.0, ref, 0.01 * ref)
    assert y.shape == (batch, out_features)
    assert jnp.allclose(y, ref, atol=1e-5, rtol=1e-5)

    # --- Tile-spanning shape: exercises the Pallas (2,2,2) grid, padding in
    #     all three dims, and the padded slice-off. ---
    M2, K2, N2 = 1000, 1536, 900
    x2 = jax.random.normal(k4, (M2, K2), dtype=jnp.float32)
    w2 = jax.random.normal(k5, (N2, K2), dtype=jnp.float32) * 0.02
    b2 = jax.random.normal(k6, (N2,), dtype=jnp.float32) * 0.02
    y2 = linear_block_forward(x2, w2, b2)
    jax.block_until_ready(y2)
    assert y2.shape == (M2, N2)

    # Loose check vs. the f32 reference (bf16 operands, f32 accumulation).
    ref2 = x2 @ w2.T + b2
    ref2 = jnp.where(ref2 >= 0.0, ref2, 0.01 * ref2)
    assert jnp.allclose(y2, ref2, atol=5e-2, rtol=5e-2)

    # Tight check vs. an XLA bf16-operand / f32-accumulate reference.
    ref2b = jnp.dot(x2.astype(jnp.bfloat16), w2.T.astype(jnp.bfloat16),
                    preferred_element_type=jnp.float32) + b2
    ref2b = jnp.where(ref2b >= 0.0, ref2b, 0.01 * ref2b)
    assert jnp.allclose(y2, ref2b, atol=1e-3, rtol=1e-3)

    print("KERNEL_OK")
</pallas_src>

<mosaic_0001>
module attributes {stable_mosaic.version = 11 : i64} {
  func.func @_linear_lrelu_kernel(%arg0: i32, %arg1: i32, %arg2: i32, %arg3: memref<512x1024xbf16, #tpu.memory_space<vmem>>, %arg4: memref<1024x512xbf16, #tpu.memory_space<vmem>>, %arg5: memref<1x512xf32, #tpu.memory_space<vmem>>, %arg6: memref<512x512xf32, #tpu.memory_space<vmem>>, %arg7: memref<512x512xf32, #tpu.memory_space<vmem>>) attributes {dimension_semantics = [#tpu.dimension_semantics<parallel>, #tpu.dimension_semantics<parallel>, #tpu.dimension_semantics<arbitrary>], iteration_bounds = array<i64: 2, 2, 2>, scalar_prefetch = 0 : i64, scratch_operands = 1 : i64, tpu.core_type = #tpu.core_type<tc>, window_params = [{transform_indices = @transform_0, window_bounds = array<i64: 512, 1024>}, {transform_indices = @transform_1, window_bounds = array<i64: 1024, 512>}, {transform_indices = @transform_2, window_bounds = array<i64: 1, 512>}, {transform_indices = @transform_3, window_bounds = array<i64: 512, 512>}]} {
    %c0_i32 = arith.constant 0 : i32
    %0 = arith.cmpi eq, %arg2, %c0_i32 : i32
    %1 = arith.extui %0 : i1 to i32
    %c0_i32_0 = arith.constant 0 : i32
    %2 = arith.cmpi ne, %1, %c0_i32_0 : i32
    scf.if %2 {
      %cst_9 = arith.constant 0.000000e+00 : f32
      %12 = vector.broadcast %cst_9 : f32 to vector<512x512xf32>
      %c0_10 = arith.constant 0 : index
      %c0_11 = arith.constant 0 : index
      %13 = vector.load %arg7[%c0_10, %c0_11] : memref<512x512xf32, #tpu.memory_space<vmem>>, vector<512x512xf32>
      tpu.vector_store %arg7[%c0_10, %c0_11], %12 {strides = array<i32>} : memref<512x512xf32, #tpu.memory_space<vmem>>, vector<512x512xf32>,
    } else {
    }
    %c0 = arith.constant 0 : index
    %c0_1 = arith.constant 0 : index
    %3 = vector.load %arg7[%c0, %c0_1] : memref<512x512xf32, #tpu.memory_space<vmem>>, vector<512x512xf32>
    %c0_2 = arith.constant 0 : index
    %c0_3 = arith.constant 0 : index
    %4 = vector.load %arg3[%c0_2, %c0_3] : memref<512x1024xbf16, #tpu.memory_space<vmem>>, vector<512x1024xbf16>
    %c0_4 = arith.constant 0 : index
    %c0_5 = arith.constant 0 : index
    %5 = vector.load %arg4[%c0_4, %c0_5] : memref<1024x512xbf16, #tpu.memory_space<vmem>>, vector<1024x512xbf16>
    %cst = arith.constant dense<0.000000e+00> : vector<512x512xf32>
    %6 = tpu.matmul %4, %5, %cst {dimension_numbers = #tpu.dot_dimension_numbers<[1], [0], [0], [1], [0, 0, 1, 1], [], []>} : vector<512x1024xbf16>, vector<1024x512xbf16>, vector<512x512xf32> -> vector<512x512xf32>
    %7 = arith.addf %3, %6 : vector<512x512xf32>
    %c0_6 = arith.constant 0 : index
    %c0_7 = arith.constant 0 : index
    %8 = vector.load %arg7[%c0_6, %c0_7] : memref<512x512xf32, #tpu.memory_space<vmem>>, vector<512x512xf32>
    tpu.vector_store %arg7[%c0_6, %c0_7], %7 {strides = array<i32>} : memref<512x512xf32, #tpu.memory_space<vmem>>, vector<512x512xf32>,
    %c1_i32 = arith.constant 1 : i32
    %9 = arith.cmpi eq, %arg2, %c1_i32 : i32
    %10 = arith.extui %9 : i1 to i32
    %c0_i32_8 = arith.constant 0 : i32
    %11 = arith.cmpi ne, %10, %c0_i32_8 : i32
    scf.if %11 {
      %c0_9 = arith.constant 0 : index
      %c0_10 = arith.constant 0 : index
      %12 = vector.load %arg7[%c0_9, %c0_10] : memref<512x512xf32, #tpu.memory_space<vmem>>, vector<512x512xf32>
      %c0_11 = arith.constant 0 : index
      %c0_12 = arith.constant 0 : index
      %13 = vector.load %arg5[%c0_11, %c0_12] : memref<1x512xf32, #tpu.memory_space<vmem>>, vector<1x512xf32>
      %14 = vector.broadcast %13 : vector<1x512xf32> to vector<512x512xf32>
      %15 = arith.addf %12, %14 : vector<512x512xf32>
      %cst_13 = arith.constant 0.000000e+00 : f32
      %16 = vector.broadcast %cst_13 : f32 to vector<512x512xf32>
      %17 = arith.cmpf oge, %15, %16 : vector<512x512xf32>
      %cst_14 = arith.constant 0.00999999977 : f32
      %18 = vector.broadcast %cst_14 : f32 to vector<512x512xf32>
      %19 = arith.mulf %18, %15 : vector<512x512xf32>
      %20 = arith.select %17, %15, %19 : vector<512x512xi1>, vector<512x512xf32>
      %c0_15 = arith.constant 0 : index
      %c0_16 = arith.constant 0 : index
      %21 = vector.load %arg6[%c0_15, %c0_16] : memref<512x512xf32, #tpu.memory_space<vmem>>, vector<512x512xf32>
      tpu.vector_store %arg6[%c0_15, %c0_16], %20 {strides = array<i32>} : memref<512x512xf32, #tpu.memory_space<vmem>>, vector<512x512xf32>,
    } else {
    }
    return
  }
  func.func @transform_0(%arg0: i32, %arg1: i32, %arg2: i32) -> (i32, i32) {
    %c0_i32 = arith.constant 0 : i32
    return %arg0, %arg2 : i32, i32
  }
  func.func @transform_1(%arg0: i32, %arg1: i32, %arg2: i32) -> (i32, i32) {
    %c0_i32 = arith.constant 0 : i32
    return %arg2, %arg1 : i32, i32
  }
  func.func @transform_2(%arg0: i32, %arg1: i32, %arg2: i32) -> (i32, i32) {
    %c0_i32 = arith.constant 0 : i32
    %c0_i32_0 = arith.constant 0 : i32
    return %c0_i32, %arg1 : i32, i32
  }
  func.func @transform_3(%arg0: i32, %arg1: i32, %arg2: i32) -> (i32, i32) {
    %c0_i32 = arith.constant 0 : i32
    return %arg0, %arg1 : i32, i32
  }
}

</mosaic_0001>

<bundles_post_ra>
// kernel: tpu_custom_call.1
= control target key start
LH: loop header
LB: loop body
LE: loop exit
PB: predicated region body
PF: predicated region fallthrough
CT: control target
= control target key end

     0   :  { %s13869_s0 = inlined_call_operand.hbm [shape: bf16[1024,2048], index: 0, kind: input, shape index: {}]   ;;  %s13870_s1 = inlined_call_operand.hbm [shape: bf16[2048,1024], index: 1, kind: input, shape index: {}]   ;;  %s13871_s2 = inlined_call_operand.hbm [shape: f32[1,1024], index: 2, kind: input, shape index: {}]   ;;  %s13872_s3 = inlined_call_operand.hbm [shape: f32[1024,1024], index: 3, kind: output, shape index: {}]  }
   0x1   :  { %14121 = sst [smem:[#allocation356_spill]] %s13870_s1 }
   0x2   :  { %14122 = sst [smem:[#allocation357_spill]] %s13871_s2 }
   0x3   :  { %14123 = sst [smem:[#allocation358_spill]] %s13872_s3 }
   0x4   :  { %8 = vsyncpa [#allocation4], 0 }
   0x5   :  { %10 = vsyncpa [#allocation4 + $0x1], 0 }
   0x6   :  { %11 = vsyncpa [#allocation7], 0 }
   0x7   :  { %13 = vsyncpa [#allocation7 + $0x1], 0 }
   0x8   :  { %14 = vsyncpa [#allocation5], 0 }
   0x9   :  { %16 = vsyncpa [#allocation5 + $0x1], 0  ;;  %s10374_s12 = smov 0   ;;  %s10376_s13 = smov 0  }
   0xa   :  { %s10378_s14 = smov 0   ;;  %s10380_s15 = smov 0  }
   0xb   :  { %s10382_s16 = smov 0   ;;  %s10384_s17 = smov 0  }
   0xc   :  { %s10386_s18 = smov 0   ;;  %s10388_s19 = smov 0  }
   0xd   :  { %s10390_s20 = smov 0   ;;  %s10392_s21 = smov 0  }
   0xe   :  { %s10394_s22 = smov 0   ;;  %s10396_s23 = smov 0  }
   0xf   :  { %s10398_s24 = smov 0   ;;  %s10400_s25 = smov 0  }
  0x10   :  { %s10402_s26 = smov 0   ;;  %s10404_s27 = smov 0  }
  0x11   :  { %s10406_s28 = smov 0   ;;  %s10408_s29 = smov 0  }
  0x12   :  { %s10410_s30 = smov 0  }
  0x13 LB: > { %14124 = sst [smem:[#allocation14_spill]] %s10267_s12  ;;  %s34_s4 = sadd.s32 1, %s10327_s27  ;;  %s10339_s30 = sphi %s10410_s30, %s22_s30   ;;  %s10335_s29 = sphi %s10408_s29, %s15062_s29   ;;  %s10331_s28 = sphi %s10406_s28, %s15061_s28   ;;  %s10327_s27 = sphi %s10404_s27, %s15048_s27   ;;  %s10323_s26 = sphi %s10402_s26, %s15060_s26   ;;  %s10319_s25 = sphi %s10400_s25, %s15059_s25   ;;  %s10315_s24 = sphi %s10398_s24, %s15047_s24   ;;  %s10311_s23 = sphi %s10396_s23, %s15058_s23   ;;  %s10307_s22 = sphi %s10394_s22, %s15057_s22   ;;  %s10303_s21 = sphi %s10392_s21, %s15056_s21   ;;  %s10299_s20 = sphi %s10390_s20, %s15055_s20   ;;  %s10295_s19 = sphi %s10388_s19, %s15044_s19   ;;  %s10291_s18 = sphi %s10386_s18, %s15054_s18   ;;  %s10287_s17 = sphi %s10384_s17, %s15053_s17   ;;  %s10283_s16 = sphi %s10382_s16, %s15052_s16   ;;  %s10279_s15 = sphi %s10380_s15, %s15042_s15   ;;  %s10275_s14 = sphi %s10378_s14, %s15051_s14   ;;  %s10271_s13 = sphi %s10376_s13, %s15050_s13   ;;  %s10267_s12 = sphi %s10374_s12, %s15041_s12  }
  0x14   : > { %14125 = sst [smem:[#allocation15_spill]] %s10271_s13  ;;  %s37_s5 = sadd.s32 1, %s10331_s28 }
  0x15   : > { %14126 = sst [smem:[#allocation16_spill]] %s10279_s15  ;;  %p35_p0 = scmp.ge.s32.totalorder %s34_s4, 2 }
  0x16   : > { %14127 = sst [smem:[#allocation17_spill]] %s10283_s16  ;;  %p13886_p1 = scmp.eq.s32.totalorder %s10339_s30, 0 }
  0x17   : > { %14128 = sst [smem:[#allocation18_spill]] %s10291_s18  ;;  %s78_s6 = sadd.s32 1, %s10299_s20 }
  0x18   : > { %14129 = sst [smem:[#allocation19_spill]] %s10295_s19  ;;  %p85_p2 = scmp.ne.s32.totalorder %s10299_s20, %s10295_s19 }
  0x19   : > { %14130 = sst [smem:[#allocation20_spill]] %s10299_s20  ;;  %s15064_s4 = smov (%p35_p0, %s34_s4), 0 }
  0x1a   : > { %14131 = sst [smem:[#allocation21_spill]] %s10315_s24  ;;  %s15066_s5 = smov (!%p35_p0, %s37_s5), %s10331_s28 }
  0x1b   : > { %14132 = sst [smem:[#allocation22_spill]] %s10319_s25  ;;  %s10482_s7 = ssub.s32 %s10327_s27, %s15064_s4 }
  0x1c   : > { %14133 = sst [smem:[#allocation23_spill]] %s10323_s26  ;;  %p10486_p3 = por %p85_p2, %p13886_p1 }
  0x1d   : > { %14134 = sst [smem:[#allocation24_spill]] %s10327_s27  ;;  %p39_p4 = scmp.ge.s32.totalorder %s15066_s5, 2 }
  0x1e   : > { %14135 = sst [smem:[#allocation25_spill]] %s15064_s4  ;;  %p91_p5 = scmp.ne.s32.totalorder %s10295_s19, %s10291_s18 }
  0x1f   : > { %p13887_p6 = scmp.lt.s32.totalorder %s10339_s30, 8  ;;  %s193_s10 = sand.u32 1, %s10339_s30  }
  0x20   : > { %s10497_s9 = scalar_select %p39_p4, 0, %s15066_s5  }
  0x21   : > { %s195_s3 = sand.u32 1, %s10299_s20   ;;  %s8958_s25 = sshll.u32 %s10331_s28, 2 }
  0x22   : > { %14137 = sst [smem:[#allocation26_spill]] %s10497_s9  ;;  %s10502_s11 = ssub.s32 %s10331_s28, %s10497_s9 }
  0x23   : > { %s75_s4 = sor.u32 %s10502_s11, %s10482_s7  ;;  %s8956_s26 = sshll.u32 %s195_s3, 11 }
  0x24   : > { %p76_p7 = scmp.eq.s32.totalorder %s75_s4, 0  ;;  %s9491_s2 = sshll.u32 %s10327_s27, 10 }
  0x25   : > { %s197_s12 = scalar_lea.vmem [#allocation6], %s8956_s26  ;;  %s204_s15 = sadd.s32 %s9491_s2, %s8958_s25 }
  0x26   : > { %s10509_s24 = scalar_select %p76_p7, %s10299_s20, %s78_s6  }
  0x27   : > { %s207_s13 = sshll.u32 %s197_s12, 4  ;;  %s8960_s18 = sshll.u32 %s204_s15, 6  ;;  %s208_s13 = int_to_ptr.vmem [resolvable:$true] %s207_s13 }
  0x28   : > { %14138 = sst [smem:[#allocation27_spill]] %s10509_s24  ;;  %p10516_p8 = pnand %p13887_p6, %p10486_p3 }
  0x29   : > { %s14140_s1 = sld [smem:[#allocation356_spill]]  ;;  %s10523_s4 = scalar_lea.sflag [#allocation7], %s193_s10 }
  0x2a   : > { %14141 = sst [smem:[#allocation28_spill]] %s10523_s4  ;;  %p10065_p9 = pneg %p10516_p8 }
  0x2b   : > { %s10076_s26 = scalar_lea.vmem %s208_s13, 32768  ;;  %s10341_s2 = smov [#allocation6]  }
  0x2c   : > { %p10077_p10 = scmp.ne.s32.totalorder %s208_s13, %s10076_s26  ;;  %s10081_s12 = sshll.u32 %s10341_s2, 4  ;;  %s10082_s12 = int_to_ptr.vmem [resolvable:$false] %s10081_s12 }
  0x2d   : > { %s10083_s15 = scalar_lea.vmem %s10082_s12, 65536  ;;  %p10084_p13 = scmp.lt.s32.totalorder %s208_s13, %s10082_s12 }
  0x2e   : > { %p10079_p11 = pnand %p10077_p10, %p10065_p9  ;;  %p10085_p0 = scmp.lt.s32.totalorder %s10083_s15, %s10076_s26 }
  0x2f   : > { %s206_s3 = scalar_lea.hbm %s14140_s1, %s8960_s18 }
  0x30   : > { %p10080_p12 = pneg %p10079_p11  ;;  %p10086_p2 = por %p10085_p0, %p10084_p13 }
  0x32   : > { %p10087_p3 = pnand %p10086_p2, %p10080_p12 }
  0x34   : > { %10090 = shalt.err (!%p10087_p3)
}
  0x35   : > { %s13881_s16 = smov 512   ;;  %s10343_s18 = smov 256  }
  0x36   : > { %s10344_s25 = smov 16   ;;  %p8964_p7 = scmp.ge.s32.totalorder %s10339_s30, 1 }
  0x37   : > { %9508 = dma.hbm_to_vmem [thread:$0]  (!%p10516_p8), %s206_s3, 32768, %s208_s13, %s10523_s4, %s13881_s16, %s10343_s18, %s10344_s25  }
  0x38   : > { %p234_p9 = scmp.lt.s32.totalorder %s10339_s30, 9  ;;  %s41_s8 = sadd.s32 1, %s10335_s29 }
  0x39   : > { %s15068_s8 = smov (!%p39_p4, %s41_s8), %s10335_s29  ;;  %s50_s9 = sadd.s32 1, %s10311_s23 }
  0x3a   : > { %p10533_p10 = pnand %p8964_p7, %p234_p9  ;;  %p57_p11 = scmp.ne.s32.totalorder %s10311_s23, %s10307_s22 }
  0x3b   : > { %p43_p12 = scmp.ge.s32.totalorder %s15068_s8, 2  ;;  %p63_p13 = scmp.ne.s32.totalorder %s10307_s22, %s10303_s21 }
  0x3c   : > { %s14142_s6 = scalar_select %p10533_p10, 1, 0 }
  0x3d   : > { %p10548_p8 = por %p13886_p1, %p57_p11  ;;  %s132_s19 = sadd.s32 1, %s10275_s14 }
  0x3e   : > { %14143 = sst [smem:[#allocation29_spill]] %s14142_s6  ;;  %s15070_s8 = smov (%p43_p12, %s15068_s8), 0 }
  0x3f   : > { %s169_s10 = sand.u32 1, %s10311_s23   ;;  %s8953_s3 = sshll.u32 %s10327_s27, 3 }
  0x40   : > { %s45_s5 = ssub.s32 %s10335_s29, %s15070_s8  ;;  %s8951_s12 = sshll.u32 %s169_s10, 11 }
  0x41   : > { %s47_s26 = sor.u32 %s10482_s7, %s45_s5  ;;  %s129_s2 = sor.u32 %s10502_s11, %s45_s5 }
  0x42   : > { %p48_p4 = scmp.eq.s32.totalorder %s47_s26, 0  ;;  %p130_p0 = scmp.eq.s32.totalorder %s129_s2, 0 }
  0x43   : > { %s9490_s15 = sshll.u32 %s10335_s29, 10  ;;  %s173_s24 = scalar_lea.vmem [#allocation3], %s8951_s12 }
  0x44   : > { %s10563_s18 = scalar_select %p48_p4, %s10311_s23, %s50_s9  }
  0x45   : > { %s10566_s25 = scalar_select %p130_p0, %s10275_s14, %s132_s19  }
  0x46   : > { %s180_s16 = sadd.s32 %s9490_s15, %s8953_s3  ;;  %s183_s20 = sshll.u32 %s173_s24, 4  ;;  %s184_s20 = int_to_ptr.vmem [resolvable:$true] %s183_s20 }
  0x47   : > { %s8955_s1 = sshll.u32 %s180_s16, 6  ;;  %p10575_p2 = pnand %p13887_p6, %p10548_p8 }
  0x48   : > { %s182_s27 = scalar_lea.hbm %s13869_s0, %s8955_s1  ;;  %s170_s9 = scalar_lea.sflag [#allocation4], %s169_s10 }
  0x49   : > { %p10093_p3 = pneg %p10575_p2  ;;  %s10104_s19 = scalar_lea.vmem %s184_s20, 32768 }
  0x4a   : > { %p10105_p7 = scmp.ne.s32.totalorder %s184_s20, %s10104_s19  ;;  %s10345_s24 = smov [#allocation3]  }
  0x4b   : > { %s10109_s16 = sshll.u32 %s10345_s24, 4  ;;  %s10110_s16 = int_to_ptr.vmem [resolvable:$false] %s10109_s16 }
  0x4c   : > { %p10107_p9 = pnand %p10105_p7, %p10093_p3  ;;  %s10111_s4 = scalar_lea.vmem %s10110_s16, 65536 }
  0x4d   : > { %p10112_p12 = scmp.lt.s32.totalorder %s184_s20, %s10110_s16  ;;  %p10113_p4 = scmp.lt.s32.totalorder %s10111_s4, %s10104_s19 }
  0x4e   : > { %p10108_p11 = pneg %p10107_p9 }
  0x4f   : > { %p10114_p0 = por %p10113_p4, %p10112_p12 }
  0x51   : > { %p10115_p1 = pnand %p10114_p0, %p10108_p11 }
  0x53   : > { %10118 = shalt.err (!%p10115_p1)
}
  0x54   : > { %s10346_s1 = smov 1024   ;;  %s14146_s6 = sld [smem:[#allocation17_spill]] }
  0x55   : > { %s14149_s3 = sld [smem:[#allocation16_spill]]  ;;  %s10347_s26 = smov 32  }
  0x56   : > { %s14150_s5 = sld [smem:[#allocation15_spill]]  ;;  %s14151_s2 = smov 512  }
  0x57   : > { %s14152_s12 = sld [smem:[#allocation14_spill]]  ;;  %s10585_s15 = sadd.s32 4294967295, %s10339_s30  }
  0x58   : > { %9505 = dma.hbm_to_vmem [thread:$0]  (!%p10575_p2), %s182_s27, 32768, %s184_s20, %s170_s9, %s10346_s1, %s14151_s2, %s10347_s26  }
  0x59   : > { %s8948_s19 = sadd.s32 4294967294, %s10339_s30   ;;  %p64_p1 = scmp.eq.s32.totalorder %s10585_s15, 0 }
  0x5a   : > { %p102_p8 = scmp.eq.s32.totalorder %s10502_s11, 0  ;;  %s104_s24 = sadd.s32 1, %s10287_s17 }
  0x5b   : > { %p111_p3 = scmp.ne.s32.totalorder %s10287_s17, %s14146_s6  ;;  %p10596_p7 = por %p64_p1, %p63_p13 }
  0x5c   : > { %p10603_p9 = por %p91_p5, %p64_p1  ;;  %p14155_p2 = scmp.eq.s32.totalorder %s10339_s30, 0 }
  0x5d   : > { %s10608_s20 = scalar_select %p102_p8, %s10287_s17, %s104_s24  }
  0x5e   : > { %p10612_p11 = por %p111_p3, %p14155_p2  ;;  %p117_p12 = scmp.ne.s32.totalorder %s14146_s6, %s14149_s3 }
  0x5f   : > { %p142_p4 = scmp.ne.s32.totalorder %s10275_s14, %s14150_s5  ;;  %p143_p13 = scmp.eq.s32.totalorder %s10585_s15, 7 }
  0x60   : > { %p10621_p0 = por %p117_p12, %p64_p1  ;;  %p148_p5 = scmp.ne.s32.totalorder %s14150_s5, %s14152_s12 }
  0x61   : > { %p10627_p6 = por %p143_p13, %p142_p4  ;;  %p149_p8 = scmp.eq.s32.totalorder %s8948_s19, 7 }
  0x62   : > { %s14157_s21 = scalar_select %p10621_p0, 1, 0 }
  0x63   : > { %s14158_s11 = scalar_select %p10627_p6, 1, 0 }
  0x64   : > { %s219_s9 = sand.u32 1, %s10287_s17   ;;  %s9492_s4 = sshll.u32 %s10331_s28, 6 }
  0x65   : > { %p10633_p3 = por %p149_p8, %p148_p5  ;;  %s8961_s13 = sshll.u32 %s219_s9, 2 }
  0x66   : > { %s14160_s3 = sld [smem:[#allocation357_spill]]  ;;  %s221_s2 = scalar_lea.vmem [#allocation8], %s8961_s13 }
  0x67   : > { %s14159_s1 = scalar_select %p10633_p3, 1, 0 }
  0x68   : > { %s229_s24 = sshll.u32 %s221_s2, 4  ;;  %p14161_p1 = scmp.lt.s32.totalorder %s10339_s30, 8  ;;  %s230_s24 = int_to_ptr.vmem [resolvable:$true] %s229_s24 }
  0x69   : > { %s10132_s12 = scalar_lea.vmem %s230_s24, 64  ;;  %s10348_s19 = smov [#allocation8]  }
  0x6a   : > { %p10644_p2 = pnand %p14161_p1, %p10612_p11  ;;  %p10133_p4 = scmp.ne.s32.totalorder %s230_s24, %s10132_s12 }
  0x6b   : > { %s10137_s9 = sshll.u32 %s10348_s19, 4  ;;  %s10138_s9 = int_to_ptr.vmem [resolvable:$false] %s10137_s9 }
  0x6c   : > { %s227_s26 = scalar_lea.hbm %s14160_s3, %s9492_s4  ;;  %p10121_p12 = pneg %p10644_p2 }
  0x6d   : > { %s10139_s4 = scalar_lea.vmem %s10138_s9, 128  ;;  %p10140_p8 = scmp.lt.s32.totalorder %s230_s24, %s10138_s9 }
  0x6e   : > { %p10135_p13 = pnand %p10133_p4, %p10121_p12  ;;  %p10141_p3 = scmp.lt.s32.totalorder %s10139_s4, %s10132_s12 }
  0x70   : > { %p10136_p5 = pneg %p10135_p13  ;;  %p10142_p6 = por %p10141_p3, %p10140_p8 }
  0x72   : > { %p10143_p0 = pnand %p10142_p6, %p10136_p5 }
  0x74   : > { %10146 = shalt.err (!%p10143_p0)
}
  0x75   : > { %s14163_s27 = sld [smem:[#allocation28_spill]] }
  0x77   : > { %238 = sbr.rel (%p10533_p10) target bundleno = 1877 (0x755), region = 32 }
  0x7b   : > { %9511 = dma.hbm_to_vmem [thread:$0]  (!%p10644_p2), %s227_s26, 64, %s230_s24, %s14163_s27  }
  0x7c   : > { %s240_s6 = sand.u32 1, %s10307_s22  }
  0x7d   : > { %s8965_s10 = sshll.u32 %s240_s6, 11  ;;  %s241_s3 = scalar_lea.sflag [#allocation4], %s240_s6 }
  0x7e   : > { %s10656_s2 = scalar_lea.vmem [#allocation3], %s8965_s10 }
  0x7f   : > { %10250 = dma.done.wait (%p10596_p7), %s241_s3, 32768  }
  0x80   : > { %10252 = vsyncadd (%p10596_p7), %s241_s3, 4294934528  ;;  %s14165_s12 = sld [smem:[#allocation19_spill]]  ;;  %s249_s5 = sand.u32 1, %s10585_s15  }
  0x81   : > { %s250_s19 = scalar_lea.sflag [#allocation7], %s249_s5 }
  0x86   : > { %s251_s26 = sand.u32 1, %s14165_s12  }
  0x87   : > { %s8966_s24 = sshll.u32 %s251_s26, 11 }
  0x88   : > { %s10664_s9 = scalar_lea.vmem [#allocation6], %s8966_s24 }
  0x89   : > { %10254 = dma.done.wait (%p10603_p9), %s250_s19, 32768  }
  0x8a   : > { %10256 = vsyncadd (%p10603_p9), %s250_s19, 4294934528  ;;  %s14166_s4 = sld [smem:[#allocation17_spill]]  ;;  %p14167_p6 = scmp.ne.s32.totalorder %s14157_s21, 0 }
  0x90   : > { %s260_s27 = sand.u32 1, %s14166_s4  }
  0x91   : > { %s10671_s13 = sshll.u32 %s260_s27, 2 }
  0x92   : > { %s262_s16 = scalar_lea.vmem [#allocation8], %s10671_s13 }
  0x93   : > { %10258 = dma.done.wait (%p14167_p6), %s250_s19, 64  }
  0x94   : > { %10260 = vsyncadd (%p14167_p6), %s250_s19, 4294967232  ;;  %s14168_s15 = sld [smem:[#allocation15_spill]] }
  0x95   : > { %s14169_s7 = sld [smem:[#allocation21_spill]] }
  0x9a   : > { %s292_s6 = sand.u32 1, %s14168_s15  }
  0x9b   : > { %s8968_s10 = sshll.u32 %s292_s6, 11  ;;  %p8969_p10 = scmp.ne.s32.totalorder %s14169_s7, 0 }
  0x9c   : > { %s10681_s3 = scalar_lea.vmem [#allocation9], %s8968_s10 }
  0x9d   : > { %305 = sbr.rel (%p8969_p10) target bundleno = 291 (0x123), region = 48 }
  0xa2   : > { %v10349_v0 = vmov 0.0  }
  0xa3   : > { %306 = vst [vmem:[#allocation2 + $0x2b0] sm:$0xff] %v10349_v0  ;;  %307 = vst [vmem:[#allocation2 + $0x3b0] sm:$0xff] %v10349_v0 }
  0xa4   : > { %308 = vst [vmem:[#allocation2 + $0x4d8] sm:$0xff] %v10349_v0  ;;  %309 = vst [vmem:[#allocation2 + $0x18] sm:$0xff] %v10349_v0 }
  0xa5   : > { %310 = vst [vmem:[#allocation2 + $0x450] sm:$0xff] %v10349_v0  ;;  %311 = vst [vmem:[#allocation2 + $0x768] sm:$0xff] %v10349_v0 }
  0xa6   : > { %312 = vst [vmem:[#allocation2 + $0x330] sm:$0xff] %v10349_v0  ;;  %313 = vst [vmem:[#allocation2 + $0x448] sm:$0xff] %v10349_v0 }
  0xa7   : > { %314 = vst [vmem:[#allocation2 + $0x380] sm:$0xff] %v10349_v0  ;;  %315 = vst [vmem:[#allocation2 + $0x110] sm:$0xff] %v10349_v0 }
  0xa8   : > { %316 = vst [vmem:[#allocation2 + $0x518] sm:$0xff] %v10349_v0  ;;  %317 = vst [vmem:[#allocation2 + $0x498] sm:$0xff] %v10349_v0 }
  0xa9   : > { %318 = vst [vmem:[#allocation2 + $0x320] sm:$0xff] %v10349_v0  ;;  %319 = vst [vmem:[#allocation2 + $0x550] sm:$0xff] %v10349_v0 }
  0xaa   : > { %320 = vst [vmem:[#allocation2 + $0x508] sm:$0xff] %v10349_v0  ;;  %321 = vst [vmem:[#allocation2 + $0x720] sm:$0xff] %v10349_v0 }
  0xab   : > { %322 = vst [vmem:[#allocation2 + $0x6e0] sm:$0xff] %v10349_v0  ;;  %323 = vst [vmem:[#allocation2 + $0x788] sm:$0xff] %v10349_v0 }
  0xac   : > { %324 = vst [vmem:[#allocation2 + $0x338] sm:$0xff] %v10349_v0  ;;  %325 = vst [vmem:[#allocation2 + $0x740] sm:$0xff] %v10349_v0 }
  0xad   : > { %326 = vst [vmem:[#allocation2 + $0x2e0] sm:$0xff] %v10349_v0  ;;  %327 = vst [vmem:[#allocation2 + $0x5a8] sm:$0xff] %v10349_v0 }
  0xae   : > { %328 = vst [vmem:[#allocation2 + $0x5b8] sm:$0xff] %v10349_v0  ;;  %329 = vst [vmem:[#allocation2 + $0x568] sm:$0xff] %v10349_v0 }
  0xaf   : > { %330 = vst [vmem:[#allocation2 + $0x3e8] sm:$0xff] %v10349_v0  ;;  %331 = vst [vmem:[#allocation2 + $0x6f8] sm:$0xff] %v10349_v0 }
  0xb0   : > { %332 = vst [vmem:[#allocation2 + $0x690] sm:$0xff] %v10349_v0  ;;  %333 = vst [vmem:[#allocation2 + $0x368] sm:$0xff] %v10349_v0 }
  0xb1   : > { %334 = vst [vmem:[#allocation2 + $0x138] sm:$0xff] %v10349_v0  ;;  %335 = vst [vmem:[#allocation2 + $0xc0] sm:$0xff] %v10349_v0 }
  0xb2   : > { %336 = vst [vmem:[#allocation2 + $0x1c0] sm:$0xff] %v10349_v0  ;;  %337 = vst [vmem:[#allocation2 + $0x280] sm:$0xff] %v10349_v0 }
  0xb3   : > { %338 = vst [vmem:[#allocation2 + $0x100] sm:$0xff] %v10349_v0  ;;  %339 = vst [vmem:[#allocation2 + $0x3c0] sm:$0xff] %v10349_v0 }
  0xb4   : > { %340 = vst [vmem:[#allocation2 + $0x558] sm:$0xff] %v10349_v0  ;;  %341 = vst [vmem:[#allocation2 + $0x3e0] sm:$0xff] %v10349_v0 }
  0xb5   : > { %342 = vst [vmem:[#allocation2 + $0x618] sm:$0xff] %v10349_v0  ;;  %343 = vst [vmem:[#allocation2 + $0x4c0] sm:$0xff] %v10349_v0 }
  0xb6   : > { %344 = vst [vmem:[#allocation2 + $0x70] sm:$0xff] %v10349_v0  ;;  %345 = vst [vmem:[#allocation2 + $0x7b8] sm:$0xff] %v10349_v0 }
  0xb7   : > { %346 = vst [vmem:[#allocation2 + $0x400] sm:$0xff] %v10349_v0  ;;  %347 = vst [vmem:[#allocation2 + $0x6a8] sm:$0xff] %v10349_v0 }
  0xb8   : > { %348 = vst [vmem:[#allocation2 + $0x3f8] sm:$0xff] %v10349_v0  ;;  %349 = vst [vmem:[#allocation2 + $0x2e8] sm:$0xff] %v10349_v0 }
  0xb9   : > { %350 = vst [vmem:[#allocation2 + $0x6c8] sm:$0xff] %v10349_v0  ;;  %351 = vst [vmem:[#allocation2 + $0x5c0] sm:$0xff] %v10349_v0 }
  0xba   : > { %352 = vst [vmem:[#allocation2 + $0x5e8] sm:$0xff] %v10349_v0  ;;  %353 = vst [vmem:[#allocation2 + $0x5f8] sm:$0xff] %v10349_v0 }
  0xbb   : > { %354 = vst [vmem:[#allocation2 + $0x770] sm:$0xff] %v10349_v0  ;;  %355 = vst [vmem:[#allocation2 + $0x520] sm:$0xff] %v10349_v0 }
  0xbc   : > { %356 = vst [vmem:[#allocation2 + $0x640] sm:$0xff] %v10349_v0  ;;  %357 = vst [vmem:[#allocation2 + $0x250] sm:$0xff] %v10349_v0 }
  0xbd   : > { %358 = vst [vmem:[#allocation2 + $0x348] sm:$0xff] %v10349_v0  ;;  %359 = vst [vmem:[#allocation2 + $0x420] sm:$0xff] %v10349_v0 }
  0xbe   : > { %360 = vst [vmem:[#allocation2 + $0xe0] sm:$0xff] %v10349_v0  ;;  %361 = vst [vmem:[#allocation2 + $0x620] sm:$0xff] %v10349_v0 }
  0xbf   : > { %362 = vst [vmem:[#allocation2 + $0x148] sm:$0xff] %v10349_v0  ;;  %363 = vst [vmem:[#allocation2 + $0x3a0] sm:$0xff] %v10349_v0 }
  0xc0   : > { %364 = vst [vmem:[#allocation2 + $0x4e8] sm:$0xff] %v10349_v0  ;;  %365 = vst [vmem:[#allocation2 + $0x310] sm:$0xff] %v10349_v0 }
  0xc1   : > { %366 = vst [vmem:[#allocation2 + $0x38] sm:$0xff] %v10349_v0  ;;  %367 = vst [vmem:[#allocation2 + $0x440] sm:$0xff] %v10349_v0 }
  0xc2   : > { %368 = vst [vmem:[#allocation2 + $0x50] sm:$0xff] %v10349_v0  ;;  %369 = vst [vmem:[#allocation2 + $0x390] sm:$0xff] %v10349_v0 }
  0xc3   : > { %370 = vst [vmem:[#allocation2 + $0x538] sm:$0xff] %v10349_v0  ;;  %371 = vst [vmem:[#allocation2 + $0xf0] sm:$0xff] %v10349_v0 }
  0xc4   : > { %372 = vst [vmem:[#allocation2 + $0x790] sm:$0xff] %v10349_v0  ;;  %373 = vst [vmem:[#allocation2 + $0x680] sm:$0xff] %v10349_v0 }
  0xc5   : > { %374 = vst [vmem:[#allocation2 + $0xb8] sm:$0xff] %v10349_v0  ;;  %375 = vst [vmem:[#allocation2 + $0x120] sm:$0xff] %v10349_v0 }
  0xc6   : > { %376 = vst [vmem:[#allocation2 + $0xd0] sm:$0xff] %v10349_v0  ;;  %377 = vst [vmem:[#allocation2 + $0x40] sm:$0xff] %v10349_v0 }
  0xc7   : > { %378 = vst [vmem:[#allocation2 + $0x6f0] sm:$0xff] %v10349_v0  ;;  %379 = vst [vmem:[#allocation2 + $0x2f8] sm:$0xff] %v10349_v0 }
  0xc8   : > { %380 = vst [vmem:[#allocation2 + $0x758] sm:$0xff] %v10349_v0  ;;  %381 = vst [vmem:[#allocation2 + $0x178] sm:$0xff] %v10349_v0 }
  0xc9   : > { %382 = vst [vmem:[#allocation2 + $0x738] sm:$0xff] %v10349_v0  ;;  %383 = vst [vmem:[#allocation2 + $0x598] sm:$0xff] %v10349_v0 }
  0xca   : > { %384 = vst [vmem:[#allocation2 + $0x7d8] sm:$0xff] %v10349_v0  ;;  %385 = vst [vmem:[#allocation2 + $0x6d8] sm:$0xff] %v10349_v0 }
  0xcb   : > { %386 = vst [vmem:[#allocation2 + $0x398] sm:$0xff] %v10349_v0  ;;  %387 = vst [vmem:[#allocation2 + $0x1a8] sm:$0xff] %v10349_v0 }
  0xcc   : > { %388 = vst [vmem:[#allocation2 + $0x698] sm:$0xff] %v10349_v0  ;;  %389 = vst [vmem:[#allocation2 + $0x3b8] sm:$0xff] %v10349_v0 }
  0xcd   : > { %390 = vst [vmem:[#allocation2 + $0x5d8] sm:$0xff] %v10349_v0  ;;  %391 = vst [vmem:[#allocation2 + $0x610] sm:$0xff] %v10349_v0 }
  0xce   : > { %392 = vst [vmem:[#allocation2 + $0x218] sm:$0xff] %v10349_v0  ;;  %393 = vst [vmem:[#allocation2 + $0x1d8] sm:$0xff] %v10349_v0 }
  0xcf   : > { %394 = vst [vmem:[#allocation2 + $0x628] sm:$0xff] %v10349_v0  ;;  %395 = vst [vmem:[#allocation2 + $0x1f8] sm:$0xff] %v10349_v0 }
  0xd0   : > { %396 = vst [vmem:[#allocation2 + $0x388] sm:$0xff] %v10349_v0  ;;  %397 = vst [vmem:[#allocation2 + $0x278] sm:$0xff] %v10349_v0 }
  0xd1   : > { %398 = vst [vmem:[#allocation2 + $0x478] sm:$0xff] %v10349_v0  ;;  %399 = vst [vmem:[#allocation2 + $0x2c0] sm:$0xff] %v10349_v0 }
  0xd2   : > { %400 = vst [vmem:[#allocation2 + $0x1c8] sm:$0xff] %v10349_v0  ;;  %401 = vst [vmem:[#allocation2 + $0x7c0] sm:$0xff] %v10349_v0 }
  0xd3   : > { %402 = vst [vmem:[#allocation2 + $0x418] sm:$0xff] %v10349_v0  ;;  %403 = vst [vmem:[#allocation2 + $0x7f0] sm:$0xff] %v10349_v0 }
  0xd4   : > { %404 = vst [vmem:[#allocation2 + $0x4b0] sm:$0xff] %v10349_v0  ;;  %405 = vst [vmem:[#allocation2 + $0x318] sm:$0xff] %v10349_v0 }
  0xd5   : > { %406 = vst [vmem:[#allocation2 + $0x90] sm:$0xff] %v10349_v0  ;;  %407 = vst [vmem:[#allocation2 + $0x540] sm:$0xff] %v10349_v0 }
  0xd6   : > { %408 = vst [vmem:[#allocation2 + $0x588] sm:$0xff] %v10349_v0  ;;  %409 = vst [vmem:[#allocation2 + $0x648] sm:$0xff] %v10349_v0 }
  0xd7   : > { %410 = vst [vmem:[#allocation2 + $0x58] sm:$0xff] %v10349_v0  ;;  %411 = vst [vmem:[#allocation2 + $0x198] sm:$0xff] %v10349_v0 }
  0xd8   : > { %412 = vst [vmem:[#allocation2 + $0x68] sm:$0xff] %v10349_v0  ;;  %413 = vst [vmem:[#allocation2 + $0x600] sm:$0xff] %v10349_v0 }
  0xd9   : > { %414 = vst [vmem:[#allocation2 + $0x3a8] sm:$0xff] %v10349_v0  ;;  %415 = vst [vmem:[#allocation2 + $0xb0] sm:$0xff] %v10349_v0 }
  0xda   : > { %416 = vst [vmem:[#allocation2 + $0x630] sm:$0xff] %v10349_v0  ;;  %417 = vst [vmem:[#allocation2 + $0x158] sm:$0xff] %v10349_v0 }
  0xdb   : > { %418 = vst [vmem:[#allocation2 + $0x370] sm:$0xff] %v10349_v0  ;;  %419 = vst [vmem:[#allocation2 + $0x1e0] sm:$0xff] %v10349_v0 }
  0xdc   : > { %420 = vst [vmem:[#allocation2 + $0x7b0] sm:$0xff] %v10349_v0  ;;  %421 = vst [vmem:[#allocation2 + $0x6c0] sm:$0xff] %v10349_v0 }
  0xdd   : > { %422 = vst [vmem:[#allocation2 + $0xd8] sm:$0xff] %v10349_v0  ;;  %423 = vst [vmem:[#allocation2 + $0x6b8] sm:$0xff] %v10349_v0 }
  0xde   : > { %424 = vst [vmem:[#allocation2 + $0x140] sm:$0xff] %v10349_v0  ;;  %425 = vst [vmem:[#allocation2 + $0x5b0] sm:$0xff] %v10349_v0 }
  0xdf   : > { %426 = vst [vmem:[#allocation2 + $0x30] sm:$0xff] %v10349_v0  ;;  %427 = vst [vmem:[#allocation2 + $0x128] sm:$0xff] %v10349_v0 }
  0xe0   : > { %428 = vst [vmem:[#allocation2 + $0x1a0] sm:$0xff] %v10349_v0  ;;  %429 = vst [vmem:[#allocation2 + $0x5f0] sm:$0xff] %v10349_v0 }
  0xe1   : > { %430 = vst [vmem:[#allocation2 + $0x670] sm:$0xff] %v10349_v0  ;;  %431 = vst [vmem:[#allocation2 + $0x240] sm:$0xff] %v10349_v0 }
  0xe2   : > { %432 = vst [vmem:[#allocation2 + $0x118] sm:$0xff] %v10349_v0  ;;  %433 = vst [vmem:[#allocation2 + $0x268] sm:$0xff] %v10349_v0 }
  0xe3   : > { %434 = vst [vmem:[#allocation2 + $0x4a8] sm:$0xff] %v10349_v0  ;;  %435 = vst [vmem:[#allocation2 + $0x5c8] sm:$0xff] %v10349_v0 }
  0xe4   : > { %436 = vst [vmem:[#allocation2 + $0x438] sm:$0xff] %v10349_v0  ;;  %437 = vst [vmem:[#allocation2 + $0x350] sm:$0xff] %v10349_v0 }
  0xe5   : > { %438 = vst [vmem:[#allocation2 + $0x2c8] sm:$0xff] %v10349_v0  ;;  %439 = vst [vmem:[#allocation2 + $0xf8] sm:$0xff] %v10349_v0 }
  0xe6   : > { %440 = vst [vmem:[#allocation2 + $0x488] sm:$0xff] %v10349_v0  ;;  %441 = vst [vmem:[#allocation2 + $0x6a0] sm:$0xff] %v10349_v0 }
  0xe7   : > { %442 = vst [vmem:[#allocation2 + $0x3c8] sm:$0xff] %v10349_v0  ;;  %443 = vst [vmem:[#allocation2 + $0x1e8] sm:$0xff] %v10349_v0 }
  0xe8   : > { %444 = vst [vmem:[#allocation2 + $0x6d0] sm:$0xff] %v10349_v0  ;;  %445 = vst [vmem:[#allocation2 + $0x688] sm:$0xff] %v10349_v0 }
  0xe9   : > { %446 = vst [vmem:[#allocation2 + $0x730] sm:$0xff] %v10349_v0  ;;  %447 = vst [vmem:[#allocation2 + $0x658] sm:$0xff] %v10349_v0 }
  0xea   : > { %448 = vst [vmem:[#allocation2 + $0x458] sm:$0xff] %v10349_v0  ;;  %449 = vst [vmem:[#allocation2 + $0x1b8] sm:$0xff] %v10349_v0 }
  0xeb   : > { %450 = vst [vmem:[#allocation2 + $0x460] sm:$0xff] %v10349_v0  ;;  %451 = vst [vmem:[#allocation2 + $0x4f0] sm:$0xff] %v10349_v0 }
  0xec   : > { %452 = vst [vmem:[#allocation2 + $0x528] sm:$0xff] %v10349_v0  ;;  %453 = vst [vmem:[#allocation2 + $0x258] sm:$0xff] %v10349_v0 }
  0xed   : > { %454 = vst [vmem:[#allocation2 + $0x4d0] sm:$0xff] %v10349_v0  ;;  %455 = vst [vmem:[#allocation2 + $0x4f8] sm:$0xff] %v10349_v0 }
  0xee   : > { %456 = vst [vmem:[#allocation2 + $0x78] sm:$0xff] %v10349_v0  ;;  %457 = vst [vmem:[#allocation2 + $0x2a0] sm:$0xff] %v10349_v0 }
  0xef   : > { %458 = vst [vmem:[#allocation2 + $0x10] sm:$0xff] %v10349_v0  ;;  %459 = vst [vmem:[#allocation2 + $0x778] sm:$0xff] %v10349_v0 }
  0xf0   : > { %460 = vst [vmem:[#allocation2 + $0x7a8] sm:$0xff] %v10349_v0  ;;  %461 = vst [vmem:[#allocation2 + $0x530] sm:$0xff] %v10349_v0 }
  0xf1   : > { %462 = vst [vmem:[#allocation2 + $0x590] sm:$0xff] %v10349_v0  ;;  %463 = vst [vmem:[#allocation2 + $0x660] sm:$0xff] %v10349_v0 }
  0xf2   : > { %464 = vst [vmem:[#allocation2 + $0x358] sm:$0xff] %v10349_v0  ;;  %465 = vst [vmem:[#allocation2 + $0x700] sm:$0xff] %v10349_v0 }
  0xf3   : > { %466 = vst [vmem:[#allocation2 + $0x340] sm:$0xff] %v10349_v0  ;;  %467 = vst [vmem:[#allocation2 + $0x5a0] sm:$0xff] %v10349_v0 }
  0xf4   : > { %468 = vst [vmem:[#allocation2 + $0x3d0] sm:$0xff] %v10349_v0  ;;  %469 = vst [vmem:[#allocation2 + $0x230] sm:$0xff] %v10349_v0 }
  0xf5   : > { %470 = vst [vmem:[#allocation2 + $0x560] sm:$0xff] %v10349_v0  ;;  %471 = vst [vmem:[#allocation2 + $0x7f8] sm:$0xff] %v10349_v0 }
  0xf6   : > { %472 = vst [vmem:[#allocation2 + $0x4e0] sm:$0xff] %v10349_v0  ;;  %473 = vst [vmem:[#allocation2 + $0x200] sm:$0xff] %v10349_v0 }
  0xf7   : > { %474 = vst [vmem:[#allocation2 + $0x468] sm:$0xff] %v10349_v0  ;;  %475 = vst [vmem:[#allocation2 + $0x2a8] sm:$0xff] %v10349_v0 }
  0xf8   : > { %476 = vst [vmem:[#allocation2 + $0x1d0] sm:$0xff] %v10349_v0  ;;  %477 = vst [vmem:[#allocation2 + $0x510] sm:$0xff] %v10349_v0 }
  0xf9   : > { %478 = vst [vmem:[#allocation2 + $0x750] sm:$0xff] %v10349_v0  ;;  %479 = vst [vmem:[#allocation2 + $0x130] sm:$0xff] %v10349_v0 }
  0xfa   : > { %480 = vst [vmem:[#allocation2 + $0x28] sm:$0xff] %v10349_v0  ;;  %481 = vst [vmem:[#allocation2 + $0x760] sm:$0xff] %v10349_v0 }
  0xfb   : > { %482 = vst [vmem:[#allocation2 + $0x5d0] sm:$0xff] %v10349_v0  ;;  %483 = vst [vmem:[#allocation2 + $0x228] sm:$0xff] %v10349_v0 }
  0xfc   : > { %484 = vst [vmem:[#allocation2 + $0x208] sm:$0xff] %v10349_v0  ;;  %485 = vst [vmem:[#allocation2 + $0x290] sm:$0xff] %v10349_v0 }
  0xfd   : > { %486 = vst [vmem:[#allocation2 + $0x7a0] sm:$0xff] %v10349_v0  ;;  %487 = vst [vmem:[#allocation2 + $0x80] sm:$0xff] %v10349_v0 }
  0xfe   : > { %488 = vst [vmem:[#allocation2 + $0x4c8] sm:$0xff] %v10349_v0  ;;  %489 = vst [vmem:[#allocation2 + $0x3f0] sm:$0xff] %v10349_v0 }
  0xff   : > { %490 = vst [vmem:[#allocation2 + $0x798] sm:$0xff] %v10349_v0  ;;  %491 = vst [vmem:[#allocation2 + $0x378] sm:$0xff] %v10349_v0 }
 0x100   : > { %492 = vst [vmem:[#allocation2 + $0x160] sm:$0xff] %v10349_v0  ;;  %493 = vst [vmem:[#allocation2 + $0x260] sm:$0xff] %v10349_v0 }
 0x101   : > { %494 = vst [vmem:[#allocation2 + $0x728] sm:$0xff] %v10349_v0  ;;  %495 = vst [vmem:[#allocation2 + $0x288] sm:$0xff] %v10349_v0 }
 0x102   : > { %496 = vst [vmem:[#allocation2 + $0x188] sm:$0xff] %v10349_v0  ;;  %497 = vst [vmem:[#allocation2 + $0x408] sm:$0xff] %v10349_v0 }
 0x103   : > { %498 = vst [vmem:[#allocation2 + $0x678] sm:$0xff] %v10349_v0  ;;  %499 = vst [vmem:[#allocation2 + $0x98] sm:$0xff] %v10349_v0 }
 0x104   : > { %500 = vst [vmem:[#allocation2 + $0x470] sm:$0xff] %v10349_v0  ;;  %501 = vst [vmem:[#allocation2 + $0x410] sm:$0xff] %v10349_v0 }
 0x105   : > { %502 = vst [vmem:[#allocation2 + $0x248] sm:$0xff] %v10349_v0  ;;  %503 = vst [vmem:[#allocation2 + $0x548] sm:$0xff] %v10349_v0 }
 0x106   : > { %504 = vst [vmem:[#allocation2 + $0x220] sm:$0xff] %v10349_v0  ;;  %505 = vst [vmem:[#allocation2 + $0x780] sm:$0xff] %v10349_v0 }
 0x107   : > { %506 = vst [vmem:[#allocation2 + $0x708] sm:$0xff] %v10349_v0  ;;  %507 = vst [vmem:[#allocation2 + $0x8] sm:$0xff] %v10349_v0 }
 0x108   : > { %508 = vst [vmem:[#allocation2 + $0x428] sm:$0xff] %v10349_v0  ;;  %509 = vst [vmem:[#allocation2 + $0x170] sm:$0xff] %v10349_v0 }
 0x109   : > { %510 = vst [vmem:[#allocation2 + $0x7e0] sm:$0xff] %v10349_v0  ;;  %511 = vst [vmem:[#allocation2 + $0x20] sm:$0xff] %v10349_v0 }
 0x10a   : > { %512 = vst [vmem:[#allocation2 + $0x308] sm:$0xff] %v10349_v0  ;;  %513 = vst [vmem:[#allocation2 + $0x88] sm:$0xff] %v10349_v0 }
 0x10b   : > { %514 = vst [vmem:[#allocation2 + $0x6e8] sm:$0xff] %v10349_v0  ;;  %515 = vst [vmem:[#allocation2 + $0x6b0] sm:$0xff] %v10349_v0 }
 0x10c   : > { %516 = vst [vmem:[#allocation2 + $0x300] sm:$0xff] %v10349_v0  ;;  %517 = vst [vmem:[#allocation2 + $0x108] sm:$0xff] %v10349_v0 }
 0x10d   : > { %518 = vst [vmem:[#allocation2 + $0x180] sm:$0xff] %v10349_v0  ;;  %519 = vst [vmem:[#allocation2 + $0x490] sm:$0xff] %v10349_v0 }
 0x10e   : > { %520 = vst [vmem:[#allocation2 + $0x570] sm:$0xff] %v10349_v0  ;;  %521 = vst [vmem:[#allocation2 + $0x500] sm:$0xff] %v10349_v0 }
 0x10f   : > { %522 = vst [vmem:[#allocation2 + $0xe8] sm:$0xff] %v10349_v0  ;;  %523 = vst [vmem:[#allocation2 + $0x2f0] sm:$0xff] %v10349_v0 }
 0x110   : > { %524 = vst [vmem:[#allocation2 + $0x7e8] sm:$0xff] %v10349_v0  ;;  %525 = vst [vmem:[#allocation2 + $0x360] sm:$0xff] %v10349_v0 }
 0x111   : > { %526 = vst [vmem:[#allocation2 + $0x60] sm:$0xff] %v10349_v0  ;;  %527 = vst [vmem:[#allocation2 + $0x210] sm:$0xff] %v10349_v0 }
 0x112   : > { %528 = vst [vmem:[#allocation2 + $0x4a0] sm:$0xff] %v10349_v0  ;;  %529 = vst [vmem:[#allocation2 + $0x748] sm:$0xff] %v10349_v0 }
 0x113   : > { %530 = vst [vmem:[#allocation2 + $0x168] sm:$0xff] %v10349_v0  ;;  %531 = vst [vmem:[#allocation2 + $0x668] sm:$0xff] %v10349_v0 }
 0x114   : > { %532 = vst [vmem:[#allocation2 + $0x270] sm:$0xff] %v10349_v0  ;;  %533 = vst [vmem:[#allocation2 + $0x2d8] sm:$0xff] %v10349_v0 }
 0x115   : > { %534 = vst [vmem:[#allocation2 + $0xc8] sm:$0xff] %v10349_v0  ;;  %535 = vst [vmem:[#allocation2 + $0xa0] sm:$0xff] %v10349_v0 }
 0x116   : > { %536 = vst [vmem:[#allocation2 + $0x48] sm:$0xff] %v10349_v0  ;;  %537 = vst [vmem:[#allocation2 + $0x328] sm:$0xff] %v10349_v0 }
 0x117   : > { %538 = vst [vmem:[#allocation2 + $0x7c8] sm:$0xff] %v10349_v0  ;;  %539 = vst [vmem:[#allocation2 + $0x430] sm:$0xff] %v10349_v0 }
 0x118   : > { %540 = vst [vmem:[#allocation2 + $0x578] sm:$0xff] %v10349_v0  ;;  %541 = vst [vmem:[#allocation2 + $0x608] sm:$0xff] %v10349_v0 }
 0x119   : > { %542 = vst [vmem:[#allocation2 + $0x638] sm:$0xff] %v10349_v0  ;;  %543 = vst [vmem:[#allocation2 + $0x4b8] sm:$0xff] %v10349_v0 }
 0x11a   : > { %544 = vst [vmem:[#allocation2 + $0x298] sm:$0xff] %v10349_v0  ;;  %545 = vst [vmem:[#allocation2 + $0x1f0] sm:$0xff] %v10349_v0 }
 0x11b   : > { %546 = vst [vmem:[#allocation2] sm:$0xff] %v10349_v0  ;;  %547 = vst [vmem:[#allocation2 + $0x2d0] sm:$0xff] %v10349_v0 }
 0x11c   : > { %548 = vst [vmem:[#allocation2 + $0x650] sm:$0xff] %v10349_v0  ;;  %549 = vst [vmem:[#allocation2 + $0x480] sm:$0xff] %v10349_v0 }
 0x11d   : > { %550 = vst [vmem:[#allocation2 + $0x3d8] sm:$0xff] %v10349_v0  ;;  %551 = vst [vmem:[#allocation2 + $0x718] sm:$0xff] %v10349_v0 }
 0x11e   : > { %552 = vst [vmem:[#allocation2 + $0x7d0] sm:$0xff] %v10349_v0  ;;  %553 = vst [vmem:[#allocation2 + $0x190] sm:$0xff] %v10349_v0 }
 0x11f   : > { %554 = vst [vmem:[#allocation2 + $0x710] sm:$0xff] %v10349_v0  ;;  %555 = vst [vmem:[#allocation2 + $0xa8] sm:$0xff] %v10349_v0 }
 0x120   : > { %556 = vst [vmem:[#allocation2 + $0x2b8] sm:$0xff] %v10349_v0  ;;  %557 = vst [vmem:[#allocation2 + $0x238] sm:$0xff] %v10349_v0 }
 0x121   : > { %558 = vst [vmem:[#allocation2 + $0x1b0] sm:$0xff] %v10349_v0  ;;  %559 = vst [vmem:[#allocation2 + $0x5e0] sm:$0xff] %v10349_v0 }
 0x122   : > { %560 = vst [vmem:[#allocation2 + $0x580] sm:$0xff] %v10349_v0  ;;  %561 = vst [vmem:[#allocation2 + $0x150] sm:$0xff] %v10349_v0 }
 0x123 PF: > { %v9679_v1 = vld [vmem:[%s10664_s9 + $0xe4] ss:$16 sps:$4 sm:$0xff]   ;;  %v9683_v3 = vld [vmem:[%s10664_s9 + $0xe0] ss:$16 sps:$4 sm:$0xff]   ;;  %v819_v51 = vld [vmem:[%s10656_s2 + $0x8] sm:$0xff]  ;;  %s15030_s21 = sld [smem:[#allocation21_spill]] }
 0x124   : > { %v9681_v2 = vld [vmem:[%s10664_s9 + $0x2e4] ss:$16 sps:$4 sm:$0xff]   ;;  %3890 = vmatprep.subr.bf16.mxu0 %v9679_v1  ;;  %v9684_v4 = vld [vmem:[%s10664_s9 + $0x2e0] ss:$16 sps:$4 sm:$0xff]   ;;  %v823_v52 = vld [vmem:[%s10656_s2 + $0x28] sm:$0xff] }
 0x125   : > { %4243 = vmatprep.subr.bf16.mxu1 %v9681_v2  ;;  %v9685_v5 = vld [vmem:[%s10664_s9 + $0xc4] ss:$16 sps:$4 sm:$0xff]   ;;  %3891 = vmatpush1.bf16.msra.mxu0 %v9683_v3  ;;  %v9689_v7 = vld [vmem:[%s10664_s9 + $0xc0] ss:$16 sps:$4 sm:$0xff]   ;;  %v10996_v56 = vcombine.high %v819_v51, %v823_v52 }
 0x126   : > { %4244 = vmatpush1.bf16.msra.mxu1 %v9684_v4  ;;  %v9687_v6 = vld [vmem:[%s10664_s9 + $0x2c4] ss:$16 sps:$4 sm:$0xff]   ;;  %3892 = vmatprep.subr.bf16.mxu0 %v9685_v5  ;;  %v9690_v8 = vld [vmem:[%s10664_s9 + $0x2c0] ss:$16 sps:$4 sm:$0xff]  }
 0x127   : > { %4245 = vmatprep.subr.bf16.mxu1 %v9687_v6  ;;  %v9691_v9 = vld [vmem:[%s10664_s9 + $0xa4] ss:$16 sps:$4 sm:$0xff]   ;;  %v9695_v11 = vld [vmem:[%s10664_s9 + $0xa0] ss:$16 sps:$4 sm:$0xff]   ;;  %4275 = vmatprep.mubr.bf16.mxu1 %v10996_v56 }
 0x128   : > { %v9693_v10 = vld [vmem:[%s10664_s9 + $0x2a4] ss:$16 sps:$4 sm:$0xff]   ;;  %v9696_v12 = vld [vmem:[%s10664_s9 + $0x2a0] ss:$16 sps:$4 sm:$0xff]  }
 0x129   : > { %3893 = vmatpush1.bf16.msra.mxu0 %v9689_v7  ;;  %v9697_v13 = vld [vmem:[%s10664_s9 + $0x84] ss:$16 sps:$4 sm:$0xff]   ;;  %v9701_v15 = vld [vmem:[%s10664_s9 + $0x80] ss:$16 sps:$4 sm:$0xff]   ;;  %p9482_p7 = scmp.ne.s32.totalorder %s15030_s21, 1 }
 0x12a   : > { %4246 = vmatpush1.bf16.msra.mxu1 %v9690_v8  ;;  %3894 = vmatprep.subr.bf16.mxu0 %v9691_v9  ;;  %v9699_v14 = vld [vmem:[%s10664_s9 + $0x284] ss:$16 sps:$4 sm:$0xff]   ;;  %v9702_v16 = vld [vmem:[%s10664_s9 + $0x280] ss:$16 sps:$4 sm:$0xff]  }
 0x12b   : > { %4247 = vmatprep.subr.bf16.mxu1 %v9693_v10  ;;  %v9703_v17 = vld [vmem:[%s10664_s9 + $0x64] ss:$16 sps:$4 sm:$0xff]   ;;  %v9707_v19 = vld [vmem:[%s10664_s9 + $0x60] ss:$16 sps:$4 sm:$0xff]  }
 0x12c   : > { %v9705_v18 = vld [vmem:[%s10664_s9 + $0x264] ss:$16 sps:$4 sm:$0xff]   ;;  %v9708_v20 = vld [vmem:[%s10664_s9 + $0x260] ss:$16 sps:$4 sm:$0xff]  }
 0x12d   : > { %3895 = vmatpush1.bf16.msra.mxu0 %v9695_v11  ;;  %v9709_v21 = vld [vmem:[%s10664_s9 + $0x44] ss:$16 sps:$4 sm:$0xff]   ;;  %v9713_v23 = vld [vmem:[%s10664_s9 + $0x40] ss:$16 sps:$4 sm:$0xff]   ;;  %v827_v11 = vld [vmem:[%s10656_s2 + $0x48] sm:$0xff] }
 0x12e   : > { %4248 = vmatpush1.bf16.msra.mxu1 %v9696_v12  ;;  %3896 = vmatprep.subr.bf16.mxu0 %v9697_v13  ;;  %v9711_v22 = vld [vmem:[%s10664_s9 + $0x244] ss:$16 sps:$4 sm:$0xff]   ;;  %v9714_v24 = vld [vmem:[%s10664_s9 + $0x240] ss:$16 sps:$4 sm:$0xff]   ;;  %v831_v12 = vld [vmem:[%s10656_s2 + $0x68] sm:$0xff] }
 0x12f   : > { %4249 = vmatprep.subr.bf16.mxu1 %v9699_v14  ;;  %v9715_v25 = vld [vmem:[%s10664_s9 + $0x24] ss:$16 sps:$4 sm:$0xff]   ;;  %v9719_v27 = vld [vmem:[%s10664_s9 + $0x20] ss:$16 sps:$4 sm:$0xff]   ;;  %v11022_v14 = vcombine.low %v819_v51, %v823_v52 }
 0x130   : > { %v9717_v26 = vld [vmem:[%s10664_s9 + $0x224] ss:$16 sps:$4 sm:$0xff]   ;;  %v9720_v28 = vld [vmem:[%s10664_s9 + $0x220] ss:$16 sps:$4 sm:$0xff]  }
 0x131   : > { %3897 = vmatpush1.bf16.msra.mxu0 %v9701_v15  ;;  %v9721_v29 = vld [vmem:[%s10664_s9 + $0x4] ss:$16 sps:$4 sm:$0xff]   ;;  %v9725_v31 = vld [vmem:[%s10664_s9] ss:$16 sps:$4 sm:$0xff]  }
 0x132   : > { %4250 = vmatpush1.bf16.msra.mxu1 %v9702_v16  ;;  %3898 = vmatprep.subr.bf16.mxu0 %v9703_v17  ;;  %v9723_v30 = vld [vmem:[%s10664_s9 + $0x204] ss:$16 sps:$4 sm:$0xff]   ;;  %v9726_v32 = vld [vmem:[%s10664_s9 + $0x200] ss:$16 sps:$4 sm:$0xff]  }
 0x133   : > { %4251 = vmatprep.subr.bf16.mxu1 %v9705_v18  ;;  %v9727_v33 = vld [vmem:[%s10664_s9 + $0x1e4] ss:$16 sps:$4 sm:$0xff]   ;;  %v9731_v35 = vld [vmem:[%s10664_s9 + $0x1e0] ss:$16 sps:$4 sm:$0xff]   ;;  %v11028_v18 = vcombine.high %v827_v11, %v831_v12 }
 0x134   : > { %v9729_v34 = vld [vmem:[%s10664_s9 + $0x3e4] ss:$16 sps:$4 sm:$0xff]   ;;  %v9732_v36 = vld [vmem:[%s10664_s9 + $0x3e0] ss:$16 sps:$4 sm:$0xff]  }
 0x135   : > { %3899 = vmatpush1.bf16.msra.mxu0 %v9707_v19  ;;  %v9733_v37 = vld [vmem:[%s10664_s9 + $0x1c4] ss:$16 sps:$4 sm:$0xff]   ;;  %v9737_v39 = vld [vmem:[%s10664_s9 + $0x1c0] ss:$16 sps:$4 sm:$0xff]   ;;  %14170 = vst [vmem:[#allocation30_spill] sm:$0xff] %v11028_v18 }
 0x136   : > { %4252 = vmatpush1.bf16.msra.mxu1 %v9708_v20  ;;  %3900 = vmatprep.subr.bf16.mxu0 %v9709_v21  ;;  %v9735_v38 = vld [vmem:[%s10664_s9 + $0x3c4] ss:$16 sps:$4 sm:$0xff]   ;;  %v9738_v40 = vld [vmem:[%s10664_s9 + $0x3c0] ss:$16 sps:$4 sm:$0xff]  }
 0x137   : > { %4253 = vmatprep.subr.bf16.mxu1 %v9711_v22  ;;  %v9739_v41 = vld [vmem:[%s10664_s9 + $0x1a4] ss:$16 sps:$4 sm:$0xff]   ;;  %v9743_v43 = vld [vmem:[%s10664_s9 + $0x1a0] ss:$16 sps:$4 sm:$0xff]  }
 0x138   : > { %v9741_v42 = vld [vmem:[%s10664_s9 + $0x3a4] ss:$16 sps:$4 sm:$0xff]   ;;  %v9744_v44 = vld [vmem:[%s10664_s9 + $0x3a0] ss:$16 sps:$4 sm:$0xff]  }
 0x139   : > { %3901 = vmatpush1.bf16.msra.mxu0 %v9713_v23  ;;  %v9745_v45 = vld [vmem:[%s10664_s9 + $0x184] ss:$16 sps:$4 sm:$0xff]   ;;  %v9749_v47 = vld [vmem:[%s10664_s9 + $0x180] ss:$16 sps:$4 sm:$0xff]   ;;  %v835_v23 = vld [vmem:[%s10656_s2 + $0x88] sm:$0xff] }
 0x13a   : > { %4254 = vmatpush1.bf16.msra.mxu1 %v9714_v24  ;;  %3902 = vmatprep.subr.bf16.mxu0 %v9715_v25  ;;  %v9747_v46 = vld [vmem:[%s10664_s9 + $0x384] ss:$16 sps:$4 sm:$0xff]   ;;  %v9750_v48 = vld [vmem:[%s10664_s9 + $0x380] ss:$16 sps:$4 sm:$0xff]  }
 0x13b   : > { %4255 = vmatprep.subr.bf16.mxu1 %v9717_v26  ;;  %v818_v49 = vld [vmem:[%s10656_s2] sm:$0xff]  ;;  %v839_v26 = vld [vmem:[%s10656_s2 + $0xa8] sm:$0xff] }
 0x13c   : > { %v822_v50 = vld [vmem:[%s10656_s2 + $0x20] sm:$0xff] }
 0x13d   : > { %3903 = vmatpush1.bf16.msra.mxu0 %v9719_v27  ;;  %v9751_v53 = vld [vmem:[%s10664_s9 + $0x164] ss:$16 sps:$4 sm:$0xff]   ;;  %v10993_v54 = vcombine.high %v818_v49, %v822_v50  ;;  %v9755_v57 = vld [vmem:[%s10664_s9 + $0x160] ss:$16 sps:$4 sm:$0xff]   ;;  %v11020_v13 = vcombine.low %v818_v49, %v822_v50 }
 0x13e   : > { %4256 = vmatpush1.bf16.msra.mxu1 %v9720_v28  ;;  %3904 = vmatprep.subr.bf16.mxu0 %v9721_v29  ;;  %v9753_v55 = vld [vmem:[%s10664_s9 + $0x364] ss:$16 sps:$4 sm:$0xff]   ;;  %v9756_v58 = vld [vmem:[%s10664_s9 + $0x360] ss:$16 sps:$4 sm:$0xff]  }
 0x13f   : > { %4257 = vmatprep.subr.bf16.mxu1 %v9723_v30  ;;  %3922 = vmatprep.mubr.bf16.mxu0 %v10993_v54  ;;  %v9757_v59 = vld [vmem:[%s10664_s9 + $0x144] ss:$16 sps:$4 sm:$0xff]   ;;  %v9761_v61 = vld [vmem:[%s10664_s9 + $0x140] ss:$16 sps:$4 sm:$0xff]   ;;  %v11046_v30 = vcombine.low %v827_v11, %v831_v12 }
 0x140   : > { %v9759_v60 = vld [vmem:[%s10664_s9 + $0x344] ss:$16 sps:$4 sm:$0xff]   ;;  %v9762_v62 = vld [vmem:[%s10664_s9 + $0x340] ss:$16 sps:$4 sm:$0xff]  }
 0x141   : > { %3905 = vmatpush1.bf16.msra.mxu0 %v9725_v31  ;;  %v9763_v63 = vld [vmem:[%s10664_s9 + $0x124] ss:$16 sps:$4 sm:$0xff]   ;;  %v9767_v1 = vld [vmem:[%s10664_s9 + $0x120] ss:$16 sps:$4 sm:$0xff]   ;;  %14172 = vst [vmem:[#allocation32_spill] sm:$0xff] %v11046_v30 }
 0x142   : > { %4258 = vmatpush1.bf16.msra.mxu1 %v9726_v32  ;;  %3906 = vmatprep.subr.bf16.mxu0 %v9727_v33  ;;  %v9765_v0 = vld [vmem:[%s10664_s9 + $0x324] ss:$16 sps:$4 sm:$0xff]   ;;  %v9768_v2 = vld [vmem:[%s10664_s9 + $0x320] ss:$16 sps:$4 sm:$0xff]   ;;  %v11050_v32 = vcombine.high %v835_v23, %v839_v26 }
 0x143   : > { %4259 = vmatprep.subr.bf16.mxu1 %v9729_v34  ;;  %v9769_v3 = vld [vmem:[%s10664_s9 + $0x104] ss:$16 sps:$4 sm:$0xff]   ;;  %v9773_v5 = vld [vmem:[%s10664_s9 + $0x100] ss:$16 sps:$4 sm:$0xff]  }
 0x144   : > { %v9771_v4 = vld [vmem:[%s10664_s9 + $0x304] ss:$16 sps:$4 sm:$0xff]   ;;  %v9774_v6 = vld [vmem:[%s10664_s9 + $0x300] ss:$16 sps:$4 sm:$0xff]   ;;  %14174 = vst [vmem:[#allocation34_spill] sm:$0xff] %v11050_v32 }
 0x145   : > { %3907 = vmatpush2.bf16.msra.mxu0 %v9731_v35  ;;  %v9777_v7 = vld [vmem:[%s10664_s9 + $0x4e4] ss:$16 sps:$4 sm:$0xff]   ;;  %v9775_v15 = vld [vmem:[%s10664_s9 + $0x4e0] ss:$16 sps:$4 sm:$0xff]  }
 0x146   : > { %4260 = vmatpush2.bf16.msra.mxu1 %v9732_v36  ;;  %3908 = vmatprep.subr.bf16.mxu0 %v9733_v37  ;;  %v9780_v8 = vld [vmem:[%s10664_s9 + $0x6e4] ss:$16 sps:$4 sm:$0xff]   ;;  %v9778_v16 = vld [vmem:[%s10664_s9 + $0x6e0] ss:$16 sps:$4 sm:$0xff]  }
 0x147   : > { %4261 = vmatprep.subr.bf16.mxu1 %v9735_v38  ;;  %v826_v9 = vld [vmem:[%s10656_s2 + $0x40] sm:$0xff] }
 0x148   : > { %v830_v10 = vld [vmem:[%s10656_s2 + $0x60] sm:$0xff] }
 0x149   : > { %3909 = vmatpush2.bf16.msra.mxu0 %v9737_v39  ;;  %v11026_v17 = vcombine.high %v826_v9, %v830_v10  ;;  %v9783_v19 = vld [vmem:[%s10664_s9 + $0x4c4] ss:$16 sps:$4 sm:$0xff]   ;;  %v9781_v24 = vld [vmem:[%s10664_s9 + $0x4c0] ss:$16 sps:$4 sm:$0xff]   ;;  %v11044_v29 = vcombine.low %v826_v9, %v830_v10  ;;  %v843_v39 = vld [vmem:[%s10656_s2 + $0xc8] sm:$0xff] }
 0x14a   : > { %4262 = vmatpush2.bf16.msra.mxu1 %v9738_v40  ;;  %3910 = vmatprep.subr.bf16.mxu0 %v9739_v41  ;;  %v9786_v20 = vld [vmem:[%s10664_s9 + $0x6c4] ss:$16 sps:$4 sm:$0xff]   ;;  %v9784_v25 = vld [vmem:[%s10664_s9 + $0x6c0] ss:$16 sps:$4 sm:$0xff]   ;;  %v847_v40 = vld [vmem:[%s10656_s2 + $0xe8] sm:$0xff] }
 0x14b   : > { %4263 = vmatprep.subr.bf16.mxu1 %v9741_v42  ;;  %v834_v21 = vld [vmem:[%s10656_s2 + $0x80] sm:$0xff]  ;;  %14171 = vst [vmem:[#allocation31_spill] sm:$0xff] %v11044_v29  ;;  %v859_v9 = vld [vmem:[%s10656_s2 + $0x148] sm:$0xff] }
 0x14c   : > { %v838_v22 = vld [vmem:[%s10656_s2 + $0xa0] sm:$0xff]  ;;  %v863_v10 = vld [vmem:[%s10656_s2 + $0x168] sm:$0xff] }
 0x14d   : > { %3911 = vmatpush2.bf16.msra.mxu0 %v9743_v43  ;;  %v9789_v27 = vld [vmem:[%s10664_s9 + $0x4a4] ss:$16 sps:$4 sm:$0xff]   ;;  %v11048_v31 = vcombine.high %v834_v21, %v838_v22  ;;  %v9787_v33 = vld [vmem:[%s10664_s9 + $0x4a0] ss:$16 sps:$4 sm:$0xff]  }
 0x14e   : > { %4264 = vmatpush2.bf16.msra.mxu1 %v9744_v44  ;;  %3912 = vmatprep.subr.bf16.mxu0 %v9745_v45  ;;  %v9792_v28 = vld [vmem:[%s10664_s9 + $0x6a4] ss:$16 sps:$4 sm:$0xff]   ;;  %v9790_v34 = vld [vmem:[%s10664_s9 + $0x6a0] ss:$16 sps:$4 sm:$0xff]   ;;  %v11068_v45 = vcombine.low %v834_v21, %v838_v22  ;;  %v11122_v22 = vcombine.high %v859_v9, %v863_v10 }
 0x14f   : > { %4265 = vmatprep.subr.bf16.mxu1 %v9747_v46  ;;  %14173 = vst [vmem:[#allocation33_spill] sm:$0xff] %v11048_v31  ;;  %v9795_v35 = vld [vmem:[%s10664_s9 + $0x484] ss:$16 sps:$4 sm:$0xff]   ;;  %v9793_v41 = vld [vmem:[%s10664_s9 + $0x480] ss:$16 sps:$4 sm:$0xff]   ;;  %v11070_v46 = vcombine.low %v835_v23, %v839_v26 }
 0x150   : > { %v9798_v36 = vld [vmem:[%s10664_s9 + $0x684] ss:$16 sps:$4 sm:$0xff]   ;;  %v9796_v42 = vld [vmem:[%s10664_s9 + $0x680] ss:$16 sps:$4 sm:$0xff]   ;;  %14175 = vst [vmem:[#allocation35_spill] sm:$0xff] %v11068_v45  ;;  %14186 = vst [vmem:[#allocation46_spill] sm:$0xff] %v11122_v22 }
 0x151   : > { %3913 = vmatpush2.bf16.msra.mxu0 %v9749_v47  ;;  %v842_v37 = vld [vmem:[%s10656_s2 + $0xc0] sm:$0xff]  ;;  %14176 = vst [vmem:[#allocation36_spill] sm:$0xff] %v11070_v46 }
 0x152   : > { %4266 = vmatpush2.bf16.msra.mxu1 %v9750_v48  ;;  %3914 = vmatprep.subr.bf16.mxu0 %v9751_v53  ;;  %v846_v38 = vld [vmem:[%s10656_s2 + $0xe0] sm:$0xff]  ;;  %v11074_v48 = vcombine.high %v843_v39, %v847_v40 }
 0x153   : > { %4267 = vmatprep.subr.bf16.mxu1 %v9753_v55  ;;  %v9801_v43 = vld [vmem:[%s10664_s9 + $0x464] ss:$16 sps:$4 sm:$0xff]   ;;  %v11072_v47 = vcombine.high %v842_v37, %v846_v38  ;;  %v9799_v49 = vld [vmem:[%s10664_s9 + $0x460] ss:$16 sps:$4 sm:$0xff]  }
 0x154   : > { %v9804_v44 = vld [vmem:[%s10664_s9 + $0x664] ss:$16 sps:$4 sm:$0xff]   ;;  %14178 = vst [vmem:[#allocation38_spill] sm:$0xff] %v11074_v48  ;;  %v9802_v50 = vld [vmem:[%s10664_s9 + $0x660] ss:$16 sps:$4 sm:$0xff]  }
 0x155   : > { %3915 = vmatpush2.bf16.msra.mxu0 %v9755_v57  ;;  %14177 = vst [vmem:[#allocation37_spill] sm:$0xff] %v11072_v47  ;;  %v9807_v51 = vld [vmem:[%s10664_s9 + $0x444] ss:$16 sps:$4 sm:$0xff]   ;;  %v851_v57 = vld [vmem:[%s10656_s2 + $0x108] sm:$0xff]  ;;  %v9817_v11 = vld [vmem:[%s10664_s9 + $0x400] ss:$16 sps:$4 sm:$0xff]  }
 0x156   : > { %4268 = vmatpush2.bf16.msra.mxu1 %v9756_v58  ;;  %3916 = vmatprep.subr.bf16.mxu0 %v9757_v59  ;;  %v9810_v52 = vld [vmem:[%s10664_s9 + $0x644] ss:$16 sps:$4 sm:$0xff]   ;;  %v855_v58 = vld [vmem:[%s10656_s2 + $0x128] sm:$0xff]  ;;  %v9805_v59 = vld [vmem:[%s10664_s9 + $0x440] ss:$16 sps:$4 sm:$0xff]  }
 0x157   : > { %4269 = vmatprep.subr.bf16.mxu1 %v9759_v60  ;;  %v850_v53 = vld [vmem:[%s10656_s2 + $0x100] sm:$0xff] }
 0x158   : > { %v854_v55 = vld [vmem:[%s10656_s2 + $0x120] sm:$0xff] }
 0x159   : > { %3917 = vmatpush2.bf16.msra.mxu0 %v9761_v61  ;;  %v9808_v60 = vld [vmem:[%s10664_s9 + $0x640] ss:$16 sps:$4 sm:$0xff]   ;;  %v9813_v61 = vld [vmem:[%s10664_s9 + $0x424] ss:$16 sps:$4 sm:$0xff]  }
 0x15a   : > { %4270 = vmatpush2.bf16.msra.mxu1 %v9762_v62  ;;  %3918 = vmatprep.subr.bf16.mxu0 %v9763_v63  ;;  %v9816_v62 = vld [vmem:[%s10664_s9 + $0x624] ss:$16 sps:$4 sm:$0xff]   ;;  %v11092_v63 = vcombine.low %v842_v37, %v846_v38  ;;  %v9820_v12 = vld [vmem:[%s10664_s9 + $0x600] ss:$16 sps:$4 sm:$0xff]  }
 0x15b   : > { %4271 = vmatprep.subr.bf16.mxu1 %v9765_v0  ;;  %v11094_v0 = vcombine.low %v843_v39, %v847_v40  ;;  %v9823_v23 = vld [vmem:[%s10664_s9 + $0x5e0] ss:$16 sps:$4 sm:$0xff]   ;;  %v9834_v26 = vld [vmem:[%s10664_s9 + $0x7c4] ss:$16 sps:$4 sm:$0xff]   ;;  %v11142_v40 = vcombine.low %v859_v9, %v863_v10 }
 0x15c   : > { %14179 = vst [vmem:[#allocation39_spill] sm:$0xff] %v11092_v63  ;;  %v9837_v37 = vld [vmem:[%s10664_s9 + $0x5a4] ss:$16 sps:$4 sm:$0xff]  }
 0x15d   : > { %3919 = vmatpush2.bf16.msra.mxu0 %v9767_v1  ;;  %14180 = vst [vmem:[#allocation40_spill] sm:$0xff] %v11094_v0  ;;  %v11096_v1 = vcombine.high %v850_v53, %v854_v55  ;;  %v9840_v38 = vld [vmem:[%s10664_s9 + $0x7a4] ss:$16 sps:$4 sm:$0xff]   ;;  %14188 = vst [vmem:[#allocation48_spill] sm:$0xff] %v11142_v40 }
 0x15e   : > { %4272 = vmatpush2.bf16.msra.mxu1 %v9768_v2  ;;  %3920 = vmatprep.subr.bf16.mxu0 %v9769_v3  ;;  %v11098_v2 = vcombine.high %v851_v57, %v855_v58  ;;  %v9811_v3 = vld [vmem:[%s10664_s9 + $0x420] ss:$16 sps:$4 sm:$0xff]  }
 0x15f   : > { %4273 = vmatprep.subr.bf16.mxu1 %v9771_v4  ;;  %14181 = vst [vmem:[#allocation41_spill] sm:$0xff] %v11096_v1  ;;  %v9814_v4 = vld [vmem:[%s10664_s9 + $0x620] ss:$16 sps:$4 sm:$0xff]  }
 0x160   : > { %14182 = vst [vmem:[#allocation42_spill] sm:$0xff] %v11098_v2 }
 0x161   : > { %3921 = vmatpush2.bf16.msra.mxu0 %v9773_v5  ;;  %v9819_v5 = vld [vmem:[%s10664_s9 + $0x404] ss:$16 sps:$4 sm:$0xff]  }
 0x162   : > { %4274 = vmatpush2.bf16.msra.mxu1 %v9774_v6  ;;  %4596 = vmatprep.subr.bf16.mxu0 %v9777_v7  ;;  %v9822_v6 = vld [vmem:[%s10664_s9 + $0x604] ss:$16 sps:$4 sm:$0xff]  }
 0x163   : > { %4949 = vmatprep.subr.bf16.mxu1 %v9780_v8  ;;  %v858_v7 = vld [vmem:[%s10656_s2 + $0x140] sm:$0xff] }
 0x164   : > { %3923 = vmatmul.mubr.bf16.vlgmr.msra.gmra.mxu0 %v11020_v13  ;;  %v862_v8 = vld [vmem:[%s10656_s2 + $0x160] sm:$0xff] }
 0x165   : > { %4276 = vmatmul.mubr.bf16.vlgmr.msra.gmra.mxu1 %v11022_v14  ;;  %4597 = vmatpush1.bf16.msra.mxu0 %v9775_v15  ;;  %v9825_v15 = vld [vmem:[%s10664_s9 + $0x5e4] ss:$16 sps:$4 sm:$0xff]   ;;  %v11120_v21 = vcombine.high %v858_v7, %v862_v8  ;;  %v11140_v39 = vcombine.low %v858_v7, %v862_v8 }
 0x166   : > { %4950 = vmatpush1.bf16.msra.mxu1 %v9778_v16  ;;  %3932 = vmatprep.mubr.bf16.mxu0 %v11026_v17  ;;  %v9828_v16 = vld [vmem:[%s10664_s9 + $0x7e4] ss:$16 sps:$4 sm:$0xff]  }
 0x167   : > { %4285 = vmatprep.mubr.bf16.mxu1 %v11028_v18  ;;  %4598 = vmatprep.subr.bf16.mxu0 %v9783_v19  ;;  %v11116_v19 = vcombine.low %v850_v53, %v854_v55  ;;  %14185 = vst [vmem:[#allocation45_spill] sm:$0xff] %v11120_v21  ;;  %14187 = vst [vmem:[#allocation47_spill] sm:$0xff] %v11140_v39 }
 0x168   : > { %4951 = vmatprep.subr.bf16.mxu1 %v9786_v20  ;;  %v11118_v20 = vcombine.low %v851_v57, %v855_v58 }
 0x169   : > { %4599 = vmatpush1.bf16.msra.mxu0 %v9781_v24  ;;  %14183 = vst [vmem:[#allocation43_spill] sm:$0xff] %v11116_v19  ;;  %v9826_v24 = vld [vmem:[%s10664_s9 + $0x7e0] ss:$16 sps:$4 sm:$0xff]  }
 0x16a   : > { %4952 = vmatpush1.bf16.msra.mxu1 %v9784_v25  ;;  %4600 = vmatprep.subr.bf16.mxu0 %v9789_v27  ;;  %14184 = vst [vmem:[#allocation44_spill] sm:$0xff] %v11118_v20  ;;  %v9831_v25 = vld [vmem:[%s10664_s9 + $0x5c4] ss:$16 sps:$4 sm:$0xff]  }
 0x16b   : > { %4953 = vmatprep.subr.bf16.mxu1 %v9792_v28  ;;  %v866_v27 = vld [vmem:[%s10656_s2 + $0x180] sm:$0xff] }
 0x16c   : > { %3933 = vmatmul.mubr.bf16.gmra.mxu0 %v11044_v29  ;;  %v870_v28 = vld [vmem:[%s10656_s2 + $0x1a0] sm:$0xff]  ;;  %v9889_v29 = vld [vmem:[%s10664_s9 + $0x88] ss:$16 sps:$4 sm:$0xff]  }
 0x16d   : > { %4286 = vmatmul.mubr.bf16.gmra.mxu1 %v11046_v30  ;;  %3942 = vmatprep.mubr.bf16.mxu0 %v11048_v31  ;;  %v11158_v53 = vcombine.low %v866_v27, %v870_v28  ;;  %v9888_v31 = vld [vmem:[%s10664_s9 + $0x2ac] ss:$16 sps:$4 sm:$0xff]  }
 0x16e   : > { %4295 = vmatprep.mubr.bf16.mxu1 %v11050_v32  ;;  %4601 = vmatpush1.bf16.msra.mxu0 %v9787_v33  ;;  %v867_v33 = vld [vmem:[%s10656_s2 + $0x188] sm:$0xff]  ;;  %v841_v32 = vld [vmem:[%s10656_s2 + $0xb8] sm:$0xff] }
 0x16f   : > { %4954 = vmatpush1.bf16.msra.mxu1 %v9790_v34  ;;  %4602 = vmatprep.subr.bf16.mxu0 %v9795_v35  ;;  %v871_v34 = vld [vmem:[%s10656_s2 + $0x1a8] sm:$0xff]  ;;  %v9829_v35 = vld [vmem:[%s10664_s9 + $0x5c0] ss:$16 sps:$4 sm:$0xff]   ;;  %14191 = vst [vmem:[#allocation51_spill] sm:$0xff] %v11158_v53 }
 0x170   : > { %4955 = vmatprep.subr.bf16.mxu1 %v9798_v36  ;;  %v9832_v36 = vld [vmem:[%s10664_s9 + $0x7c0] ss:$16 sps:$4 sm:$0xff]   ;;  %v11160_v55 = vcombine.low %v867_v33, %v871_v34 }
 0x172   : > { %4603 = vmatpush1.bf16.msra.mxu0 %v9793_v41  ;;  %v9835_v41 = vld [vmem:[%s10664_s9 + $0x5a0] ss:$16 sps:$4 sm:$0xff]   ;;  %14192 = vst [vmem:[#allocation52_spill] sm:$0xff] %v11160_v55 }
 0x173   : > { %4956 = vmatpush1.bf16.msra.mxu1 %v9796_v42  ;;  %4604 = vmatprep.subr.bf16.mxu0 %v9801_v43  ;;  %v9838_v42 = vld [vmem:[%s10664_s9 + $0x7a0] ss:$16 sps:$4 sm:$0xff]   ;;  %v11146_v43 = vcombine.high %v866_v27, %v870_v28 }
 0x174   : > { %4957 = vmatprep.subr.bf16.mxu1 %v9804_v44  ;;  %3943 = vmatmul.mubr.bf16.gmra.mxu0 %v11068_v45  ;;  %v11148_v44 = vcombine.high %v867_v33, %v871_v34  ;;  %v898_v27 = vld [vmem:[%s10656_s2 + $0x280] sm:$0xff]  ;;  %v899_v33 = vld [vmem:[%s10656_s2 + $0x288] sm:$0xff] }
 0x175   : > { %4296 = vmatmul.mubr.bf16.gmra.mxu1 %v11070_v46  ;;  %3952 = vmatprep.mubr.bf16.mxu0 %v11072_v47  ;;  %14189 = vst [vmem:[#allocation49_spill] sm:$0xff] %v11146_v43  ;;  %v902_v28 = vld [vmem:[%s10656_s2 + $0x2a0] sm:$0xff]  ;;  %v903_v34 = vld [vmem:[%s10656_s2 + $0x2a8] sm:$0xff]  ;;  %v837_v47 = vld [vmem:[%s10656_s2 + $0x98] sm:$0xff] }
 0x176   : > { %4305 = vmatprep.mubr.bf16.mxu1 %v11074_v48  ;;  %4605 = vmatpush1.bf16.msra.mxu0 %v9799_v49  ;;  %14190 = vst [vmem:[#allocation50_spill] sm:$0xff] %v11148_v44  ;;  %v874_v49 = vld [vmem:[%s10656_s2 + $0x1c0] sm:$0xff]  ;;  %v11696_v30 = vcombine.high %v837_v47, %v841_v32 }
 0x177   : > { %4958 = vmatpush1.bf16.msra.mxu1 %v9802_v50  ;;  %4606 = vmatprep.subr.bf16.mxu0 %v9807_v51  ;;  %v878_v50 = vld [vmem:[%s10656_s2 + $0x1e0] sm:$0xff]  ;;  %v875_v51 = vld [vmem:[%s10656_s2 + $0x1c8] sm:$0xff] }
 0x178   : > { %4959 = vmatprep.subr.bf16.mxu1 %v9810_v52  ;;  %v879_v52 = vld [vmem:[%s10656_s2 + $0x1e8] sm:$0xff]  ;;  %v11162_v57 = vcombine.high %v874_v49, %v878_v50  ;;  %v11178_v7 = vcombine.low %v874_v49, %v878_v50  ;;  %v11218_v49 = vcombine.high %v898_v27, %v902_v28  ;;  %v11220_v50 = vcombine.high %v899_v33, %v903_v34 }
 0x179   : > { %v11164_v58 = vcombine.high %v875_v51, %v879_v52  ;;  %v11180_v8 = vcombine.low %v875_v51, %v879_v52  ;;  %v906_v51 = vld [vmem:[%s10656_s2 + $0x2c0] sm:$0xff]  ;;  %14304 = vst [vmem:[#allocation164_spill] sm:$0xff] %v11696_v30 }
 0x17a   : > { %4607 = vmatpush1.bf16.msra.mxu0 %v9805_v59  ;;  %14193 = vst [vmem:[#allocation53_spill] sm:$0xff] %v11162_v57  ;;  %v9841_v59 = vld [vmem:[%s10664_s9 + $0x580] ss:$16 sps:$4 sm:$0xff]   ;;  %14195 = vst [vmem:[#allocation55_spill] sm:$0xff] %v11178_v7 }
 0x17b   : > { %4960 = vmatpush1.bf16.msra.mxu1 %v9808_v60  ;;  %4608 = vmatprep.subr.bf16.mxu0 %v9813_v61  ;;  %14194 = vst [vmem:[#allocation54_spill] sm:$0xff] %v11164_v58  ;;  %v9843_v60 = vld [vmem:[%s10664_s9 + $0x584] ss:$16 sps:$4 sm:$0xff]   ;;  %v9844_v61 = vld [vmem:[%s10664_s9 + $0x780] ss:$16 sps:$4 sm:$0xff]   ;;  %14196 = vst [vmem:[#allocation56_spill] sm:$0xff] %v11180_v8 }
 0x17c   : > { %4961 = vmatprep.subr.bf16.mxu1 %v9816_v62  ;;  %3953 = vmatmul.mubr.bf16.gmra.mxu0 %v11092_v63  ;;  %v882_v62 = vld [vmem:[%s10656_s2 + $0x200] sm:$0xff]  ;;  %14205 = vst [vmem:[#allocation65_spill] sm:$0xff] %v11218_v49  ;;  %14206 = vst [vmem:[#allocation66_spill] sm:$0xff] %v11220_v50 }
 0x17d   : > { %4306 = vmatmul.mubr.bf16.gmra.mxu1 %v11094_v0  ;;  %3962 = vmatprep.mubr.bf16.mxu0 %v11096_v1  ;;  %v910_v52 = vld [vmem:[%s10656_s2 + $0x2e0] sm:$0xff] }
 0x17e   : > { %4315 = vmatprep.mubr.bf16.mxu1 %v11098_v2  ;;  %4609 = vmatpush1.bf16.msra.mxu0 %v9811_v3  ;;  %v886_v3 = vld [vmem:[%s10656_s2 + $0x220] sm:$0xff] }
 0x17f   : > { %4962 = vmatpush1.bf16.msra.mxu1 %v9814_v4  ;;  %4610 = vmatprep.subr.bf16.mxu0 %v9819_v5  ;;  %v9846_v4 = vld [vmem:[%s10664_s9 + $0x784] ss:$16 sps:$4 sm:$0xff]   ;;  %v883_v5 = vld [vmem:[%s10656_s2 + $0x208] sm:$0xff]  ;;  %v11182_v9 = vcombine.high %v882_v62, %v886_v3 }
 0x180   : > { %4963 = vmatprep.subr.bf16.mxu1 %v9822_v6  ;;  %v887_v6 = vld [vmem:[%s10656_s2 + $0x228] sm:$0xff] }
 0x181   : > { %14197 = vst [vmem:[#allocation57_spill] sm:$0xff] %v11182_v9  ;;  %v11184_v10 = vcombine.high %v883_v5, %v887_v6 }
 0x182   : > { %4611 = vmatpush1.bf16.msra.mxu0 %v9817_v11  ;;  %v890_v11 = vld [vmem:[%s10656_s2 + $0x240] sm:$0xff] }
 0x183   : > { %4964 = vmatpush1.bf16.msra.mxu1 %v9820_v12  ;;  %4612 = vmatprep.subr.bf16.mxu0 %v9825_v15  ;;  %14198 = vst [vmem:[#allocation58_spill] sm:$0xff] %v11184_v10  ;;  %v894_v12 = vld [vmem:[%s10656_s2 + $0x260] sm:$0xff]  ;;  %v891_v15 = vld [vmem:[%s10656_s2 + $0x248] sm:$0xff] }
 0x184   : > { %4965 = vmatprep.subr.bf16.mxu1 %v9828_v16  ;;  %3963 = vmatmul.mubr.bf16.gmra.mxu0 %v11116_v19  ;;  %v895_v16 = vld [vmem:[%s10656_s2 + $0x268] sm:$0xff] }
 0x185   : > { %4316 = vmatmul.mubr.bf16.gmra.mxu1 %v11118_v20  ;;  %3972 = vmatprep.mubr.bf16.mxu0 %v11120_v21 }
 0x186   : > { %4325 = vmatprep.mubr.bf16.mxu1 %v11122_v22  ;;  %4613 = vmatpush2.bf16.msra.mxu0 %v9823_v23  ;;  %v11194_v23 = vcombine.low %v882_v62, %v886_v3  ;;  %v11232_v62 = vcombine.low %v899_v33, %v903_v34  ;;  %v11234_v3 = vcombine.high %v906_v51, %v910_v52  ;;  %v825_v22 = vld [vmem:[%s10656_s2 + $0x38] sm:$0xff] }
 0x187   : > { %4966 = vmatpush2.bf16.msra.mxu1 %v9826_v24  ;;  %4614 = vmatprep.subr.bf16.mxu0 %v9831_v25  ;;  %v11196_v24 = vcombine.low %v883_v5, %v887_v6  ;;  %v11198_v25 = vcombine.high %v890_v11, %v894_v12  ;;  %v914_v5 = vld [vmem:[%s10656_s2 + $0x300] sm:$0xff]  ;;  %v11250_v33 = vcombine.low %v906_v51, %v910_v52  ;;  %v923_v51 = vld [vmem:[%s10656_s2 + $0x348] sm:$0xff] }
 0x188   : > { %4967 = vmatprep.subr.bf16.mxu1 %v9834_v26  ;;  %14199 = vst [vmem:[#allocation59_spill] sm:$0xff] %v11194_v23  ;;  %v11200_v26 = vcombine.high %v891_v15, %v895_v16  ;;  %14208 = vst [vmem:[#allocation68_spill] sm:$0xff] %v11232_v62  ;;  %v918_v6 = vld [vmem:[%s10656_s2 + $0x320] sm:$0xff]  ;;  %v927_v52 = vld [vmem:[%s10656_s2 + $0x368] sm:$0xff] }
 0x189   : > { %14200 = vst [vmem:[#allocation60_spill] sm:$0xff] %v11196_v24  ;;  %14201 = vst [vmem:[#allocation61_spill] sm:$0xff] %v11198_v25 }
 0x18a   : > { %4615 = vmatpush2.bf16.msra.mxu0 %v9829_v35  ;;  %14202 = vst [vmem:[#allocation62_spill] sm:$0xff] %v11200_v26  ;;  %v9847_v35 = vld [vmem:[%s10664_s9 + $0x560] ss:$16 sps:$4 sm:$0xff]   ;;  %14209 = vst [vmem:[#allocation69_spill] sm:$0xff] %v11234_v3 }
 0x18b   : > { %4968 = vmatpush2.bf16.msra.mxu1 %v9832_v36  ;;  %4616 = vmatprep.subr.bf16.mxu0 %v9837_v37  ;;  %v9849_v36 = vld [vmem:[%s10664_s9 + $0x564] ss:$16 sps:$4 sm:$0xff]   ;;  %v9850_v37 = vld [vmem:[%s10664_s9 + $0x760] ss:$16 sps:$4 sm:$0xff]   ;;  %14211 = vst [vmem:[#allocation71_spill] sm:$0xff] %v11250_v33 }
 0x18c   : > { %4969 = vmatprep.subr.bf16.mxu1 %v9840_v38  ;;  %3973 = vmatmul.mubr.bf16.gmra.mxu0 %v11140_v39  ;;  %v9852_v38 = vld [vmem:[%s10664_s9 + $0x764] ss:$16 sps:$4 sm:$0xff]   ;;  %v821_v39 = vld [vmem:[%s10656_s2 + $0x18] sm:$0xff] }
 0x18d   : > { %4326 = vmatmul.mubr.bf16.gmra.mxu1 %v11142_v40  ;;  %3982 = vmatprep.mubr.bf16.mxu0 %v11146_v43 }
 0x18e   : > { %4335 = vmatprep.mubr.bf16.mxu1 %v11148_v44  ;;  %4617 = vmatpush2.bf16.msra.mxu0 %v9835_v41  ;;  %v11214_v41 = vcombine.low %v890_v11, %v894_v12  ;;  %v915_v11 = vld [vmem:[%s10656_s2 + $0x308] sm:$0xff] }
 0x18f   : > { %4970 = vmatpush2.bf16.msra.mxu1 %v9838_v42  ;;  %4618 = vmatprep.subr.bf16.mxu0 %v9843_v60  ;;  %v11216_v42 = vcombine.low %v891_v15, %v895_v16  ;;  %v911_v60 = vld [vmem:[%s10656_s2 + $0x2e8] sm:$0xff]  ;;  %v9853_v15 = vld [vmem:[%s10664_s9 + $0x540] ss:$16 sps:$4 sm:$0xff]   ;;  %v9855_v16 = vld [vmem:[%s10664_s9 + $0x544] ss:$16 sps:$4 sm:$0xff]  }
 0x190   : > { %4971 = vmatprep.subr.bf16.mxu1 %v9846_v4  ;;  %14203 = vst [vmem:[#allocation63_spill] sm:$0xff] %v11214_v41  ;;  %v919_v12 = vld [vmem:[%s10656_s2 + $0x328] sm:$0xff] }
 0x191   : > { %14204 = vst [vmem:[#allocation64_spill] sm:$0xff] %v11216_v42  ;;  %v1071_v44 = vld [vmem:[%s10656_s2 + $0x7e8] sm:$0xff] }
 0x192   : > { %4619 = vmatpush2.bf16.msra.mxu0 %v9841_v59  ;;  %v907_v59 = vld [vmem:[%s10656_s2 + $0x2c8] sm:$0xff] }
 0x193   : > { %4972 = vmatpush2.bf16.msra.mxu1 %v9844_v61  ;;  %4620 = vmatprep.subr.bf16.mxu0 %v9849_v36  ;;  %v11230_v61 = vcombine.low %v898_v27, %v902_v28  ;;  %v11236_v4 = vcombine.high %v907_v59, %v911_v60  ;;  %v9856_v27 = vld [vmem:[%s10664_s9 + $0x740] ss:$16 sps:$4 sm:$0xff]   ;;  %v9858_v28 = vld [vmem:[%s10664_s9 + $0x744] ss:$16 sps:$4 sm:$0xff]   ;;  %v11252_v34 = vcombine.low %v907_v59, %v911_v60 }
 0x194   : > { %3983 = vmatmul.mubr.bf16.gmra.mxu0 %v11158_v53  ;;  %4973 = vmatprep.subr.bf16.mxu1 %v9852_v38  ;;  %v11256_v36 = vcombine.high %v915_v11, %v919_v12  ;;  %v926_v38 = vld [vmem:[%s10656_s2 + $0x360] sm:$0xff]  ;;  %v11266_v59 = vcombine.low %v914_v5, %v918_v6  ;;  %v11268_v60 = vcombine.low %v915_v11, %v919_v12  ;;  %v935_v11 = vld [vmem:[%s10656_s2 + $0x3a8] sm:$0xff] }
 0x195   : > { %4336 = vmatmul.mubr.bf16.gmra.mxu1 %v11160_v55  ;;  %3992 = vmatprep.mubr.bf16.mxu0 %v11162_v57  ;;  %14207 = vst [vmem:[#allocation67_spill] sm:$0xff] %v11230_v61  ;;  %14210 = vst [vmem:[#allocation70_spill] sm:$0xff] %v11236_v4  ;;  %v9862_v12 = vld [vmem:[%s10664_s9 + $0x720] ss:$16 sps:$4 sm:$0xff]   ;;  %v1067_v53 = vld [vmem:[%s10656_s2 + $0x7c8] sm:$0xff] }
 0x196   : > { %4345 = vmatprep.mubr.bf16.mxu1 %v11164_v58  ;;  %4621 = vmatpush2.bf16.msra.mxu0 %v9847_v35  ;;  %14212 = vst [vmem:[#allocation72_spill] sm:$0xff] %v11252_v34  ;;  %v11254_v35 = vcombine.high %v914_v5, %v918_v6  ;;  %14214 = vst [vmem:[#allocation74_spill] sm:$0xff] %v11256_v36  ;;  %v934_v5 = vld [vmem:[%s10656_s2 + $0x3a0] sm:$0xff]  ;;  %v931_v6 = vld [vmem:[%s10656_s2 + $0x388] sm:$0xff]  ;;  %v11634_v20 = vcombine.low %v1067_v53, %v1071_v44 }
 0x197   : > { %4974 = vmatpush2.bf16.msra.mxu1 %v9850_v37  ;;  %4622 = vmatprep.subr.bf16.mxu0 %v9855_v16  ;;  %v922_v37 = vld [vmem:[%s10656_s2 + $0x340] sm:$0xff]  ;;  %14215 = vst [vmem:[#allocation75_spill] sm:$0xff] %v11266_v59  ;;  %14216 = vst [vmem:[#allocation76_spill] sm:$0xff] %v11268_v60  ;;  %v11272_v16 = vcombine.high %v923_v51, %v927_v52  ;;  %v1063_v58 = vld [vmem:[%s10656_s2 + $0x7a8] sm:$0xff] }
 0x198   : > { %14213 = vst [vmem:[#allocation73_spill] sm:$0xff] %v11254_v35  ;;  %4975 = vmatprep.subr.bf16.mxu1 %v9858_v28  ;;  %v9859_v28 = vld [vmem:[%s10664_s9 + $0x520] ss:$16 sps:$4 sm:$0xff]   ;;  %14292 = vst [vmem:[#allocation152_spill] sm:$0xff] %v11634_v20 }
 0x199   : > { %14218 = vst [vmem:[#allocation78_spill] sm:$0xff] %v11272_v16 }
 0x19a   : > { %4623 = vmatpush2.bf16.msra.mxu0 %v9853_v15  ;;  %v11270_v15 = vcombine.high %v922_v37, %v926_v38 }
 0x19b   : > { %4976 = vmatpush2.bf16.msra.mxu1 %v9856_v27  ;;  %v930_v27 = vld [vmem:[%s10656_s2 + $0x380] sm:$0xff] }
 0x19c   : > { %3993 = vmatmul.mubr.bf16.gmra.mxu0 %v11178_v7  ;;  %14217 = vst [vmem:[#allocation77_spill] sm:$0xff] %v11270_v15  ;;  %v1059_v7 = vld [vmem:[%s10656_s2 + $0x788] sm:$0xff] }
 0x19d   : > { %4346 = vmatmul.mubr.bf16.gmra.mxu1 %v11180_v8  ;;  %4002 = vmatprep.mubr.bf16.mxu0 %v11182_v9 }
 0x19e   : > { %4355 = vmatprep.mubr.bf16.mxu1 %v11184_v10  ;;  %v1055_v10 = vld [vmem:[%s10656_s2 + $0x768] sm:$0xff] }
 0x1a4   : > { %4003 = vmatmul.mubr.bf16.gmra.mxu0 %v11194_v23  ;;  %v1051_v23 = vld [vmem:[%s10656_s2 + $0x748] sm:$0xff] }
 0x1a5   : > { %4356 = vmatmul.mubr.bf16.gmra.mxu1 %v11196_v24  ;;  %4012 = vmatprep.mubr.bf16.mxu0 %v11198_v25 }
 0x1a6   : > { %4365 = vmatprep.mubr.bf16.mxu1 %v11200_v26  ;;  %v1047_v26 = vld [vmem:[%s10656_s2 + $0x728] sm:$0xff] }
 0x1ac   : > { %4013 = vmatmul.mubr.bf16.gmra.mxu0 %v11214_v41  ;;  %v1043_v41 = vld [vmem:[%s10656_s2 + $0x708] sm:$0xff] }
 0x1ad   : > { %4366 = vmatmul.mubr.bf16.gmra.mxu1 %v11216_v42  ;;  %4022 = vmatprep.mubr.bf16.mxu0 %v11218_v49 }
 0x1ae   : > { %4375 = vmatprep.mubr.bf16.mxu1 %v11220_v50  ;;  %v1039_v50 = vld [vmem:[%s10656_s2 + $0x6e8] sm:$0xff] }
 0x1b4   : > { %4023 = vmatmul.mubr.bf16.gmra.mxu0 %v11230_v61  ;;  %v1035_v61 = vld [vmem:[%s10656_s2 + $0x6c8] sm:$0xff] }
 0x1b5   : > { %4376 = vmatmul.mubr.bf16.gmra.mxu1 %v11232_v62  ;;  %4032 = vmatprep.mubr.bf16.mxu0 %v11234_v3 }
 0x1b6   : > { %4385 = vmatprep.mubr.bf16.mxu1 %v11236_v4 }
 0x1bc   : > { %4033 = vmatmul.mubr.bf16.gmra.mxu0 %v11250_v33 }
 0x1bd   : > { %4386 = vmatmul.mubr.bf16.gmra.mxu1 %v11252_v34  ;;  %4042 = vmatprep.mubr.bf16.mxu0 %v11254_v35  ;;  %v9864_v35 = vld [vmem:[%s10664_s9 + $0x724] ss:$16 sps:$4 sm:$0xff]   ;;  %v1031_v34 = vld [vmem:[%s10656_s2 + $0x6a8] sm:$0xff] }
 0x1be   : > { %4395 = vmatprep.mubr.bf16.mxu1 %v11256_v36  ;;  %v9861_v36 = vld [vmem:[%s10664_s9 + $0x524] ss:$16 sps:$4 sm:$0xff]   ;;  %4977 = vmatprep.subr.bf16.mxu1 %v9864_v35  ;;  %v11302_v35 = vcombine.low %v930_v27, %v934_v5 }
 0x1bf   : > { %4624 = vmatprep.subr.bf16.mxu0 %v9861_v36  ;;  %4978 = vmatpush2.bf16.msra.mxu1 %v9862_v12  ;;  %v938_v36 = vld [vmem:[%s10656_s2 + $0x3c0] sm:$0xff] }
 0x1c0   : > { %4625 = vmatpush2.bf16.msra.mxu0 %v9859_v28  ;;  %14223 = vst [vmem:[#allocation83_spill] sm:$0xff] %v11302_v35 }
 0x1c4   : > { %4043 = vmatmul.mubr.bf16.gmra.mxu0 %v11266_v59  ;;  %v11286_v59 = vcombine.low %v922_v37, %v926_v38  ;;  %v942_v37 = vld [vmem:[%s10656_s2 + $0x3e0] sm:$0xff]  ;;  %v939_v38 = vld [vmem:[%s10656_s2 + $0x3c8] sm:$0xff] }
 0x1c5   : > { %4396 = vmatmul.mubr.bf16.gmra.mxu1 %v11268_v60  ;;  %4052 = vmatprep.mubr.bf16.mxu0 %v11270_v15  ;;  %v11288_v60 = vcombine.low %v923_v51, %v927_v52  ;;  %v11290_v15 = vcombine.high %v930_v27, %v934_v5  ;;  %v943_v51 = vld [vmem:[%s10656_s2 + $0x3e8] sm:$0xff]  ;;  %v11304_v52 = vcombine.low %v931_v6, %v935_v11  ;;  %v950_v27 = vld [vmem:[%s10656_s2 + $0x420] sm:$0xff] }
 0x1c6   : > { %4405 = vmatprep.mubr.bf16.mxu1 %v11272_v16  ;;  %14219 = vst [vmem:[#allocation79_spill] sm:$0xff] %v11286_v59  ;;  %v11292_v16 = vcombine.high %v931_v6, %v935_v11  ;;  %v11306_v28 = vcombine.high %v938_v36, %v942_v37  ;;  %v11308_v12 = vcombine.high %v939_v38, %v943_v51  ;;  %v947_v5 = vld [vmem:[%s10656_s2 + $0x408] sm:$0xff]  ;;  %v9868_v11 = vld [vmem:[%s10664_s9 + $0x700] ss:$16 sps:$4 sm:$0xff]  }
 0x1c7   : > { %14220 = vst [vmem:[#allocation80_spill] sm:$0xff] %v11288_v60  ;;  %14221 = vst [vmem:[#allocation81_spill] sm:$0xff] %v11290_v15  ;;  %v951_v6 = vld [vmem:[%s10656_s2 + $0x428] sm:$0xff] }
 0x1c8   : > { %14222 = vst [vmem:[#allocation82_spill] sm:$0xff] %v11292_v16  ;;  %14224 = vst [vmem:[#allocation84_spill] sm:$0xff] %v11304_v52 }
 0x1c9   : > { %14225 = vst [vmem:[#allocation85_spill] sm:$0xff] %v11306_v28  ;;  %14226 = vst [vmem:[#allocation86_spill] sm:$0xff] %v11308_v12 }
 0x1cc   : > { %4053 = vmatmul.mubr.bf16.gmra.mxu0 %v11286_v59  ;;  %v9870_v59 = vld [vmem:[%s10664_s9 + $0x704] ss:$16 sps:$4 sm:$0xff]  }
 0x1cd   : > { %4406 = vmatmul.mubr.bf16.gmra.mxu1 %v11288_v60  ;;  %4062 = vmatprep.mubr.bf16.mxu0 %v11290_v15  ;;  %v9865_v15 = vld [vmem:[%s10664_s9 + $0x500] ss:$16 sps:$4 sm:$0xff]   ;;  %v9867_v60 = vld [vmem:[%s10664_s9 + $0x504] ss:$16 sps:$4 sm:$0xff]  }
 0x1ce   : > { %4415 = vmatprep.mubr.bf16.mxu1 %v11292_v16  ;;  %v946_v16 = vld [vmem:[%s10656_s2 + $0x400] sm:$0xff]  ;;  %4626 = vmatprep.subr.bf16.mxu0 %v9867_v60 }
 0x1cf   : > { %4627 = vmatpush2.bf16.msra.mxu0 %v9865_v15  ;;  %4979 = vmatprep.subr.bf16.mxu1 %v9870_v59  ;;  %v954_v60 = vld [vmem:[%s10656_s2 + $0x440] sm:$0xff]  ;;  %v11338_v59 = vcombine.low %v946_v16, %v950_v27 }
 0x1d0   : > { %4980 = vmatpush2.bf16.msra.mxu1 %v9868_v11  ;;  %v958_v15 = vld [vmem:[%s10656_s2 + $0x460] sm:$0xff] }
 0x1d1   : > { %14231 = vst [vmem:[#allocation91_spill] sm:$0xff] %v11338_v59 }
 0x1d4   : > { %4063 = vmatmul.mubr.bf16.gmra.mxu0 %v11302_v35  ;;  %v11322_v35 = vcombine.low %v938_v36, %v942_v37  ;;  %v955_v36 = vld [vmem:[%s10656_s2 + $0x448] sm:$0xff] }
 0x1d5   : > { %4416 = vmatmul.mubr.bf16.gmra.mxu1 %v11304_v52  ;;  %4072 = vmatprep.mubr.bf16.mxu0 %v11306_v28  ;;  %v11324_v52 = vcombine.low %v939_v38, %v943_v51  ;;  %v11326_v28 = vcombine.high %v946_v16, %v950_v27  ;;  %v959_v37 = vld [vmem:[%s10656_s2 + $0x468] sm:$0xff]  ;;  %v11340_v38 = vcombine.low %v947_v5, %v951_v6  ;;  %v966_v16 = vld [vmem:[%s10656_s2 + $0x4a0] sm:$0xff] }
 0x1d6   : > { %4425 = vmatprep.mubr.bf16.mxu1 %v11308_v12  ;;  %14227 = vst [vmem:[#allocation87_spill] sm:$0xff] %v11322_v35  ;;  %v11328_v12 = vcombine.high %v947_v5, %v951_v6  ;;  %v11342_v51 = vcombine.high %v954_v60, %v958_v15  ;;  %v11344_v11 = vcombine.high %v955_v36, %v959_v37  ;;  %v963_v27 = vld [vmem:[%s10656_s2 + $0x488] sm:$0xff] }
 0x1d7   : > { %14228 = vst [vmem:[#allocation88_spill] sm:$0xff] %v11324_v52  ;;  %14229 = vst [vmem:[#allocation89_spill] sm:$0xff] %v11326_v28  ;;  %v967_v5 = vld [vmem:[%s10656_s2 + $0x4a8] sm:$0xff] }
 0x1d8   : > { %14230 = vst [vmem:[#allocation90_spill] sm:$0xff] %v11328_v12  ;;  %14232 = vst [vmem:[#allocation92_spill] sm:$0xff] %v11340_v38  ;;  %v9876_v6 = vld [vmem:[%s10664_s9 + $0x2ec] ss:$16 sps:$4 sm:$0xff]  }
 0x1d9   : > { %14233 = vst [vmem:[#allocation93_spill] sm:$0xff] %v11342_v51  ;;  %14234 = vst [vmem:[#allocation94_spill] sm:$0xff] %v11344_v11  ;;  %5655 = vmatprep.subr.bf16.mxu1 %v9876_v6 }
 0x1dc   : > { %4073 = vmatmul.mubr.bf16.gmra.mxu0 %v11322_v35  ;;  %v1027_v35 = vld [vmem:[%s10656_s2 + $0x688] sm:$0xff] }
 0x1dd   : > { %4426 = vmatmul.mubr.bf16.gmra.mxu1 %v11324_v52  ;;  %4082 = vmatprep.mubr.bf16.mxu0 %v11326_v28  ;;  %v9873_v28 = vld [vmem:[%s10664_s9 + $0xec] ss:$16 sps:$4 sm:$0xff]   ;;  %v11356_v52 = vcombine.low %v954_v60, %v958_v15  ;;  %v974_v60 = vld [vmem:[%s10656_s2 + $0x4e0] sm:$0xff] }
 0x1de   : > { %4435 = vmatprep.mubr.bf16.mxu1 %v11328_v12  ;;  %v962_v12 = vld [vmem:[%s10656_s2 + $0x480] sm:$0xff]  ;;  %5302 = vmatprep.subr.bf16.mxu0 %v9873_v28  ;;  %v971_v15 = vld [vmem:[%s10656_s2 + $0x4c8] sm:$0xff] }
 0x1df   : > { %14235 = vst [vmem:[#allocation95_spill] sm:$0xff] %v11356_v52  ;;  %v970_v28 = vld [vmem:[%s10656_s2 + $0x4c0] sm:$0xff] }
 0x1e0   : > { %v11376_v6 = vcombine.high %v970_v28, %v974_v60 }
 0x1e2   : > { %14241 = vst [vmem:[#allocation101_spill] sm:$0xff] %v11376_v6 }
 0x1e4   : > { %4083 = vmatmul.mubr.bf16.gmra.mxu0 %v11338_v59  ;;  %v11358_v59 = vcombine.low %v955_v36, %v959_v37  ;;  %v975_v36 = vld [vmem:[%s10656_s2 + $0x4e8] sm:$0xff]  ;;  %v11372_v37 = vcombine.low %v962_v12, %v966_v16 }
 0x1e5   : > { %4436 = vmatmul.mubr.bf16.gmra.mxu1 %v11340_v38  ;;  %4092 = vmatprep.mubr.bf16.mxu0 %v11342_v51  ;;  %v11360_v38 = vcombine.high %v962_v12, %v966_v16  ;;  %v11362_v51 = vcombine.high %v963_v27, %v967_v5  ;;  %v978_v12 = vld [vmem:[%s10656_s2 + $0x500] sm:$0xff] }
 0x1e6   : > { %4445 = vmatprep.mubr.bf16.mxu1 %v11344_v11  ;;  %14236 = vst [vmem:[#allocation96_spill] sm:$0xff] %v11358_v59  ;;  %14239 = vst [vmem:[#allocation99_spill] sm:$0xff] %v11372_v37  ;;  %v11374_v11 = vcombine.low %v963_v27, %v967_v5  ;;  %v982_v16 = vld [vmem:[%s10656_s2 + $0x520] sm:$0xff]  ;;  %v979_v27 = vld [vmem:[%s10656_s2 + $0x508] sm:$0xff] }
 0x1e7   : > { %14237 = vst [vmem:[#allocation97_spill] sm:$0xff] %v11360_v38  ;;  %14238 = vst [vmem:[#allocation98_spill] sm:$0xff] %v11362_v51  ;;  %v983_v5 = vld [vmem:[%s10656_s2 + $0x528] sm:$0xff] }
 0x1e8   : > { %14240 = vst [vmem:[#allocation100_spill] sm:$0xff] %v11374_v11 }
 0x1ec   : > { %4093 = vmatmul.mubr.bf16.gmra.mxu0 %v11356_v52  ;;  %v11378_v52 = vcombine.high %v971_v15, %v975_v36 }
 0x1ed   : > { %4446 = vmatmul.mubr.bf16.gmra.mxu1 %v11358_v59  ;;  %4102 = vmatprep.mubr.bf16.mxu0 %v11360_v38  ;;  %v11390_v38 = vcombine.low %v971_v15, %v975_v36  ;;  %v11392_v59 = vcombine.high %v978_v12, %v982_v16  ;;  %v987_v15 = vld [vmem:[%s10656_s2 + $0x548] sm:$0xff] }
 0x1ee   : > { %4455 = vmatprep.mubr.bf16.mxu1 %v11362_v51  ;;  %14242 = vst [vmem:[#allocation102_spill] sm:$0xff] %v11378_v52  ;;  %v11388_v51 = vcombine.low %v970_v28, %v974_v60  ;;  %v986_v28 = vld [vmem:[%s10656_s2 + $0x540] sm:$0xff]  ;;  %v991_v36 = vld [vmem:[%s10656_s2 + $0x568] sm:$0xff] }
 0x1ef   : > { %14244 = vst [vmem:[#allocation104_spill] sm:$0xff] %v11390_v38  ;;  %14245 = vst [vmem:[#allocation105_spill] sm:$0xff] %v11392_v59  ;;  %v990_v60 = vld [vmem:[%s10656_s2 + $0x560] sm:$0xff] }
 0x1f0   : > { %14243 = vst [vmem:[#allocation103_spill] sm:$0xff] %v11388_v51 }
 0x1f4   : > { %4103 = vmatmul.mubr.bf16.gmra.mxu0 %v11372_v37  ;;  %v11394_v37 = vcombine.high %v979_v27, %v983_v5 }
 0x1f5   : > { %4456 = vmatmul.mubr.bf16.gmra.mxu1 %v11374_v11  ;;  %4112 = vmatprep.mubr.bf16.mxu0 %v11376_v6  ;;  %v11406_v6 = vcombine.low %v979_v27, %v983_v5  ;;  %v11408_v11 = vcombine.high %v986_v28, %v990_v60  ;;  %v995_v27 = vld [vmem:[%s10656_s2 + $0x588] sm:$0xff] }
 0x1f6   : > { %4465 = vmatprep.mubr.bf16.mxu1 %v11378_v52  ;;  %14246 = vst [vmem:[#allocation106_spill] sm:$0xff] %v11394_v37  ;;  %v11404_v52 = vcombine.low %v978_v12, %v982_v16  ;;  %v994_v12 = vld [vmem:[%s10656_s2 + $0x580] sm:$0xff]  ;;  %v999_v5 = vld [vmem:[%s10656_s2 + $0x5a8] sm:$0xff] }
 0x1f7   : > { %14248 = vst [vmem:[#allocation108_spill] sm:$0xff] %v11406_v6  ;;  %14249 = vst [vmem:[#allocation109_spill] sm:$0xff] %v11408_v11  ;;  %v998_v16 = vld [vmem:[%s10656_s2 + $0x5a0] sm:$0xff] }
 0x1f8   : > { %14247 = vst [vmem:[#allocation107_spill] sm:$0xff] %v11404_v52 }
 0x1fc   : > { %4113 = vmatmul.mubr.bf16.gmra.mxu0 %v11388_v51  ;;  %v11410_v51 = vcombine.high %v987_v15, %v991_v36 }
 0x1fd   : > { %4466 = vmatmul.mubr.bf16.gmra.mxu1 %v11390_v38  ;;  %4122 = vmatprep.mubr.bf16.mxu0 %v11392_v59  ;;  %v11422_v59 = vcombine.low %v987_v15, %v991_v36  ;;  %v11424_v38 = vcombine.high %v994_v12, %v998_v16  ;;  %v1003_v15 = vld [vmem:[%s10656_s2 + $0x5c8] sm:$0xff] }
 0x1fe   : > { %4475 = vmatprep.mubr.bf16.mxu1 %v11394_v37  ;;  %14250 = vst [vmem:[#allocation110_spill] sm:$0xff] %v11410_v51  ;;  %v11420_v37 = vcombine.low %v986_v28, %v990_v60  ;;  %v1002_v28 = vld [vmem:[%s10656_s2 + $0x5c0] sm:$0xff]  ;;  %v1007_v36 = vld [vmem:[%s10656_s2 + $0x5e8] sm:$0xff] }
 0x1ff   : > { %14252 = vst [vmem:[#allocation112_spill] sm:$0xff] %v11422_v59  ;;  %14253 = vst [vmem:[#allocation113_spill] sm:$0xff] %v11424_v38  ;;  %v1006_v60 = vld [vmem:[%s10656_s2 + $0x5e0] sm:$0xff] }
 0x200   : > { %14251 = vst [vmem:[#allocation111_spill] sm:$0xff] %v11420_v37 }
 0x204   : > { %4123 = vmatmul.mubr.bf16.gmra.mxu0 %v11404_v52  ;;  %v11426_v52 = vcombine.high %v995_v27, %v999_v5 }
 0x205   : > { %4476 = vmatmul.mubr.bf16.gmra.mxu1 %v11406_v6  ;;  %4132 = vmatprep.mubr.bf16.mxu0 %v11408_v11  ;;  %v11438_v11 = vcombine.low %v995_v27, %v999_v5  ;;  %v11440_v6 = vcombine.high %v1002_v28, %v1006_v60  ;;  %v1011_v27 = vld [vmem:[%s10656_s2 + $0x608] sm:$0xff] }
 0x206   : > { %4485 = vmatprep.mubr.bf16.mxu1 %v11410_v51  ;;  %14254 = vst [vmem:[#allocation114_spill] sm:$0xff] %v11426_v52  ;;  %v11436_v51 = vcombine.low %v994_v12, %v998_v16  ;;  %v1010_v12 = vld [vmem:[%s10656_s2 + $0x600] sm:$0xff]  ;;  %v1015_v5 = vld [vmem:[%s10656_s2 + $0x628] sm:$0xff] }
 0x207   : > { %14256 = vst [vmem:[#allocation116_spill] sm:$0xff] %v11438_v11  ;;  %14257 = vst [vmem:[#allocation117_spill] sm:$0xff] %v11440_v6  ;;  %v1014_v16 = vld [vmem:[%s10656_s2 + $0x620] sm:$0xff] }
 0x208   : > { %14255 = vst [vmem:[#allocation115_spill] sm:$0xff] %v11436_v51 }
 0x20c   : > { %4133 = vmatmul.mubr.bf16.gmra.mxu0 %v11420_v37  ;;  %v11442_v37 = vcombine.high %v1003_v15, %v1007_v36 }
 0x20d   : > { %4486 = vmatmul.mubr.bf16.gmra.mxu1 %v11422_v59  ;;  %4142 = vmatprep.mubr.bf16.mxu0 %v11424_v38  ;;  %v11454_v38 = vcombine.low %v1003_v15, %v1007_v36  ;;  %v11456_v59 = vcombine.high %v1010_v12, %v1014_v16  ;;  %v11470_v15 = vcombine.low %v1011_v27, %v1015_v5 }
 0x20e   : > { %4495 = vmatprep.mubr.bf16.mxu1 %v11426_v52  ;;  %14258 = vst [vmem:[#allocation118_spill] sm:$0xff] %v11442_v37  ;;  %v11452_v52 = vcombine.low %v1002_v28, %v1006_v60  ;;  %v1023_v28 = vld [vmem:[%s10656_s2 + $0x668] sm:$0xff]  ;;  %v11468_v60 = vcombine.low %v1010_v12, %v1014_v16  ;;  %v1026_v12 = vld [vmem:[%s10656_s2 + $0x680] sm:$0xff] }
 0x20f   : > { %14260 = vst [vmem:[#allocation120_spill] sm:$0xff] %v11454_v38  ;;  %14261 = vst [vmem:[#allocation121_spill] sm:$0xff] %v11456_v59 }
 0x210   : > { %14259 = vst [vmem:[#allocation119_spill] sm:$0xff] %v11452_v52  ;;  %14263 = vst [vmem:[#allocation123_spill] sm:$0xff] %v11468_v60 }
 0x211   : > { %14264 = vst [vmem:[#allocation124_spill] sm:$0xff] %v11470_v15 }
 0x214   : > { %4143 = vmatmul.mubr.bf16.gmra.mxu0 %v11436_v51  ;;  %v11458_v51 = vcombine.high %v1011_v27, %v1015_v5  ;;  %v1030_v5 = vld [vmem:[%s10656_s2 + $0x6a0] sm:$0xff] }
 0x215   : > { %4496 = vmatmul.mubr.bf16.gmra.mxu1 %v11438_v11  ;;  %4152 = vmatprep.mubr.bf16.mxu0 %v11440_v6  ;;  %v1022_v6 = vld [vmem:[%s10656_s2 + $0x660] sm:$0xff]  ;;  %v1019_v11 = vld [vmem:[%s10656_s2 + $0x648] sm:$0xff] }
 0x216   : > { %4505 = vmatprep.mubr.bf16.mxu1 %v11442_v37  ;;  %14262 = vst [vmem:[#allocation122_spill] sm:$0xff] %v11458_v51  ;;  %v1018_v37 = vld [vmem:[%s10656_s2 + $0x640] sm:$0xff] }
 0x217   : > { %v11472_v36 = vcombine.high %v1018_v37, %v1022_v6 }
 0x219   : > { %14265 = vst [vmem:[#allocation125_spill] sm:$0xff] %v11472_v36 }
 0x21c   : > { %4153 = vmatmul.mubr.bf16.gmra.mxu0 %v11452_v52  ;;  %v11474_v52 = vcombine.high %v1019_v11, %v1023_v28 }
 0x21d   : > { %4506 = vmatmul.mubr.bf16.gmra.mxu1 %v11454_v38  ;;  %4162 = vmatprep.mubr.bf16.mxu0 %v11456_v59 }
 0x21e   : > { %4515 = vmatprep.mubr.bf16.mxu1 %v11458_v51  ;;  %14266 = vst [vmem:[#allocation126_spill] sm:$0xff] %v11474_v52 }
 0x224   : > { %v3924_v38 = vpop.f32.mrf.mxu0  ;;  %4163 = vmatmul.mubr.bf16.gmra.mxu0 %v11468_v60  ;;  %v11488_v60 = vcombine.low %v1018_v37, %v1022_v6 }
 0x225   : > { %v4277_v51 = vpop.f32.mrf.mxu1  ;;  %4516 = vmatmul.mubr.bf16.gmra.mxu1 %v11470_v15  ;;  %4172 = vmatprep.mubr.bf16.mxu0 %v11472_v36  ;;  %v11490_v15 = vcombine.low %v1019_v11, %v1023_v28  ;;  %v1038_v28 = vld [vmem:[%s10656_s2 + $0x6e0] sm:$0xff] }
 0x226   : > { %v11478_v59 = vadd.f32 %v4277_v51, %v3924_v38  ;;  %4525 = vmatprep.mubr.bf16.mxu1 %v11474_v52  ;;  %v3926_v16 = vpop.f32.mrf.mxu0  ;;  %14267 = vst [vmem:[#allocation127_spill] sm:$0xff] %v11488_v60  ;;  %v11494_v51 = vcombine.high %v1026_v12, %v1030_v5  ;;  %v11496_v52 = vcombine.high %v1027_v35, %v1031_v34 }
 0x227   : > { %v4279_v27 = vpop.f32.mrf.mxu1  ;;  %14268 = vst [vmem:[#allocation128_spill] sm:$0xff] %v11490_v15 }
 0x228   : > { %v11486_v33 = vadd.f32 %v4279_v27, %v3926_v16  ;;  %v3928_v4 = vpop.f32.mrf.mxu0  ;;  %14269 = vst [vmem:[#allocation129_spill] sm:$0xff] %v11494_v51  ;;  %14270 = vst [vmem:[#allocation130_spill] sm:$0xff] %v11496_v52 }
 0x229   : > { %v4281_v3 = vpop.f32.mrf.mxu1 }
 0x22a   : > { %v11492_v38 = vadd.f32 %v4281_v3, %v3928_v4  ;;  %v3930_v36 = vpop.f32.mrf.mxu0  ;;  %v1034_v3 = vld [vmem:[%s10656_s2 + $0x6c0] sm:$0xff] }
 0x22b   : > { %v4283_v62 = vpop.f32.mrf.mxu1 }
 0x22c   : > { %v11498_v16 = vadd.f32 %v4283_v62, %v3930_v36  ;;  %v3934_v27 = vpop.f32.mrf.mxu0  ;;  %4173 = vmatmul.mubr.bf16.gmra.mxu0 %v11488_v60  ;;  %v11512_v60 = vcombine.low %v1026_v12, %v1030_v5 }
 0x22d   : > { %v4287_v37 = vpop.f32.mrf.mxu1  ;;  %4526 = vmatmul.mubr.bf16.gmra.mxu1 %v11490_v15  ;;  %4182 = vmatprep.mubr.bf16.mxu0 %v11494_v51  ;;  %v11514_v15 = vcombine.low %v1027_v35, %v1031_v34 }
 0x22e   : > { %v11502_v11 = vadd.f32 %v4287_v37, %v3934_v27  ;;  %4535 = vmatprep.mubr.bf16.mxu1 %v11496_v52  ;;  %v3936_v4 = vpop.f32.mrf.mxu0  ;;  %14271 = vst [vmem:[#allocation131_spill] sm:$0xff] %v11512_v60  ;;  %v11518_v37 = vcombine.high %v1034_v3, %v1038_v28  ;;  %v11520_v52 = vcombine.high %v1035_v61, %v1039_v50 }
 0x22f   : > { %v4289_v6 = vpop.f32.mrf.mxu1  ;;  %14272 = vst [vmem:[#allocation132_spill] sm:$0xff] %v11514_v15 }
 0x230   : > { %v11510_v62 = vadd.f32 %v4289_v6, %v3936_v4  ;;  %v3938_v36 = vpop.f32.mrf.mxu0  ;;  %14273 = vst [vmem:[#allocation133_spill] sm:$0xff] %v11518_v37  ;;  %14274 = vst [vmem:[#allocation134_spill] sm:$0xff] %v11520_v52 }
 0x231   : > { %v4291_v49 = vpop.f32.mrf.mxu1 }
 0x232   : > { %v11516_v27 = vadd.f32 %v4291_v49, %v3938_v36  ;;  %v3940_v51 = vpop.f32.mrf.mxu0  ;;  %v1042_v49 = vld [vmem:[%s10656_s2 + $0x700] sm:$0xff] }
 0x233   : > { %v4293_v42 = vpop.f32.mrf.mxu1  ;;  %v1046_v36 = vld [vmem:[%s10656_s2 + $0x720] sm:$0xff] }
 0x234   : > { %v11522_v4 = vadd.f32 %v4293_v42, %v3940_v51  ;;  %v3944_v6 = vpop.f32.mrf.mxu0  ;;  %4183 = vmatmul.mubr.bf16.gmra.mxu0 %v11512_v60  ;;  %v11536_v60 = vcombine.low %v1034_v3, %v1038_v28 }
 0x235   : > { %v4297_v12 = vpop.f32.mrf.mxu1  ;;  %4536 = vmatmul.mubr.bf16.gmra.mxu1 %v11514_v15  ;;  %4192 = vmatprep.mubr.bf16.mxu0 %v11518_v37  ;;  %v11538_v15 = vcombine.low %v1035_v61, %v1039_v50 }
 0x236   : > { %v11526_v34 = vadd.f32 %v4297_v12, %v3944_v6  ;;  %4545 = vmatprep.mubr.bf16.mxu1 %v11520_v52  ;;  %v3946_v35 = vpop.f32.mrf.mxu0  ;;  %14275 = vst [vmem:[#allocation135_spill] sm:$0xff] %v11536_v60  ;;  %v11542_v12 = vcombine.high %v1042_v49, %v1046_v36  ;;  %v11544_v52 = vcombine.high %v1043_v41, %v1047_v26 }
 0x237   : > { %v4299_v5 = vpop.f32.mrf.mxu1  ;;  %14276 = vst [vmem:[#allocation136_spill] sm:$0xff] %v11538_v15 }
 0x238   : > { %v11534_v42 = vadd.f32 %v4299_v5, %v3946_v35  ;;  %v3948_v51 = vpop.f32.mrf.mxu0  ;;  %14277 = vst [vmem:[#allocation137_spill] sm:$0xff] %v11542_v12  ;;  %14278 = vst [vmem:[#allocation138_spill] sm:$0xff] %v11544_v52 }
 0x239   : > { %v4301_v25 = vpop.f32.mrf.mxu1 }
 0x23a   : > { %v11540_v6 = vadd.f32 %v4301_v25, %v3948_v51  ;;  %v3950_v37 = vpop.f32.mrf.mxu0  ;;  %v1050_v25 = vld [vmem:[%s10656_s2 + $0x740] sm:$0xff] }
 0x23b   : > { %v4303_v24 = vpop.f32.mrf.mxu1  ;;  %v1054_v51 = vld [vmem:[%s10656_s2 + $0x760] sm:$0xff] }
 0x23c   : > { %v11546_v35 = vadd.f32 %v4303_v24, %v3950_v37  ;;  %v3954_v5 = vpop.f32.mrf.mxu0  ;;  %4193 = vmatmul.mubr.bf16.gmra.mxu0 %v11536_v60  ;;  %v11560_v60 = vcombine.low %v1042_v49, %v1046_v36 }
 0x23d   : > { %v4307_v3 = vpop.f32.mrf.mxu1  ;;  %4546 = vmatmul.mubr.bf16.gmra.mxu1 %v11538_v15  ;;  %4202 = vmatprep.mubr.bf16.mxu0 %v11542_v12  ;;  %v11562_v15 = vcombine.low %v1043_v41, %v1047_v26 }
 0x23e   : > { %v11550_v50 = vadd.f32 %v4307_v3, %v3954_v5  ;;  %4555 = vmatprep.mubr.bf16.mxu1 %v11544_v52  ;;  %v3956_v61 = vpop.f32.mrf.mxu0  ;;  %14279 = vst [vmem:[#allocation139_spill] sm:$0xff] %v11560_v60  ;;  %v11566_v3 = vcombine.high %v1050_v25, %v1054_v51  ;;  %v11568_v52 = vcombine.high %v1051_v23, %v1055_v10 }
 0x23f   : > { %v4309_v28 = vpop.f32.mrf.mxu1  ;;  %14280 = vst [vmem:[#allocation140_spill] sm:$0xff] %v11562_v15 }
 0x240   : > { %v11558_v24 = vadd.f32 %v4309_v28, %v3956_v61  ;;  %v3958_v37 = vpop.f32.mrf.mxu0  ;;  %14281 = vst [vmem:[#allocation141_spill] sm:$0xff] %v11566_v3  ;;  %14282 = vst [vmem:[#allocation142_spill] sm:$0xff] %v11568_v52 }
 0x241   : > { %v4311_v9 = vpop.f32.mrf.mxu1 }
 0x242   : > { %v11564_v5 = vadd.f32 %v4311_v9, %v3958_v37  ;;  %v3960_v12 = vpop.f32.mrf.mxu0  ;;  %v1058_v9 = vld [vmem:[%s10656_s2 + $0x780] sm:$0xff] }
 0x243   : > { %v4313_v8 = vpop.f32.mrf.mxu1  ;;  %v1062_v37 = vld [vmem:[%s10656_s2 + $0x7a0] sm:$0xff] }
 0x244   : > { %v11570_v61 = vadd.f32 %v4313_v8, %v3960_v12  ;;  %v3964_v28 = vpop.f32.mrf.mxu0  ;;  %4203 = vmatmul.mubr.bf16.gmra.mxu0 %v11560_v60  ;;  %v11584_v60 = vcombine.low %v1050_v25, %v1054_v51 }
 0x245   : > { %v4317_v49 = vpop.f32.mrf.mxu1  ;;  %4556 = vmatmul.mubr.bf16.gmra.mxu1 %v11562_v15  ;;  %4212 = vmatprep.mubr.bf16.mxu0 %v11566_v3  ;;  %v11586_v15 = vcombine.low %v1051_v23, %v1055_v10 }
 0x246   : > { %v11574_v26 = vadd.f32 %v4317_v49, %v3964_v28  ;;  %4565 = vmatprep.mubr.bf16.mxu1 %v11568_v52  ;;  %v3966_v41 = vpop.f32.mrf.mxu0  ;;  %14283 = vst [vmem:[#allocation143_spill] sm:$0xff] %v11584_v60  ;;  %v11590_v49 = vcombine.high %v1058_v9, %v1062_v37  ;;  %v11592_v52 = vcombine.high %v1059_v7, %v1063_v58 }
 0x247   : > { %v4319_v36 = vpop.f32.mrf.mxu1  ;;  %14284 = vst [vmem:[#allocation144_spill] sm:$0xff] %v11586_v15 }
 0x248   : > { %v11582_v8 = vadd.f32 %v4319_v36, %v3966_v41  ;;  %v3968_v12 = vpop.f32.mrf.mxu0  ;;  %14285 = vst [vmem:[#allocation145_spill] sm:$0xff] %v11590_v49  ;;  %14286 = vst [vmem:[#allocation146_spill] sm:$0xff] %v11592_v52 }
 0x249   : > { %v4321_v57 = vpop.f32.mrf.mxu1 }
 0x24a   : > { %v11588_v28 = vadd.f32 %v4321_v57, %v3968_v12  ;;  %v3970_v3 = vpop.f32.mrf.mxu0  ;;  %v1066_v57 = vld [vmem:[%s10656_s2 + $0x7c0] sm:$0xff] }
 0x24b   : > { %v4323_v55 = vpop.f32.mrf.mxu1  ;;  %v1070_v12 = vld [vmem:[%s10656_s2 + $0x7e0] sm:$0xff] }
 0x24c   : > { %v11594_v41 = vadd.f32 %v4323_v55, %v3970_v3  ;;  %v3974_v36 = vpop.f32.mrf.mxu0  ;;  %4213 = vmatmul.mubr.bf16.gmra.mxu0 %v11584_v60  ;;  %v11608_v60 = vcombine.low %v1058_v9, %v1062_v37 }
 0x24d   : > { %v4327_v25 = vpop.f32.mrf.mxu1  ;;  %4566 = vmatmul.mubr.bf16.gmra.mxu1 %v11586_v15  ;;  %4222 = vmatprep.mubr.bf16.mxu0 %v11590_v49  ;;  %v11610_v15 = vcombine.low %v1059_v7, %v1063_v58 }
 0x24e   : > { %v11598_v10 = vadd.f32 %v4327_v25, %v3974_v36  ;;  %4575 = vmatprep.mubr.bf16.mxu1 %v11592_v52  ;;  %v3976_v23 = vpop.f32.mrf.mxu0  ;;  %14287 = vst [vmem:[#allocation147_spill] sm:$0xff] %v11608_v60  ;;  %v11614_v25 = vcombine.high %v1066_v57, %v1070_v12  ;;  %v11616_v52 = vcombine.high %v1067_v53, %v1071_v44 }
 0x24f   : > { %v4329_v51 = vpop.f32.mrf.mxu1  ;;  %14288 = vst [vmem:[#allocation148_spill] sm:$0xff] %v11610_v15 }
 0x250   : > { %v11606_v55 = vadd.f32 %v4329_v51, %v3976_v23  ;;  %v3978_v3 = vpop.f32.mrf.mxu0  ;;  %14289 = vst [vmem:[#allocation149_spill] sm:$0xff] %v11614_v25  ;;  %14290 = vst [vmem:[#allocation150_spill] sm:$0xff] %v11616_v52 }
 0x251   : > { %v4331_v43 = vpop.f32.mrf.mxu1 }
 0x252   : > { %v11612_v36 = vadd.f32 %v4331_v43, %v3978_v3  ;;  %v3980_v49 = vpop.f32.mrf.mxu0  ;;  %v820_v43 = vld [vmem:[%s10656_s2 + $0x10] sm:$0xff] }
 0x253   : > { %v4333_v40 = vpop.f32.mrf.mxu1  ;;  %v824_v3 = vld [vmem:[%s10656_s2 + $0x30] sm:$0xff] }
 0x254   : > { %v11618_v23 = vadd.f32 %v4333_v40, %v3980_v49  ;;  %v3984_v51 = vpop.f32.mrf.mxu0  ;;  %4223 = vmatmul.mubr.bf16.gmra.mxu0 %v11608_v60  ;;  %v11632_v60 = vcombine.low %v1066_v57, %v1070_v12  ;;  %v828_v12 = vld [vmem:[%s10656_s2 + $0x50] sm:$0xff]  ;;  %v11656_v2 = vcombine.low %v820_v43, %v824_v3 }
 0x255   : > { %v4337_v9 = vpop.f32.mrf.mxu1  ;;  %4576 = vmatmul.mubr.bf16.gmra.mxu1 %v11610_v15  ;;  %4232 = vmatprep.mubr.bf16.mxu0 %v11614_v25 }
 0x256   : > { %v11622_v58 = vadd.f32 %v4337_v9, %v3984_v51  ;;  %4585 = vmatprep.mubr.bf16.mxu1 %v11616_v52  ;;  %v3986_v7 = vpop.f32.mrf.mxu0  ;;  %14291 = vst [vmem:[#allocation151_spill] sm:$0xff] %v11632_v60  ;;  %v11638_v9 = vcombine.high %v820_v43, %v824_v3  ;;  %v11640_v52 = vcombine.high %v821_v39, %v825_v22  ;;  %14295 = vst [vmem:[#allocation155_spill] sm:$0xff] %v11656_v2  ;;  %v9879_v43 = vld [vmem:[%s10664_s9 + $0xcc] ss:$16 sps:$4 sm:$0xff]  }
 0x257   : > { %v4339_v37 = vpop.f32.mrf.mxu1  ;;  %v9882_v3 = vld [vmem:[%s10664_s9 + $0x2cc] ss:$16 sps:$4 sm:$0xff]  }
 0x258   : > { %v11630_v40 = vadd.f32 %v4339_v37, %v3986_v7  ;;  %v3988_v49 = vpop.f32.mrf.mxu0  ;;  %14293 = vst [vmem:[#allocation153_spill] sm:$0xff] %v11638_v9  ;;  %14294 = vst [vmem:[#allocation154_spill] sm:$0xff] %v11640_v52 }
 0x259   : > { %v4341_v21 = vpop.f32.mrf.mxu1 }
 0x25a   : > { %v11636_v51 = vadd.f32 %v4341_v21, %v3988_v49  ;;  %v3990_v25 = vpop.f32.mrf.mxu0 }
 0x25b   : > { %v4343_v15 = vpop.f32.mrf.mxu1 }
 0x25c   : > { %v11642_v7 = vadd.f32 %v4343_v15, %v3990_v25  ;;  %v3994_v37 = vpop.f32.mrf.mxu0  ;;  %4233 = vmatmul.mubr.bf16.gmra.mxu0 %v11632_v60  ;;  %v832_v15 = vld [vmem:[%s10656_s2 + $0x70] sm:$0xff]  ;;  %v829_v25 = vld [vmem:[%s10656_s2 + $0x58] sm:$0xff] }
 0x25d   : > { %v4347_v57 = vpop.f32.mrf.mxu1  ;;  %4586 = vmatmul.mubr.bf16.gmra.mxu1 %v11634_v20  ;;  %4628 = vmatprep.mubr.bf16.mxu0 %v11638_v9  ;;  %v833_v60 = vld [vmem:[%s10656_s2 + $0x78] sm:$0xff] }
 0x25e   : > { %v11646_v21 = vadd.f32 %v4347_v57, %v3994_v37  ;;  %4981 = vmatprep.mubr.bf16.mxu1 %v11640_v52  ;;  %v3996_v44 = vpop.f32.mrf.mxu0  ;;  %v11658_v37 = vcombine.low %v821_v39, %v825_v22  ;;  %v9871_v52 = vld [vmem:[%s10664_s9 + $0xe8] ss:$16 sps:$4 sm:$0xff]   ;;  %v11666_v0 = vcombine.high %v829_v25, %v833_v60 }
 0x25f   : > { %v4349_v53 = vpop.f32.mrf.mxu1  ;;  %v9874_v9 = vld [vmem:[%s10664_s9 + $0x2e8] ss:$16 sps:$4 sm:$0xff]  }
 0x260   : > { %v11651_v49 = vadd.f32 %v4349_v53, %v3996_v44  ;;  %v3998_v19 = vpop.f32.mrf.mxu0  ;;  %14296 = vst [vmem:[#allocation156_spill] sm:$0xff] %v11658_v37  ;;  %v11664_v53 = vcombine.high %v828_v12, %v832_v15  ;;  %14298 = vst [vmem:[#allocation158_spill] sm:$0xff] %v11666_v0 }
 0x261   : > { %v4351_v20 = vpop.f32.mrf.mxu1 }
 0x262   : > { %v11660_v57 = vadd.f32 %v4351_v20, %v3998_v19  ;;  %v4000_v1 = vpop.f32.mrf.mxu0  ;;  %14297 = vst [vmem:[#allocation157_spill] sm:$0xff] %v11664_v53  ;;  %v836_v19 = vld [vmem:[%s10656_s2 + $0x90] sm:$0xff] }
 0x263   : > { %v4353_v44 = vpop.f32.mrf.mxu1  ;;  %v840_v20 = vld [vmem:[%s10656_s2 + $0xb0] sm:$0xff] }
 0x264   : > { %v11668_v63 = vadd.f32 %v4353_v44, %v4000_v1  ;;  %v4004_v22 = vpop.f32.mrf.mxu0  ;;  %4629 = vmatmul.mubr.bf16.vlgmr.msra.gmra.mxu0 %v11656_v2  ;;  %v9877_v1 = vld [vmem:[%s10664_s9 + $0xc8] ss:$16 sps:$4 sm:$0xff]   ;;  %v9885_v2 = vld [vmem:[%s10664_s9 + $0xac] ss:$16 sps:$4 sm:$0xff]  }
 0x265   : > { %v4357_v39 = vpop.f32.mrf.mxu1  ;;  %4982 = vmatmul.mubr.bf16.vlgmr.msra.gmra.mxu1 %v11658_v37  ;;  %5303 = vmatpush1.bf16.msra.mxu0 %v9871_v52  ;;  %v9880_v44 = vld [vmem:[%s10664_s9 + $0x2c8] ss:$16 sps:$4 sm:$0xff]  }
 0x266   : > { %v11676_v48 = vadd.f32 %v4357_v39, %v4004_v22  ;;  %5656 = vmatpush1.bf16.msra.mxu1 %v9874_v9  ;;  %v4006_v46 = vpop.f32.mrf.mxu0  ;;  %4638 = vmatprep.mubr.bf16.mxu0 %v11664_v53  ;;  %v11688_v22 = vcombine.low %v828_v12, %v832_v15  ;;  %v11690_v39 = vcombine.low %v829_v25, %v833_v60  ;;  %v9891_v12 = vld [vmem:[%s10664_s9 + $0x8c] ss:$16 sps:$4 sm:$0xff]  }
 0x267   : > { %v4359_v45 = vpop.f32.mrf.mxu1  ;;  %4991 = vmatprep.mubr.bf16.mxu1 %v11666_v0  ;;  %5304 = vmatprep.subr.bf16.mxu0 %v9879_v43  ;;  %v11694_v0 = vcombine.high %v836_v19, %v840_v20  ;;  %v9883_v43 = vld [vmem:[%s10664_s9 + $0xa8] ss:$16 sps:$4 sm:$0xff]   ;;  %v9894_v15 = vld [vmem:[%s10664_s9 + $0x28c] ss:$16 sps:$4 sm:$0xff]  }
 0x268   : > { %v11686_v37 = vadd.f32 %v4359_v45, %v4006_v46  ;;  %5657 = vmatprep.subr.bf16.mxu1 %v9882_v3  ;;  %v4008_v52 = vpop.f32.mrf.mxu0  ;;  %14300 = vst [vmem:[#allocation160_spill] sm:$0xff] %v11688_v22  ;;  %14301 = vst [vmem:[#allocation161_spill] sm:$0xff] %v11690_v39  ;;  %v9886_v3 = vld [vmem:[%s10664_s9 + $0x2a8] ss:$16 sps:$4 sm:$0xff]  }
 0x269   : > { %v4361_v9 = vpop.f32.mrf.mxu1  ;;  %14303 = vst [vmem:[#allocation163_spill] sm:$0xff] %v11694_v0  ;;  %5305 = vmatpush1.bf16.msra.mxu0 %v9877_v1 }
 0x26a   : > { %14299 = vst [vmem:[#allocation159_spill] sm:$0xff] %v11686_v37  ;;  %v11692_v53 = vadd.f32 %v4361_v9, %v4008_v52  ;;  %5658 = vmatpush1.bf16.msra.mxu1 %v9880_v44  ;;  %v4010_v45 = vpop.f32.mrf.mxu0  ;;  %5306 = vmatprep.subr.bf16.mxu0 %v9885_v2  ;;  %v848_v2 = vld [vmem:[%s10656_s2 + $0xf0] sm:$0xff]  ;;  %v845_v44 = vld [vmem:[%s10656_s2 + $0xd8] sm:$0xff] }
 0x26b   : > { %v4363_v46 = vpop.f32.mrf.mxu1  ;;  %5659 = vmatprep.subr.bf16.mxu1 %v9888_v31  ;;  %v844_v31 = vld [vmem:[%s10656_s2 + $0xd0] sm:$0xff] }
 0x26c   : > { %14302 = vst [vmem:[#allocation162_spill] sm:$0xff] %v11692_v53  ;;  %v11700_v60 = vadd.f32 %v4363_v46, %v4010_v45  ;;  %v4014_v25 = vpop.f32.mrf.mxu0  ;;  %4639 = vmatmul.mubr.bf16.gmra.mxu0 %v11688_v22  ;;  %v849_v46 = vld [vmem:[%s10656_s2 + $0xf8] sm:$0xff]  ;;  %v566_v37 = vld [vmem:[#allocation2 + $0x450] sm:$0xff] }
 0x26d   : > { %v4367_v52 = vpop.f32.mrf.mxu1  ;;  %4992 = vmatmul.mubr.bf16.gmra.mxu1 %v11690_v39  ;;  %4648 = vmatprep.mubr.bf16.mxu0 %v11694_v0  ;;  %v9892_v22 = vld [vmem:[%s10664_s9 + $0x288] ss:$16 sps:$4 sm:$0xff]   ;;  %v11720_v39 = vcombine.low %v836_v19, %v840_v20  ;;  %v852_v19 = vld [vmem:[%s10656_s2 + $0x110] sm:$0xff] }
 0x26e   : > { %14305 = vst [vmem:[#allocation165_spill] sm:$0xff] %v11700_v60  ;;  %v11706_v1 = vadd.f32 %v4367_v52, %v4014_v25  ;;  %5001 = vmatprep.mubr.bf16.mxu1 %v11696_v30  ;;  %v4016_v9 = vpop.f32.mrf.mxu0  ;;  %5307 = vmatpush1.bf16.msra.mxu0 %v9883_v43  ;;  %v9897_v25 = vld [vmem:[%s10664_s9 + $0x6c] ss:$16 sps:$4 sm:$0xff]   ;;  %v856_v20 = vld [vmem:[%s10656_s2 + $0x130] sm:$0xff] }
 0x26f   : > { %v4369_v45 = vpop.f32.mrf.mxu1  ;;  %5660 = vmatpush1.bf16.msra.mxu1 %v9886_v3  ;;  %5308 = vmatprep.subr.bf16.mxu0 %v9891_v12  ;;  %v9900_v52 = vld [vmem:[%s10664_s9 + $0x26c] ss:$16 sps:$4 sm:$0xff]   ;;  %14308 = vst [vmem:[#allocation168_spill] sm:$0xff] %v11720_v39  ;;  %v11726_v3 = vcombine.high %v844_v31, %v848_v2 }
 0x270   : > { %14306 = vst [vmem:[#allocation166_spill] sm:$0xff] %v11706_v1  ;;  %v11716_v60 = vadd.f32 %v4369_v45, %v4016_v9  ;;  %5661 = vmatprep.subr.bf16.mxu1 %v9894_v15  ;;  %v4018_v0 = vpop.f32.mrf.mxu0  ;;  %v11722_v1 = vcombine.low %v837_v47, %v841_v32  ;;  %v11728_v9 = vcombine.high %v845_v44, %v849_v46  ;;  %v9895_v15 = vld [vmem:[%s10664_s9 + $0x68] ss:$16 sps:$4 sm:$0xff]   ;;  %v9906_v32 = vld [vmem:[%s10664_s9 + $0x24c] ss:$16 sps:$4 sm:$0xff]  }
 0x271   : > { %v4371_v30 = vpop.f32.mrf.mxu1  ;;  %14311 = vst [vmem:[#allocation171_spill] sm:$0xff] %v11726_v3 }
 0x272   : > { %14307 = vst [vmem:[#allocation167_spill] sm:$0xff] %v11716_v60  ;;  %14309 = vst [vmem:[#allocation169_spill] sm:$0xff] %v11722_v1  ;;  %v11724_v43 = vadd.f32 %v4371_v30, %v4018_v0  ;;  %v4020_v45 = vpop.f32.mrf.mxu0  ;;  %5309 = vmatpush1.bf16.msra.mxu0 %v9889_v29  ;;  %v9898_v60 = vld [vmem:[%s10664_s9 + $0x268] ss:$16 sps:$4 sm:$0xff]   ;;  %v9903_v30 = vld [vmem:[%s10664_s9 + $0x4c] ss:$16 sps:$4 sm:$0xff]  }
 0x273   : > { %14312 = vst [vmem:[#allocation172_spill] sm:$0xff] %v11728_v9  ;;  %v4373_v12 = vpop.f32.mrf.mxu1  ;;  %5662 = vmatpush1.bf16.msra.mxu1 %v9892_v22  ;;  %5310 = vmatprep.subr.bf16.mxu0 %v9897_v25  ;;  %v853_v22 = vld [vmem:[%s10656_s2 + $0x118] sm:$0xff] }
 0x274   : > { %14310 = vst [vmem:[#allocation170_spill] sm:$0xff] %v11724_v43  ;;  %v11732_v53 = vadd.f32 %v4373_v12, %v4020_v45  ;;  %5663 = vmatprep.subr.bf16.mxu1 %v9900_v52  ;;  %v4024_v47 = vpop.f32.mrf.mxu0  ;;  %4649 = vmatmul.mubr.bf16.gmra.mxu0 %v11720_v39  ;;  %v857_v45 = vld [vmem:[%s10656_s2 + $0x138] sm:$0xff] }
 0x275   : > { %v4377_v0 = vpop.f32.mrf.mxu1  ;;  %5002 = vmatmul.mubr.bf16.gmra.mxu1 %v11722_v1  ;;  %4658 = vmatprep.mubr.bf16.mxu0 %v11726_v3  ;;  %v9901_v12 = vld [vmem:[%s10664_s9 + $0x48] ss:$16 sps:$4 sm:$0xff]   ;;  %v11752_v1 = vcombine.low %v844_v31, %v848_v2  ;;  %v9915_v31 = vld [vmem:[%s10664_s9 + $0xc] ss:$16 sps:$4 sm:$0xff]  }
 0x276   : > { %14313 = vst [vmem:[#allocation173_spill] sm:$0xff] %v11732_v53  ;;  %v11738_v29 = vadd.f32 %v4377_v0, %v4024_v47  ;;  %5011 = vmatprep.mubr.bf16.mxu1 %v11728_v9  ;;  %v4026_v25 = vpop.f32.mrf.mxu0  ;;  %5311 = vmatpush1.bf16.msra.mxu0 %v9895_v15  ;;  %v9904_v39 = vld [vmem:[%s10664_s9 + $0x248] ss:$16 sps:$4 sm:$0xff]   ;;  %v9909_v47 = vld [vmem:[%s10664_s9 + $0x2c] ss:$16 sps:$4 sm:$0xff]  }
 0x277   : > { %v4379_v52 = vpop.f32.mrf.mxu1  ;;  %5664 = vmatpush1.bf16.msra.mxu1 %v9898_v60  ;;  %5312 = vmatprep.subr.bf16.mxu0 %v9903_v30  ;;  %v9912_v0 = vld [vmem:[%s10664_s9 + $0x22c] ss:$16 sps:$4 sm:$0xff]   ;;  %14316 = vst [vmem:[#allocation176_spill] sm:$0xff] %v11752_v1  ;;  %v11758_v60 = vcombine.high %v852_v19, %v856_v20 }
 0x278   : > { %14314 = vst [vmem:[#allocation174_spill] sm:$0xff] %v11738_v29  ;;  %v11748_v53 = vadd.f32 %v4379_v52, %v4026_v25  ;;  %5665 = vmatprep.subr.bf16.mxu1 %v9906_v32  ;;  %v4028_v3 = vpop.f32.mrf.mxu0  ;;  %v11754_v29 = vcombine.low %v845_v44, %v849_v46  ;;  %v11760_v25 = vcombine.high %v853_v22, %v857_v45  ;;  %v9907_v32 = vld [vmem:[%s10664_s9 + $0x28] ss:$16 sps:$4 sm:$0xff]   ;;  %v9918_v2 = vld [vmem:[%s10664_s9 + $0x20c] ss:$16 sps:$4 sm:$0xff]  }
 0x279   : > { %v4381_v9 = vpop.f32.mrf.mxu1  ;;  %14319 = vst [vmem:[#allocation179_spill] sm:$0xff] %v11758_v60 }
 0x27a   : > { %14315 = vst [vmem:[#allocation175_spill] sm:$0xff] %v11748_v53  ;;  %14317 = vst [vmem:[#allocation177_spill] sm:$0xff] %v11754_v29  ;;  %v11756_v15 = vadd.f32 %v4381_v9, %v4028_v3  ;;  %v4030_v52 = vpop.f32.mrf.mxu0  ;;  %5313 = vmatpush1.bf16.msra.mxu0 %v9901_v12  ;;  %v9910_v53 = vld [vmem:[%s10664_s9 + $0x228] ss:$16 sps:$4 sm:$0xff]   ;;  %v860_v3 = vld [vmem:[%s10656_s2 + $0x150] sm:$0xff] }
 0x27b   : > { %14320 = vst [vmem:[#allocation180_spill] sm:$0xff] %v11760_v25  ;;  %v4383_v30 = vpop.f32.mrf.mxu1  ;;  %5666 = vmatpush1.bf16.msra.mxu1 %v9904_v39  ;;  %5314 = vmatprep.subr.bf16.mxu0 %v9909_v47  ;;  %v864_v9 = vld [vmem:[%s10656_s2 + $0x170] sm:$0xff]  ;;  %v861_v12 = vld [vmem:[%s10656_s2 + $0x158] sm:$0xff] }
 0x27c   : > { %14318 = vst [vmem:[#allocation178_spill] sm:$0xff] %v11756_v15  ;;  %v11764_v43 = vadd.f32 %v4383_v30, %v4030_v52  ;;  %5667 = vmatprep.subr.bf16.mxu1 %v9912_v0  ;;  %v4034_v44 = vpop.f32.mrf.mxu0  ;;  %4659 = vmatmul.mubr.bf16.gmra.mxu0 %v11752_v1  ;;  %v865_v52 = vld [vmem:[%s10656_s2 + $0x178] sm:$0xff] }
 0x27d   : > { %v4387_v46 = vpop.f32.mrf.mxu1  ;;  %5012 = vmatmul.mubr.bf16.gmra.mxu1 %v11754_v29  ;;  %4668 = vmatprep.mubr.bf16.mxu0 %v11758_v60  ;;  %v9913_v30 = vld [vmem:[%s10664_s9 + $0x8] ss:$16 sps:$4 sm:$0xff]   ;;  %v11784_v29 = vcombine.low %v852_v19, %v856_v20  ;;  %v9927_v19 = vld [vmem:[%s10664_s9 + $0x1cc] ss:$16 sps:$4 sm:$0xff]  }
 0x27e   : > { %14321 = vst [vmem:[#allocation181_spill] sm:$0xff] %v11764_v43  ;;  %v11770_v39 = vadd.f32 %v4387_v46, %v4034_v44  ;;  %5021 = vmatprep.mubr.bf16.mxu1 %v11760_v25  ;;  %v4036_v47 = vpop.f32.mrf.mxu0  ;;  %5315 = vmatpush1.bf16.msra.mxu0 %v9907_v32  ;;  %v9916_v1 = vld [vmem:[%s10664_s9 + $0x208] ss:$16 sps:$4 sm:$0xff]   ;;  %v9921_v44 = vld [vmem:[%s10664_s9 + $0x1ec] ss:$16 sps:$4 sm:$0xff]  }
 0x27f   : > { %v4389_v0 = vpop.f32.mrf.mxu1  ;;  %5668 = vmatpush1.bf16.msra.mxu1 %v9910_v53  ;;  %5316 = vmatprep.subr.bf16.mxu0 %v9915_v31  ;;  %v9924_v46 = vld [vmem:[%s10664_s9 + $0x3ec] ss:$16 sps:$4 sm:$0xff]   ;;  %14324 = vst [vmem:[#allocation184_spill] sm:$0xff] %v11784_v29  ;;  %v11790_v53 = vcombine.high %v860_v3, %v864_v9 }
 0x280   : > { %14322 = vst [vmem:[#allocation182_spill] sm:$0xff] %v11770_v39  ;;  %v11780_v43 = vadd.f32 %v4389_v0, %v4036_v47  ;;  %5669 = vmatprep.subr.bf16.mxu1 %v9918_v2  ;;  %v4038_v60 = vpop.f32.mrf.mxu0  ;;  %v11786_v39 = vcombine.low %v853_v22, %v857_v45  ;;  %v11792_v47 = vcombine.high %v861_v12, %v865_v52  ;;  %v9919_v2 = vld [vmem:[%s10664_s9 + $0x1e8] ss:$16 sps:$4 sm:$0xff]   ;;  %v9930_v20 = vld [vmem:[%s10664_s9 + $0x3cc] ss:$16 sps:$4 sm:$0xff]  }
 0x281   : > { %v4391_v25 = vpop.f32.mrf.mxu1  ;;  %14327 = vst [vmem:[#allocation187_spill] sm:$0xff] %v11790_v53 }
 0x282   : > { %14323 = vst [vmem:[#allocation183_spill] sm:$0xff] %v11780_v43  ;;  %14325 = vst [vmem:[#allocation185_spill] sm:$0xff] %v11786_v39  ;;  %v11788_v32 = vadd.f32 %v4391_v25, %v4038_v60  ;;  %v4040_v0 = vpop.f32.mrf.mxu0  ;;  %5317 = vmatpush1.bf16.msra.mxu0 %v9913_v30  ;;  %v9922_v43 = vld [vmem:[%s10664_s9 + $0x3e8] ss:$16 sps:$4 sm:$0xff]   ;;  %v868_v60 = vld [vmem:[%s10656_s2 + $0x190] sm:$0xff] }
 0x283   : > { %14328 = vst [vmem:[#allocation188_spill] sm:$0xff] %v11792_v47  ;;  %v4393_v31 = vpop.f32.mrf.mxu1  ;;  %5670 = vmatpush1.bf16.msra.mxu1 %v9916_v1  ;;  %5318 = vmatprep.subr.bf16.mxu0 %v9921_v44  ;;  %v872_v25 = vld [vmem:[%s10656_s2 + $0x1b0] sm:$0xff]  ;;  %v869_v30 = vld [vmem:[%s10656_s2 + $0x198] sm:$0xff] }
 0x284   : > { %14326 = vst [vmem:[#allocation186_spill] sm:$0xff] %v11788_v32  ;;  %v11796_v15 = vadd.f32 %v4393_v31, %v4040_v0  ;;  %5671 = vmatprep.subr.bf16.mxu1 %v9924_v46  ;;  %v4044_v22 = vpop.f32.mrf.mxu0  ;;  %4669 = vmatmul.mubr.bf16.gmra.mxu0 %v11784_v29  ;;  %v873_v0 = vld [vmem:[%s10656_s2 + $0x1b8] sm:$0xff] }
 0x285   : > { %v4397_v45 = vpop.f32.mrf.mxu1  ;;  %5022 = vmatmul.mubr.bf16.gmra.mxu1 %v11786_v39  ;;  %4678 = vmatprep.mubr.bf16.mxu0 %v11790_v53  ;;  %v9925_v31 = vld [vmem:[%s10664_s9 + $0x1c8] ss:$16 sps:$4 sm:$0xff]   ;;  %v11816_v39 = vcombine.low %v860_v3, %v864_v9 }
 0x286   : > { %14329 = vst [vmem:[#allocation189_spill] sm:$0xff] %v11796_v15  ;;  %v11802_v1 = vadd.f32 %v4397_v45, %v4044_v22  ;;  %5031 = vmatprep.mubr.bf16.mxu1 %v11792_v47  ;;  %v4046_v44 = vpop.f32.mrf.mxu0  ;;  %5319 = vmatpush2.bf16.msra.mxu0 %v9919_v2  ;;  %v9928_v29 = vld [vmem:[%s10664_s9 + $0x3c8] ss:$16 sps:$4 sm:$0xff]   ;;  %v9933_v22 = vld [vmem:[%s10664_s9 + $0x1ac] ss:$16 sps:$4 sm:$0xff]   ;;  %v11822_v2 = vcombine.high %v868_v60, %v872_v25 }
 0x287   : > { %v4399_v46 = vpop.f32.mrf.mxu1  ;;  %5672 = vmatpush2.bf16.msra.mxu1 %v9922_v43  ;;  %5320 = vmatprep.subr.bf16.mxu0 %v9927_v19  ;;  %v9936_v45 = vld [vmem:[%s10664_s9 + $0x3ac] ss:$16 sps:$4 sm:$0xff]   ;;  %14332 = vst [vmem:[#allocation192_spill] sm:$0xff] %v11816_v39  ;;  %v11824_v43 = vcombine.high %v869_v30, %v873_v0  ;;  %v9931_v19 = vld [vmem:[%s10664_s9 + $0x1a8] ss:$16 sps:$4 sm:$0xff]  }
 0x288   : > { %14330 = vst [vmem:[#allocation190_spill] sm:$0xff] %v11802_v1  ;;  %v11812_v15 = vadd.f32 %v4399_v46, %v4046_v44  ;;  %5673 = vmatprep.subr.bf16.mxu1 %v9930_v20  ;;  %v4048_v53 = vpop.f32.mrf.mxu0  ;;  %v11818_v1 = vcombine.low %v861_v12, %v865_v52  ;;  %14335 = vst [vmem:[#allocation195_spill] sm:$0xff] %v11822_v2  ;;  %v9934_v20 = vld [vmem:[%s10664_s9 + $0x3a8] ss:$16 sps:$4 sm:$0xff]  }
 0x289   : > { %v4401_v47 = vpop.f32.mrf.mxu1  ;;  %14336 = vst [vmem:[#allocation196_spill] sm:$0xff] %v11824_v43 }
 0x28a   : > { %14331 = vst [vmem:[#allocation191_spill] sm:$0xff] %v11812_v15  ;;  %14333 = vst [vmem:[#allocation193_spill] sm:$0xff] %v11818_v1  ;;  %v11820_v32 = vadd.f32 %v4401_v47, %v4048_v53  ;;  %v4050_v44 = vpop.f32.mrf.mxu0  ;;  %5321 = vmatpush2.bf16.msra.mxu0 %v9925_v31  ;;  %v880_v31 = vld [vmem:[%s10656_s2 + $0x1f0] sm:$0xff] }
 0x28b   : > { %v4403_v46 = vpop.f32.mrf.mxu1  ;;  %5674 = vmatpush2.bf16.msra.mxu1 %v9928_v29  ;;  %5322 = vmatprep.subr.bf16.mxu0 %v9933_v22  ;;  %v876_v29 = vld [vmem:[%s10656_s2 + $0x1d0] sm:$0xff] }
 0x28c   : > { %14334 = vst [vmem:[#allocation194_spill] sm:$0xff] %v11820_v32  ;;  %v11828_v3 = vadd.f32 %v4403_v46, %v4050_v44  ;;  %5675 = vmatprep.subr.bf16.mxu1 %v9936_v45  ;;  %v4054_v9 = vpop.f32.mrf.mxu0  ;;  %4679 = vmatmul.mubr.bf16.gmra.mxu0 %v11816_v39  ;;  %v877_v44 = vld [vmem:[%s10656_s2 + $0x1d8] sm:$0xff] }
 0x28d   : > { %v4407_v12 = vpop.f32.mrf.mxu1  ;;  %5032 = vmatmul.mubr.bf16.gmra.mxu1 %v11818_v1  ;;  %4688 = vmatprep.mubr.bf16.mxu0 %v11822_v2  ;;  %v881_v46 = vld [vmem:[%s10656_s2 + $0x1f8] sm:$0xff]  ;;  %v11842_v1 = vcombine.low %v868_v60, %v872_v25  ;;  %v884_v25 = vld [vmem:[%s10656_s2 + $0x210] sm:$0xff] }
 0x28e   : > { %14337 = vst [vmem:[#allocation197_spill] sm:$0xff] %v11828_v3  ;;  %v11832_v52 = vadd.f32 %v4407_v12, %v4054_v9  ;;  %5041 = vmatprep.mubr.bf16.mxu1 %v11824_v43  ;;  %v4056_v53 = vpop.f32.mrf.mxu0  ;;  %5323 = vmatpush2.bf16.msra.mxu0 %v9931_v19  ;;  %v11844_v9 = vcombine.low %v869_v30, %v873_v0  ;;  %v9937_v30 = vld [vmem:[%s10664_s9 + $0x188] ss:$16 sps:$4 sm:$0xff]   ;;  %v9939_v0 = vld [vmem:[%s10664_s9 + $0x18c] ss:$16 sps:$4 sm:$0xff]  }
 0x28f   : > { %v4409_v47 = vpop.f32.mrf.mxu1  ;;  %5676 = vmatpush2.bf16.msra.mxu1 %v9934_v20  ;;  %14340 = vst [vmem:[#allocation200_spill] sm:$0xff] %v11842_v1  ;;  %v11848_v43 = vcombine.high %v876_v29, %v880_v31  ;;  %v11850_v2 = vcombine.high %v877_v44, %v881_v46  ;;  %5324 = vmatprep.subr.bf16.mxu0 %v9939_v0 }
 0x290   : > { %14338 = vst [vmem:[#allocation198_spill] sm:$0xff] %v11832_v52  ;;  %v11840_v22 = vadd.f32 %v4409_v47, %v4056_v53  ;;  %v4058_v45 = vpop.f32.mrf.mxu0  ;;  %14341 = vst [vmem:[#allocation201_spill] sm:$0xff] %v11844_v9  ;;  %v9942_v52 = vld [vmem:[%s10664_s9 + $0x38c] ss:$16 sps:$4 sm:$0xff]  }
 0x291   : > { %v4411_v39 = vpop.f32.mrf.mxu1  ;;  %14343 = vst [vmem:[#allocation203_spill] sm:$0xff] %v11848_v43  ;;  %14344 = vst [vmem:[#allocation204_spill] sm:$0xff] %v11850_v2  ;;  %5677 = vmatprep.subr.bf16.mxu1 %v9942_v52  ;;  %v892_v52 = vld [vmem:[%s10656_s2 + $0x250] sm:$0xff] }
 0x292   : > { %14339 = vst [vmem:[#allocation199_spill] sm:$0xff] %v11840_v22  ;;  %v11846_v12 = vadd.f32 %v4411_v39, %v4058_v45  ;;  %v4060_v19 = vpop.f32.mrf.mxu0  ;;  %5325 = vmatpush2.bf16.msra.mxu0 %v9937_v30  ;;  %v896_v30 = vld [vmem:[%s10656_s2 + $0x270] sm:$0xff] }
 0x293   : > { %v4413_v20 = vpop.f32.mrf.mxu1 }
 0x294   : > { %14342 = vst [vmem:[#allocation202_spill] sm:$0xff] %v11846_v12  ;;  %v11852_v53 = vadd.f32 %v4413_v20, %v4060_v19  ;;  %v4064_v47 = vpop.f32.mrf.mxu0  ;;  %4689 = vmatmul.mubr.bf16.gmra.mxu0 %v11842_v1  ;;  %v888_v20 = vld [vmem:[%s10656_s2 + $0x230] sm:$0xff]  ;;  %v889_v12 = vld [vmem:[%s10656_s2 + $0x238] sm:$0xff] }
 0x295   : > { %v4417_v60 = vpop.f32.mrf.mxu1  ;;  %5042 = vmatmul.mubr.bf16.gmra.mxu1 %v11844_v9  ;;  %4698 = vmatprep.mubr.bf16.mxu0 %v11848_v43  ;;  %v9940_v1 = vld [vmem:[%s10664_s9 + $0x388] ss:$16 sps:$4 sm:$0xff]   ;;  %v11872_v43 = vcombine.low %v877_v44, %v881_v46 }
 0x296   : > { %14345 = vst [vmem:[#allocation205_spill] sm:$0xff] %v11852_v53  ;;  %v11856_v39 = vadd.f32 %v4417_v60, %v4064_v47  ;;  %5051 = vmatprep.mubr.bf16.mxu1 %v11850_v2  ;;  %v4066_v45 = vpop.f32.mrf.mxu0  ;;  %v885_v53 = vld [vmem:[%s10656_s2 + $0x218] sm:$0xff]  ;;  %v11870_v60 = vcombine.low %v876_v29, %v880_v31  ;;  %5678 = vmatpush2.bf16.msra.mxu1 %v9940_v1 }
 0x297   : > { %v4419_v19 = vpop.f32.mrf.mxu1  ;;  %14349 = vst [vmem:[#allocation209_spill] sm:$0xff] %v11872_v43  ;;  %v11878_v3 = vcombine.high %v885_v53, %v889_v12  ;;  %v897_v1 = vld [vmem:[%s10656_s2 + $0x278] sm:$0xff] }
 0x298   : > { %14346 = vst [vmem:[#allocation206_spill] sm:$0xff] %v11856_v39  ;;  %v11866_v22 = vadd.f32 %v4419_v19, %v4066_v45  ;;  %v4068_v9 = vpop.f32.mrf.mxu0  ;;  %14348 = vst [vmem:[#allocation208_spill] sm:$0xff] %v11870_v60  ;;  %v11876_v39 = vcombine.high %v884_v25, %v888_v20 }
 0x299   : > { %v4421_v47 = vpop.f32.mrf.mxu1  ;;  %14352 = vst [vmem:[#allocation212_spill] sm:$0xff] %v11878_v3 }
 0x29a   : > { %14347 = vst [vmem:[#allocation207_spill] sm:$0xff] %v11866_v22  ;;  %v11874_v2 = vadd.f32 %v4421_v47, %v4068_v9  ;;  %14351 = vst [vmem:[#allocation211_spill] sm:$0xff] %v11876_v39  ;;  %v4070_v0 = vpop.f32.mrf.mxu0  ;;  %v893_v47 = vld [vmem:[%s10656_s2 + $0x258] sm:$0xff] }
 0x29b   : > { %v4423_v45 = vpop.f32.mrf.mxu1 }
 0x29c   : > { %14350 = vst [vmem:[#allocation210_spill] sm:$0xff] %v11874_v2  ;;  %v11880_v19 = vadd.f32 %v4423_v45, %v4070_v0  ;;  %v4074_v29 = vpop.f32.mrf.mxu0  ;;  %4699 = vmatmul.mubr.bf16.gmra.mxu0 %v11870_v60  ;;  %v11894_v60 = vcombine.low %v884_v25, %v888_v20  ;;  %v913_v2 = vld [vmem:[%s10656_s2 + $0x2f8] sm:$0xff] }
 0x29d   : > { %v4427_v31 = vpop.f32.mrf.mxu1  ;;  %5052 = vmatmul.mubr.bf16.gmra.mxu1 %v11872_v43  ;;  %4708 = vmatprep.mubr.bf16.mxu0 %v11876_v39  ;;  %v11896_v43 = vcombine.low %v885_v53, %v889_v12  ;;  %v900_v53 = vld [vmem:[%s10656_s2 + $0x290] sm:$0xff] }
 0x29e   : > { %14353 = vst [vmem:[#allocation213_spill] sm:$0xff] %v11880_v19  ;;  %v11884_v44 = vadd.f32 %v4427_v31, %v4074_v29  ;;  %5061 = vmatprep.mubr.bf16.mxu1 %v11878_v3  ;;  %v4076_v46 = vpop.f32.mrf.mxu0  ;;  %14356 = vst [vmem:[#allocation216_spill] sm:$0xff] %v11894_v60  ;;  %v11900_v31 = vcombine.high %v892_v52, %v896_v30  ;;  %v11902_v3 = vcombine.high %v893_v47, %v897_v1 }
 0x29f   : > { %v4429_v9 = vpop.f32.mrf.mxu1  ;;  %14357 = vst [vmem:[#allocation217_spill] sm:$0xff] %v11896_v43 }
 0x2a0   : > { %14354 = vst [vmem:[#allocation214_spill] sm:$0xff] %v11884_v44  ;;  %v11892_v0 = vadd.f32 %v4429_v9, %v4076_v46  ;;  %v4078_v45 = vpop.f32.mrf.mxu0  ;;  %14359 = vst [vmem:[#allocation219_spill] sm:$0xff] %v11900_v31 }
 0x2a1   : > { %v4431_v19 = vpop.f32.mrf.mxu1  ;;  %14360 = vst [vmem:[#allocation220_spill] sm:$0xff] %v11902_v3 }
 0x2a2   : > { %14355 = vst [vmem:[#allocation215_spill] sm:$0xff] %v11892_v0  ;;  %v11898_v29 = vadd.f32 %v4431_v19, %v4078_v45  ;;  %v4080_v39 = vpop.f32.mrf.mxu0  ;;  %v904_v19 = vld [vmem:[%s10656_s2 + $0x2b0] sm:$0xff] }
 0x2a3   : > { %v4433_v44 = vpop.f32.mrf.mxu1 }
 0x2a4   : > { %14358 = vst [vmem:[#allocation218_spill] sm:$0xff] %v11898_v29  ;;  %v11904_v46 = vadd.f32 %v4433_v44, %v4080_v39  ;;  %v4084_v9 = vpop.f32.mrf.mxu0  ;;  %4709 = vmatmul.mubr.bf16.gmra.mxu0 %v11894_v60  ;;  %v901_v39 = vld [vmem:[%s10656_s2 + $0x298] sm:$0xff]  ;;  %v11918_v29 = vcombine.low %v892_v52, %v896_v30 }
 0x2a5   : > { %v4437_v0 = vpop.f32.mrf.mxu1  ;;  %5062 = vmatmul.mubr.bf16.gmra.mxu1 %v11896_v43  ;;  %4718 = vmatprep.mubr.bf16.mxu0 %v11900_v31  ;;  %v905_v44 = vld [vmem:[%s10656_s2 + $0x2b8] sm:$0xff] }
 0x2a6   : > { %14361 = vst [vmem:[#allocation221_spill] sm:$0xff] %v11904_v46  ;;  %v11908_v12 = vadd.f32 %v4437_v0, %v4084_v9  ;;  %5071 = vmatprep.mubr.bf16.mxu1 %v11902_v3  ;;  %v4086_v25 = vpop.f32.mrf.mxu0  ;;  %14364 = vst [vmem:[#allocation224_spill] sm:$0xff] %v11918_v29  ;;  %v11920_v0 = vcombine.low %v893_v47, %v897_v1  ;;  %v11924_v3 = vcombine.high %v900_v53, %v904_v19  ;;  %v9945_v52 = vld [vmem:[%s10664_s9 + $0x16c] ss:$16 sps:$4 sm:$0xff]   ;;  %v908_v1 = vld [vmem:[%s10656_s2 + $0x2d0] sm:$0xff] }
 0x2a7   : > { %v4439_v20 = vpop.f32.mrf.mxu1  ;;  %v11926_v31 = vcombine.high %v901_v39, %v905_v44  ;;  %5326 = vmatprep.subr.bf16.mxu0 %v9945_v52 }
 0x2a8   : > { %14362 = vst [vmem:[#allocation222_spill] sm:$0xff] %v11908_v12  ;;  %v11916_v45 = vadd.f32 %v4439_v20, %v4086_v25  ;;  %v4088_v46 = vpop.f32.mrf.mxu0  ;;  %14365 = vst [vmem:[#allocation225_spill] sm:$0xff] %v11920_v0  ;;  %v9943_v20 = vld [vmem:[%s10664_s9 + $0x168] ss:$16 sps:$4 sm:$0xff]  }
 0x2a9   : > { %v4441_v60 = vpop.f32.mrf.mxu1  ;;  %14367 = vst [vmem:[#allocation227_spill] sm:$0xff] %v11924_v3  ;;  %14368 = vst [vmem:[#allocation228_spill] sm:$0xff] %v11926_v31  ;;  %5327 = vmatpush2.bf16.msra.mxu0 %v9943_v20 }
 0x2aa   : > { %14363 = vst [vmem:[#allocation223_spill] sm:$0xff] %v11916_v45  ;;  %v11922_v9 = vadd.f32 %v4441_v60, %v4088_v46  ;;  %v4090_v43 = vpop.f32.mrf.mxu0  ;;  %v9946_v46 = vld [vmem:[%s10664_s9 + $0x368] ss:$16 sps:$4 sm:$0xff]  }
 0x2ab   : > { %v4443_v12 = vpop.f32.mrf.mxu1  ;;  %v909_v45 = vld [vmem:[%s10656_s2 + $0x2d8] sm:$0xff] }
 0x2ac   : > { %14366 = vst [vmem:[#allocation226_spill] sm:$0xff] %v11922_v9  ;;  %v11928_v25 = vadd.f32 %v4443_v12, %v4090_v43  ;;  %v4094_v30 = vpop.f32.mrf.mxu0  ;;  %4719 = vmatmul.mubr.bf16.gmra.mxu0 %v11918_v29  ;;  %v9948_v43 = vld [vmem:[%s10664_s9 + $0x36c] ss:$16 sps:$4 sm:$0xff]   ;;  %v912_v9 = vld [vmem:[%s10656_s2 + $0x2f0] sm:$0xff] }
 0x2ad   : > { %v4447_v47 = vpop.f32.mrf.mxu1  ;;  %5072 = vmatmul.mubr.bf16.gmra.mxu1 %v11920_v0  ;;  %4728 = vmatprep.mubr.bf16.mxu0 %v11924_v3  ;;  %v11948_v3 = vcombine.low %v901_v39, %v905_v44  ;;  %v11952_v29 = vcombine.high %v908_v1, %v912_v9  ;;  %v916_v39 = vld [vmem:[%s10656_s2 + $0x310] sm:$0xff] }
 0x2ae   : > { %14369 = vst [vmem:[#allocation229_spill] sm:$0xff] %v11928_v25  ;;  %v11934_v60 = vadd.f32 %v4447_v47, %v4094_v30  ;;  %5081 = vmatprep.mubr.bf16.mxu1 %v11926_v31  ;;  %v4096_v12 = vpop.f32.mrf.mxu0  ;;  %5679 = vmatprep.subr.bf16.mxu1 %v9948_v43  ;;  %v11946_v47 = vcombine.low %v900_v53, %v904_v19 }
 0x2af   : > { %v4449_v25 = vpop.f32.mrf.mxu1  ;;  %14373 = vst [vmem:[#allocation233_spill] sm:$0xff] %v11948_v3  ;;  %5680 = vmatpush2.bf16.msra.mxu1 %v9946_v46  ;;  %14375 = vst [vmem:[#allocation235_spill] sm:$0xff] %v11952_v29  ;;  %v920_v46 = vld [vmem:[%s10656_s2 + $0x330] sm:$0xff] }
 0x2b0   : > { %14370 = vst [vmem:[#allocation230_spill] sm:$0xff] %v11934_v60  ;;  %v11944_v22 = vadd.f32 %v4449_v25, %v4096_v12  ;;  %v4098_v0 = vpop.f32.mrf.mxu0  ;;  %14372 = vst [vmem:[#allocation232_spill] sm:$0xff] %v11946_v47  ;;  %v11954_v60 = vcombine.high %v909_v45, %v913_v2  ;;  %v917_v12 = vld [vmem:[%s10656_s2 + $0x318] sm:$0xff] }
 0x2b1   : > { %v4451_v30 = vpop.f32.mrf.mxu1 }
 0x2b2   : > { %14371 = vst [vmem:[#allocation231_spill] sm:$0xff] %v11944_v22  ;;  %v11950_v31 = vadd.f32 %v4451_v30, %v4098_v0  ;;  %14376 = vst [vmem:[#allocation236_spill] sm:$0xff] %v11954_v60  ;;  %v4100_v25 = vpop.f32.mrf.mxu0  ;;  %v921_v30 = vld [vmem:[%s10656_s2 + $0x338] sm:$0xff] }
 0x2b3   : > { %v4453_v20 = vpop.f32.mrf.mxu1 }
 0x2b4   : > { %14374 = vst [vmem:[#allocation234_spill] sm:$0xff] %v11950_v31  ;;  %v11956_v52 = vadd.f32 %v4453_v20, %v4100_v25  ;;  %v4104_v43 = vpop.f32.mrf.mxu0  ;;  %4729 = vmatmul.mubr.bf16.gmra.mxu0 %v11946_v47  ;;  %v929_v31 = vld [vmem:[%s10656_s2 + $0x378] sm:$0xff] }
 0x2b5   : > { %v4457_v53 = vpop.f32.mrf.mxu1  ;;  %5082 = vmatmul.mubr.bf16.gmra.mxu1 %v11948_v3  ;;  %4738 = vmatprep.mubr.bf16.mxu0 %v11952_v29  ;;  %v11978_v29 = vcombine.high %v917_v12, %v921_v30 }
 0x2b6   : > { %14377 = vst [vmem:[#allocation237_spill] sm:$0xff] %v11956_v52  ;;  %v11960_v19 = vadd.f32 %v4457_v53, %v4104_v43  ;;  %5091 = vmatprep.mubr.bf16.mxu1 %v11954_v60  ;;  %v4106_v44 = vpop.f32.mrf.mxu0  ;;  %v11970_v52 = vcombine.low %v908_v1, %v912_v9  ;;  %v11972_v43 = vcombine.low %v909_v45, %v913_v2  ;;  %v9951_v9 = vld [vmem:[%s10664_s9 + $0x14c] ss:$16 sps:$4 sm:$0xff]  }
 0x2b7   : > { %v4459_v0 = vpop.f32.mrf.mxu1  ;;  %v11976_v60 = vcombine.high %v916_v39, %v920_v46  ;;  %14384 = vst [vmem:[#allocation244_spill] sm:$0xff] %v11978_v29  ;;  %5328 = vmatprep.subr.bf16.mxu0 %v9951_v9 }
 0x2b8   : > { %14378 = vst [vmem:[#allocation238_spill] sm:$0xff] %v11960_v19  ;;  %v11968_v25 = vadd.f32 %v4459_v0, %v4106_v44  ;;  %v4108_v20 = vpop.f32.mrf.mxu0  ;;  %14380 = vst [vmem:[#allocation240_spill] sm:$0xff] %v11970_v52  ;;  %v9949_v0 = vld [vmem:[%s10664_s9 + $0x148] ss:$16 sps:$4 sm:$0xff]  }
 0x2b9   : > { %v4461_v47 = vpop.f32.mrf.mxu1  ;;  %14381 = vst [vmem:[#allocation241_spill] sm:$0xff] %v11972_v43  ;;  %14383 = vst [vmem:[#allocation243_spill] sm:$0xff] %v11976_v60  ;;  %5329 = vmatpush2.bf16.msra.mxu0 %v9949_v0 }
 0x2ba   : > { %14379 = vst [vmem:[#allocation239_spill] sm:$0xff] %v11968_v25  ;;  %v11974_v53 = vadd.f32 %v4461_v47, %v4108_v20  ;;  %v4110_v3 = vpop.f32.mrf.mxu0  ;;  %v924_v47 = vld [vmem:[%s10656_s2 + $0x350] sm:$0xff]  ;;  %v9952_v20 = vld [vmem:[%s10664_s9 + $0x348] ss:$16 sps:$4 sm:$0xff]  }
 0x2bb   : > { %v4463_v19 = vpop.f32.mrf.mxu1  ;;  %v925_v25 = vld [vmem:[%s10656_s2 + $0x358] sm:$0xff] }
 0x2bc   : > { %14382 = vst [vmem:[#allocation242_spill] sm:$0xff] %v11974_v53  ;;  %v11980_v44 = vadd.f32 %v4463_v19, %v4110_v3  ;;  %v4114_v2 = vpop.f32.mrf.mxu0  ;;  %4739 = vmatmul.mubr.bf16.gmra.mxu0 %v11970_v52  ;;  %v9954_v3 = vld [vmem:[%s10664_s9 + $0x34c] ss:$16 sps:$4 sm:$0xff]   ;;  %v928_v53 = vld [vmem:[%s10656_s2 + $0x370] sm:$0xff] }
 0x2bd   : > { %v4467_v45 = vpop.f32.mrf.mxu1  ;;  %5092 = vmatmul.mubr.bf16.gmra.mxu1 %v11972_v43  ;;  %4748 = vmatprep.mubr.bf16.mxu0 %v11976_v60  ;;  %v12000_v60 = vcombine.low %v917_v12, %v921_v30  ;;  %v12004_v52 = vcombine.high %v924_v47, %v928_v53  ;;  %v932_v12 = vld [vmem:[%s10656_s2 + $0x390] sm:$0xff] }
 0x2be   : > { %14385 = vst [vmem:[#allocation245_spill] sm:$0xff] %v11980_v44  ;;  %v11986_v1 = vadd.f32 %v4467_v45, %v4114_v2  ;;  %5101 = vmatprep.mubr.bf16.mxu1 %v11978_v29  ;;  %v4116_v19 = vpop.f32.mrf.mxu0  ;;  %5681 = vmatprep.subr.bf16.mxu1 %v9954_v3  ;;  %v11998_v45 = vcombine.low %v916_v39, %v920_v46 }
 0x2bf   : > { %v4469_v44 = vpop.f32.mrf.mxu1  ;;  %14389 = vst [vmem:[#allocation249_spill] sm:$0xff] %v12000_v60  ;;  %5682 = vmatpush2.bf16.msra.mxu1 %v9952_v20  ;;  %14391 = vst [vmem:[#allocation251_spill] sm:$0xff] %v12004_v52  ;;  %v936_v20 = vld [vmem:[%s10656_s2 + $0x3b0] sm:$0xff] }
 0x2c0   : > { %14386 = vst [vmem:[#allocation246_spill] sm:$0xff] %v11986_v1  ;;  %v11996_v22 = vadd.f32 %v4469_v44, %v4116_v19  ;;  %v4118_v43 = vpop.f32.mrf.mxu0  ;;  %14388 = vst [vmem:[#allocation248_spill] sm:$0xff] %v11998_v45  ;;  %v12006_v1 = vcombine.high %v925_v25, %v929_v31  ;;  %v933_v19 = vld [vmem:[%s10656_s2 + $0x398] sm:$0xff] }
 0x2c1   : > { %v4471_v2 = vpop.f32.mrf.mxu1 }
 0x2c2   : > { %14387 = vst [vmem:[#allocation247_spill] sm:$0xff] %v11996_v22  ;;  %v12002_v29 = vadd.f32 %v4471_v2, %v4118_v43  ;;  %14392 = vst [vmem:[#allocation252_spill] sm:$0xff] %v12006_v1  ;;  %v4120_v44 = vpop.f32.mrf.mxu0  ;;  %v937_v2 = vld [vmem:[%s10656_s2 + $0x3b8] sm:$0xff] }
 0x2c3   : > { %v4473_v0 = vpop.f32.mrf.mxu1 }
 0x2c4   : > { %14390 = vst [vmem:[#allocation250_spill] sm:$0xff] %v12002_v29  ;;  %v12008_v9 = vadd.f32 %v4473_v0, %v4120_v44  ;;  %v4124_v3 = vpop.f32.mrf.mxu0  ;;  %4749 = vmatmul.mubr.bf16.gmra.mxu0 %v11998_v45  ;;  %v945_v29 = vld [vmem:[%s10656_s2 + $0x3f8] sm:$0xff] }
 0x2c5   : > { %v4477_v39 = vpop.f32.mrf.mxu1  ;;  %5102 = vmatmul.mubr.bf16.gmra.mxu1 %v12000_v60  ;;  %4758 = vmatprep.mubr.bf16.mxu0 %v12004_v52  ;;  %v12030_v52 = vcombine.high %v933_v19, %v937_v2 }
 0x2c6   : > { %14393 = vst [vmem:[#allocation253_spill] sm:$0xff] %v12008_v9  ;;  %v12012_v46 = vadd.f32 %v4477_v39, %v4124_v3  ;;  %5111 = vmatprep.mubr.bf16.mxu1 %v12006_v1  ;;  %v4126_v30 = vpop.f32.mrf.mxu0  ;;  %v12022_v9 = vcombine.low %v924_v47, %v928_v53  ;;  %v12024_v3 = vcombine.low %v925_v25, %v929_v31  ;;  %v9957_v53 = vld [vmem:[%s10664_s9 + $0x12c] ss:$16 sps:$4 sm:$0xff]  }
 0x2c7   : > { %v4479_v43 = vpop.f32.mrf.mxu1  ;;  %v12028_v1 = vcombine.high %v932_v12, %v936_v20  ;;  %14400 = vst [vmem:[#allocation260_spill] sm:$0xff] %v12030_v52  ;;  %5330 = vmatprep.subr.bf16.mxu0 %v9957_v53 }
 0x2c8   : > { %14394 = vst [vmem:[#allocation254_spill] sm:$0xff] %v12012_v46  ;;  %v12020_v44 = vadd.f32 %v4479_v43, %v4126_v30  ;;  %v4128_v0 = vpop.f32.mrf.mxu0  ;;  %14396 = vst [vmem:[#allocation256_spill] sm:$0xff] %v12022_v9  ;;  %v9955_v43 = vld [vmem:[%s10664_s9 + $0x128] ss:$16 sps:$4 sm:$0xff]  }
 0x2c9   : > { %v4481_v45 = vpop.f32.mrf.mxu1  ;;  %14397 = vst [vmem:[#allocation257_spill] sm:$0xff] %v12024_v3  ;;  %14399 = vst [vmem:[#allocation259_spill] sm:$0xff] %v12028_v1  ;;  %5331 = vmatpush2.bf16.msra.mxu0 %v9955_v43 }
 0x2ca   : > { %14395 = vst [vmem:[#allocation255_spill] sm:$0xff] %v12020_v44  ;;  %v12026_v39 = vadd.f32 %v4481_v45, %v4128_v0  ;;  %v4130_v60 = vpop.f32.mrf.mxu0  ;;  %v940_v45 = vld [vmem:[%s10656_s2 + $0x3d0] sm:$0xff]  ;;  %v9958_v0 = vld [vmem:[%s10664_s9 + $0x328] ss:$16 sps:$4 sm:$0xff]  }
 0x2cb   : > { %v4483_v46 = vpop.f32.mrf.mxu1  ;;  %v941_v44 = vld [vmem:[%s10656_s2 + $0x3d8] sm:$0xff] }
 0x2cc   : > { %14398 = vst [vmem:[#allocation258_spill] sm:$0xff] %v12026_v39  ;;  %v12032_v30 = vadd.f32 %v4483_v46, %v4130_v60  ;;  %v4134_v31 = vpop.f32.mrf.mxu0  ;;  %4759 = vmatmul.mubr.bf16.gmra.mxu0 %v12022_v9  ;;  %v9960_v60 = vld [vmem:[%s10664_s9 + $0x32c] ss:$16 sps:$4 sm:$0xff]   ;;  %v944_v39 = vld [vmem:[%s10656_s2 + $0x3f0] sm:$0xff] }
 0x2cd   : > { %v4487_v25 = vpop.f32.mrf.mxu1  ;;  %5112 = vmatmul.mubr.bf16.gmra.mxu1 %v12024_v3  ;;  %4768 = vmatprep.mubr.bf16.mxu0 %v12028_v1  ;;  %v12052_v1 = vcombine.low %v933_v19, %v937_v2  ;;  %v12056_v9 = vcombine.high %v940_v45, %v944_v39  ;;  %v948_v19 = vld [vmem:[%s10656_s2 + $0x410] sm:$0xff] }
 0x2ce   : > { %14401 = vst [vmem:[#allocation261_spill] sm:$0xff] %v12032_v30  ;;  %v12038_v47 = vadd.f32 %v4487_v25, %v4134_v31  ;;  %5121 = vmatprep.mubr.bf16.mxu1 %v12030_v52  ;;  %v4136_v46 = vpop.f32.mrf.mxu0  ;;  %5683 = vmatprep.subr.bf16.mxu1 %v9960_v60  ;;  %v12050_v25 = vcombine.low %v932_v12, %v936_v20 }
 0x2cf   : > { %v4489_v30 = vpop.f32.mrf.mxu1  ;;  %14405 = vst [vmem:[#allocation265_spill] sm:$0xff] %v12052_v1  ;;  %5684 = vmatpush2.bf16.msra.mxu1 %v9958_v0  ;;  %14407 = vst [vmem:[#allocation267_spill] sm:$0xff] %v12056_v9  ;;  %v952_v0 = vld [vmem:[%s10656_s2 + $0x430] sm:$0xff] }
 0x2d0   : > { %14402 = vst [vmem:[#allocation262_spill] sm:$0xff] %v12038_v47  ;;  %v12048_v22 = vadd.f32 %v4489_v30, %v4136_v46  ;;  %v4138_v3 = vpop.f32.mrf.mxu0  ;;  %14404 = vst [vmem:[#allocation264_spill] sm:$0xff] %v12050_v25  ;;  %v12058_v47 = vcombine.high %v941_v44, %v945_v29  ;;  %v949_v46 = vld [vmem:[%s10656_s2 + $0x418] sm:$0xff] }
 0x2d1   : > { %v4491_v31 = vpop.f32.mrf.mxu1 }
 0x2d2   : > { %14403 = vst [vmem:[#allocation263_spill] sm:$0xff] %v12048_v22  ;;  %v12054_v52 = vadd.f32 %v4491_v31, %v4138_v3  ;;  %14408 = vst [vmem:[#allocation268_spill] sm:$0xff] %v12058_v47  ;;  %v4140_v30 = vpop.f32.mrf.mxu0  ;;  %v953_v31 = vld [vmem:[%s10656_s2 + $0x438] sm:$0xff] }
 0x2d3   : > { %v4493_v43 = vpop.f32.mrf.mxu1 }
 0x2d4   : > { %14406 = vst [vmem:[#allocation266_spill] sm:$0xff] %v12054_v52  ;;  %v12060_v53 = vadd.f32 %v4493_v43, %v4140_v30  ;;  %v4144_v60 = vpop.f32.mrf.mxu0  ;;  %4769 = vmatmul.mubr.bf16.gmra.mxu0 %v12050_v25  ;;  %v961_v52 = vld [vmem:[%s10656_s2 + $0x478] sm:$0xff] }
 0x2d5   : > { %v4497_v12 = vpop.f32.mrf.mxu1  ;;  %5122 = vmatmul.mubr.bf16.gmra.mxu1 %v12052_v1  ;;  %4778 = vmatprep.mubr.bf16.mxu0 %v12056_v9  ;;  %v12082_v9 = vcombine.high %v949_v46, %v953_v31 }
 0x2d6   : > { %14409 = vst [vmem:[#allocation269_spill] sm:$0xff] %v12060_v53  ;;  %v12064_v20 = vadd.f32 %v4497_v12, %v4144_v60  ;;  %5131 = vmatprep.mubr.bf16.mxu1 %v12058_v47  ;;  %v4146_v2 = vpop.f32.mrf.mxu0  ;;  %v12074_v53 = vcombine.low %v940_v45, %v944_v39  ;;  %v12076_v60 = vcombine.low %v941_v44, %v945_v29  ;;  %v9963_v39 = vld [vmem:[%s10664_s9 + $0x10c] ss:$16 sps:$4 sm:$0xff]  }
 0x2d7   : > { %v4499_v3 = vpop.f32.mrf.mxu1  ;;  %v12080_v47 = vcombine.high %v948_v19, %v952_v0  ;;  %14416 = vst [vmem:[#allocation276_spill] sm:$0xff] %v12082_v9  ;;  %5332 = vmatprep.subr.bf16.mxu0 %v9963_v39 }
 0x2d8   : > { %14410 = vst [vmem:[#allocation270_spill] sm:$0xff] %v12064_v20  ;;  %v12072_v30 = vadd.f32 %v4499_v3, %v4146_v2  ;;  %v4148_v43 = vpop.f32.mrf.mxu0  ;;  %14412 = vst [vmem:[#allocation272_spill] sm:$0xff] %v12074_v53  ;;  %v9961_v3 = vld [vmem:[%s10664_s9 + $0x108] ss:$16 sps:$4 sm:$0xff]  }
 0x2d9   : > { %v4501_v25 = vpop.f32.mrf.mxu1  ;;  %14413 = vst [vmem:[#allocation273_spill] sm:$0xff] %v12076_v60  ;;  %14415 = vst [vmem:[#allocation275_spill] sm:$0xff] %v12080_v47  ;;  %5333 = vmatpush2.bf16.msra.mxu0 %v9961_v3 }
 0x2da   : > { %14411 = vst [vmem:[#allocation271_spill] sm:$0xff] %v12072_v30  ;;  %v12078_v12 = vadd.f32 %v4501_v25, %v4148_v43  ;;  %v4150_v1 = vpop.f32.mrf.mxu0  ;;  %v956_v25 = vld [vmem:[%s10656_s2 + $0x450] sm:$0xff]  ;;  %v9964_v43 = vld [vmem:[%s10664_s9 + $0x308] ss:$16 sps:$4 sm:$0xff]  }
 0x2db   : > { %v4503_v20 = vpop.f32.mrf.mxu1  ;;  %v957_v30 = vld [vmem:[%s10656_s2 + $0x458] sm:$0xff] }
 0x2dc   : > { %14414 = vst [vmem:[#allocation274_spill] sm:$0xff] %v12078_v12  ;;  %v12084_v2 = vadd.f32 %v4503_v20, %v4150_v1  ;;  %v4154_v29 = vpop.f32.mrf.mxu0  ;;  %4779 = vmatmul.mubr.bf16.gmra.mxu0 %v12074_v53  ;;  %v9966_v1 = vld [vmem:[%s10664_s9 + $0x30c] ss:$16 sps:$4 sm:$0xff]   ;;  %v960_v12 = vld [vmem:[%s10656_s2 + $0x470] sm:$0xff] }
 0x2dd   : > { %v4507_v44 = vpop.f32.mrf.mxu1  ;;  %5132 = vmatmul.mubr.bf16.gmra.mxu1 %v12076_v60  ;;  %4788 = vmatprep.mubr.bf16.mxu0 %v12080_v47  ;;  %v12104_v47 = vcombine.low %v949_v46, %v953_v31  ;;  %v12108_v53 = vcombine.high %v956_v25, %v960_v12  ;;  %v964_v46 = vld [vmem:[%s10656_s2 + $0x490] sm:$0xff] }
 0x2de   : > { %14417 = vst [vmem:[#allocation277_spill] sm:$0xff] %v12084_v2  ;;  %v12090_v45 = vadd.f32 %v4507_v44, %v4154_v29  ;;  %5141 = vmatprep.mubr.bf16.mxu1 %v12082_v9  ;;  %v4156_v20 = vpop.f32.mrf.mxu0  ;;  %5685 = vmatprep.subr.bf16.mxu1 %v9966_v1  ;;  %v12102_v44 = vcombine.low %v948_v19, %v952_v0 }
 0x2df   : > { %v4509_v2 = vpop.f32.mrf.mxu1  ;;  %14421 = vst [vmem:[#allocation281_spill] sm:$0xff] %v12104_v47  ;;  %5686 = vmatpush2.bf16.msra.mxu1 %v9964_v43  ;;  %14423 = vst [vmem:[#allocation283_spill] sm:$0xff] %v12108_v53  ;;  %v968_v43 = vld [vmem:[%s10656_s2 + $0x4b0] sm:$0xff] }
 0x2e0   : > { %14418 = vst [vmem:[#allocation278_spill] sm:$0xff] %v12090_v45  ;;  %v12100_v22 = vadd.f32 %v4509_v2, %v4156_v20  ;;  %v4158_v60 = vpop.f32.mrf.mxu0  ;;  %14420 = vst [vmem:[#allocation280_spill] sm:$0xff] %v12102_v44  ;;  %v12110_v45 = vcombine.high %v957_v30, %v961_v52  ;;  %v965_v20 = vld [vmem:[%s10656_s2 + $0x498] sm:$0xff] }
 0x2e1   : > { %v4511_v29 = vpop.f32.mrf.mxu1 }
 0x2e2   : > { %14419 = vst [vmem:[#allocation279_spill] sm:$0xff] %v12100_v22  ;;  %v12106_v9 = vadd.f32 %v4511_v29, %v4158_v60  ;;  %14424 = vst [vmem:[#allocation284_spill] sm:$0xff] %v12110_v45  ;;  %v4160_v2 = vpop.f32.mrf.mxu0  ;;  %v969_v29 = vld [vmem:[%s10656_s2 + $0x4b8] sm:$0xff] }
 0x2e3   : > { %v4513_v3 = vpop.f32.mrf.mxu1 }
 0x2e4   : > { %14422 = vst [vmem:[#allocation282_spill] sm:$0xff] %v12106_v9  ;;  %v12112_v39 = vadd.f32 %v4513_v3, %v4160_v2  ;;  %v4164_v1 = vpop.f32.mrf.mxu0  ;;  %4789 = vmatmul.mubr.bf16.gmra.mxu0 %v12102_v44  ;;  %v12126_v44 = vcombine.low %v956_v25, %v960_v12 }
 0x2e5   : > { %v4517_v19 = vpop.f32.mrf.mxu1  ;;  %5142 = vmatmul.mubr.bf16.gmra.mxu1 %v12104_v47  ;;  %4798 = vmatprep.mubr.bf16.mxu0 %v12108_v53  ;;  %v12134_v53 = vcombine.high %v965_v20, %v969_v29 }
 0x2e6   : > { %14425 = vst [vmem:[#allocation285_spill] sm:$0xff] %v12112_v39  ;;  %v12116_v0 = vadd.f32 %v4517_v19, %v4164_v1  ;;  %5151 = vmatprep.mubr.bf16.mxu1 %v12110_v45  ;;  %v4166_v31 = vpop.f32.mrf.mxu0  ;;  %14428 = vst [vmem:[#allocation288_spill] sm:$0xff] %v12126_v44  ;;  %v12128_v1 = vcombine.low %v957_v30, %v961_v52  ;;  %v12132_v45 = vcombine.high %v964_v46, %v968_v43  ;;  %v972_v30 = vld [vmem:[%s10656_s2 + $0x4d0] sm:$0xff] }
 0x2e7   : > { %v4519_v60 = vpop.f32.mrf.mxu1  ;;  %14432 = vst [vmem:[#allocation292_spill] sm:$0xff] %v12134_v53 }
 0x2e8   : > { %14426 = vst [vmem:[#allocation286_spill] sm:$0xff] %v12116_v0  ;;  %v12124_v2 = vadd.f32 %v4519_v60, %v4166_v31  ;;  %v4168_v3 = vpop.f32.mrf.mxu0  ;;  %14429 = vst [vmem:[#allocation289_spill] sm:$0xff] %v12128_v1  ;;  %v9969_v60 = vld [vmem:[%s10664_s9 + $0x4ec] ss:$16 sps:$4 sm:$0xff]  }
 0x2e9   : > { %v4521_v39 = vpop.f32.mrf.mxu1  ;;  %14431 = vst [vmem:[#allocation291_spill] sm:$0xff] %v12132_v45  ;;  %6008 = vmatprep.subr.bf16.mxu0 %v9969_v60 }
 0x2ea   : > { %14427 = vst [vmem:[#allocation287_spill] sm:$0xff] %v12124_v2  ;;  %v12130_v19 = vadd.f32 %v4521_v39, %v4168_v3  ;;  %v4170_v47 = vpop.f32.mrf.mxu0  ;;  %v9972_v39 = vld [vmem:[%s10664_s9 + $0x6ec] ss:$16 sps:$4 sm:$0xff]   ;;  %v976_v2 = vld [vmem:[%s10656_s2 + $0x4f0] sm:$0xff] }
 0x2eb   : > { %v4523_v0 = vpop.f32.mrf.mxu1  ;;  %6361 = vmatprep.subr.bf16.mxu1 %v9972_v39 }
 0x2ec   : > { %14430 = vst [vmem:[#allocation290_spill] sm:$0xff] %v12130_v19  ;;  %v12136_v31 = vadd.f32 %v4523_v0, %v4170_v47  ;;  %v4174_v12 = vpop.f32.mrf.mxu0  ;;  %4799 = vmatmul.mubr.bf16.gmra.mxu0 %v12126_v44  ;;  %v973_v47 = vld [vmem:[%s10656_s2 + $0x4d8] sm:$0xff] }
 0x2ed   : > { %v4527_v25 = vpop.f32.mrf.mxu1  ;;  %5152 = vmatmul.mubr.bf16.gmra.mxu1 %v12128_v1  ;;  %4808 = vmatprep.mubr.bf16.mxu0 %v12132_v45  ;;  %v977_v0 = vld [vmem:[%s10656_s2 + $0x4f8] sm:$0xff] }
 0x2ee   : > { %14433 = vst [vmem:[#allocation293_spill] sm:$0xff] %v12136_v31  ;;  %v12141_v52 = vadd.f32 %v4527_v25, %v4174_v12  ;;  %5161 = vmatprep.mubr.bf16.mxu1 %v12134_v53  ;;  %v4176_v3 = vpop.f32.mrf.mxu0  ;;  %v12152_v12 = vcombine.low %v964_v46, %v968_v43  ;;  %v12154_v25 = vcombine.low %v965_v20, %v969_v29  ;;  %v984_v20 = vld [vmem:[%s10656_s2 + $0x530] sm:$0xff]  ;;  %v981_v29 = vld [vmem:[%s10656_s2 + $0x518] sm:$0xff] }
 0x2ef   : > { %v4529_v19 = vpop.f32.mrf.mxu1  ;;  %v12158_v53 = vcombine.high %v972_v30, %v976_v2  ;;  %v12160_v1 = vcombine.high %v973_v47, %v977_v0 }
 0x2f0   : > { %14434 = vst [vmem:[#allocation294_spill] sm:$0xff] %v12141_v52  ;;  %v12150_v31 = vadd.f32 %v4529_v19, %v4176_v3  ;;  %v4178_v44 = vpop.f32.mrf.mxu0  ;;  %14436 = vst [vmem:[#allocation296_spill] sm:$0xff] %v12152_v12 }
 0x2f1   : > { %v4531_v9 = vpop.f32.mrf.mxu1  ;;  %14437 = vst [vmem:[#allocation297_spill] sm:$0xff] %v12154_v25  ;;  %14439 = vst [vmem:[#allocation299_spill] sm:$0xff] %v12158_v53 }
 0x2f2   : > { %14435 = vst [vmem:[#allocation295_spill] sm:$0xff] %v12150_v31  ;;  %v12156_v45 = vadd.f32 %v4531_v9, %v4178_v44  ;;  %14440 = vst [vmem:[#allocation300_spill] sm:$0xff] %v12160_v1  ;;  %v4180_v60 = vpop.f32.mrf.mxu0  ;;  %v980_v9 = vld [vmem:[%s10656_s2 + $0x510] sm:$0xff] }
 0x2f3   : > { %v4533_v19 = vpop.f32.mrf.mxu1 }
 0x2f4   : > { %14438 = vst [vmem:[#allocation298_spill] sm:$0xff] %v12156_v45  ;;  %v12162_v3 = vadd.f32 %v4533_v19, %v4180_v60  ;;  %v4184_v39 = vpop.f32.mrf.mxu0  ;;  %4809 = vmatmul.mubr.bf16.gmra.mxu0 %v12152_v12  ;;  %v985_v45 = vld [vmem:[%s10656_s2 + $0x538] sm:$0xff]  ;;  %v12176_v12 = vcombine.low %v972_v30, %v976_v2  ;;  %v988_v30 = vld [vmem:[%s10656_s2 + $0x550] sm:$0xff] }
 0x2f5   : > { %v4537_v31 = vpop.f32.mrf.mxu1  ;;  %5162 = vmatmul.mubr.bf16.gmra.mxu1 %v12154_v25  ;;  %4818 = vmatprep.mubr.bf16.mxu0 %v12158_v53  ;;  %v12178_v25 = vcombine.low %v973_v47, %v977_v0 }
 0x2f6   : > { %14441 = vst [vmem:[#allocation301_spill] sm:$0xff] %v12162_v3  ;;  %v12166_v46 = vadd.f32 %v4537_v31, %v4184_v39  ;;  %5171 = vmatprep.mubr.bf16.mxu1 %v12160_v1  ;;  %v4186_v44 = vpop.f32.mrf.mxu0  ;;  %14444 = vst [vmem:[#allocation304_spill] sm:$0xff] %v12176_v12  ;;  %v12182_v39 = vcombine.high %v980_v9, %v984_v20  ;;  %v12184_v1 = vcombine.high %v981_v29, %v985_v45 }
 0x2f7   : > { %v4539_v43 = vpop.f32.mrf.mxu1  ;;  %14445 = vst [vmem:[#allocation305_spill] sm:$0xff] %v12178_v25 }
 0x2f8   : > { %14442 = vst [vmem:[#allocation302_spill] sm:$0xff] %v12166_v46  ;;  %v12174_v60 = vadd.f32 %v4539_v43, %v4186_v44  ;;  %v4188_v19 = vpop.f32.mrf.mxu0  ;;  %14447 = vst [vmem:[#allocation307_spill] sm:$0xff] %v12182_v39 }
 0x2f9   : > { %v4541_v3 = vpop.f32.mrf.mxu1  ;;  %14448 = vst [vmem:[#allocation308_spill] sm:$0xff] %v12184_v1 }
 0x2fa   : > { %14443 = vst [vmem:[#allocation303_spill] sm:$0xff] %v12174_v60  ;;  %v12180_v31 = vadd.f32 %v4541_v3, %v4188_v19  ;;  %v4190_v53 = vpop.f32.mrf.mxu0  ;;  %v992_v3 = vld [vmem:[%s10656_s2 + $0x570] sm:$0xff]  ;;  %v989_v19 = vld [vmem:[%s10656_s2 + $0x558] sm:$0xff] }
 0x2fb   : > { %v4543_v46 = vpop.f32.mrf.mxu1 }
 0x2fc   : > { %14446 = vst [vmem:[#allocation306_spill] sm:$0xff] %v12180_v31  ;;  %v12186_v44 = vadd.f32 %v4543_v46, %v4190_v53  ;;  %v4194_v43 = vpop.f32.mrf.mxu0  ;;  %4819 = vmatmul.mubr.bf16.gmra.mxu0 %v12176_v12  ;;  %v993_v31 = vld [vmem:[%s10656_s2 + $0x578] sm:$0xff]  ;;  %v12200_v12 = vcombine.low %v980_v9, %v984_v20  ;;  %v996_v9 = vld [vmem:[%s10656_s2 + $0x590] sm:$0xff] }
 0x2fd   : > { %v4547_v60 = vpop.f32.mrf.mxu1  ;;  %5172 = vmatmul.mubr.bf16.gmra.mxu1 %v12178_v25  ;;  %4828 = vmatprep.mubr.bf16.mxu0 %v12182_v39  ;;  %v12202_v25 = vcombine.low %v981_v29, %v985_v45 }
 0x2fe   : > { %14449 = vst [vmem:[#allocation309_spill] sm:$0xff] %v12186_v44  ;;  %v12190_v2 = vadd.f32 %v4547_v60, %v4194_v43  ;;  %5181 = vmatprep.mubr.bf16.mxu1 %v12184_v1  ;;  %v4196_v47 = vpop.f32.mrf.mxu0  ;;  %14452 = vst [vmem:[#allocation312_spill] sm:$0xff] %v12200_v12  ;;  %v12206_v43 = vcombine.high %v988_v30, %v992_v3  ;;  %v12208_v1 = vcombine.high %v989_v19, %v993_v31 }
 0x2ff   : > { %v4549_v0 = vpop.f32.mrf.mxu1  ;;  %14453 = vst [vmem:[#allocation313_spill] sm:$0xff] %v12202_v25 }
 0x300   : > { %14450 = vst [vmem:[#allocation310_spill] sm:$0xff] %v12190_v2  ;;  %v12198_v53 = vadd.f32 %v4549_v0, %v4196_v47  ;;  %v4198_v46 = vpop.f32.mrf.mxu0  ;;  %14455 = vst [vmem:[#allocation315_spill] sm:$0xff] %v12206_v43 }
 0x301   : > { %v4551_v44 = vpop.f32.mrf.mxu1  ;;  %14456 = vst [vmem:[#allocation316_spill] sm:$0xff] %v12208_v1 }
 0x302   : > { %14451 = vst [vmem:[#allocation311_spill] sm:$0xff] %v12198_v53  ;;  %v12204_v60 = vadd.f32 %v4551_v44, %v4198_v46  ;;  %v4200_v39 = vpop.f32.mrf.mxu0  ;;  %v1000_v44 = vld [vmem:[%s10656_s2 + $0x5b0] sm:$0xff]  ;;  %v997_v46 = vld [vmem:[%s10656_s2 + $0x598] sm:$0xff] }
 0x303   : > { %v4553_v2 = vpop.f32.mrf.mxu1 }
 0x304   : > { %14454 = vst [vmem:[#allocation314_spill] sm:$0xff] %v12204_v60  ;;  %v12210_v47 = vadd.f32 %v4553_v2, %v4200_v39  ;;  %v4204_v0 = vpop.f32.mrf.mxu0  ;;  %4829 = vmatmul.mubr.bf16.gmra.mxu0 %v12200_v12  ;;  %v1001_v60 = vld [vmem:[%s10656_s2 + $0x5b8] sm:$0xff]  ;;  %v12224_v12 = vcombine.low %v988_v30, %v992_v3  ;;  %v1004_v30 = vld [vmem:[%s10656_s2 + $0x5d0] sm:$0xff] }
 0x305   : > { %v4557_v53 = vpop.f32.mrf.mxu1  ;;  %5182 = vmatmul.mubr.bf16.gmra.mxu1 %v12202_v25  ;;  %4838 = vmatprep.mubr.bf16.mxu0 %v12206_v43  ;;  %v12226_v25 = vcombine.low %v989_v19, %v993_v31 }
 0x306   : > { %14457 = vst [vmem:[#allocation317_spill] sm:$0xff] %v12210_v47  ;;  %v12214_v45 = vadd.f32 %v4557_v53, %v4204_v0  ;;  %5191 = vmatprep.mubr.bf16.mxu1 %v12208_v1  ;;  %v4206_v20 = vpop.f32.mrf.mxu0  ;;  %14460 = vst [vmem:[#allocation320_spill] sm:$0xff] %v12224_v12  ;;  %v12230_v0 = vcombine.high %v996_v9, %v1000_v44  ;;  %v12232_v1 = vcombine.high %v997_v46, %v1001_v60 }
 0x307   : > { %v4559_v29 = vpop.f32.mrf.mxu1  ;;  %14461 = vst [vmem:[#allocation321_spill] sm:$0xff] %v12226_v25 }
 0x308   : > { %14458 = vst [vmem:[#allocation318_spill] sm:$0xff] %v12214_v45  ;;  %v12222_v39 = vadd.f32 %v4559_v29, %v4206_v20  ;;  %v4208_v2 = vpop.f32.mrf.mxu0  ;;  %14463 = vst [vmem:[#allocation323_spill] sm:$0xff] %v12230_v0 }
 0x309   : > { %v4561_v47 = vpop.f32.mrf.mxu1  ;;  %14464 = vst [vmem:[#allocation324_spill] sm:$0xff] %v12232_v1 }
 0x30a   : > { %14459 = vst [vmem:[#allocation319_spill] sm:$0xff] %v12222_v39  ;;  %v12228_v53 = vadd.f32 %v4561_v47, %v4208_v2  ;;  %v4210_v43 = vpop.f32.mrf.mxu0  ;;  %v1008_v47 = vld [vmem:[%s10656_s2 + $0x5f0] sm:$0xff]  ;;  %v1005_v2 = vld [vmem:[%s10656_s2 + $0x5d8] sm:$0xff] }
 0x30b   : > { %v4563_v45 = vpop.f32.mrf.mxu1 }
 0x30c   : > { %14462 = vst [vmem:[#allocation322_spill] sm:$0xff] %v12228_v53  ;;  %v12234_v20 = vadd.f32 %v4563_v45, %v4210_v43  ;;  %v4214_v29 = vpop.f32.mrf.mxu0  ;;  %4839 = vmatmul.mubr.bf16.gmra.mxu0 %v12224_v12  ;;  %v1009_v53 = vld [vmem:[%s10656_s2 + $0x5f8] sm:$0xff]  ;;  %v12248_v12 = vcombine.low %v996_v9, %v1000_v44  ;;  %v1012_v9 = vld [vmem:[%s10656_s2 + $0x610] sm:$0xff] }
 0x30d   : > { %v4567_v39 = vpop.f32.mrf.mxu1  ;;  %5192 = vmatmul.mubr.bf16.gmra.mxu1 %v12226_v25  ;;  %4848 = vmatprep.mubr.bf16.mxu0 %v12230_v0  ;;  %v12250_v25 = vcombine.low %v997_v46, %v1001_v60 }
 0x30e   : > { %14465 = vst [vmem:[#allocation325_spill] sm:$0xff] %v12234_v20  ;;  %v12238_v31 = vadd.f32 %v4567_v39, %v4214_v29  ;;  %5201 = vmatprep.mubr.bf16.mxu1 %v12232_v1  ;;  %v4216_v3 = vpop.f32.mrf.mxu0  ;;  %14468 = vst [vmem:[#allocation328_spill] sm:$0xff] %v12248_v12  ;;  %v12254_v29 = vcombine.high %v1004_v30, %v1008_v47  ;;  %v12256_v1 = vcombine.high %v1005_v2, %v1009_v53 }
 0x30f   : > { %v4569_v19 = vpop.f32.mrf.mxu1  ;;  %14469 = vst [vmem:[#allocation329_spill] sm:$0xff] %v12250_v25 }
 0x310   : > { %14466 = vst [vmem:[#allocation326_spill] sm:$0xff] %v12238_v31  ;;  %v12246_v43 = vadd.f32 %v4569_v19, %v4216_v3  ;;  %v4218_v45 = vpop.f32.mrf.mxu0  ;;  %14471 = vst [vmem:[#allocation331_spill] sm:$0xff] %v12254_v29 }
 0x311   : > { %v4571_v20 = vpop.f32.mrf.mxu1  ;;  %14472 = vst [vmem:[#allocation332_spill] sm:$0xff] %v12256_v1 }
 0x312   : > { %14467 = vst [vmem:[#allocation327_spill] sm:$0xff] %v12246_v43  ;;  %v12252_v39 = vadd.f32 %v4571_v20, %v4218_v45  ;;  %v4220_v0 = vpop.f32.mrf.mxu0  ;;  %v1016_v20 = vld [vmem:[%s10656_s2 + $0x630] sm:$0xff]  ;;  %v1013_v45 = vld [vmem:[%s10656_s2 + $0x618] sm:$0xff] }
 0x313   : > { %v4573_v31 = vpop.f32.mrf.mxu1 }
 0x314   : > { %14470 = vst [vmem:[#allocation330_spill] sm:$0xff] %v12252_v39  ;;  %v12258_v3 = vadd.f32 %v4573_v31, %v4220_v0  ;;  %v4224_v19 = vpop.f32.mrf.mxu0  ;;  %4849 = vmatmul.mubr.bf16.gmra.mxu0 %v12248_v12  ;;  %v1017_v39 = vld [vmem:[%s10656_s2 + $0x638] sm:$0xff]  ;;  %v12272_v12 = vcombine.low %v1004_v30, %v1008_v47  ;;  %v1020_v30 = vld [vmem:[%s10656_s2 + $0x650] sm:$0xff] }
 0x315   : > { %v4577_v43 = vpop.f32.mrf.mxu1  ;;  %5202 = vmatmul.mubr.bf16.gmra.mxu1 %v12250_v25  ;;  %4858 = vmatprep.mubr.bf16.mxu0 %v12254_v29  ;;  %v12274_v25 = vcombine.low %v1005_v2, %v1009_v53 }
 0x316   : > { %14473 = vst [vmem:[#allocation333_spill] sm:$0xff] %v12258_v3  ;;  %v12262_v60 = vadd.f32 %v4577_v43, %v4224_v19  ;;  %5211 = vmatprep.mubr.bf16.mxu1 %v12256_v1  ;;  %v4226_v44 = vpop.f32.mrf.mxu0  ;;  %14476 = vst [vmem:[#allocation336_spill] sm:$0xff] %v12272_v12  ;;  %v12278_v19 = vcombine.high %v1012_v9, %v1016_v20  ;;  %v12280_v1 = vcombine.high %v1013_v45, %v1017_v39 }
 0x317   : > { %v4579_v46 = vpop.f32.mrf.mxu1  ;;  %14477 = vst [vmem:[#allocation337_spill] sm:$0xff] %v12274_v25 }
 0x318   : > { %14474 = vst [vmem:[#allocation334_spill] sm:$0xff] %v12262_v60  ;;  %v12270_v0 = vadd.f32 %v4579_v46, %v4226_v44  ;;  %v4228_v31 = vpop.f32.mrf.mxu0  ;;  %14479 = vst [vmem:[#allocation339_spill] sm:$0xff] %v12278_v19 }
 0x319   : > { %v4581_v3 = vpop.f32.mrf.mxu1  ;;  %14480 = vst [vmem:[#allocation340_spill] sm:$0xff] %v12280_v1 }
 0x31a   : > { %14475 = vst [vmem:[#allocation335_spill] sm:$0xff] %v12270_v0  ;;  %v12276_v43 = vadd.f32 %v4581_v3, %v4228_v31  ;;  %v4230_v29 = vpop.f32.mrf.mxu0  ;;  %v1024_v3 = vld [vmem:[%s10656_s2 + $0x670] sm:$0xff]  ;;  %v1021_v31 = vld [vmem:[%s10656_s2 + $0x658] sm:$0xff] }
 0x31b   : > { %v4583_v60 = vpop.f32.mrf.mxu1 }
 0x31c   : > { %14478 = vst [vmem:[#allocation338_spill] sm:$0xff] %v12276_v43  ;;  %v12282_v44 = vadd.f32 %v4583_v60, %v4230_v29  ;;  %v4234_v46 = vpop.f32.mrf.mxu0  ;;  %4859 = vmatmul.mubr.bf16.gmra.mxu0 %v12272_v12  ;;  %v1025_v43 = vld [vmem:[%s10656_s2 + $0x678] sm:$0xff]  ;;  %v12296_v12 = vcombine.low %v1012_v9, %v1016_v20  ;;  %v1028_v20 = vld [vmem:[%s10656_s2 + $0x690] sm:$0xff] }
 0x31d   : > { %v4587_v0 = vpop.f32.mrf.mxu1  ;;  %5212 = vmatmul.mubr.bf16.gmra.mxu1 %v12274_v25  ;;  %4868 = vmatprep.mubr.bf16.mxu0 %v12278_v19  ;;  %v12302_v19 = vcombine.high %v1020_v30, %v1024_v3 }
 0x31e   : > { %14481 = vst [vmem:[#allocation341_spill] sm:$0xff] %v12282_v44  ;;  %v12286_v53 = vadd.f32 %v4587_v0, %v4234_v46  ;;  %5221 = vmatprep.mubr.bf16.mxu1 %v12280_v1  ;;  %v4236_v47 = vpop.f32.mrf.mxu0  ;;  %14484 = vst [vmem:[#allocation344_spill] sm:$0xff] %v12296_v12  ;;  %v12298_v0 = vcombine.low %v1013_v45, %v1017_v39  ;;  %v12304_v1 = vcombine.high %v1021_v31, %v1025_v43  ;;  %v1032_v45 = vld [vmem:[%s10656_s2 + $0x6b0] sm:$0xff] }
 0x31f   : > { %v4589_v2 = vpop.f32.mrf.mxu1  ;;  %14487 = vst [vmem:[#allocation347_spill] sm:$0xff] %v12302_v19 }
 0x320   : > { %14482 = vst [vmem:[#allocation342_spill] sm:$0xff] %v12286_v53  ;;  %v12294_v29 = vadd.f32 %v4589_v2, %v4236_v47  ;;  %v4238_v60 = vpop.f32.mrf.mxu0  ;;  %14485 = vst [vmem:[#allocation345_spill] sm:$0xff] %v12298_v0 }
 0x321   : > { %v4591_v44 = vpop.f32.mrf.mxu1  ;;  %14488 = vst [vmem:[#allocation348_spill] sm:$0xff] %v12304_v1 }
 0x322   : > { %14483 = vst [vmem:[#allocation343_spill] sm:$0xff] %v12294_v29  ;;  %v12300_v46 = vadd.f32 %v4591_v44, %v4238_v60  ;;  %v4240_v25 = vpop.f32.mrf.mxu0  ;;  %v562_v44 = vld [vmem:[#allocation2 + $0x2b0] sm:$0xff]  ;;  %v1029_v29 = vld [vmem:[%s10656_s2 + $0x698] sm:$0xff] }
 0x323   : > { %v4593_v53 = vpop.f32.mrf.mxu1 }
 0x324   : > { %14486 = vst [vmem:[#allocation346_spill] sm:$0xff] %v12300_v46  ;;  %v12306_v47 = vadd.f32 %v4593_v53, %v4240_v25  ;;  %v4630_v2 = vpop.f32.mrf.mxu0  ;;  %4869 = vmatmul.mubr.bf16.gmra.mxu0 %v12296_v12  ;;  %v1033_v25 = vld [vmem:[%s10656_s2 + $0x6b8] sm:$0xff]  ;;  %v563_v12 = vld [vmem:[#allocation2 + $0x3b0] sm:$0xff] }
 0x325   : > { %v4983_v9 = vpop.f32.mrf.mxu1  ;;  %5222 = vmatmul.mubr.bf16.gmra.mxu1 %v12298_v0  ;;  %v4631_v39 = vadd.f32 %v4630_v2, %v11478_v59  ;;  %4878 = vmatprep.mubr.bf16.mxu0 %v12302_v19  ;;  %v12318_v0 = vcombine.low %v1020_v30, %v1024_v3  ;;  %v12320_v59 = vcombine.low %v1021_v31, %v1025_v43  ;;  %v567_v43 = vld [vmem:[#allocation2 + $0x768] sm:$0xff] }
 0x326   : > { %14489 = vst [vmem:[#allocation349_spill] sm:$0xff] %v12306_v47  ;;  %5231 = vmatprep.mubr.bf16.mxu1 %v12304_v1  ;;  %v4632_v60 = vpop.f32.mrf.mxu0  ;;  %v12322_v2 = vcombine.high %v1028_v20, %v1032_v45  ;;  %v12325_v15 = vcombine.high %v1029_v29, %v1033_v25 }
 0x327   : > { %v4985_v46 = vpop.f32.mrf.mxu1  ;;  %v4984_v53 = vadd.f32 %v4983_v9, %v4631_v39  ;;  %v4633_v47 = vadd.f32 %v4632_v60, %v11486_v33 }
 0x328   : > { %v4634_v52 = vpop.f32.mrf.mxu0  ;;  %14490 = vst [vmem:[#allocation350_spill] sm:$0xff] %v12322_v2  ;;  %14491 = vst [vmem:[#allocation351_spill] sm:$0xff] %v12325_v15 }
 0x329   : > { %v4987_v22 = vpop.f32.mrf.mxu1  ;;  %v6714_v1 = vadd.f32 %v4984_v53, %v562_v44  ;;  %v4986_v19 = vadd.f32 %v4985_v46, %v4633_v47  ;;  %v4635_v32 = vadd.f32 %v4634_v52, %v11492_v38 }
 0x32a   : > { %v4636_v18 = vpop.f32.mrf.mxu0 }
 0x32b   : > { %v4989_v9 = vpop.f32.mrf.mxu1  ;;  %6970 = vst [vmem:[#allocation2 + $0x2b0] sm:$0xff] %v6714_v1  ;;  %v6715_v33 = vadd.f32 %v4986_v19, %v563_v12  ;;  %v4988_v39 = vadd.f32 %v4987_v22, %v4635_v32  ;;  %v4637_v30 = vadd.f32 %v4636_v18, %v11498_v16  ;;  %v1036_v32 = vld [vmem:[%s10656_s2 + $0x6d0] sm:$0xff]  ;;  %v570_v16 = vld [vmem:[#allocation2 + $0x380] sm:$0xff]  ;;  %v1037_v12 = vld [vmem:[%s10656_s2 + $0x6d8] sm:$0xff] }
 0x32c   : > { %v4640_v3 = vpop.f32.mrf.mxu0  ;;  %4879 = vmatmul.mubr.bf16.gmra.mxu0 %v12318_v0  ;;  %v1040_v18 = vld [vmem:[%s10656_s2 + $0x6f0] sm:$0xff]  ;;  %v1041_v19 = vld [vmem:[%s10656_s2 + $0x6f8] sm:$0xff] }
 0x32d   : > { %v4993_v31 = vpop.f32.mrf.mxu1  ;;  %5232 = vmatmul.mubr.bf16.gmra.mxu1 %v12320_v59  ;;  %6971 = vst [vmem:[#allocation2 + $0x3b0] sm:$0xff] %v6715_v33  ;;  %v6718_v38 = vadd.f32 %v4988_v39, %v566_v37  ;;  %v4990_v52 = vadd.f32 %v4989_v9, %v4637_v30  ;;  %v4641_v46 = vadd.f32 %v4640_v3, %v11502_v11  ;;  %v571_v37 = vld [vmem:[#allocation2 + $0x110] sm:$0xff] }
 0x32e   : > { %4888 = vmatprep.mubr.bf16.mxu0 %v12322_v2  ;;  %5241 = vmatprep.mubr.bf16.mxu1 %v12325_v15  ;;  %v4642_v22 = vpop.f32.mrf.mxu0  ;;  %v12338_v11 = vcombine.low %v1028_v20, %v1032_v45  ;;  %v12340_v33 = vcombine.low %v1029_v29, %v1033_v25  ;;  %v12342_v39 = vcombine.high %v1036_v32, %v1040_v18  ;;  %v575_v45 = vld [vmem:[#allocation2 + $0x550] sm:$0xff] }
 0x32f   : > { %v4995_v1 = vpop.f32.mrf.mxu1  ;;  %6974 = vst [vmem:[#allocation2 + $0x450] sm:$0xff] %v6718_v38  ;;  %v6719_v47 = vadd.f32 %v4990_v52, %v567_v43  ;;  %v4994_v44 = vadd.f32 %v4993_v31, %v4641_v46  ;;  %v4643_v60 = vadd.f32 %v4642_v22, %v11510_v62  ;;  %v12345_v2 = vcombine.high %v1037_v12, %v1041_v19  ;;  %v574_v43 = vld [vmem:[#allocation2 + $0x320] sm:$0xff] }
 0x330   : > { %v4644_v53 = vpop.f32.mrf.mxu0  ;;  %v578_v22 = vld [vmem:[#allocation2 + $0x6e0] sm:$0xff] }
 0x331   : > { %v4997_v9 = vpop.f32.mrf.mxu1  ;;  %6975 = vst [vmem:[#allocation2 + $0x768] sm:$0xff] %v6719_v47  ;;  %v6722_v30 = vadd.f32 %v4994_v44, %v570_v16  ;;  %v4996_v3 = vadd.f32 %v4995_v1, %v4643_v60  ;;  %v4645_v15 = vadd.f32 %v4644_v53, %v11516_v27  ;;  %v1045_v44 = vld [vmem:[%s10656_s2 + $0x718] sm:$0xff] }
 0x332   : > { %v4646_v31 = vpop.f32.mrf.mxu0  ;;  %v1049_v60 = vld [vmem:[%s10656_s2 + $0x738] sm:$0xff] }
 0x333   : > { %v4999_v38 = vpop.f32.mrf.mxu1  ;;  %6978 = vst [vmem:[#allocation2 + $0x380] sm:$0xff] %v6722_v30  ;;  %v6723_v62 = vadd.f32 %v4996_v3, %v571_v37  ;;  %v4998_v20 = vadd.f32 %v4997_v9, %v4645_v15  ;;  %v4647_v29 = vadd.f32 %v4646_v31, %v11522_v4  ;;  %v1044_v15 = vld [vmem:[%s10656_s2 + $0x710] sm:$0xff]  ;;  %v579_v30 = vld [vmem:[#allocation2 + $0x788] sm:$0xff]  ;;  %v12360_v31 = vcombine.low %v1037_v12, %v1041_v19 }
 0x334   : > { %v4650_v25 = vpop.f32.mrf.mxu0  ;;  %4889 = vmatmul.mubr.bf16.gmra.mxu0 %v12338_v11  ;;  %v1048_v4 = vld [vmem:[%s10656_s2 + $0x730] sm:$0xff]  ;;  %v583_v12 = vld [vmem:[#allocation2 + $0x5a8] sm:$0xff] }
 0x335   : > { %v5003_v52 = vpop.f32.mrf.mxu1  ;;  %5242 = vmatmul.mubr.bf16.gmra.mxu1 %v12340_v33  ;;  %6979 = vst [vmem:[#allocation2 + $0x110] sm:$0xff] %v6723_v62  ;;  %v6726_v27 = vadd.f32 %v4998_v20, %v574_v43  ;;  %v5000_v46 = vadd.f32 %v4999_v38, %v4647_v29  ;;  %v4651_v16 = vadd.f32 %v4650_v25, %v11526_v34 }
 0x336   : > { %4898 = vmatprep.mubr.bf16.mxu0 %v12342_v39  ;;  %5251 = vmatprep.mubr.bf16.mxu1 %v12345_v2  ;;  %v4652_v1 = vpop.f32.mrf.mxu0  ;;  %v12358_v34 = vcombine.low %v1036_v32, %v1040_v18  ;;  %v12362_v38 = vcombine.high %v1044_v15, %v1048_v4  ;;  %v12365_v25 = vcombine.high %v1045_v44, %v1049_v60 }
 0x337   : > { %v5005_v47 = vpop.f32.mrf.mxu1  ;;  %6982 = vst [vmem:[#allocation2 + $0x320] sm:$0xff] %v6726_v27  ;;  %v6727_v37 = vadd.f32 %v5000_v46, %v575_v45  ;;  %v5004_v53 = vadd.f32 %v5003_v52, %v4651_v16  ;;  %v4653_v9 = vadd.f32 %v4652_v1, %v11534_v42  ;;  %v582_v45 = vld [vmem:[#allocation2 + $0x2e0] sm:$0xff]  ;;  %v1052_v1 = vld [vmem:[%s10656_s2 + $0x750] sm:$0xff] }
 0x338   : > { %v4654_v3 = vpop.f32.mrf.mxu0 }
 0x339   : > { %v5007_v43 = vpop.f32.mrf.mxu1  ;;  %6983 = vst [vmem:[#allocation2 + $0x550] sm:$0xff] %v6727_v37  ;;  %v6730_v62 = vadd.f32 %v5004_v53, %v578_v22  ;;  %v5006_v20 = vadd.f32 %v5005_v47, %v4653_v9  ;;  %v4655_v29 = vadd.f32 %v4654_v3, %v11540_v6  ;;  %v586_v47 = vld [vmem:[#allocation2 + $0x3e8] sm:$0xff]  ;;  %v1053_v9 = vld [vmem:[%s10656_s2 + $0x758] sm:$0xff] }
 0x33a   : > { %v4656_v52 = vpop.f32.mrf.mxu0 }
 0x33b   : > { %v5009_v27 = vpop.f32.mrf.mxu1  ;;  %6986 = vst [vmem:[#allocation2 + $0x6e0] sm:$0xff] %v6730_v62  ;;  %v6731_v42 = vadd.f32 %v5006_v20, %v579_v30  ;;  %v5008_v32 = vadd.f32 %v5007_v43, %v4655_v29  ;;  %v4657_v18 = vadd.f32 %v4656_v52, %v11546_v35  ;;  %v1056_v35 = vld [vmem:[%s10656_s2 + $0x770] sm:$0xff]  ;;  %v1057_v30 = vld [vmem:[%s10656_s2 + $0x778] sm:$0xff]  ;;  %v12380_v52 = vcombine.low %v1045_v44, %v1049_v60  ;;  %v591_v44 = vld [vmem:[#allocation2 + $0xc0] sm:$0xff] }
 0x33c   : > { %v4660_v19 = vpop.f32.mrf.mxu0  ;;  %4899 = vmatmul.mubr.bf16.gmra.mxu0 %v12358_v34  ;;  %v587_v20 = vld [vmem:[#allocation2 + $0x6f8] sm:$0xff] }
 0x33d   : > { %v5013_v46 = vpop.f32.mrf.mxu1  ;;  %5252 = vmatmul.mubr.bf16.gmra.mxu1 %v12360_v31  ;;  %6987 = vst [vmem:[#allocation2 + $0x788] sm:$0xff] %v6731_v42  ;;  %v6734_v6 = vadd.f32 %v5008_v32, %v582_v45  ;;  %v5010_v16 = vadd.f32 %v5009_v27, %v4657_v18  ;;  %v4661_v22 = vadd.f32 %v4660_v19, %v11550_v50 }
 0x33e   : > { %4908 = vmatprep.mubr.bf16.mxu0 %v12362_v38  ;;  %5261 = vmatprep.mubr.bf16.mxu1 %v12365_v25  ;;  %v4662_v37 = vpop.f32.mrf.mxu0  ;;  %v12378_v50 = vcombine.low %v1044_v15, %v1048_v4  ;;  %v12382_v27 = vcombine.high %v1052_v1, %v1056_v35  ;;  %v12385_v19 = vcombine.high %v1053_v9, %v1057_v30 }
 0x33f   : > { %v5015_v53 = vpop.f32.mrf.mxu1  ;;  %6990 = vst [vmem:[#allocation2 + $0x2e0] sm:$0xff] %v6734_v6  ;;  %v6735_v3 = vadd.f32 %v5010_v16, %v583_v12  ;;  %v5014_v43 = vadd.f32 %v5013_v46, %v4661_v22  ;;  %v4663_v62 = vadd.f32 %v4662_v37, %v11558_v24  ;;  %v590_v12 = vld [vmem:[#allocation2 + $0x138] sm:$0xff]  ;;  %v1060_v37 = vld [vmem:[%s10656_s2 + $0x790] sm:$0xff] }
 0x340   : > { %v4664_v29 = vpop.f32.mrf.mxu0 }
 0x341   : > { %v5017_v45 = vpop.f32.mrf.mxu1  ;;  %6991 = vst [vmem:[#allocation2 + $0x5a8] sm:$0xff] %v6735_v3  ;;  %v6738_v42 = vadd.f32 %v5014_v43, %v586_v47  ;;  %v5016_v32 = vadd.f32 %v5015_v53, %v4663_v62  ;;  %v4665_v18 = vadd.f32 %v4664_v29, %v11564_v5  ;;  %v594_v53 = vld [vmem:[#allocation2 + $0x100] sm:$0xff]  ;;  %v1061_v62 = vld [vmem:[%s10656_s2 + $0x798] sm:$0xff] }
 0x342   : > { %v4666_v46 = vpop.f32.mrf.mxu0 }
 0x343   : > { %v5019_v6 = vpop.f32.mrf.mxu1  ;;  %6994 = vst [vmem:[#allocation2 + $0x3e8] sm:$0xff] %v6738_v42  ;;  %v6739_v24 = vadd.f32 %v5016_v32, %v587_v20  ;;  %v5018_v15 = vadd.f32 %v5017_v45, %v4665_v18  ;;  %v4667_v4 = vadd.f32 %v4666_v46, %v11570_v61  ;;  %v1064_v61 = vld [vmem:[%s10656_s2 + $0x7b0] sm:$0xff]  ;;  %v1065_v20 = vld [vmem:[%s10656_s2 + $0x7b8] sm:$0xff]  ;;  %v595_v32 = vld [vmem:[#allocation2 + $0x3c0] sm:$0xff]  ;;  %v12400_v46 = vcombine.low %v1053_v9, %v1057_v30 }
 0x344   : > { %v4670_v60 = vpop.f32.mrf.mxu0  ;;  %4909 = vmatmul.mubr.bf16.gmra.mxu0 %v12378_v50  ;;  %v599_v9 = vld [vmem:[#allocation2 + $0x4c0] sm:$0xff] }
 0x345   : > { %v5023_v16 = vpop.f32.mrf.mxu1  ;;  %5262 = vmatmul.mubr.bf16.gmra.mxu1 %v12380_v52  ;;  %6995 = vst [vmem:[#allocation2 + $0x6f8] sm:$0xff] %v6739_v24  ;;  %v6742_v5 = vadd.f32 %v5018_v15, %v590_v12  ;;  %v5020_v22 = vadd.f32 %v5019_v6, %v4667_v4  ;;  %v4671_v47 = vadd.f32 %v4670_v60, %v11574_v26 }
 0x346   : > { %4918 = vmatprep.mubr.bf16.mxu0 %v12382_v27  ;;  %5271 = vmatprep.mubr.bf16.mxu1 %v12385_v19  ;;  %v4672_v3 = vpop.f32.mrf.mxu0  ;;  %v12398_v26 = vcombine.low %v1052_v1, %v1056_v35  ;;  %v12402_v6 = vcombine.high %v1060_v37, %v1064_v61  ;;  %v12405_v60 = vcombine.high %v1061_v62, %v1065_v20 }
 0x347   : > { %v5025_v43 = vpop.f32.mrf.mxu1  ;;  %6998 = vst [vmem:[#allocation2 + $0x138] sm:$0xff] %v6742_v5  ;;  %v6743_v29 = vadd.f32 %v5020_v22, %v591_v44  ;;  %v5024_v45 = vadd.f32 %v5023_v16, %v4671_v47  ;;  %v4673_v42 = vadd.f32 %v4672_v3, %v11582_v8  ;;  %v598_v44 = vld [vmem:[#allocation2 + $0x618] sm:$0xff]  ;;  %v1068_v3 = vld [vmem:[%s10656_s2 + $0x7d0] sm:$0xff] }
 0x348   : > { %v4674_v18 = vpop.f32.mrf.mxu0 }
 0x349   : > { %v5027_v12 = vpop.f32.mrf.mxu1  ;;  %6999 = vst [vmem:[#allocation2 + $0xc0] sm:$0xff] %v6743_v29  ;;  %v6746_v24 = vadd.f32 %v5024_v45, %v594_v53  ;;  %v5026_v15 = vadd.f32 %v5025_v43, %v4673_v42  ;;  %v4675_v4 = vadd.f32 %v4674_v18, %v11588_v28  ;;  %v602_v43 = vld [vmem:[#allocation2 + $0x400] sm:$0xff]  ;;  %v1069_v42 = vld [vmem:[%s10656_s2 + $0x7d8] sm:$0xff] }
 0x34a   : > { %v4676_v16 = vpop.f32.mrf.mxu0 }
 0x34b   : > { %v5029_v5 = vpop.f32.mrf.mxu1  ;;  %7002 = vst [vmem:[#allocation2 + $0x100] sm:$0xff] %v6746_v24  ;;  %v6747_v8 = vadd.f32 %v5026_v15, %v595_v32  ;;  %v5028_v1 = vadd.f32 %v5027_v12, %v4675_v4  ;;  %v4677_v35 = vadd.f32 %v4676_v16, %v11594_v41  ;;  %v1072_v41 = vld [vmem:[%s10656_s2 + $0x7f0] sm:$0xff]  ;;  %v1073_v32 = vld [vmem:[%s10656_s2 + $0x7f8] sm:$0xff]  ;;  %v603_v15 = vld [vmem:[#allocation2 + $0x6a8] sm:$0xff]  ;;  %v12420_v16 = vcombine.low %v1061_v62, %v1065_v20 }
 0x34c   : > { %v4680_v30 = vpop.f32.mrf.mxu0  ;;  %4919 = vmatmul.mubr.bf16.gmra.mxu0 %v12398_v26 }
 0x34d   : > { %v5033_v22 = vpop.f32.mrf.mxu1  ;;  %5272 = vmatmul.mubr.bf16.gmra.mxu1 %v12400_v46  ;;  %7003 = vst [vmem:[#allocation2 + $0x3c0] sm:$0xff] %v6747_v8  ;;  %v6750_v28 = vadd.f32 %v5028_v1, %v598_v44  ;;  %v5030_v47 = vadd.f32 %v5029_v5, %v4677_v35  ;;  %v4681_v53 = vadd.f32 %v4680_v30, %v11598_v10 }
 0x34e   : > { %4928 = vmatprep.mubr.bf16.mxu0 %v12402_v6  ;;  %5281 = vmatprep.mubr.bf16.mxu1 %v12405_v60  ;;  %v4682_v29 = vpop.f32.mrf.mxu0  ;;  %v12418_v10 = vcombine.low %v1060_v37, %v1064_v61  ;;  %v12422_v5 = vcombine.high %v1068_v3, %v1072_v41  ;;  %v12425_v30 = vcombine.high %v1069_v42, %v1073_v32  ;;  %v607_v61 = vld [vmem:[#allocation2 + $0x5c0] sm:$0xff] }
 0x34f   : > { %v5035_v45 = vpop.f32.mrf.mxu1  ;;  %7006 = vst [vmem:[#allocation2 + $0x618] sm:$0xff] %v6750_v28  ;;  %v6751_v18 = vadd.f32 %v5030_v47, %v599_v9  ;;  %v5034_v12 = vadd.f32 %v5033_v22, %v4681_v53  ;;  %v4683_v24 = vadd.f32 %v4682_v29, %v11606_v55  ;;  %v606_v9 = vld [vmem:[#allocation2 + $0x6c8] sm:$0xff]  ;;  %v610_v29 = vld [vmem:[#allocation2 + $0x770] sm:$0xff] }
 0x350   : > { %v4684_v4 = vpop.f32.mrf.mxu0  ;;  %14492 = vst [vmem:[#allocation352_spill] sm:$0xff] %v12422_v5  ;;  %14493 = vst [vmem:[#allocation353_spill] sm:$0xff] %v12425_v30 }
 0x351   : > { %v5037_v44 = vpop.f32.mrf.mxu1  ;;  %7007 = vst [vmem:[#allocation2 + $0x4c0] sm:$0xff] %v6751_v18  ;;  %v6754_v8 = vadd.f32 %v5034_v12, %v602_v43  ;;  %v5036_v1 = vadd.f32 %v5035_v45, %v4683_v24  ;;  %v4685_v35 = vadd.f32 %v4684_v4, %v11612_v36 }
 0x352   : > { %v4686_v22 = vpop.f32.mrf.mxu0 }
 0x353   : > { %v5039_v28 = vpop.f32.mrf.mxu1  ;;  %7010 = vst [vmem:[#allocation2 + $0x400] sm:$0xff] %v6754_v8  ;;  %v6755_v55 = vadd.f32 %v5036_v1, %v603_v15  ;;  %v5038_v47 = vadd.f32 %v5037_v44, %v4685_v35  ;;  %v4687_v37 = vadd.f32 %v4686_v22, %v11618_v23  ;;  %v611_v15 = vld [vmem:[#allocation2 + $0x520] sm:$0xff]  ;;  %v12434_v8 = vcombine.low %v1068_v3, %v1072_v41  ;;  %v614_v22 = vld [vmem:[#allocation2 + $0x348] sm:$0xff] }
 0x354   : > { %v4690_v62 = vpop.f32.mrf.mxu0  ;;  %4929 = vmatmul.mubr.bf16.gmra.mxu0 %v12418_v10  ;;  %v12436_v1 = vcombine.low %v1069_v42, %v1073_v32  ;;  %v618_v32 = vld [vmem:[#allocation2 + $0x148] sm:$0xff] }
 0x355   : > { %v5043_v20 = vpop.f32.mrf.mxu1  ;;  %5282 = vmatmul.mubr.bf16.gmra.mxu1 %v12420_v16  ;;  %7011 = vst [vmem:[#allocation2 + $0x6a8] sm:$0xff] %v6755_v55  ;;  %v6758_v53 = vadd.f32 %v5038_v47, %v606_v9  ;;  %v5040_v36 = vadd.f32 %v5039_v28, %v4687_v37  ;;  %v4691_v43 = vadd.f32 %v4690_v62, %v11622_v58  ;;  %14494 = vst [vmem:[#allocation354_spill] sm:$0xff] %v12434_v8 }
 0x356   : > { %4938 = vmatprep.mubr.bf16.mxu0 %v12422_v5  ;;  %5291 = vmatprep.mubr.bf16.mxu1 %v12425_v30  ;;  %v4692_v45 = vpop.f32.mrf.mxu0  ;;  %14495 = vst [vmem:[#allocation355_spill] sm:$0xff] %v12436_v1  ;;  %v569_v5 = vld [vmem:[#allocation2 + $0x448] sm:$0xff] }
 0x357   : > { %v5045_v18 = vpop.f32.mrf.mxu1  ;;  %7014 = vst [vmem:[#allocation2 + $0x6c8] sm:$0xff] %v6758_v53  ;;  %v6759_v23 = vadd.f32 %v5040_v36, %v607_v61  ;;  %v5044_v12 = vadd.f32 %v5043_v20, %v4691_v43  ;;  %v4693_v24 = vadd.f32 %v4692_v45, %v11630_v40  ;;  %v615_v61 = vld [vmem:[#allocation2 + $0x420] sm:$0xff] }
 0x358   : > { %v4694_v4 = vpop.f32.mrf.mxu0 }
 0x359   : > { %v5047_v44 = vpop.f32.mrf.mxu1  ;;  %7015 = vst [vmem:[#allocation2 + $0x5c0] sm:$0xff] %v6759_v23  ;;  %v6762_v58 = vadd.f32 %v5044_v12, %v610_v29  ;;  %v5046_v35 = vadd.f32 %v5045_v18, %v4693_v24  ;;  %v4695_v9 = vadd.f32 %v4694_v4, %v11636_v51  ;;  %v619_v29 = vld [vmem:[#allocation2 + $0x3a0] sm:$0xff]  ;;  %v9970_v12 = vld [vmem:[%s10664_s9 + $0x6e8] ss:$16 sps:$4 sm:$0xff]  }
 0x35a   : > { %v4696_v28 = vpop.f32.mrf.mxu0  ;;  %v622_v24 = vld [vmem:[#allocation2 + $0x38] sm:$0xff] }
 0x35b   : > { %v5049_v55 = vpop.f32.mrf.mxu1  ;;  %7018 = vst [vmem:[#allocation2 + $0x770] sm:$0xff] %v6762_v58  ;;  %v6763_v47 = vadd.f32 %v5046_v35, %v611_v15  ;;  %v5048_v37 = vadd.f32 %v5047_v44, %v4695_v9  ;;  %v4697_v40 = vadd.f32 %v4696_v28, %v11642_v7  ;;  %v9975_v35 = vld [vmem:[%s10664_s9 + $0x4cc] ss:$16 sps:$4 sm:$0xff]  }
 0x35c   : > { %v4700_v62 = vpop.f32.mrf.mxu0  ;;  %4939 = vmatmul.mubr.bf16.gmra.mxu0 %v12434_v8  ;;  %v9978_v9 = vld [vmem:[%s10664_s9 + $0x6cc] ss:$16 sps:$4 sm:$0xff]  }
 0x35d   : > { %v5053_v3 = vpop.f32.mrf.mxu1  ;;  %5292 = vmatmul.mubr.bf16.gmra.mxu1 %v12436_v1  ;;  %7019 = vst [vmem:[#allocation2 + $0x520] sm:$0xff] %v6763_v47  ;;  %v6766_v41 = vadd.f32 %v5048_v37, %v614_v22  ;;  %v5050_v42 = vadd.f32 %v5049_v55, %v4697_v40  ;;  %v4701_v51 = vadd.f32 %v4700_v62, %v11646_v21  ;;  %v623_v22 = vld [vmem:[#allocation2 + $0x440] sm:$0xff]  ;;  %v9973_v40 = vld [vmem:[%s10664_s9 + $0x4c8] ss:$16 sps:$4 sm:$0xff]  }
 0x35e   : > { %5334 = vmatprep.mubr.bf16.mxu0 %v10993_v54  ;;  %5687 = vmatprep.mubr.bf16.mxu1 %v10996_v56  ;;  %v4702_v7 = vpop.f32.mrf.mxu0  ;;  %v9967_v56 = vld [vmem:[%s10664_s9 + $0x4e8] ss:$16 sps:$4 sm:$0xff]  }
 0x35f   : > { %v5055_v20 = vpop.f32.mrf.mxu1  ;;  %7022 = vst [vmem:[#allocation2 + $0x348] sm:$0xff] %v6766_v41  ;;  %v6767_v53 = vadd.f32 %v5050_v42, %v615_v61  ;;  %v5054_v36 = vadd.f32 %v5053_v3, %v4701_v51  ;;  %v4703_v43 = vadd.f32 %v4702_v7, %v11651_v49  ;;  %v626_v61 = vld [vmem:[#allocation2 + $0x538] sm:$0xff]  ;;  %v14496_v41 = vld [vmem:[#allocation30_spill] sm:$0xff] }
 0x360   : > { %v4704_v45 = vpop.f32.mrf.mxu0  ;;  %v9984_v42 = vld [vmem:[%s10664_s9 + $0x6ac] ss:$16 sps:$4 sm:$0xff]  }
 0x361   : > { %v5057_v18 = vpop.f32.mrf.mxu1  ;;  %7023 = vst [vmem:[#allocation2 + $0x420] sm:$0xff] %v6767_v53  ;;  %v6770_v21 = vadd.f32 %v5054_v36, %v618_v32  ;;  %v5056_v54 = vadd.f32 %v5055_v20, %v4703_v43  ;;  %v4705_v23 = vadd.f32 %v4704_v45, %v11660_v57  ;;  %v14497_v32 = vld [vmem:[#allocation159_spill] sm:$0xff]  ;;  %v14498_v43 = vld [vmem:[#allocation162_spill] sm:$0xff]  ;;  %v630_v45 = vld [vmem:[#allocation2 + $0xb8] sm:$0xff] }
 0x362   : > { %v4706_v15 = vpop.f32.mrf.mxu0 }
 0x363   : > { %v5059_v4 = vpop.f32.mrf.mxu1  ;;  %7026 = vst [vmem:[#allocation2 + $0x148] sm:$0xff] %v6770_v21  ;;  %v6771_v44 = vadd.f32 %v5056_v54, %v619_v29  ;;  %v5058_v58 = vadd.f32 %v5057_v18, %v4705_v23  ;;  %v4707_v49 = vadd.f32 %v4706_v15, %v11668_v63  ;;  %v9976_v63 = vld [vmem:[%s10664_s9 + $0x6c8] ss:$16 sps:$4 sm:$0xff]  }
 0x364   : > { %v4710_v28 = vpop.f32.mrf.mxu0  ;;  %5335 = vmatmul.mubr.bf16.vlgmr.msra.gmra.mxu0 %v11020_v13  ;;  %v9981_v13 = vld [vmem:[%s10664_s9 + $0x4ac] ss:$16 sps:$4 sm:$0xff]   ;;  %v9979_v54 = vld [vmem:[%s10664_s9 + $0x4a8] ss:$16 sps:$4 sm:$0xff]  }
 0x365   : > { %v5063_v55 = vpop.f32.mrf.mxu1  ;;  %5688 = vmatmul.mubr.bf16.vlgmr.msra.gmra.mxu1 %v11022_v14  ;;  %7027 = vst [vmem:[#allocation2 + $0x3a0] sm:$0xff] %v6771_v44  ;;  %v6774_v57 = vadd.f32 %v5058_v58, %v622_v24  ;;  %v5060_v47 = vadd.f32 %v5059_v4, %v4707_v49  ;;  %v4711_v37 = vadd.f32 %v4710_v28, %v11676_v48  ;;  %v627_v48 = vld [vmem:[#allocation2 + $0xf0] sm:$0xff]  ;;  %v9982_v23 = vld [vmem:[%s10664_s9 + $0x6a8] ss:$16 sps:$4 sm:$0xff]   ;;  %v14499_v24 = vld [vmem:[#allocation165_spill] sm:$0xff] }
 0x366   : > { %6009 = vmatpush1.bf16.msra.mxu0 %v9967_v56  ;;  %6362 = vmatpush1.bf16.msra.mxu1 %v9970_v12  ;;  %v4712_v62 = vpop.f32.mrf.mxu0  ;;  %v9987_v4 = vld [vmem:[%s10664_s9 + $0x48c] ss:$16 sps:$4 sm:$0xff]   ;;  %v631_v58 = vld [vmem:[#allocation2 + $0x120] sm:$0xff] }
 0x367   : > { %v5065_v3 = vpop.f32.mrf.mxu1  ;;  %5344 = vmatprep.mubr.bf16.mxu0 %v11026_v17  ;;  %5697 = vmatprep.mubr.bf16.mxu1 %v14496_v41  ;;  %7030 = vst [vmem:[#allocation2 + $0x38] sm:$0xff] %v6774_v57  ;;  %v6775_v14 = vadd.f32 %v5060_v47, %v623_v22  ;;  %v5064_v51 = vadd.f32 %v5063_v55, %v4711_v37  ;;  %v9990_v44 = vld [vmem:[%s10664_s9 + $0x68c] ss:$16 sps:$4 sm:$0xff]   ;;  %v14503_v37 = vld [vmem:[#allocation33_spill] sm:$0xff]  ;;  %v9988_v41 = vld [vmem:[%s10664_s9 + $0x688] ss:$16 sps:$4 sm:$0xff]  }
 0x368   : > { %v4713_v7 = vadd.f32 %v4712_v62, %v14497_v32  ;;  %6010 = vmatprep.subr.bf16.mxu0 %v9975_v35  ;;  %6363 = vmatprep.subr.bf16.mxu1 %v9978_v9  ;;  %v4714_v20 = vpop.f32.mrf.mxu0  ;;  %v14500_v9 = vld [vmem:[#allocation31_spill] sm:$0xff]  ;;  %v14501_v22 = vld [vmem:[#allocation32_spill] sm:$0xff]  ;;  %v14502_v57 = vld [vmem:[#allocation166_spill] sm:$0xff] }
 0x369   : > { %v5067_v53 = vpop.f32.mrf.mxu1  ;;  %7031 = vst [vmem:[#allocation2 + $0x440] sm:$0xff] %v6775_v14  ;;  %v6778_v36 = vadd.f32 %v5064_v51, %v626_v61  ;;  %v4715_v29 = vadd.f32 %v4714_v20, %v14498_v43  ;;  %v14505_v14 = vld [vmem:[#allocation167_spill] sm:$0xff]  ;;  %v9993_v32 = vld [vmem:[%s10664_s9 + $0x46c] ss:$16 sps:$4 sm:$0xff]  }
 0x36a   : > { %v5066_v17 = vadd.f32 %v5065_v3, %v4713_v7  ;;  %6011 = vmatpush1.bf16.msra.mxu0 %v9973_v40  ;;  %6364 = vmatpush1.bf16.msra.mxu1 %v9976_v63  ;;  %v4716_v18 = vpop.f32.mrf.mxu0  ;;  %v14504_v40 = vld [vmem:[#allocation34_spill] sm:$0xff]  ;;  %v634_v63 = vld [vmem:[#allocation2 + $0x6f0] sm:$0xff] }
 0x36b   : > { %v5069_v21 = vpop.f32.mrf.mxu1  ;;  %6012 = vmatprep.subr.bf16.mxu0 %v9981_v13  ;;  %6365 = vmatprep.subr.bf16.mxu1 %v9984_v42  ;;  %7034 = vst [vmem:[#allocation2 + $0x538] sm:$0xff] %v6778_v36  ;;  %v5068_v12 = vadd.f32 %v5067_v53, %v4715_v29  ;;  %v4717_v15 = vadd.f32 %v4716_v18, %v14499_v24  ;;  %v9985_v3 = vld [vmem:[%s10664_s9 + $0x488] ss:$16 sps:$4 sm:$0xff]   ;;  %v9996_v7 = vld [vmem:[%s10664_s9 + $0x66c] ss:$16 sps:$4 sm:$0xff]   ;;  %v14507_v24 = vld [vmem:[#allocation173_spill] sm:$0xff] }
 0x36c   : > { %v6779_v56 = vadd.f32 %v5066_v17, %v627_v48  ;;  %v4720_v49 = vpop.f32.mrf.mxu0  ;;  %5345 = vmatmul.mubr.bf16.gmra.mxu0 %v14500_v9  ;;  %v635_v48 = vld [vmem:[#allocation2 + $0x2f8] sm:$0xff]  ;;  %v14506_v43 = vld [vmem:[#allocation170_spill] sm:$0xff]  ;;  %v14508_v9 = vld [vmem:[#allocation35_spill] sm:$0xff] }
 0x36d   : > { %v5073_v35 = vpop.f32.mrf.mxu1  ;;  %5698 = vmatmul.mubr.bf16.gmra.mxu1 %v14501_v22  ;;  %v6782_v28 = vadd.f32 %v5068_v12, %v630_v45  ;;  %v5070_v55 = vadd.f32 %v5069_v21, %v4717_v15  ;;  %v4721_v47 = vadd.f32 %v4720_v49, %v14502_v57  ;;  %5354 = vmatprep.mubr.bf16.mxu0 %v14503_v37  ;;  %v638_v45 = vld [vmem:[#allocation2 + $0x738] sm:$0xff]  ;;  %v14510_v57 = vld [vmem:[#allocation174_spill] sm:$0xff]  ;;  %v14511_v37 = vld [vmem:[#allocation37_spill] sm:$0xff] }
 0x36e   : > { %7035 = vst [vmem:[#allocation2 + $0xf0] sm:$0xff] %v6779_v56  ;;  %5707 = vmatprep.mubr.bf16.mxu1 %v14504_v40  ;;  %v4722_v61 = vpop.f32.mrf.mxu0  ;;  %6013 = vmatpush1.bf16.msra.mxu0 %v9979_v54  ;;  %v9991_v54 = vld [vmem:[%s10664_s9 + $0x468] ss:$16 sps:$4 sm:$0xff]  }
 0x36f   : > { %v5075_v62 = vpop.f32.mrf.mxu1  ;;  %6366 = vmatpush1.bf16.msra.mxu1 %v9982_v23  ;;  %7038 = vst [vmem:[#allocation2 + $0xb8] sm:$0xff] %v6782_v28  ;;  %v6783_v13 = vadd.f32 %v5070_v55, %v631_v58  ;;  %v5074_v42 = vadd.f32 %v5073_v35, %v4721_v47  ;;  %v4723_v51 = vadd.f32 %v4722_v61, %v14505_v14  ;;  %v9994_v23 = vld [vmem:[%s10664_s9 + $0x668] ss:$16 sps:$4 sm:$0xff]   ;;  %v14513_v14 = vld [vmem:[#allocation175_spill] sm:$0xff] }
 0x370   : > { %6014 = vmatprep.subr.bf16.mxu0 %v9987_v4  ;;  %6367 = vmatprep.subr.bf16.mxu1 %v9990_v44  ;;  %v4724_v20 = vpop.f32.mrf.mxu0  ;;  %v9999_v4 = vld [vmem:[%s10664_s9 + $0x44c] ss:$16 sps:$4 sm:$0xff]  }
 0x371   : > { %v5077_v53 = vpop.f32.mrf.mxu1  ;;  %7039 = vst [vmem:[#allocation2 + $0x120] sm:$0xff] %v6783_v13  ;;  %v6786_v36 = vadd.f32 %v5074_v42, %v634_v63  ;;  %v5076_v17 = vadd.f32 %v5075_v62, %v4723_v51  ;;  %v4725_v29 = vadd.f32 %v4724_v20, %v14506_v43  ;;  %v10002_v44 = vld [vmem:[%s10664_s9 + $0x64c] ss:$16 sps:$4 sm:$0xff]  }
 0x372   : > { %v4726_v18 = vpop.f32.mrf.mxu0  ;;  %6015 = vmatpush1.bf16.msra.mxu0 %v9985_v3  ;;  %v639_v58 = vld [vmem:[#allocation2 + $0x598] sm:$0xff]  ;;  %v14512_v40 = vld [vmem:[#allocation38_spill] sm:$0xff] }
 0x373   : > { %v5079_v21 = vpop.f32.mrf.mxu1  ;;  %6368 = vmatpush1.bf16.msra.mxu1 %v9988_v41  ;;  %7042 = vst [vmem:[#allocation2 + $0x6f0] sm:$0xff] %v6786_v36  ;;  %v6787_v56 = vadd.f32 %v5076_v17, %v635_v48  ;;  %v5078_v12 = vadd.f32 %v5077_v53, %v4725_v29  ;;  %v4727_v15 = vadd.f32 %v4726_v18, %v14507_v24  ;;  %v14509_v22 = vld [vmem:[#allocation36_spill] sm:$0xff]  ;;  %v643_v48 = vld [vmem:[#allocation2 + $0x1a8] sm:$0xff]  ;;  %v14515_v24 = vld [vmem:[#allocation181_spill] sm:$0xff] }
 0x374   : > { %6016 = vmatprep.subr.bf16.mxu0 %v9993_v32  ;;  %6369 = vmatprep.subr.bf16.mxu1 %v9996_v7  ;;  %v4730_v49 = vpop.f32.mrf.mxu0  ;;  %v642_v63 = vld [vmem:[#allocation2 + $0x398] sm:$0xff]  ;;  %v14514_v43 = vld [vmem:[#allocation178_spill] sm:$0xff] }
 0x375   : > { %v5083_v35 = vpop.f32.mrf.mxu1  ;;  %5355 = vmatmul.mubr.bf16.gmra.mxu0 %v14508_v9  ;;  %5708 = vmatmul.mubr.bf16.gmra.mxu1 %v14509_v22  ;;  %7043 = vst [vmem:[#allocation2 + $0x2f8] sm:$0xff] %v6787_v56  ;;  %v6790_v28 = vadd.f32 %v5078_v12, %v638_v45  ;;  %v5080_v55 = vadd.f32 %v5079_v21, %v4727_v15  ;;  %v9997_v3 = vld [vmem:[%s10664_s9 + $0x448] ss:$16 sps:$4 sm:$0xff]   ;;  %v10005_v32 = vld [vmem:[%s10664_s9 + $0x42c] ss:$16 sps:$4 sm:$0xff]   ;;  %v14516_v9 = vld [vmem:[#allocation39_spill] sm:$0xff] }
 0x376   : > { %v4731_v47 = vadd.f32 %v4730_v49, %v14510_v57  ;;  %5364 = vmatprep.mubr.bf16.mxu0 %v14511_v37  ;;  %5717 = vmatprep.mubr.bf16.mxu1 %v14512_v40  ;;  %v4732_v61 = vpop.f32.mrf.mxu0  ;;  %v10000_v41 = vld [vmem:[%s10664_s9 + $0x648] ss:$16 sps:$4 sm:$0xff]   ;;  %v10008_v7 = vld [vmem:[%s10664_s9 + $0x62c] ss:$16 sps:$4 sm:$0xff]   ;;  %v14519_v37 = vld [vmem:[#allocation41_spill] sm:$0xff] }
 0x377   : > { %v5085_v62 = vpop.f32.mrf.mxu1  ;;  %6017 = vmatpush1.bf16.msra.mxu0 %v9991_v54  ;;  %6370 = vmatpush1.bf16.msra.mxu1 %v9994_v23  ;;  %7046 = vst [vmem:[#allocation2 + $0x738] sm:$0xff] %v6790_v28  ;;  %v6791_v13 = vadd.f32 %v5080_v55, %v639_v58  ;;  %v4733_v51 = vadd.f32 %v4732_v61, %v14513_v14  ;;  %v646_v45 = vld [vmem:[#allocation2 + $0x5d8] sm:$0xff]  ;;  %v647_v58 = vld [vmem:[#allocation2 + $0x610] sm:$0xff]  ;;  %v14518_v57 = vld [vmem:[#allocation182_spill] sm:$0xff] }
 0x378   : > { %v5084_v42 = vadd.f32 %v5083_v35, %v4731_v47  ;;  %6018 = vmatprep.subr.bf16.mxu0 %v9999_v4  ;;  %6371 = vmatprep.subr.bf16.mxu1 %v10002_v44  ;;  %v4734_v20 = vpop.f32.mrf.mxu0  ;;  %v10003_v54 = vld [vmem:[%s10664_s9 + $0x428] ss:$16 sps:$4 sm:$0xff]   ;;  %v10011_v4 = vld [vmem:[%s10664_s9 + $0x40c] ss:$16 sps:$4 sm:$0xff]   ;;  %v14521_v14 = vld [vmem:[#allocation183_spill] sm:$0xff] }
 0x379   : > { %v5087_v53 = vpop.f32.mrf.mxu1  ;;  %7047 = vst [vmem:[#allocation2 + $0x598] sm:$0xff] %v6791_v13  ;;  %v5086_v17 = vadd.f32 %v5085_v62, %v4733_v51  ;;  %v4735_v29 = vadd.f32 %v4734_v20, %v14514_v43  ;;  %v10006_v23 = vld [vmem:[%s10664_s9 + $0x628] ss:$16 sps:$4 sm:$0xff]   ;;  %v10014_v44 = vld [vmem:[%s10664_s9 + $0x60c] ss:$16 sps:$4 sm:$0xff]  }
 0x37a   : > { %v6794_v36 = vadd.f32 %v5084_v42, %v642_v63  ;;  %v4736_v18 = vpop.f32.mrf.mxu0  ;;  %v14517_v22 = vld [vmem:[#allocation40_spill] sm:$0xff]  ;;  %v14520_v40 = vld [vmem:[#allocation42_spill] sm:$0xff] }
 0x37b   : > { %v5089_v21 = vpop.f32.mrf.mxu1  ;;  %6019 = vmatpush1.bf16.msra.mxu0 %v9997_v3  ;;  %6372 = vmatpush1.bf16.msra.mxu1 %v10000_v41  ;;  %v6795_v56 = vadd.f32 %v5086_v17, %v643_v48  ;;  %v5088_v12 = vadd.f32 %v5087_v53, %v4735_v29  ;;  %v4737_v15 = vadd.f32 %v4736_v18, %v14515_v24  ;;  %v650_v63 = vld [vmem:[#allocation2 + $0x628] sm:$0xff]  ;;  %v651_v48 = vld [vmem:[#allocation2 + $0x1f8] sm:$0xff]  ;;  %v14523_v24 = vld [vmem:[#allocation189_spill] sm:$0xff] }
 0x37c   : > { %7050 = vst [vmem:[#allocation2 + $0x398] sm:$0xff] %v6794_v36  ;;  %6020 = vmatprep.subr.bf16.mxu0 %v10005_v32  ;;  %6373 = vmatprep.subr.bf16.mxu1 %v10008_v7  ;;  %v4740_v49 = vpop.f32.mrf.mxu0  ;;  %v10009_v3 = vld [vmem:[%s10664_s9 + $0x408] ss:$16 sps:$4 sm:$0xff]   ;;  %v10017_v32 = vld [vmem:[%s10664_s9 + $0x5ec] ss:$16 sps:$4 sm:$0xff]  }
 0x37d   : > { %v5093_v35 = vpop.f32.mrf.mxu1  ;;  %5365 = vmatmul.mubr.bf16.gmra.mxu0 %v14516_v9  ;;  %5718 = vmatmul.mubr.bf16.gmra.mxu1 %v14517_v22  ;;  %7051 = vst [vmem:[#allocation2 + $0x1a8] sm:$0xff] %v6795_v56  ;;  %v6798_v28 = vadd.f32 %v5088_v12, %v646_v45  ;;  %v5090_v55 = vadd.f32 %v5089_v21, %v4737_v15  ;;  %v10012_v41 = vld [vmem:[%s10664_s9 + $0x608] ss:$16 sps:$4 sm:$0xff]   ;;  %v10020_v7 = vld [vmem:[%s10664_s9 + $0x7ec] ss:$16 sps:$4 sm:$0xff]   ;;  %v14524_v9 = vld [vmem:[#allocation43_spill] sm:$0xff] }
 0x37e   : > { %v4741_v47 = vadd.f32 %v4740_v49, %v14518_v57  ;;  %5374 = vmatprep.mubr.bf16.mxu0 %v14519_v37  ;;  %5727 = vmatprep.mubr.bf16.mxu1 %v14520_v40  ;;  %v4742_v61 = vpop.f32.mrf.mxu0  ;;  %v14522_v43 = vld [vmem:[#allocation186_spill] sm:$0xff]  ;;  %v654_v45 = vld [vmem:[#allocation2 + $0x478] sm:$0xff]  ;;  %v14527_v37 = vld [vmem:[#allocation45_spill] sm:$0xff] }
 0x37f   : > { %v5095_v62 = vpop.f32.mrf.mxu1  ;;  %6021 = vmatpush1.bf16.msra.mxu0 %v10003_v54  ;;  %6374 = vmatpush1.bf16.msra.mxu1 %v10006_v23  ;;  %7054 = vst [vmem:[#allocation2 + $0x5d8] sm:$0xff] %v6798_v28  ;;  %v6799_v13 = vadd.f32 %v5090_v55, %v647_v58  ;;  %v4743_v51 = vadd.f32 %v4742_v61, %v14521_v14  ;;  %v10015_v54 = vld [vmem:[%s10664_s9 + $0x5e8] ss:$16 sps:$4 sm:$0xff]   ;;  %v655_v58 = vld [vmem:[#allocation2 + $0x2c0] sm:$0xff]  ;;  %v14529_v14 = vld [vmem:[#allocation191_spill] sm:$0xff] }
 0x380   : > { %v5094_v42 = vadd.f32 %v5093_v35, %v4741_v47  ;;  %6022 = vmatprep.subr.bf16.mxu0 %v10011_v4  ;;  %6375 = vmatprep.subr.bf16.mxu1 %v10014_v44  ;;  %v4744_v20 = vpop.f32.mrf.mxu0  ;;  %v10018_v23 = vld [vmem:[%s10664_s9 + $0x7e8] ss:$16 sps:$4 sm:$0xff]   ;;  %v10023_v4 = vld [vmem:[%s10664_s9 + $0x5cc] ss:$16 sps:$4 sm:$0xff]  }
 0x381   : > { %v5097_v53 = vpop.f32.mrf.mxu1  ;;  %7055 = vst [vmem:[#allocation2 + $0x610] sm:$0xff] %v6799_v13  ;;  %v5096_v17 = vadd.f32 %v5095_v62, %v4743_v51  ;;  %v4745_v29 = vadd.f32 %v4744_v20, %v14522_v43  ;;  %v10026_v44 = vld [vmem:[%s10664_s9 + $0x7cc] ss:$16 sps:$4 sm:$0xff]   ;;  %v662_v43 = vld [vmem:[#allocation2 + $0x90] sm:$0xff] }
 0x382   : > { %v6802_v36 = vadd.f32 %v5094_v42, %v650_v63  ;;  %v4746_v18 = vpop.f32.mrf.mxu0  ;;  %v14525_v22 = vld [vmem:[#allocation44_spill] sm:$0xff]  ;;  %v14526_v57 = vld [vmem:[#allocation190_spill] sm:$0xff] }
 0x383   : > { %v5099_v21 = vpop.f32.mrf.mxu1  ;;  %6023 = vmatpush1.bf16.msra.mxu0 %v10009_v3  ;;  %6376 = vmatpush1.bf16.msra.mxu1 %v10012_v41  ;;  %v6803_v56 = vadd.f32 %v5096_v17, %v651_v48  ;;  %v5098_v12 = vadd.f32 %v5097_v53, %v4745_v29  ;;  %v4747_v15 = vadd.f32 %v4746_v18, %v14523_v24  ;;  %v14528_v40 = vld [vmem:[#allocation46_spill] sm:$0xff]  ;;  %v658_v63 = vld [vmem:[#allocation2 + $0x418] sm:$0xff]  ;;  %v663_v24 = vld [vmem:[#allocation2 + $0x540] sm:$0xff] }
 0x384   : > { %7058 = vst [vmem:[#allocation2 + $0x628] sm:$0xff] %v6802_v36  ;;  %6024 = vmatprep.subr.bf16.mxu0 %v10017_v32  ;;  %6377 = vmatprep.subr.bf16.mxu1 %v10020_v7  ;;  %v4750_v49 = vpop.f32.mrf.mxu0  ;;  %v10021_v3 = vld [vmem:[%s10664_s9 + $0x5c8] ss:$16 sps:$4 sm:$0xff]   ;;  %v659_v32 = vld [vmem:[#allocation2 + $0x7f0] sm:$0xff] }
 0x385   : > { %v5103_v35 = vpop.f32.mrf.mxu1  ;;  %5375 = vmatmul.mubr.bf16.gmra.mxu0 %v14524_v9  ;;  %5728 = vmatmul.mubr.bf16.gmra.mxu1 %v14525_v22  ;;  %7059 = vst [vmem:[#allocation2 + $0x1f8] sm:$0xff] %v6803_v56  ;;  %v6806_v28 = vadd.f32 %v5098_v12, %v654_v45  ;;  %v5100_v55 = vadd.f32 %v5099_v21, %v4747_v15  ;;  %v10024_v41 = vld [vmem:[%s10664_s9 + $0x7c8] ss:$16 sps:$4 sm:$0xff]   ;;  %v10029_v12 = vld [vmem:[%s10664_s9 + $0x5ac] ss:$16 sps:$4 sm:$0xff]  }
 0x386   : > { %v4751_v47 = vadd.f32 %v4750_v49, %v14526_v57  ;;  %5384 = vmatprep.mubr.bf16.mxu0 %v14527_v37  ;;  %5737 = vmatprep.mubr.bf16.mxu1 %v14528_v40  ;;  %v4752_v61 = vpop.f32.mrf.mxu0  ;;  %v14530_v36 = vld [vmem:[#allocation194_spill] sm:$0xff]  ;;  %v666_v37 = vld [vmem:[#allocation2 + $0x58] sm:$0xff] }
 0x387   : > { %v5105_v62 = vpop.f32.mrf.mxu1  ;;  %6025 = vmatpush2.bf16.msra.mxu0 %v10015_v54  ;;  %6378 = vmatpush2.bf16.msra.mxu1 %v10018_v23  ;;  %7062 = vst [vmem:[#allocation2 + $0x478] sm:$0xff] %v6806_v28  ;;  %v6807_v13 = vadd.f32 %v5100_v55, %v655_v58  ;;  %v4753_v51 = vadd.f32 %v4752_v61, %v14529_v14  ;;  %v14531_v54 = vld [vmem:[#allocation197_spill] sm:$0xff]  ;;  %v10027_v56 = vld [vmem:[%s10664_s9 + $0x5a8] ss:$16 sps:$4 sm:$0xff]  }
 0x388   : > { %v5104_v42 = vadd.f32 %v5103_v35, %v4751_v47  ;;  %6026 = vmatprep.subr.bf16.mxu0 %v10023_v4  ;;  %6379 = vmatprep.subr.bf16.mxu1 %v10026_v44  ;;  %v4754_v7 = vpop.f32.mrf.mxu0  ;;  %v14532_v44 = vld [vmem:[#allocation47_spill] sm:$0xff]  ;;  %v14533_v58 = vld [vmem:[#allocation48_spill] sm:$0xff]  ;;  %v14534_v9 = vld [vmem:[#allocation198_spill] sm:$0xff] }
 0x389   : > { %v5107_v48 = vpop.f32.mrf.mxu1  ;;  %7063 = vst [vmem:[#allocation2 + $0x2c0] sm:$0xff] %v6807_v13  ;;  %v5106_v53 = vadd.f32 %v5105_v62, %v4753_v51  ;;  %v4755_v17 = vadd.f32 %v4754_v7, %v14530_v36  ;;  %v14535_v28 = vld [vmem:[#allocation49_spill] sm:$0xff]  ;;  %v14536_v55 = vld [vmem:[#allocation50_spill] sm:$0xff]  ;;  %v667_v13 = vld [vmem:[#allocation2 + $0x198] sm:$0xff] }
 0x38a   : > { %v6810_v20 = vadd.f32 %v5104_v42, %v658_v63  ;;  %v4756_v29 = vpop.f32.mrf.mxu0  ;;  %v10030_v57 = vld [vmem:[%s10664_s9 + $0x7a8] ss:$16 sps:$4 sm:$0xff]   ;;  %v10032_v47 = vld [vmem:[%s10664_s9 + $0x7ac] ss:$16 sps:$4 sm:$0xff]  }
 0x38b   : > { %v5109_v45 = vpop.f32.mrf.mxu1  ;;  %6027 = vmatpush2.bf16.msra.mxu0 %v10021_v3  ;;  %6380 = vmatpush2.bf16.msra.mxu1 %v10024_v41  ;;  %v6811_v18 = vadd.f32 %v5106_v53, %v659_v32  ;;  %v5108_v21 = vadd.f32 %v5107_v48, %v4755_v17  ;;  %v4757_v23 = vadd.f32 %v4756_v29, %v14531_v54  ;;  %v14537_v3 = vld [vmem:[#allocation199_spill] sm:$0xff]  ;;  %v14538_v7 = vld [vmem:[#allocation202_spill] sm:$0xff]  ;;  %v14539_v29 = vld [vmem:[#allocation205_spill] sm:$0xff] }
 0x38c   : > { %7066 = vst [vmem:[#allocation2 + $0x418] sm:$0xff] %v6810_v20  ;;  %v4760_v15 = vpop.f32.mrf.mxu0  ;;  %6028 = vmatprep.subr.bf16.mxu0 %v10029_v12  ;;  %6381 = vmatprep.subr.bf16.mxu1 %v10032_v47  ;;  %v670_v20 = vld [vmem:[#allocation2 + $0x3a8] sm:$0xff]  ;;  %v675_v47 = vld [vmem:[#allocation2 + $0x1e0] sm:$0xff] }
 0x38d   : > { %v5113_v4 = vpop.f32.mrf.mxu1  ;;  %5385 = vmatmul.mubr.bf16.gmra.mxu0 %v14532_v44  ;;  %5738 = vmatmul.mubr.bf16.gmra.mxu1 %v14533_v58  ;;  %7067 = vst [vmem:[#allocation2 + $0x7f0] sm:$0xff] %v6811_v18  ;;  %v6814_v49 = vadd.f32 %v5108_v21, %v662_v43  ;;  %v5110_v35 = vadd.f32 %v5109_v45, %v4757_v23  ;;  %v671_v18 = vld [vmem:[#allocation2 + $0xb0] sm:$0xff]  ;;  %v14543_v44 = vld [vmem:[#allocation53_spill] sm:$0xff]  ;;  %v14544_v58 = vld [vmem:[#allocation54_spill] sm:$0xff] }
 0x38e   : > { %v4761_v22 = vadd.f32 %v4760_v15, %v14534_v9  ;;  %5394 = vmatprep.mubr.bf16.mxu0 %v14535_v28  ;;  %5747 = vmatprep.mubr.bf16.mxu1 %v14536_v55  ;;  %v4762_v40 = vpop.f32.mrf.mxu0  ;;  %v14540_v23 = vld [vmem:[#allocation51_spill] sm:$0xff]  ;;  %v14542_v15 = vld [vmem:[#allocation206_spill] sm:$0xff] }
 0x38f   : > { %v5115_v63 = vpop.f32.mrf.mxu1  ;;  %7070 = vst [vmem:[#allocation2 + $0x90] sm:$0xff] %v6814_v49  ;;  %v6815_v61 = vadd.f32 %v5110_v35, %v663_v24  ;;  %v4763_v41 = vadd.f32 %v4762_v40, %v14537_v3  ;;  %6029 = vmatpush2.bf16.msra.mxu0 %v10027_v56  ;;  %6382 = vmatpush2.bf16.msra.mxu1 %v10030_v57  ;;  %v14541_v56 = vld [vmem:[#allocation52_spill] sm:$0xff]  ;;  %v674_v49 = vld [vmem:[#allocation2 + $0x370] sm:$0xff] }
 0x390   : > { %v5114_v62 = vadd.f32 %v5113_v4, %v4761_v22  ;;  %v4764_v42 = vpop.f32.mrf.mxu0  ;;  %v14545_v55 = vld [vmem:[#allocation207_spill] sm:$0xff] }
 0x391   : > { %v5117_v14 = vpop.f32.mrf.mxu1  ;;  %7071 = vst [vmem:[#allocation2 + $0x540] sm:$0xff] %v6815_v61  ;;  %v5116_v32 = vadd.f32 %v5115_v63, %v4763_v41  ;;  %v4765_v48 = vadd.f32 %v4764_v42, %v14538_v7  ;;  %v678_v41 = vld [vmem:[#allocation2 + $0xd8] sm:$0xff] }
 0x392   : > { %v6818_v51 = vadd.f32 %v5114_v62, %v666_v37  ;;  %v4766_v53 = vpop.f32.mrf.mxu0  ;;  %v14546_v62 = vld [vmem:[#allocation210_spill] sm:$0xff] }
 0x393   : > { %v5119_v36 = vpop.f32.mrf.mxu1  ;;  %v6819_v17 = vadd.f32 %v5116_v32, %v667_v13  ;;  %v5118_v43 = vadd.f32 %v5117_v14, %v4765_v48  ;;  %v4767_v45 = vadd.f32 %v4766_v53, %v14539_v29  ;;  %v14547_v32 = vld [vmem:[#allocation213_spill] sm:$0xff]  ;;  %v10033_v48 = vld [vmem:[%s10664_s9 + $0x588] ss:$16 sps:$4 sm:$0xff]  }
 0x394   : > { %7074 = vst [vmem:[#allocation2 + $0x58] sm:$0xff] %v6818_v51  ;;  %v4770_v21 = vpop.f32.mrf.mxu0  ;;  %v679_v53 = vld [vmem:[#allocation2 + $0x6b8] sm:$0xff] }
 0x395   : > { %v5123_v54 = vpop.f32.mrf.mxu1  ;;  %5395 = vmatmul.mubr.bf16.gmra.mxu0 %v14540_v23  ;;  %5748 = vmatmul.mubr.bf16.gmra.mxu1 %v14541_v56  ;;  %7075 = vst [vmem:[#allocation2 + $0x198] sm:$0xff] %v6819_v17  ;;  %v6822_v12 = vadd.f32 %v5118_v43, %v670_v20  ;;  %v5120_v24 = vadd.f32 %v5119_v36, %v4767_v45  ;;  %v10035_v20 = vld [vmem:[%s10664_s9 + $0x58c] ss:$16 sps:$4 sm:$0xff]   ;;  %v14548_v43 = vld [vmem:[#allocation55_spill] sm:$0xff]  ;;  %v14551_v23 = vld [vmem:[#allocation57_spill] sm:$0xff] }
 0x396   : > { %v4771_v4 = vadd.f32 %v4770_v21, %v14542_v15  ;;  %5404 = vmatprep.mubr.bf16.mxu0 %v14543_v44  ;;  %5757 = vmatprep.mubr.bf16.mxu1 %v14544_v58  ;;  %v4772_v35 = vpop.f32.mrf.mxu0  ;;  %v14549_v29 = vld [vmem:[#allocation56_spill] sm:$0xff]  ;;  %v14550_v21 = vld [vmem:[#allocation214_spill] sm:$0xff]  ;;  %v682_v15 = vld [vmem:[#allocation2 + $0x30] sm:$0xff] }
 0x397   : > { %v5125_v9 = vpop.f32.mrf.mxu1  ;;  %7078 = vst [vmem:[#allocation2 + $0x3a8] sm:$0xff] %v6822_v12  ;;  %v6823_v22 = vadd.f32 %v5120_v24, %v671_v18  ;;  %v4773_v57 = vadd.f32 %v4772_v35, %v14545_v55  ;;  %v14552_v56 = vld [vmem:[#allocation58_spill] sm:$0xff]  ;;  %6030 = vmatprep.subr.bf16.mxu0 %v10035_v20  ;;  %v14553_v35 = vld [vmem:[#allocation215_spill] sm:$0xff] }
 0x398   : > { %v5124_v28 = vadd.f32 %v5123_v54, %v4771_v4  ;;  %v4774_v37 = vpop.f32.mrf.mxu0  ;;  %v10036_v12 = vld [vmem:[%s10664_s9 + $0x788] ss:$16 sps:$4 sm:$0xff]   ;;  %v10038_v24 = vld [vmem:[%s10664_s9 + $0x78c] ss:$16 sps:$4 sm:$0xff]   ;;  %6031 = vmatpush2.bf16.msra.mxu0 %v10033_v48 }
 0x399   : > { %v5127_v40 = vpop.f32.mrf.mxu1  ;;  %7079 = vst [vmem:[#allocation2 + $0xb0] sm:$0xff] %v6823_v22  ;;  %v5126_v61 = vadd.f32 %v5125_v9, %v4773_v57  ;;  %v4775_v3 = vadd.f32 %v4774_v37, %v14546_v62  ;;  %6383 = vmatprep.subr.bf16.mxu1 %v10038_v24  ;;  %v683_v22 = vld [vmem:[#allocation2 + $0x128] sm:$0xff]  ;;  %v14557_v48 = vld [vmem:[#allocation60_spill] sm:$0xff] }
 0x39a   : > { %v6826_v63 = vadd.f32 %v5124_v28, %v674_v49  ;;  %v4776_v13 = vpop.f32.mrf.mxu0  ;;  %6384 = vmatpush2.bf16.msra.mxu1 %v10036_v12  ;;  %v14554_v37 = vld [vmem:[#allocation218_spill] sm:$0xff] }
 0x39b   : > { %v5129_v42 = vpop.f32.mrf.mxu1  ;;  %v6827_v14 = vadd.f32 %v5126_v61, %v675_v47  ;;  %v5128_v51 = vadd.f32 %v5127_v40, %v4775_v3  ;;  %v4777_v7 = vadd.f32 %v4776_v13, %v14547_v32  ;;  %v14555_v13 = vld [vmem:[#allocation221_spill] sm:$0xff]  ;;  %v691_v24 = vld [vmem:[#allocation2 + $0x5c8] sm:$0xff] }
 0x39c   : > { %7082 = vst [vmem:[#allocation2 + $0x370] sm:$0xff] %v6826_v63  ;;  %v4780_v36 = vpop.f32.mrf.mxu0  ;;  %v686_v63 = vld [vmem:[#allocation2 + $0x670] sm:$0xff] }
 0x39d   : > { %v5133_v17 = vpop.f32.mrf.mxu1  ;;  %5405 = vmatmul.mubr.bf16.gmra.mxu0 %v14548_v43  ;;  %5758 = vmatmul.mubr.bf16.gmra.mxu1 %v14549_v29  ;;  %7083 = vst [vmem:[#allocation2 + $0x1e0] sm:$0xff] %v6827_v14  ;;  %v6830_v45 = vadd.f32 %v5128_v51, %v678_v41  ;;  %v5130_v18 = vadd.f32 %v5129_v42, %v4777_v7  ;;  %v687_v14 = vld [vmem:[#allocation2 + $0x240] sm:$0xff]  ;;  %v14556_v7 = vld [vmem:[#allocation59_spill] sm:$0xff]  ;;  %v14560_v29 = vld [vmem:[#allocation62_spill] sm:$0xff] }
 0x39e   : > { %v4781_v54 = vadd.f32 %v4780_v36, %v14550_v21  ;;  %5414 = vmatprep.mubr.bf16.mxu0 %v14551_v23  ;;  %5767 = vmatprep.mubr.bf16.mxu1 %v14552_v56  ;;  %v4782_v4 = vpop.f32.mrf.mxu0  ;;  %v14558_v36 = vld [vmem:[#allocation222_spill] sm:$0xff]  ;;  %v14559_v43 = vld [vmem:[#allocation61_spill] sm:$0xff]  ;;  %v14561_v56 = vld [vmem:[#allocation223_spill] sm:$0xff] }
 0x39f   : > { %v5135_v44 = vpop.f32.mrf.mxu1  ;;  %7086 = vst [vmem:[#allocation2 + $0xd8] sm:$0xff] %v6830_v45  ;;  %v6831_v58 = vadd.f32 %v5130_v18, %v679_v53  ;;  %v4783_v9 = vadd.f32 %v4782_v4, %v14553_v35  ;;  %v690_v45 = vld [vmem:[#allocation2 + $0x4a8] sm:$0xff] }
 0x3a0   : > { %v5134_v49 = vadd.f32 %v5133_v17, %v4781_v54  ;;  %v4784_v28 = vpop.f32.mrf.mxu0 }
 0x3a1   : > { %v5137_v55 = vpop.f32.mrf.mxu1  ;;  %7087 = vst [vmem:[#allocation2 + $0x6b8] sm:$0xff] %v6831_v58  ;;  %v5136_v47 = vadd.f32 %v5135_v44, %v4783_v9  ;;  %v4785_v40 = vadd.f32 %v4784_v28, %v14554_v37  ;;  %v10041_v9 = vld [vmem:[%s10664_s9 + $0x56c] ss:$16 sps:$4 sm:$0xff]  }
 0x3a2   : > { %v6834_v57 = vadd.f32 %v5134_v49, %v682_v15  ;;  %v4786_v61 = vpop.f32.mrf.mxu0  ;;  %v14562_v49 = vld [vmem:[#allocation226_spill] sm:$0xff]  ;;  %6032 = vmatprep.subr.bf16.mxu0 %v10041_v9 }
 0x3a3   : > { %v5139_v62 = vpop.f32.mrf.mxu1  ;;  %v6835_v3 = vadd.f32 %v5136_v47, %v683_v22  ;;  %v5138_v41 = vadd.f32 %v5137_v55, %v4785_v40  ;;  %v4787_v42 = vadd.f32 %v4786_v61, %v14555_v13  ;;  %v694_v22 = vld [vmem:[#allocation2 + $0x2c8] sm:$0xff] }
 0x3a4   : > { %7090 = vst [vmem:[#allocation2 + $0x30] sm:$0xff] %v6834_v57  ;;  %v4790_v51 = vpop.f32.mrf.mxu0  ;;  %v10039_v57 = vld [vmem:[%s10664_s9 + $0x568] ss:$16 sps:$4 sm:$0xff]   ;;  %v10044_v47 = vld [vmem:[%s10664_s9 + $0x76c] ss:$16 sps:$4 sm:$0xff]  }
 0x3a5   : > { %v5143_v32 = vpop.f32.mrf.mxu1  ;;  %5415 = vmatmul.mubr.bf16.gmra.mxu0 %v14556_v7  ;;  %5768 = vmatmul.mubr.bf16.gmra.mxu1 %v14557_v48  ;;  %7091 = vst [vmem:[#allocation2 + $0x128] sm:$0xff] %v6835_v3  ;;  %v6838_v20 = vadd.f32 %v5138_v41, %v686_v63  ;;  %v5140_v53 = vadd.f32 %v5139_v62, %v4787_v42  ;;  %v14563_v63 = vld [vmem:[#allocation229_spill] sm:$0xff]  ;;  %v10042_v62 = vld [vmem:[%s10664_s9 + $0x768] ss:$16 sps:$4 sm:$0xff]   ;;  %v14564_v42 = vld [vmem:[#allocation63_spill] sm:$0xff] }
 0x3a6   : > { %v4791_v17 = vadd.f32 %v4790_v51, %v14558_v36  ;;  %5424 = vmatprep.mubr.bf16.mxu0 %v14559_v43  ;;  %5777 = vmatprep.mubr.bf16.mxu1 %v14560_v29  ;;  %v4792_v18 = vpop.f32.mrf.mxu0  ;;  %v695_v3 = vld [vmem:[#allocation2 + $0xf8] sm:$0xff]  ;;  %v14566_v7 = vld [vmem:[#allocation230_spill] sm:$0xff] }
 0x3a7   : > { %v5145_v21 = vpop.f32.mrf.mxu1  ;;  %7094 = vst [vmem:[#allocation2 + $0x670] sm:$0xff] %v6838_v20  ;;  %v6839_v54 = vadd.f32 %v5140_v53, %v687_v14  ;;  %v4793_v12 = vadd.f32 %v4792_v18, %v14561_v56  ;;  %v14565_v14 = vld [vmem:[#allocation64_spill] sm:$0xff]  ;;  %v14567_v20 = vld [vmem:[#allocation65_spill] sm:$0xff]  ;;  %v14568_v53 = vld [vmem:[#allocation66_spill] sm:$0xff]  ;;  %6033 = vmatpush2.bf16.msra.mxu0 %v10039_v57  ;;  %6385 = vmatprep.subr.bf16.mxu1 %v10044_v47 }
 0x3a8   : > { %v5144_v23 = vadd.f32 %v5143_v32, %v4791_v17  ;;  %v4794_v15 = vpop.f32.mrf.mxu0  ;;  %v698_v36 = vld [vmem:[#allocation2 + $0x3c8] sm:$0xff]  ;;  %v14569_v18 = vld [vmem:[#allocation231_spill] sm:$0xff]  ;;  %6386 = vmatpush2.bf16.msra.mxu1 %v10042_v62 }
 0x3a9   : > { %v5147_v4 = vpop.f32.mrf.mxu1  ;;  %7095 = vst [vmem:[#allocation2 + $0x240] sm:$0xff] %v6839_v54  ;;  %v5146_v58 = vadd.f32 %v5145_v21, %v4793_v12  ;;  %v4795_v35 = vadd.f32 %v4794_v15, %v14562_v49  ;;  %v699_v54 = vld [vmem:[#allocation2 + $0x1e8] sm:$0xff] }
 0x3aa   : > { %v6842_v44 = vadd.f32 %v5144_v23, %v690_v45  ;;  %v4796_v28 = vpop.f32.mrf.mxu0  ;;  %v14570_v15 = vld [vmem:[#allocation234_spill] sm:$0xff] }
 0x3ab   : > { %v5149_v55 = vpop.f32.mrf.mxu1  ;;  %v6843_v37 = vadd.f32 %v5146_v58, %v691_v24  ;;  %v5148_v40 = vadd.f32 %v5147_v4, %v4795_v35  ;;  %v4797_v61 = vadd.f32 %v4796_v28, %v14563_v63  ;;  %v14574_v62 = vld [vmem:[#allocation238_spill] sm:$0xff] }
 0x3ac   : > { %7098 = vst [vmem:[#allocation2 + $0x4a8] sm:$0xff] %v6842_v44  ;;  %v4800_v41 = vpop.f32.mrf.mxu0  ;;  %v702_v44 = vld [vmem:[#allocation2 + $0x730] sm:$0xff] }
 0x3ad   : > { %v5153_v13 = vpop.f32.mrf.mxu1  ;;  %5425 = vmatmul.mubr.bf16.gmra.mxu0 %v14564_v42  ;;  %5778 = vmatmul.mubr.bf16.gmra.mxu1 %v14565_v14  ;;  %7099 = vst [vmem:[#allocation2 + $0x5c8] sm:$0xff] %v6843_v37  ;;  %v6846_v51 = vadd.f32 %v5148_v40, %v694_v22  ;;  %v5150_v32 = vadd.f32 %v5149_v55, %v4797_v61  ;;  %v14571_v22 = vld [vmem:[#allocation237_spill] sm:$0xff]  ;;  %v703_v55 = vld [vmem:[#allocation2 + $0x658] sm:$0xff]  ;;  %v14572_v37 = vld [vmem:[#allocation67_spill] sm:$0xff] }
 0x3ae   : > { %v4801_v48 = vadd.f32 %v4800_v41, %v14566_v7  ;;  %5434 = vmatprep.mubr.bf16.mxu0 %v14567_v20  ;;  %5787 = vmatprep.mubr.bf16.mxu1 %v14568_v53  ;;  %v4802_v17 = vpop.f32.mrf.mxu0  ;;  %v14573_v40 = vld [vmem:[#allocation68_spill] sm:$0xff]  ;;  %v14575_v41 = vld [vmem:[#allocation69_spill] sm:$0xff]  ;;  %v14577_v53 = vld [vmem:[#allocation239_spill] sm:$0xff] }
 0x3af   : > { %v5155_v43 = vpop.f32.mrf.mxu1  ;;  %7102 = vst [vmem:[#allocation2 + $0x2c8] sm:$0xff] %v6846_v51  ;;  %v6847_v29 = vadd.f32 %v5150_v32, %v695_v3  ;;  %v4803_v21 = vadd.f32 %v4802_v17, %v14569_v18  ;;  %v10045_v42 = vld [vmem:[%s10664_s9 + $0x548] ss:$16 sps:$4 sm:$0xff]   ;;  %v10047_v14 = vld [vmem:[%s10664_s9 + $0x54c] ss:$16 sps:$4 sm:$0xff]   ;;  %v706_v51 = vld [vmem:[#allocation2 + $0x460] sm:$0xff] }
 0x3b0   : > { %v5154_v45 = vadd.f32 %v5153_v13, %v4801_v48  ;;  %v4804_v23 = vpop.f32.mrf.mxu0  ;;  %v14576_v13 = vld [vmem:[#allocation70_spill] sm:$0xff]  ;;  %6034 = vmatprep.subr.bf16.mxu0 %v10047_v14  ;;  %v14585_v14 = vld [vmem:[#allocation247_spill] sm:$0xff] }
 0x3b1   : > { %v5157_v56 = vpop.f32.mrf.mxu1  ;;  %7103 = vst [vmem:[#allocation2 + $0xf8] sm:$0xff] %v6847_v29  ;;  %v5156_v24 = vadd.f32 %v5155_v43, %v4803_v21  ;;  %v4805_v4 = vadd.f32 %v4804_v23, %v14570_v15  ;;  %v10048_v17 = vld [vmem:[%s10664_s9 + $0x748] ss:$16 sps:$4 sm:$0xff]   ;;  %v10050_v43 = vld [vmem:[%s10664_s9 + $0x74c] ss:$16 sps:$4 sm:$0xff]   ;;  %v707_v29 = vld [vmem:[#allocation2 + $0x4f0] sm:$0xff]  ;;  %6035 = vmatpush2.bf16.msra.mxu0 %v10045_v42 }
 0x3b2   : > { %v6850_v12 = vadd.f32 %v5154_v45, %v698_v36  ;;  %v4806_v58 = vpop.f32.mrf.mxu0  ;;  %v14578_v23 = vld [vmem:[#allocation242_spill] sm:$0xff]  ;;  %6387 = vmatprep.subr.bf16.mxu1 %v10050_v43  ;;  %v718_v43 = vld [vmem:[#allocation2 + $0x590] sm:$0xff] }
 0x3b3   : > { %v5159_v49 = vpop.f32.mrf.mxu1  ;;  %v6851_v35 = vadd.f32 %v5156_v24, %v699_v54  ;;  %v5158_v9 = vadd.f32 %v5157_v56, %v4805_v4  ;;  %v4807_v28 = vadd.f32 %v4806_v58, %v14571_v22  ;;  %6388 = vmatpush2.bf16.msra.mxu1 %v10048_v17  ;;  %v14579_v58 = vld [vmem:[#allocation245_spill] sm:$0xff] }
 0x3b4   : > { %7106 = vst [vmem:[#allocation2 + $0x3c8] sm:$0xff] %v6850_v12  ;;  %v4810_v57 = vpop.f32.mrf.mxu0  ;;  %v710_v12 = vld [vmem:[#allocation2 + $0x4d0] sm:$0xff] }
 0x3b5   : > { %v5163_v47 = vpop.f32.mrf.mxu1  ;;  %5435 = vmatmul.mubr.bf16.gmra.mxu0 %v14572_v37  ;;  %5788 = vmatmul.mubr.bf16.gmra.mxu1 %v14573_v40  ;;  %7107 = vst [vmem:[#allocation2 + $0x1e8] sm:$0xff] %v6851_v35  ;;  %v6854_v63 = vadd.f32 %v5158_v9, %v702_v44  ;;  %v5160_v61 = vadd.f32 %v5159_v49, %v4807_v28  ;;  %v711_v35 = vld [vmem:[#allocation2 + $0x4f8] sm:$0xff]  ;;  %v14580_v28 = vld [vmem:[#allocation71_spill] sm:$0xff]  ;;  %v14582_v37 = vld [vmem:[#allocation246_spill] sm:$0xff] }
 0x3b6   : > { %v4811_v3 = vadd.f32 %v4810_v57, %v14574_v62  ;;  %5444 = vmatprep.mubr.bf16.mxu0 %v14575_v41  ;;  %5797 = vmatprep.mubr.bf16.mxu1 %v14576_v13  ;;  %v4812_v32 = vpop.f32.mrf.mxu0  ;;  %v714_v62 = vld [vmem:[#allocation2 + $0x10] sm:$0xff] }
 0x3b7   : > { %v5165_v7 = vpop.f32.mrf.mxu1  ;;  %7110 = vst [vmem:[#allocation2 + $0x730] sm:$0xff] %v6854_v63  ;;  %v6855_v48 = vadd.f32 %v5160_v61, %v703_v55  ;;  %v4813_v36 = vadd.f32 %v4812_v32, %v14577_v53  ;;  %v14581_v55 = vld [vmem:[#allocation72_spill] sm:$0xff]  ;;  %v14583_v63 = vld [vmem:[#allocation73_spill] sm:$0xff]  ;;  %v14584_v61 = vld [vmem:[#allocation74_spill] sm:$0xff] }
 0x3b8   : > { %v5164_v20 = vadd.f32 %v5163_v47, %v4811_v3  ;;  %v4814_v45 = vpop.f32.mrf.mxu0  ;;  %v715_v32 = vld [vmem:[#allocation2 + $0x778] sm:$0xff] }
 0x3b9   : > { %v5167_v18 = vpop.f32.mrf.mxu1  ;;  %7111 = vst [vmem:[#allocation2 + $0x658] sm:$0xff] %v6855_v48  ;;  %v5166_v54 = vadd.f32 %v5165_v7, %v4813_v36  ;;  %v4815_v56 = vadd.f32 %v4814_v45, %v14578_v23  ;;  %v14586_v36 = vld [vmem:[#allocation250_spill] sm:$0xff] }
 0x3ba   : > { %v6858_v21 = vadd.f32 %v5164_v20, %v706_v51  ;;  %v4816_v24 = vpop.f32.mrf.mxu0 }
 0x3bb   : > { %v5169_v15 = vpop.f32.mrf.mxu1  ;;  %v6859_v4 = vadd.f32 %v5166_v54, %v707_v29  ;;  %v5168_v44 = vadd.f32 %v5167_v18, %v4815_v56  ;;  %v4817_v49 = vadd.f32 %v4816_v24, %v14579_v58  ;;  %v14587_v54 = vld [vmem:[#allocation253_spill] sm:$0xff] }
 0x3bc   : > { %7114 = vst [vmem:[#allocation2 + $0x460] sm:$0xff] %v6858_v21  ;;  %v4820_v9 = vpop.f32.mrf.mxu0  ;;  %v719_v56 = vld [vmem:[#allocation2 + $0x660] sm:$0xff] }
 0x3bd   : > { %v5173_v22 = vpop.f32.mrf.mxu1  ;;  %5445 = vmatmul.mubr.bf16.gmra.mxu0 %v14580_v28  ;;  %5798 = vmatmul.mubr.bf16.gmra.mxu1 %v14581_v55  ;;  %7115 = vst [vmem:[#allocation2 + $0x4f0] sm:$0xff] %v6859_v4  ;;  %v6862_v57 = vadd.f32 %v5168_v44, %v710_v12  ;;  %v5170_v47 = vadd.f32 %v5169_v15, %v4817_v49  ;;  %v14588_v15 = vld [vmem:[#allocation75_spill] sm:$0xff]  ;;  %v14589_v4 = vld [vmem:[#allocation76_spill] sm:$0xff]  ;;  %v14590_v49 = vld [vmem:[#allocation254_spill] sm:$0xff] }
 0x3be   : > { %v4821_v40 = vadd.f32 %v4820_v9, %v14582_v37  ;;  %5454 = vmatprep.mubr.bf16.mxu0 %v14583_v63  ;;  %5807 = vmatprep.mubr.bf16.mxu1 %v14584_v61  ;;  %v4822_v3 = vpop.f32.mrf.mxu0  ;;  %v14591_v9 = vld [vmem:[#allocation77_spill] sm:$0xff]  ;;  %v10051_v28 = vld [vmem:[%s10664_s9 + $0x528] ss:$16 sps:$4 sm:$0xff]   ;;  %v10053_v55 = vld [vmem:[%s10664_s9 + $0x52c] ss:$16 sps:$4 sm:$0xff]  }
 0x3bf   : > { %v5175_v41 = vpop.f32.mrf.mxu1  ;;  %7118 = vst [vmem:[#allocation2 + $0x4d0] sm:$0xff] %v6862_v57  ;;  %v6863_v13 = vadd.f32 %v5170_v47, %v711_v35  ;;  %v4823_v51 = vadd.f32 %v4822_v3, %v14585_v14  ;;  %v722_v57 = vld [vmem:[#allocation2 + $0x340] sm:$0xff]  ;;  %v14593_v61 = vld [vmem:[#allocation255_spill] sm:$0xff]  ;;  %6036 = vmatprep.subr.bf16.mxu0 %v10053_v55  ;;  %v10054_v3 = vld [vmem:[%s10664_s9 + $0x728] ss:$16 sps:$4 sm:$0xff]  }
 0x3c0   : > { %v5174_v42 = vadd.f32 %v5173_v22, %v4821_v40  ;;  %v4824_v7 = vpop.f32.mrf.mxu0  ;;  %v14592_v22 = vld [vmem:[#allocation78_spill] sm:$0xff]  ;;  %6037 = vmatpush2.bf16.msra.mxu0 %v10051_v28  ;;  %v14601_v55 = vld [vmem:[#allocation263_spill] sm:$0xff] }
 0x3c1   : > { %v5177_v48 = vpop.f32.mrf.mxu1  ;;  %7119 = vst [vmem:[#allocation2 + $0x4f8] sm:$0xff] %v6863_v13  ;;  %v5176_v53 = vadd.f32 %v5175_v41, %v4823_v51  ;;  %v4825_v17 = vadd.f32 %v4824_v7, %v14586_v36  ;;  %v10056_v41 = vld [vmem:[%s10664_s9 + $0x72c] ss:$16 sps:$4 sm:$0xff]   ;;  %v723_v13 = vld [vmem:[#allocation2 + $0x5a0] sm:$0xff] }
 0x3c2   : > { %v6866_v20 = vadd.f32 %v5174_v42, %v714_v62  ;;  %v4826_v29 = vpop.f32.mrf.mxu0  ;;  %v14594_v7 = vld [vmem:[#allocation258_spill] sm:$0xff]  ;;  %6389 = vmatprep.subr.bf16.mxu1 %v10056_v41  ;;  %v734_v41 = vld [vmem:[#allocation2 + $0x750] sm:$0xff] }
 0x3c3   : > { %v5179_v45 = vpop.f32.mrf.mxu1  ;;  %v6867_v18 = vadd.f32 %v5176_v53, %v715_v32  ;;  %v5178_v21 = vadd.f32 %v5177_v48, %v4825_v17  ;;  %v4827_v23 = vadd.f32 %v4826_v29, %v14587_v54  ;;  %6390 = vmatpush2.bf16.msra.mxu1 %v10054_v3  ;;  %v14595_v29 = vld [vmem:[#allocation261_spill] sm:$0xff] }
 0x3c4   : > { %7122 = vst [vmem:[#allocation2 + $0x10] sm:$0xff] %v6866_v20  ;;  %v4830_v12 = vpop.f32.mrf.mxu0  ;;  %v726_v20 = vld [vmem:[#allocation2 + $0x560] sm:$0xff] }
 0x3c5   : > { %v5183_v24 = vpop.f32.mrf.mxu1  ;;  %5455 = vmatmul.mubr.bf16.gmra.mxu0 %v14588_v15  ;;  %5808 = vmatmul.mubr.bf16.gmra.mxu1 %v14589_v4  ;;  %7123 = vst [vmem:[#allocation2 + $0x778] sm:$0xff] %v6867_v18  ;;  %v6870_v44 = vadd.f32 %v5178_v21, %v718_v43  ;;  %v5180_v58 = vadd.f32 %v5179_v45, %v4827_v23  ;;  %v727_v18 = vld [vmem:[#allocation2 + $0x7f8] sm:$0xff]  ;;  %v14596_v23 = vld [vmem:[#allocation79_spill] sm:$0xff]  ;;  %v14598_v15 = vld [vmem:[#allocation262_spill] sm:$0xff] }
 0x3c6   : > { %v4831_v35 = vadd.f32 %v4830_v12, %v14590_v49  ;;  %5464 = vmatprep.mubr.bf16.mxu0 %v14591_v9  ;;  %5817 = vmatprep.mubr.bf16.mxu1 %v14592_v22  ;;  %v4832_v47 = vpop.f32.mrf.mxu0  ;;  %v730_v49 = vld [vmem:[#allocation2 + $0x468] sm:$0xff] }
 0x3c7   : > { %v5185_v37 = vpop.f32.mrf.mxu1  ;;  %7126 = vst [vmem:[#allocation2 + $0x590] sm:$0xff] %v6870_v44  ;;  %v6871_v40 = vadd.f32 %v5180_v58, %v719_v56  ;;  %v4833_v62 = vadd.f32 %v4832_v47, %v14593_v61  ;;  %v14597_v56 = vld [vmem:[#allocation80_spill] sm:$0xff]  ;;  %v14599_v44 = vld [vmem:[#allocation81_spill] sm:$0xff]  ;;  %v14600_v58 = vld [vmem:[#allocation82_spill] sm:$0xff] }
 0x3c8   : > { %v5184_v63 = vadd.f32 %v5183_v24, %v4831_v35  ;;  %v4834_v42 = vpop.f32.mrf.mxu0  ;;  %v731_v47 = vld [vmem:[#allocation2 + $0x2a8] sm:$0xff] }
 0x3c9   : > { %v5187_v14 = vpop.f32.mrf.mxu1  ;;  %7127 = vst [vmem:[#allocation2 + $0x660] sm:$0xff] %v6871_v40  ;;  %v5186_v32 = vadd.f32 %v5185_v37, %v4833_v62  ;;  %v4835_v48 = vadd.f32 %v4834_v42, %v14594_v7  ;;  %v14602_v62 = vld [vmem:[#allocation266_spill] sm:$0xff] }
 0x3ca   : > { %v6874_v51 = vadd.f32 %v5184_v63, %v722_v57  ;;  %v4836_v53 = vpop.f32.mrf.mxu0 }
 0x3cb   : > { %v5189_v36 = vpop.f32.mrf.mxu1  ;;  %v6875_v17 = vadd.f32 %v5186_v32, %v723_v13  ;;  %v5188_v43 = vadd.f32 %v5187_v14, %v4835_v48  ;;  %v4837_v45 = vadd.f32 %v4836_v53, %v14595_v29  ;;  %v14603_v32 = vld [vmem:[#allocation269_spill] sm:$0xff]  ;;  %v735_v48 = vld [vmem:[#allocation2 + $0x130] sm:$0xff] }
 0x3cc   : > { %7130 = vst [vmem:[#allocation2 + $0x340] sm:$0xff] %v6874_v51  ;;  %v4840_v21 = vpop.f32.mrf.mxu0 }
 0x3cd   : > { %v5193_v54 = vpop.f32.mrf.mxu1  ;;  %5465 = vmatmul.mubr.bf16.gmra.mxu0 %v14596_v23  ;;  %5818 = vmatmul.mubr.bf16.gmra.mxu1 %v14597_v56  ;;  %7131 = vst [vmem:[#allocation2 + $0x5a0] sm:$0xff] %v6875_v17  ;;  %v6878_v12 = vadd.f32 %v5188_v43, %v726_v20  ;;  %v5190_v24 = vadd.f32 %v5189_v36, %v4837_v45  ;;  %v14604_v36 = vld [vmem:[#allocation83_spill] sm:$0xff]  ;;  %v14605_v17 = vld [vmem:[#allocation84_spill] sm:$0xff]  ;;  %v14606_v45 = vld [vmem:[#allocation270_spill] sm:$0xff] }
 0x3ce   : > { %v4841_v4 = vadd.f32 %v4840_v21, %v14598_v15  ;;  %5474 = vmatprep.mubr.bf16.mxu0 %v14599_v44  ;;  %5827 = vmatprep.mubr.bf16.mxu1 %v14600_v58  ;;  %v4842_v35 = vpop.f32.mrf.mxu0  ;;  %v14607_v21 = vld [vmem:[#allocation85_spill] sm:$0xff]  ;;  %v10057_v23 = vld [vmem:[%s10664_s9 + $0x508] ss:$16 sps:$4 sm:$0xff]   ;;  %v10059_v56 = vld [vmem:[%s10664_s9 + $0x50c] ss:$16 sps:$4 sm:$0xff]  }
 0x3cf   : > { %v5195_v9 = vpop.f32.mrf.mxu1  ;;  %7134 = vst [vmem:[#allocation2 + $0x560] sm:$0xff] %v6878_v12  ;;  %v6879_v22 = vadd.f32 %v5190_v24, %v727_v18  ;;  %v4843_v57 = vadd.f32 %v4842_v35, %v14601_v55  ;;  %v738_v12 = vld [vmem:[#allocation2 + $0x5d0] sm:$0xff]  ;;  %6038 = vmatprep.subr.bf16.mxu0 %v10059_v56  ;;  %v10060_v35 = vld [vmem:[%s10664_s9 + $0x708] ss:$16 sps:$4 sm:$0xff]  }
 0x3d0   : > { %v5194_v28 = vadd.f32 %v5193_v54, %v4841_v4  ;;  %v4844_v37 = vpop.f32.mrf.mxu0  ;;  %v14608_v54 = vld [vmem:[#allocation86_spill] sm:$0xff]  ;;  %v14609_v58 = vld [vmem:[#allocation271_spill] sm:$0xff]  ;;  %6039 = vmatpush2.bf16.msra.mxu0 %v10057_v23 }
 0x3d1   : > { %v5197_v40 = vpop.f32.mrf.mxu1  ;;  %7135 = vst [vmem:[#allocation2 + $0x7f8] sm:$0xff] %v6879_v22  ;;  %v5196_v61 = vadd.f32 %v5195_v9, %v4843_v57  ;;  %v4845_v3 = vadd.f32 %v4844_v37, %v14602_v62  ;;  %v10062_v9 = vld [vmem:[%s10664_s9 + $0x70c] ss:$16 sps:$4 sm:$0xff]   ;;  %v14617_v56 = vld [vmem:[#allocation279_spill] sm:$0xff] }
 0x3d2   : > { %v6882_v63 = vadd.f32 %v5194_v28, %v730_v49  ;;  %v4846_v13 = vpop.f32.mrf.mxu0  ;;  %v739_v22 = vld [vmem:[#allocation2 + $0x228] sm:$0xff]  ;;  %6391 = vmatprep.subr.bf16.mxu1 %v10062_v9 }
 0x3d3   : > { %v5199_v42 = vpop.f32.mrf.mxu1  ;;  %v6883_v14 = vadd.f32 %v5196_v61, %v731_v47  ;;  %v5198_v51 = vadd.f32 %v5197_v40, %v4845_v3  ;;  %v4847_v7 = vadd.f32 %v4846_v13, %v14603_v32  ;;  %v14610_v37 = vld [vmem:[#allocation274_spill] sm:$0xff]  ;;  %6392 = vmatpush2.bf16.msra.mxu1 %v10060_v35  ;;  %v14611_v13 = vld [vmem:[#allocation277_spill] sm:$0xff] }
 0x3d4   : > { %7138 = vst [vmem:[#allocation2 + $0x468] sm:$0xff] %v6882_v63  ;;  %v4850_v20 = vpop.f32.mrf.mxu0  ;;  %v742_v63 = vld [vmem:[#allocation2 + $0x7a0] sm:$0xff]  ;;  %v750_v9 = vld [vmem:[#allocation2 + $0x728] sm:$0xff] }
 0x3d5   : > { %v5203_v53 = vpop.f32.mrf.mxu1  ;;  %5475 = vmatmul.mubr.bf16.gmra.mxu0 %v14604_v36  ;;  %5828 = vmatmul.mubr.bf16.gmra.mxu1 %v14605_v17  ;;  %7139 = vst [vmem:[#allocation2 + $0x2a8] sm:$0xff] %v6883_v14  ;;  %v6886_v43 = vadd.f32 %v5198_v51, %v734_v41  ;;  %v5200_v29 = vadd.f32 %v5199_v42, %v4847_v7  ;;  %v743_v14 = vld [vmem:[#allocation2 + $0x80] sm:$0xff]  ;;  %v14612_v7 = vld [vmem:[#allocation87_spill] sm:$0xff]  ;;  %v14614_v36 = vld [vmem:[#allocation278_spill] sm:$0xff] }
 0x3d6   : > { %v4851_v18 = vadd.f32 %v4850_v20, %v14606_v45  ;;  %5484 = vmatprep.mubr.bf16.mxu0 %v14607_v21  ;;  %5837 = vmatprep.mubr.bf16.mxu1 %v14608_v54  ;;  %v4852_v24 = vpop.f32.mrf.mxu0  ;;  %v746_v45 = vld [vmem:[#allocation2 + $0x798] sm:$0xff] }
 0x3d7   : > { %v5205_v15 = vpop.f32.mrf.mxu1  ;;  %7142 = vst [vmem:[#allocation2 + $0x750] sm:$0xff] %v6886_v43  ;;  %v6887_v4 = vadd.f32 %v5200_v29, %v735_v48  ;;  %v4853_v49 = vadd.f32 %v4852_v24, %v14609_v58  ;;  %v14613_v48 = vld [vmem:[#allocation88_spill] sm:$0xff]  ;;  %v14615_v43 = vld [vmem:[#allocation89_spill] sm:$0xff]  ;;  %v14616_v29 = vld [vmem:[#allocation90_spill] sm:$0xff] }
 0x3d8   : > { %v5204_v44 = vadd.f32 %v5203_v53, %v4851_v18  ;;  %v4854_v28 = vpop.f32.mrf.mxu0  ;;  %v747_v24 = vld [vmem:[#allocation2 + $0x378] sm:$0xff] }
 0x3d9   : > { %v5207_v55 = vpop.f32.mrf.mxu1  ;;  %7143 = vst [vmem:[#allocation2 + $0x130] sm:$0xff] %v6887_v4  ;;  %v5206_v47 = vadd.f32 %v5205_v15, %v4853_v49  ;;  %v4855_v40 = vadd.f32 %v4854_v28, %v14610_v37  ;;  %v14618_v49 = vld [vmem:[#allocation282_spill] sm:$0xff] }
 0x3da   : > { %v6890_v57 = vadd.f32 %v5204_v44, %v738_v12  ;;  %v4856_v61 = vpop.f32.mrf.mxu0 }
 0x3db   : > { %v5209_v62 = vpop.f32.mrf.mxu1  ;;  %v6891_v3 = vadd.f32 %v5206_v47, %v739_v22  ;;  %v5208_v41 = vadd.f32 %v5207_v55, %v4855_v40  ;;  %v4857_v42 = vadd.f32 %v4856_v61, %v14611_v13  ;;  %v14619_v47 = vld [vmem:[#allocation285_spill] sm:$0xff]  ;;  %v751_v40 = vld [vmem:[#allocation2 + $0x288] sm:$0xff] }
 0x3dc   : > { %7146 = vst [vmem:[#allocation2 + $0x5d0] sm:$0xff] %v6890_v57  ;;  %v4860_v51 = vpop.f32.mrf.mxu0 }
 0x3dd   : > { %v5213_v32 = vpop.f32.mrf.mxu1  ;;  %5485 = vmatmul.mubr.bf16.gmra.mxu0 %v14612_v7  ;;  %5838 = vmatmul.mubr.bf16.gmra.mxu1 %v14613_v48  ;;  %7147 = vst [vmem:[#allocation2 + $0x228] sm:$0xff] %v6891_v3  ;;  %v6894_v20 = vadd.f32 %v5208_v41, %v742_v63  ;;  %v5210_v53 = vadd.f32 %v5209_v62, %v4857_v42  ;;  %v14620_v62 = vld [vmem:[#allocation91_spill] sm:$0xff]  ;;  %v14621_v3 = vld [vmem:[#allocation92_spill] sm:$0xff]  ;;  %v14622_v42 = vld [vmem:[#allocation286_spill] sm:$0xff] }
 0x3de   : > { %v4861_v17 = vadd.f32 %v4860_v51, %v14614_v36  ;;  %5494 = vmatprep.mubr.bf16.mxu0 %v14615_v43  ;;  %5847 = vmatprep.mubr.bf16.mxu1 %v14616_v29  ;;  %v4862_v18 = vpop.f32.mrf.mxu0  ;;  %v14623_v51 = vld [vmem:[#allocation93_spill] sm:$0xff]  ;;  %v754_v7 = vld [vmem:[#allocation2 + $0x678] sm:$0xff] }
 0x3df   : > { %v5215_v21 = vpop.f32.mrf.mxu1  ;;  %7150 = vst [vmem:[#allocation2 + $0x7a0] sm:$0xff] %v6894_v20  ;;  %v6895_v54 = vadd.f32 %v5210_v53, %v743_v14  ;;  %v4863_v12 = vadd.f32 %v4862_v18, %v14617_v56  ;;  %v755_v29 = vld [vmem:[#allocation2 + $0x98] sm:$0xff] }
 0x3e0   : > { %v5214_v23 = vadd.f32 %v5213_v32, %v4861_v17  ;;  %v4864_v15 = vpop.f32.mrf.mxu0  ;;  %v14624_v32 = vld [vmem:[#allocation94_spill] sm:$0xff]  ;;  %v14625_v17 = vld [vmem:[#allocation287_spill] sm:$0xff] }
 0x3e1   : > { %v5217_v4 = vpop.f32.mrf.mxu1  ;;  %7151 = vst [vmem:[#allocation2 + $0x80] sm:$0xff] %v6895_v54  ;;  %v5216_v58 = vadd.f32 %v5215_v21, %v4863_v12  ;;  %v4865_v35 = vadd.f32 %v4864_v15, %v14618_v49  ;;  %v758_v12 = vld [vmem:[#allocation2 + $0x248] sm:$0xff] }
 0x3e2   : > { %v6898_v44 = vadd.f32 %v5214_v23, %v746_v45  ;;  %v4866_v22 = vpop.f32.mrf.mxu0  ;;  %v14626_v23 = vld [vmem:[#allocation290_spill] sm:$0xff] }
 0x3e3   : > { %v5219_v28 = vpop.f32.mrf.mxu1  ;;  %v6899_v55 = vadd.f32 %v5216_v58, %v747_v24  ;;  %v5218_v57 = vadd.f32 %v5217_v4, %v4865_v35  ;;  %v4867_v37 = vadd.f32 %v4866_v22, %v14619_v47  ;;  %v14627_v58 = vld [vmem:[#allocation293_spill] sm:$0xff]  ;;  %v759_v35 = vld [vmem:[#allocation2 + $0x548] sm:$0xff] }
 0x3e4   : > { %7154 = vst [vmem:[#allocation2 + $0x798] sm:$0xff] %v6898_v44  ;;  %v4870_v63 = vpop.f32.mrf.mxu0 }
 0x3e5   : > { %v5223_v61 = vpop.f32.mrf.mxu1  ;;  %5495 = vmatmul.mubr.bf16.gmra.mxu0 %v14620_v62  ;;  %5848 = vmatmul.mubr.bf16.gmra.mxu1 %v14621_v3  ;;  %7155 = vst [vmem:[#allocation2 + $0x378] sm:$0xff] %v6899_v55  ;;  %v6902_v41 = vadd.f32 %v5218_v57, %v750_v9  ;;  %v5220_v13 = vadd.f32 %v5219_v28, %v4867_v37  ;;  %v14628_v28 = vld [vmem:[#allocation95_spill] sm:$0xff]  ;;  %v14629_v55 = vld [vmem:[#allocation96_spill] sm:$0xff]  ;;  %v14630_v37 = vld [vmem:[#allocation294_spill] sm:$0xff] }
 0x3e6   : > { %v4871_v14 = vadd.f32 %v4870_v63, %v14622_v42  ;;  %5504 = vmatprep.mubr.bf16.mxu0 %v14623_v51  ;;  %5857 = vmatprep.mubr.bf16.mxu1 %v14624_v32  ;;  %v4872_v48 = vpop.f32.mrf.mxu0  ;;  %v14631_v63 = vld [vmem:[#allocation97_spill] sm:$0xff]  ;;  %v762_v62 = vld [vmem:[#allocation2 + $0x708] sm:$0xff] }
 0x3e7   : > { %v5225_v20 = vpop.f32.mrf.mxu1  ;;  %7158 = vst [vmem:[#allocation2 + $0x728] sm:$0xff] %v6902_v41  ;;  %v6903_v53 = vadd.f32 %v5220_v13, %v751_v40  ;;  %v4873_v43 = vadd.f32 %v4872_v48, %v14625_v17  ;;  %v763_v32 = vld [vmem:[#allocation2 + $0x8] sm:$0xff] }
 0x3e8   : > { %v5224_v36 = vadd.f32 %v5223_v61, %v4871_v14  ;;  %v4874_v45 = vpop.f32.mrf.mxu0  ;;  %v14632_v61 = vld [vmem:[#allocation98_spill] sm:$0xff]  ;;  %v14633_v14 = vld [vmem:[#allocation295_spill] sm:$0xff] }
 0x3e9   : > { %v5227_v18 = vpop.f32.mrf.mxu1  ;;  %7159 = vst [vmem:[#allocation2 + $0x288] sm:$0xff] %v6903_v53  ;;  %v5226_v54 = vadd.f32 %v5225_v20, %v4873_v43  ;;  %v4875_v56 = vadd.f32 %v4874_v45, %v14626_v23  ;;  %v766_v43 = vld [vmem:[#allocation2 + $0x7e0] sm:$0xff] }
 0x3ea   : > { %v6906_v21 = vadd.f32 %v5224_v36, %v754_v7  ;;  %v4876_v24 = vpop.f32.mrf.mxu0  ;;  %v14634_v36 = vld [vmem:[#allocation298_spill] sm:$0xff] }
 0x3eb   : > { %v5229_v15 = vpop.f32.mrf.mxu1  ;;  %v6907_v4 = vadd.f32 %v5226_v54, %v755_v29  ;;  %v5228_v44 = vadd.f32 %v5227_v18, %v4875_v56  ;;  %v4877_v49 = vadd.f32 %v4876_v24, %v14627_v58  ;;  %v14635_v54 = vld [vmem:[#allocation301_spill] sm:$0xff] }
 0x3ec   : > { %7162 = vst [vmem:[#allocation2 + $0x678] sm:$0xff] %v6906_v21  ;;  %v4880_v9 = vpop.f32.mrf.mxu0  ;;  %v767_v56 = vld [vmem:[#allocation2 + $0x20] sm:$0xff] }
 0x3ed   : > { %v5233_v22 = vpop.f32.mrf.mxu1  ;;  %5505 = vmatmul.mubr.bf16.gmra.mxu0 %v14628_v28  ;;  %5858 = vmatmul.mubr.bf16.gmra.mxu1 %v14629_v55  ;;  %7163 = vst [vmem:[#allocation2 + $0x98] sm:$0xff] %v6907_v4  ;;  %v6910_v57 = vadd.f32 %v5228_v44, %v758_v12  ;;  %v5230_v47 = vadd.f32 %v5229_v15, %v4877_v49  ;;  %v14636_v15 = vld [vmem:[#allocation99_spill] sm:$0xff]  ;;  %v14637_v4 = vld [vmem:[#allocation100_spill] sm:$0xff]  ;;  %v14638_v49 = vld [vmem:[#allocation302_spill] sm:$0xff] }
 0x3ee   : > { %v4881_v40 = vadd.f32 %v4880_v9, %v14630_v37  ;;  %5514 = vmatprep.mubr.bf16.mxu0 %v14631_v63  ;;  %5867 = vmatprep.mubr.bf16.mxu1 %v14632_v61  ;;  %v4882_v3 = vpop.f32.mrf.mxu0  ;;  %v14639_v9 = vld [vmem:[#allocation101_spill] sm:$0xff]  ;;  %v770_v28 = vld [vmem:[#allocation2 + $0x6e8] sm:$0xff]  ;;  %v771_v61 = vld [vmem:[#allocation2 + $0x6b0] sm:$0xff] }
 0x3ef   : > { %v5235_v41 = vpop.f32.mrf.mxu1  ;;  %7166 = vst [vmem:[#allocation2 + $0x248] sm:$0xff] %v6910_v57  ;;  %v6911_v13 = vadd.f32 %v5230_v47, %v759_v35  ;;  %v4883_v51 = vadd.f32 %v4882_v3, %v14633_v14 }
 0x3f0   : > { %v5234_v42 = vadd.f32 %v5233_v22, %v4881_v40  ;;  %v4884_v7 = vpop.f32.mrf.mxu0  ;;  %v14640_v22 = vld [vmem:[#allocation102_spill] sm:$0xff]  ;;  %v14641_v40 = vld [vmem:[#allocation303_spill] sm:$0xff] }
 0x3f1   : > { %v5237_v48 = vpop.f32.mrf.mxu1  ;;  %7167 = vst [vmem:[#allocation2 + $0x548] sm:$0xff] %v6911_v13  ;;  %v5236_v53 = vadd.f32 %v5235_v41, %v4883_v51  ;;  %v4885_v17 = vadd.f32 %v4884_v7, %v14634_v36  ;;  %v774_v51 = vld [vmem:[#allocation2 + $0x180] sm:$0xff] }
 0x3f2   : > { %v6914_v20 = vadd.f32 %v5234_v42, %v762_v62  ;;  %v4886_v29 = vpop.f32.mrf.mxu0  ;;  %v14642_v42 = vld [vmem:[#allocation306_spill] sm:$0xff] }
 0x3f3   : > { %v5239_v45 = vpop.f32.mrf.mxu1  ;;  %v6915_v18 = vadd.f32 %v5236_v53, %v763_v32  ;;  %v5238_v21 = vadd.f32 %v5237_v48, %v4885_v17  ;;  %v4887_v23 = vadd.f32 %v4886_v29, %v14635_v54  ;;  %v14643_v53 = vld [vmem:[#allocation309_spill] sm:$0xff]  ;;  %v775_v17 = vld [vmem:[#allocation2 + $0x490] sm:$0xff] }
 0x3f4   : > { %7170 = vst [vmem:[#allocation2 + $0x708] sm:$0xff] %v6914_v20  ;;  %v4890_v12 = vpop.f32.mrf.mxu0 }
 0x3f5   : > { %v5243_v24 = vpop.f32.mrf.mxu1  ;;  %5515 = vmatmul.mubr.bf16.gmra.mxu0 %v14636_v15  ;;  %5868 = vmatmul.mubr.bf16.gmra.mxu1 %v14637_v4  ;;  %7171 = vst [vmem:[#allocation2 + $0x8] sm:$0xff] %v6915_v18  ;;  %v6918_v44 = vadd.f32 %v5238_v21, %v766_v43  ;;  %v5240_v58 = vadd.f32 %v5239_v45, %v4887_v23  ;;  %v14644_v45 = vld [vmem:[#allocation103_spill] sm:$0xff]  ;;  %v14645_v18 = vld [vmem:[#allocation104_spill] sm:$0xff]  ;;  %v14646_v23 = vld [vmem:[#allocation310_spill] sm:$0xff] }
 0x3f6   : > { %v4891_v35 = vadd.f32 %v4890_v12, %v14638_v49  ;;  %5524 = vmatprep.mubr.bf16.mxu0 %v14639_v9  ;;  %5877 = vmatprep.mubr.bf16.mxu1 %v14640_v22  ;;  %v4892_v55 = vpop.f32.mrf.mxu0  ;;  %v14647_v12 = vld [vmem:[#allocation105_spill] sm:$0xff]  ;;  %v778_v15 = vld [vmem:[#allocation2 + $0xe8] sm:$0xff]  ;;  %v779_v22 = vld [vmem:[#allocation2 + $0x2f0] sm:$0xff] }
 0x3f7   : > { %v5245_v57 = vpop.f32.mrf.mxu1  ;;  %7174 = vst [vmem:[#allocation2 + $0x7e0] sm:$0xff] %v6918_v44  ;;  %v6919_v47 = vadd.f32 %v5240_v58, %v767_v56  ;;  %v4893_v63 = vadd.f32 %v4892_v55, %v14641_v40 }
 0x3f8   : > { %v5244_v37 = vadd.f32 %v5243_v24, %v4891_v35  ;;  %v4894_v62 = vpop.f32.mrf.mxu0  ;;  %v14648_v24 = vld [vmem:[#allocation106_spill] sm:$0xff]  ;;  %v14649_v35 = vld [vmem:[#allocation311_spill] sm:$0xff] }
 0x3f9   : > { %v5247_v3 = vpop.f32.mrf.mxu1  ;;  %7175 = vst [vmem:[#allocation2 + $0x20] sm:$0xff] %v6919_v47  ;;  %v5246_v13 = vadd.f32 %v5245_v57, %v4893_v63  ;;  %v4895_v14 = vadd.f32 %v4894_v62, %v14642_v42  ;;  %v782_v63 = vld [vmem:[#allocation2 + $0x60] sm:$0xff] }
 0x3fa   : > { %v6922_v41 = vadd.f32 %v5244_v37, %v770_v28  ;;  %v4896_v32 = vpop.f32.mrf.mxu0  ;;  %v14650_v37 = vld [vmem:[#allocation314_spill] sm:$0xff] }
 0x3fb   : > { %v5249_v7 = vpop.f32.mrf.mxu1  ;;  %v6923_v48 = vadd.f32 %v5246_v13, %v771_v61  ;;  %v5248_v20 = vadd.f32 %v5247_v3, %v4895_v14  ;;  %v4897_v36 = vadd.f32 %v4896_v32, %v14643_v53  ;;  %v14651_v13 = vld [vmem:[#allocation317_spill] sm:$0xff]  ;;  %v783_v14 = vld [vmem:[#allocation2 + $0x210] sm:$0xff] }
 0x3fc   : > { %7178 = vst [vmem:[#allocation2 + $0x6e8] sm:$0xff] %v6922_v41  ;;  %v4900_v43 = vpop.f32.mrf.mxu0 }
 0x3fd   : > { %v5253_v29 = vpop.f32.mrf.mxu1  ;;  %5525 = vmatmul.mubr.bf16.gmra.mxu0 %v14644_v45  ;;  %5878 = vmatmul.mubr.bf16.gmra.mxu1 %v14645_v18  ;;  %7179 = vst [vmem:[#allocation2 + $0x6b0] sm:$0xff] %v6923_v48  ;;  %v6926_v21 = vadd.f32 %v5248_v20, %v774_v51  ;;  %v5250_v54 = vadd.f32 %v5249_v7, %v4897_v36  ;;  %v14652_v7 = vld [vmem:[#allocation107_spill] sm:$0xff]  ;;  %v14653_v48 = vld [vmem:[#allocation108_spill] sm:$0xff]  ;;  %v14654_v36 = vld [vmem:[#allocation318_spill] sm:$0xff] }
 0x3fe   : > { %v4901_v56 = vadd.f32 %v4900_v43, %v14646_v23  ;;  %5534 = vmatprep.mubr.bf16.mxu0 %v14647_v12  ;;  %5887 = vmatprep.mubr.bf16.mxu1 %v14648_v24  ;;  %v4902_v4 = vpop.f32.mrf.mxu0  ;;  %v14655_v43 = vld [vmem:[#allocation109_spill] sm:$0xff]  ;;  %v786_v45 = vld [vmem:[#allocation2 + $0x168] sm:$0xff] }
 0x3ff   : > { %v5255_v44 = vpop.f32.mrf.mxu1  ;;  %7182 = vst [vmem:[#allocation2 + $0x180] sm:$0xff] %v6926_v21  ;;  %v6927_v58 = vadd.f32 %v5250_v54, %v775_v17  ;;  %v4903_v9 = vadd.f32 %v4902_v4, %v14649_v35  ;;  %v787_v24 = vld [vmem:[#allocation2 + $0x668] sm:$0xff] }
 0x400   : > { %v5254_v49 = vadd.f32 %v5253_v29, %v4901_v56  ;;  %v4904_v28 = vpop.f32.mrf.mxu0  ;;  %v14656_v29 = vld [vmem:[#allocation110_spill] sm:$0xff]  ;;  %v14657_v56 = vld [vmem:[#allocation319_spill] sm:$0xff] }
 0x401   : > { %v5257_v55 = vpop.f32.mrf.mxu1  ;;  %7183 = vst [vmem:[#allocation2 + $0x490] sm:$0xff] %v6927_v58  ;;  %v5256_v47 = vadd.f32 %v5255_v44, %v4903_v9  ;;  %v4905_v40 = vadd.f32 %v4904_v28, %v14650_v37  ;;  %v790_v9 = vld [vmem:[#allocation2 + $0xc8] sm:$0xff] }
 0x402   : > { %v6930_v57 = vadd.f32 %v5254_v49, %v778_v15  ;;  %v4906_v61 = vpop.f32.mrf.mxu0  ;;  %v14658_v49 = vld [vmem:[#allocation322_spill] sm:$0xff] }
 0x403   : > { %v5259_v62 = vpop.f32.mrf.mxu1  ;;  %v6931_v3 = vadd.f32 %v5256_v47, %v779_v22  ;;  %v5258_v41 = vadd.f32 %v5257_v55, %v4905_v40  ;;  %v4907_v42 = vadd.f32 %v4906_v61, %v14651_v13  ;;  %v14659_v47 = vld [vmem:[#allocation325_spill] sm:$0xff] }
 0x404   : > { %7186 = vst [vmem:[#allocation2 + $0xe8] sm:$0xff] %v6930_v57  ;;  %v4910_v51 = vpop.f32.mrf.mxu0  ;;  %v791_v40 = vld [vmem:[#allocation2 + $0xa0] sm:$0xff] }
 0x405   : > { %v5263_v32 = vpop.f32.mrf.mxu1  ;;  %5535 = vmatmul.mubr.bf16.gmra.mxu0 %v14652_v7  ;;  %5888 = vmatmul.mubr.bf16.gmra.mxu1 %v14653_v48  ;;  %7187 = vst [vmem:[#allocation2 + $0x2f0] sm:$0xff] %v6931_v3  ;;  %v6934_v20 = vadd.f32 %v5258_v41, %v782_v63  ;;  %v5260_v53 = vadd.f32 %v5259_v62, %v4907_v42  ;;  %v14660_v62 = vld [vmem:[#allocation111_spill] sm:$0xff]  ;;  %v14661_v3 = vld [vmem:[#allocation112_spill] sm:$0xff]  ;;  %v14662_v42 = vld [vmem:[#allocation326_spill] sm:$0xff] }
 0x406   : > { %v4911_v17 = vadd.f32 %v4910_v51, %v14654_v36  ;;  %5544 = vmatprep.mubr.bf16.mxu0 %v14655_v43  ;;  %5897 = vmatprep.mubr.bf16.mxu1 %v14656_v29  ;;  %v4912_v18 = vpop.f32.mrf.mxu0  ;;  %v14663_v51 = vld [vmem:[#allocation113_spill] sm:$0xff]  ;;  %v794_v7 = vld [vmem:[#allocation2 + $0x7c8] sm:$0xff]  ;;  %v795_v29 = vld [vmem:[#allocation2 + $0x430] sm:$0xff] }
 0x407   : > { %v5265_v21 = vpop.f32.mrf.mxu1  ;;  %7190 = vst [vmem:[#allocation2 + $0x60] sm:$0xff] %v6934_v20  ;;  %v6935_v54 = vadd.f32 %v5260_v53, %v783_v14  ;;  %v4913_v12 = vadd.f32 %v4912_v18, %v14657_v56 }
 0x408   : > { %v5264_v23 = vadd.f32 %v5263_v32, %v4911_v17  ;;  %v4914_v15 = vpop.f32.mrf.mxu0  ;;  %v14664_v32 = vld [vmem:[#allocation114_spill] sm:$0xff]  ;;  %v14665_v17 = vld [vmem:[#allocation327_spill] sm:$0xff] }
 0x409   : > { %v5267_v4 = vpop.f32.mrf.mxu1  ;;  %7191 = vst [vmem:[#allocation2 + $0x210] sm:$0xff] %v6935_v54  ;;  %v5266_v58 = vadd.f32 %v5265_v21, %v4913_v12  ;;  %v4915_v35 = vadd.f32 %v4914_v15, %v14658_v49  ;;  %v798_v12 = vld [vmem:[#allocation2 + $0x638] sm:$0xff] }
 0x40a   : > { %v6938_v44 = vadd.f32 %v5264_v23, %v786_v45  ;;  %v4916_v22 = vpop.f32.mrf.mxu0  ;;  %v14666_v23 = vld [vmem:[#allocation330_spill] sm:$0xff] }
 0x40b   : > { %v5269_v28 = vpop.f32.mrf.mxu1  ;;  %v6939_v55 = vadd.f32 %v5266_v58, %v787_v24  ;;  %v5268_v57 = vadd.f32 %v5267_v4, %v4915_v35  ;;  %v4917_v37 = vadd.f32 %v4916_v22, %v14659_v47  ;;  %v14667_v58 = vld [vmem:[#allocation333_spill] sm:$0xff]  ;;  %v799_v35 = vld [vmem:[#allocation2 + $0x4b8] sm:$0xff] }
 0x40c   : > { %7194 = vst [vmem:[#allocation2 + $0x168] sm:$0xff] %v6938_v44  ;;  %v4920_v63 = vpop.f32.mrf.mxu0 }
 0x40d   : > { %v5273_v61 = vpop.f32.mrf.mxu1  ;;  %5545 = vmatmul.mubr.bf16.gmra.mxu0 %v14660_v62  ;;  %5898 = vmatmul.mubr.bf16.gmra.mxu1 %v14661_v3  ;;  %7195 = vst [vmem:[#allocation2 + $0x668] sm:$0xff] %v6939_v55  ;;  %v6942_v41 = vadd.f32 %v5268_v57, %v790_v9  ;;  %v5270_v13 = vadd.f32 %v5269_v28, %v4917_v37  ;;  %v14668_v28 = vld [vmem:[#allocation115_spill] sm:$0xff]  ;;  %v14669_v55 = vld [vmem:[#allocation116_spill] sm:$0xff]  ;;  %v14670_v37 = vld [vmem:[#allocation334_spill] sm:$0xff] }
 0x40e   : > { %v4921_v14 = vadd.f32 %v4920_v63, %v14662_v42  ;;  %5554 = vmatprep.mubr.bf16.mxu0 %v14663_v51  ;;  %5907 = vmatprep.mubr.bf16.mxu1 %v14664_v32  ;;  %v4922_v48 = vpop.f32.mrf.mxu0  ;;  %v14671_v63 = vld [vmem:[#allocation117_spill] sm:$0xff]  ;;  %v803_v32 = vld [vmem:[#allocation2 + $0x2d0] sm:$0xff] }
 0x40f   : > { %v5275_v20 = vpop.f32.mrf.mxu1  ;;  %7198 = vst [vmem:[#allocation2 + $0xc8] sm:$0xff] %v6942_v41  ;;  %v6943_v53 = vadd.f32 %v5270_v13, %v791_v40  ;;  %v4923_v43 = vadd.f32 %v4922_v48, %v14665_v17  ;;  %v802_v62 = vld [vmem:[#allocation2] sm:$0xff] }
 0x410   : > { %v5274_v36 = vadd.f32 %v5273_v61, %v4921_v14  ;;  %v4924_v45 = vpop.f32.mrf.mxu0  ;;  %v14672_v61 = vld [vmem:[#allocation118_spill] sm:$0xff]  ;;  %v14673_v14 = vld [vmem:[#allocation335_spill] sm:$0xff] }
 0x411   : > { %v5277_v18 = vpop.f32.mrf.mxu1  ;;  %7199 = vst [vmem:[#allocation2 + $0xa0] sm:$0xff] %v6943_v53  ;;  %v5276_v54 = vadd.f32 %v5275_v20, %v4923_v43  ;;  %v4925_v56 = vadd.f32 %v4924_v45, %v14666_v23  ;;  %v806_v43 = vld [vmem:[#allocation2 + $0x3d8] sm:$0xff] }
 0x412   : > { %v6946_v21 = vadd.f32 %v5274_v36, %v794_v7  ;;  %v4926_v24 = vpop.f32.mrf.mxu0  ;;  %v14674_v36 = vld [vmem:[#allocation338_spill] sm:$0xff] }
 0x413   : > { %v5279_v15 = vpop.f32.mrf.mxu1  ;;  %v6947_v4 = vadd.f32 %v5276_v54, %v795_v29  ;;  %v5278_v44 = vadd.f32 %v5277_v18, %v4925_v56  ;;  %v4927_v49 = vadd.f32 %v4926_v24, %v14667_v58  ;;  %v14675_v54 = vld [vmem:[#allocation341_spill] sm:$0xff]  ;;  %v807_v56 = vld [vmem:[#allocation2 + $0x718] sm:$0xff] }
 0x414   : > { %7202 = vst [vmem:[#allocation2 + $0x7c8] sm:$0xff] %v6946_v21  ;;  %v4930_v9 = vpop.f32.mrf.mxu0 }
 0x415   : > { %v5283_v22 = vpop.f32.mrf.mxu1  ;;  %5555 = vmatmul.mubr.bf16.gmra.mxu0 %v14668_v28  ;;  %5908 = vmatmul.mubr.bf16.gmra.mxu1 %v14669_v55  ;;  %7203 = vst [vmem:[#allocation2 + $0x430] sm:$0xff] %v6947_v4  ;;  %v6950_v57 = vadd.f32 %v5278_v44, %v798_v12  ;;  %v5280_v47 = vadd.f32 %v5279_v15, %v4927_v49  ;;  %v14676_v15 = vld [vmem:[#allocation119_spill] sm:$0xff]  ;;  %v14677_v4 = vld [vmem:[#allocation120_spill] sm:$0xff]  ;;  %v14678_v49 = vld [vmem:[#allocation342_spill] sm:$0xff] }
 0x416   : > { %v4931_v40 = vadd.f32 %v4930_v9, %v14670_v37  ;;  %5564 = vmatprep.mubr.bf16.mxu0 %v14671_v63  ;;  %5917 = vmatprep.mubr.bf16.mxu1 %v14672_v61  ;;  %v4932_v3 = vpop.f32.mrf.mxu0  ;;  %v14679_v9 = vld [vmem:[#allocation121_spill] sm:$0xff]  ;;  %v810_v28 = vld [vmem:[#allocation2 + $0x710] sm:$0xff]  ;;  %v811_v61 = vld [vmem:[#allocation2 + $0xa8] sm:$0xff] }
 0x417   : > { %v5285_v41 = vpop.f32.mrf.mxu1  ;;  %7206 = vst [vmem:[#allocation2 + $0x638] sm:$0xff] %v6950_v57  ;;  %v6951_v13 = vadd.f32 %v5280_v47, %v799_v35  ;;  %v4933_v51 = vadd.f32 %v4932_v3, %v14673_v14 }
 0x418   : > { %v5284_v42 = vadd.f32 %v5283_v22, %v4931_v40  ;;  %v4934_v7 = vpop.f32.mrf.mxu0  ;;  %v14680_v22 = vld [vmem:[#allocation122_spill] sm:$0xff]  ;;  %v14681_v40 = vld [vmem:[#allocation343_spill] sm:$0xff] }
 0x419   : > { %v5287_v48 = vpop.f32.mrf.mxu1  ;;  %7207 = vst [vmem:[#allocation2 + $0x4b8] sm:$0xff] %v6951_v13  ;;  %v5286_v53 = vadd.f32 %v5285_v41, %v4933_v51  ;;  %v4935_v17 = vadd.f32 %v4934_v7, %v14674_v36  ;;  %v814_v51 = vld [vmem:[#allocation2 + $0x1b0] sm:$0xff] }
 0x41a   : > { %v6954_v20 = vadd.f32 %v5284_v42, %v802_v62  ;;  %v4936_v29 = vpop.f32.mrf.mxu0  ;;  %v14682_v42 = vld [vmem:[#allocation346_spill] sm:$0xff] }
 0x41b   : > { %v5289_v45 = vpop.f32.mrf.mxu1  ;;  %v6955_v18 = vadd.f32 %v5286_v53, %v803_v32  ;;  %v5288_v21 = vadd.f32 %v5287_v48, %v4935_v17  ;;  %v4937_v23 = vadd.f32 %v4936_v29, %v14675_v54  ;;  %v14683_v53 = vld [vmem:[#allocation349_spill] sm:$0xff]  ;;  %v14684_v29 = vld [vmem:[#allocation123_spill] sm:$0xff] }
 0x41c   : > { %7210 = vst [vmem:[#allocation2] sm:$0xff] %v6954_v20  ;;  %v4940_v12 = vpop.f32.mrf.mxu0  ;;  %v815_v17 = vld [vmem:[#allocation2 + $0x5e0] sm:$0xff] }
 0x41d   : > { %v5293_v24 = vpop.f32.mrf.mxu1  ;;  %5565 = vmatmul.mubr.bf16.gmra.mxu0 %v14676_v15  ;;  %5918 = vmatmul.mubr.bf16.gmra.mxu1 %v14677_v4  ;;  %7211 = vst [vmem:[#allocation2 + $0x2d0] sm:$0xff] %v6955_v18  ;;  %v6958_v44 = vadd.f32 %v5288_v21, %v806_v43  ;;  %v5290_v58 = vadd.f32 %v5289_v45, %v4937_v23  ;;  %v14685_v18 = vld [vmem:[#allocation124_spill] sm:$0xff] }
 0x41e   : > { %v4941_v35 = vadd.f32 %v4940_v12, %v14678_v49  ;;  %5574 = vmatprep.mubr.bf16.mxu0 %v14679_v9  ;;  %5927 = vmatprep.mubr.bf16.mxu1 %v14680_v22  ;;  %v4942_v55 = vpop.f32.mrf.mxu0  ;;  %v14687_v12 = vld [vmem:[#allocation126_spill] sm:$0xff] }
 0x41f   : > { %v5295_v57 = vpop.f32.mrf.mxu1  ;;  %7214 = vst [vmem:[#allocation2 + $0x3d8] sm:$0xff] %v6958_v44  ;;  %v6959_v47 = vadd.f32 %v5290_v58, %v807_v56  ;;  %v4943_v63 = vadd.f32 %v4942_v55, %v14681_v40  ;;  %v14686_v56 = vld [vmem:[#allocation125_spill] sm:$0xff] }
 0x420   : > { %v5294_v37 = vadd.f32 %v5293_v24, %v4941_v35  ;;  %v4944_v62 = vpop.f32.mrf.mxu0 }
 0x421   : > { %v5297_v3 = vpop.f32.mrf.mxu1  ;;  %7215 = vst [vmem:[#allocation2 + $0x718] sm:$0xff] %v6959_v47  ;;  %v5296_v13 = vadd.f32 %v5295_v57, %v4943_v63  ;;  %v4945_v14 = vadd.f32 %v4944_v62, %v14682_v42  ;;  %v14688_v57 = vld [vmem:[#allocation127_spill] sm:$0xff]  ;;  %v14690_v63 = vld [vmem:[#allocation129_spill] sm:$0xff] }
 0x422   : > { %v6962_v41 = vadd.f32 %v5294_v37, %v810_v28  ;;  %v4946_v32 = vpop.f32.mrf.mxu0  ;;  %v14689_v37 = vld [vmem:[#allocation128_spill] sm:$0xff] }
 0x423   : > { %v5299_v7 = vpop.f32.mrf.mxu1  ;;  %v6963_v48 = vadd.f32 %v5296_v13, %v811_v61  ;;  %v5298_v20 = vadd.f32 %v5297_v3, %v4945_v14  ;;  %v4947_v36 = vadd.f32 %v4946_v32, %v14683_v53  ;;  %v14691_v61 = vld [vmem:[#allocation130_spill] sm:$0xff] }
 0x424   : > { %7218 = vst [vmem:[#allocation2 + $0x710] sm:$0xff] %v6962_v41  ;;  %v5336_v43 = vpop.f32.mrf.mxu0 }
 0x425   : > { %5575 = vmatmul.mubr.bf16.gmra.mxu0 %v14684_v29  ;;  %v5689_v45 = vpop.f32.mrf.mxu1  ;;  %5928 = vmatmul.mubr.bf16.gmra.mxu1 %v14685_v18  ;;  %7219 = vst [vmem:[#allocation2 + $0xa8] sm:$0xff] %v6963_v48  ;;  %v6966_v21 = vadd.f32 %v5298_v20, %v814_v51  ;;  %v5300_v54 = vadd.f32 %v5299_v7, %v4947_v36  ;;  %v14692_v20 = vld [vmem:[#allocation131_spill] sm:$0xff]  ;;  %v14693_v36 = vld [vmem:[#allocation132_spill] sm:$0xff]  ;;  %v14695_v29 = vld [vmem:[#allocation134_spill] sm:$0xff] }
 0x426   : > { %v12704_v23 = vadd.f32 %v5689_v45, %v5336_v43  ;;  %5584 = vmatprep.mubr.bf16.mxu0 %v14686_v56  ;;  %5937 = vmatprep.mubr.bf16.mxu1 %v14687_v12  ;;  %v5338_v24 = vpop.f32.mrf.mxu0  ;;  %v14694_v43 = vld [vmem:[#allocation133_spill] sm:$0xff] }
 0x427   : > { %v5691_v15 = vpop.f32.mrf.mxu1  ;;  %7222 = vst [vmem:[#allocation2 + $0x1b0] sm:$0xff] %v6966_v21  ;;  %v6967_v4 = vadd.f32 %v5300_v54, %v815_v17 }
 0x428   : > { %v12708_v44 = vadd.f32 %v5691_v15, %v5338_v24  ;;  %v5340_v58 = vpop.f32.mrf.mxu0 }
 0x429   : > { %v5693_v49 = vpop.f32.mrf.mxu1  ;;  %7223 = vst [vmem:[#allocation2 + $0x5e0] sm:$0xff] %v6967_v4 }
 0x42a   : > { %v12710_v35 = vadd.f32 %v5693_v49, %v5340_v58  ;;  %v5342_v9 = vpop.f32.mrf.mxu0  ;;  %v14696_v49 = vld [vmem:[#allocation135_spill] sm:$0xff] }
 0x42b   : > { %v5695_v22 = vpop.f32.mrf.mxu1 }
 0x42c   : > { %v12712_v28 = vadd.f32 %v5695_v22, %v5342_v9  ;;  %v5346_v55 = vpop.f32.mrf.mxu0  ;;  %v14697_v22 = vld [vmem:[#allocation136_spill] sm:$0xff] }
 0x42d   : > { %5585 = vmatmul.mubr.bf16.gmra.mxu0 %v14688_v57  ;;  %v5699_v47 = vpop.f32.mrf.mxu1  ;;  %5938 = vmatmul.mubr.bf16.gmra.mxu1 %v14689_v37  ;;  %v14698_v57 = vld [vmem:[#allocation137_spill] sm:$0xff] }
 0x42e   : > { %v12716_v40 = vadd.f32 %v5699_v47, %v5346_v55  ;;  %5594 = vmatprep.mubr.bf16.mxu0 %v14690_v63  ;;  %5947 = vmatprep.mubr.bf16.mxu1 %v14691_v61  ;;  %v5348_v62 = vpop.f32.mrf.mxu0  ;;  %v14699_v47 = vld [vmem:[#allocation138_spill] sm:$0xff] }
 0x42f   : > { %v5701_v3 = vpop.f32.mrf.mxu1 }
 0x430   : > { %v12720_v41 = vadd.f32 %v5701_v3, %v5348_v62  ;;  %v5350_v13 = vpop.f32.mrf.mxu0 }
 0x431   : > { %v5703_v42 = vpop.f32.mrf.mxu1 }
 0x432   : > { %v12722_v14 = vadd.f32 %v5703_v42, %v5350_v13  ;;  %v5352_v51 = vpop.f32.mrf.mxu0 }
 0x433   : > { %v5705_v32 = vpop.f32.mrf.mxu1 }
 0x434   : > { %v12724_v7 = vadd.f32 %v5705_v32, %v5352_v51 }
 0x435   : > { %v5356_v48 = vpop.f32.mrf.mxu0  ;;  %5595 = vmatmul.mubr.bf16.gmra.mxu0 %v14692_v20  ;;  %v5709_v53 = vpop.f32.mrf.mxu1  ;;  %5948 = vmatmul.mubr.bf16.gmra.mxu1 %v14693_v36  ;;  %v14700_v20 = vld [vmem:[#allocation139_spill] sm:$0xff]  ;;  %v14701_v36 = vld [vmem:[#allocation140_spill] sm:$0xff] }
 0x436   : > { %v12728_v17 = vadd.f32 %v5709_v53, %v5356_v48  ;;  %5604 = vmatprep.mubr.bf16.mxu0 %v14694_v43  ;;  %5957 = vmatprep.mubr.bf16.mxu1 %v14695_v29  ;;  %v14702_v29 = vld [vmem:[#allocation141_spill] sm:$0xff] }
 0x437   : > { %v5358_v45 = vpop.f32.mrf.mxu0  ;;  %v5711_v18 = vpop.f32.mrf.mxu1 }
 0x438   : > { %v12732_v21 = vadd.f32 %v5711_v18, %v5358_v45  ;;  %v14703_v45 = vld [vmem:[#allocation142_spill] sm:$0xff] }
 0x439   : > { %v5360_v54 = vpop.f32.mrf.mxu0  ;;  %v5713_v56 = vpop.f32.mrf.mxu1 }
 0x43a   : > { %v12734_v12 = vadd.f32 %v5713_v56, %v5360_v54 }
 0x43b   : > { %v5362_v24 = vpop.f32.mrf.mxu0  ;;  %v5715_v15 = vpop.f32.mrf.mxu1 }
 0x43c   : > { %v12736_v4 = vadd.f32 %v5715_v15, %v5362_v24 }
 0x43d   : > { %v5366_v58 = vpop.f32.mrf.mxu0  ;;  %5605 = vmatmul.mubr.bf16.gmra.mxu0 %v14696_v49  ;;  %v5719_v9 = vpop.f32.mrf.mxu1  ;;  %5958 = vmatmul.mubr.bf16.gmra.mxu1 %v14697_v22 }
 0x43e   : > { %v12740_v55 = vadd.f32 %v5719_v9, %v5366_v58  ;;  %5614 = vmatprep.mubr.bf16.mxu0 %v14698_v57  ;;  %5967 = vmatprep.mubr.bf16.mxu1 %v14699_v47  ;;  %v14704_v47 = vld [vmem:[#allocation143_spill] sm:$0xff] }
 0x43f   : > { %v5368_v37 = vpop.f32.mrf.mxu0  ;;  %v5721_v63 = vpop.f32.mrf.mxu1 }
 0x440   : > { %v12744_v61 = vadd.f32 %v5721_v63, %v5368_v37  ;;  %v14705_v63 = vld [vmem:[#allocation144_spill] sm:$0xff] }
 0x441   : > { %v5370_v62 = vpop.f32.mrf.mxu0  ;;  %v5723_v3 = vpop.f32.mrf.mxu1 }
 0x442   : > { %v12746_v13 = vadd.f32 %v5723_v3, %v5370_v62  ;;  %v14706_v3 = vld [vmem:[#allocation145_spill] sm:$0xff] }
 0x443   : > { %v5372_v42 = vpop.f32.mrf.mxu0  ;;  %v5725_v51 = vpop.f32.mrf.mxu1 }
 0x444   : > { %v12748_v32 = vadd.f32 %v5725_v51, %v5372_v42  ;;  %v14707_v42 = vld [vmem:[#allocation146_spill] sm:$0xff] }
 0x445   : > { %v5376_v48 = vpop.f32.mrf.mxu0  ;;  %5615 = vmatmul.mubr.bf16.gmra.mxu0 %v14700_v20  ;;  %v5729_v53 = vpop.f32.mrf.mxu1  ;;  %5968 = vmatmul.mubr.bf16.gmra.mxu1 %v14701_v36 }
 0x446   : > { %v12752_v43 = vadd.f32 %v5729_v53, %v5376_v48  ;;  %5624 = vmatprep.mubr.bf16.mxu0 %v14702_v29  ;;  %5977 = vmatprep.mubr.bf16.mxu1 %v14703_v45 }
 0x447   : > { %v5378_v18 = vpop.f32.mrf.mxu0  ;;  %v5731_v54 = vpop.f32.mrf.mxu1 }
 0x448   : > { %v12756_v56 = vadd.f32 %v5731_v54, %v5378_v18 }
 0x449   : > { %v5380_v24 = vpop.f32.mrf.mxu0  ;;  %v5733_v15 = vpop.f32.mrf.mxu1 }
 0x44a   : > { %v12758_v58 = vadd.f32 %v5733_v15, %v5380_v24  ;;  %v14708_v15 = vld [vmem:[#allocation147_spill] sm:$0xff] }
 0x44b   : > { %v5382_v49 = vpop.f32.mrf.mxu0  ;;  %v5735_v9 = vpop.f32.mrf.mxu1 }
 0x44c   : > { %v12760_v22 = vadd.f32 %v5735_v9, %v5382_v49  ;;  %v14709_v9 = vld [vmem:[#allocation148_spill] sm:$0xff] }
 0x44d   : > { %v5386_v57 = vpop.f32.mrf.mxu0  ;;  %5625 = vmatmul.mubr.bf16.gmra.mxu0 %v14704_v47  ;;  %v5739_v37 = vpop.f32.mrf.mxu1  ;;  %5978 = vmatmul.mubr.bf16.gmra.mxu1 %v14705_v63  ;;  %v14711_v47 = vld [vmem:[#allocation149_spill] sm:$0xff] }
 0x44e   : > { %v12764_v62 = vadd.f32 %v5739_v37, %v5386_v57  ;;  %5634 = vmatprep.mubr.bf16.mxu0 %v14706_v3  ;;  %5987 = vmatprep.mubr.bf16.mxu1 %v14707_v42  ;;  %v14712_v37 = vld [vmem:[#allocation150_spill] sm:$0xff] }
 0x44f   : > { %v5388_v51 = vpop.f32.mrf.mxu0  ;;  %v5741_v48 = vpop.f32.mrf.mxu1 }
 0x450   : > { %v12768_v20 = vadd.f32 %v5741_v48, %v5388_v51 }
 0x451   : > { %v5390_v53 = vpop.f32.mrf.mxu0  ;;  %v5743_v36 = vpop.f32.mrf.mxu1 }
 0x452   : > { %v12770_v29 = vadd.f32 %v5743_v36, %v5390_v53 }
 0x453   : > { %v5392_v45 = vpop.f32.mrf.mxu0  ;;  %v5745_v18 = vpop.f32.mrf.mxu1 }
 0x454   : > { %v12772_v54 = vadd.f32 %v5745_v18, %v5392_v45 }
 0x455   : > { %v5396_v24 = vpop.f32.mrf.mxu0  ;;  %5635 = vmatmul.mubr.bf16.gmra.mxu0 %v14708_v15  ;;  %v5749_v49 = vpop.f32.mrf.mxu1  ;;  %5988 = vmatmul.mubr.bf16.gmra.mxu1 %v14709_v9  ;;  %v14716_v9 = vld [vmem:[#allocation151_spill] sm:$0xff] }
 0x456   : > { %v12776_v57 = vadd.f32 %v5749_v49, %v5396_v24  ;;  %5644 = vmatprep.mubr.bf16.mxu0 %v14711_v47  ;;  %5997 = vmatprep.mubr.bf16.mxu1 %v14712_v37  ;;  %v14717_v49 = vld [vmem:[#allocation152_spill] sm:$0xff]  ;;  %v14719_v37 = vld [vmem:[#allocation153_spill] sm:$0xff] }
 0x457   : > { %v5398_v63 = vpop.f32.mrf.mxu0  ;;  %v5751_v3 = vpop.f32.mrf.mxu1 }
 0x458   : > { %14710 = vst [vmem:[#allocation30_spill] sm:$0xff] %v12776_v57  ;;  %v12780_v42 = vadd.f32 %v5751_v3, %v5398_v63  ;;  %v14720_v63 = vld [vmem:[#allocation154_spill] sm:$0xff] }
 0x459   : > { %v5400_v51 = vpop.f32.mrf.mxu0  ;;  %v5753_v48 = vpop.f32.mrf.mxu1 }
 0x45a   : > { %14713 = vst [vmem:[#allocation159_spill] sm:$0xff] %v12780_v42  ;;  %v12782_v53 = vadd.f32 %v5753_v48, %v5400_v51 }
 0x45b   : > { %v5402_v36 = vpop.f32.mrf.mxu0  ;;  %v5755_v45 = vpop.f32.mrf.mxu1 }
 0x45c   : > { %14714 = vst [vmem:[#allocation162_spill] sm:$0xff] %v12782_v53  ;;  %v12784_v18 = vadd.f32 %v5755_v45, %v5402_v36 }
 0x45d   : > { %v5406_v15 = vpop.f32.mrf.mxu0  ;;  %5645 = vmatmul.mubr.bf16.gmra.mxu0 %v14716_v9  ;;  %v5759_v24 = vpop.f32.mrf.mxu1  ;;  %5998 = vmatmul.mubr.bf16.gmra.mxu1 %v14717_v49 }
 0x45e   : > { %14715 = vst [vmem:[#allocation165_spill] sm:$0xff] %v12784_v18  ;;  %v12788_v47 = vadd.f32 %v5759_v24, %v5406_v15  ;;  %6040 = vmatprep.mubr.bf16.mxu0 %v14719_v37  ;;  %6393 = vmatprep.mubr.bf16.mxu1 %v14720_v63  ;;  %v14724_v15 = vld [vmem:[#allocation155_spill] sm:$0xff]  ;;  %v14725_v24 = vld [vmem:[#allocation156_spill] sm:$0xff]  ;;  %v14727_v63 = vld [vmem:[#allocation157_spill] sm:$0xff] }
 0x45f   : > { %v5408_v3 = vpop.f32.mrf.mxu0  ;;  %v5761_v1 = vpop.f32.mrf.mxu1 }
 0x460   : > { %14718 = vst [vmem:[#allocation31_spill] sm:$0xff] %v12788_v47  ;;  %v12792_v51 = vadd.f32 %v5761_v1, %v5408_v3  ;;  %v14728_v1 = vld [vmem:[#allocation158_spill] sm:$0xff] }
 0x461   : > { %v5410_v48 = vpop.f32.mrf.mxu0  ;;  %v5763_v8 = vpop.f32.mrf.mxu1 }
 0x462   : > { %14721 = vst [vmem:[#allocation32_spill] sm:$0xff] %v12792_v51  ;;  %v12794_v36 = vadd.f32 %v5763_v8, %v5410_v48 }
 0x463   : > { %v5412_v45 = vpop.f32.mrf.mxu0  ;;  %v5765_v18 = vpop.f32.mrf.mxu1 }
 0x464   : > { %14722 = vst [vmem:[#allocation166_spill] sm:$0xff] %v12794_v36  ;;  %v12796_v9 = vadd.f32 %v5765_v18, %v5412_v45 }
 0x465   : > { %v5416_v53 = vpop.f32.mrf.mxu0  ;;  %v5769_v49 = vpop.f32.mrf.mxu1  ;;  %6041 = vmatmul.mubr.bf16.vlgmr.msra.gmra.mxu0 %v14724_v15  ;;  %6394 = vmatmul.mubr.bf16.vlgmr.msra.gmra.mxu1 %v14725_v24 }
 0x466   : > { %14723 = vst [vmem:[#allocation33_spill] sm:$0xff] %v12796_v9  ;;  %v12800_v37 = vadd.f32 %v5769_v49, %v5416_v53  ;;  %6050 = vmatprep.mubr.bf16.mxu0 %v14727_v63  ;;  %6403 = vmatprep.mubr.bf16.mxu1 %v14728_v1  ;;  %v14732_v53 = vld [vmem:[#allocation160_spill] sm:$0xff]  ;;  %v14733_v49 = vld [vmem:[#allocation161_spill] sm:$0xff]  ;;  %v14735_v1 = vld [vmem:[#allocation163_spill] sm:$0xff] }
 0x467   : > { %v5418_v3 = vpop.f32.mrf.mxu0  ;;  %v5771_v51 = vpop.f32.mrf.mxu1 }
 0x468   : > { %14726 = vst [vmem:[#allocation34_spill] sm:$0xff] %v12800_v37  ;;  %v12804_v8 = vadd.f32 %v5771_v51, %v5418_v3  ;;  %v14736_v51 = vld [vmem:[#allocation164_spill] sm:$0xff] }
 0x469   : > { %v5420_v48 = vpop.f32.mrf.mxu0  ;;  %v5773_v36 = vpop.f32.mrf.mxu1 }
 0x46a   : > { %14729 = vst [vmem:[#allocation167_spill] sm:$0xff] %v12804_v8  ;;  %v12806_v18 = vadd.f32 %v5773_v36, %v5420_v48 }
 0x46b   : > { %v5422_v45 = vpop.f32.mrf.mxu0  ;;  %v5775_v9 = vpop.f32.mrf.mxu1 }
 0x46c   : > { %14730 = vst [vmem:[#allocation170_spill] sm:$0xff] %v12806_v18  ;;  %v12808_v47 = vadd.f32 %v5775_v9, %v5422_v45 }
 0x46d   : > { %v5426_v15 = vpop.f32.mrf.mxu0  ;;  %v5779_v24 = vpop.f32.mrf.mxu1  ;;  %6051 = vmatmul.mubr.bf16.gmra.mxu0 %v14732_v53  ;;  %6404 = vmatmul.mubr.bf16.gmra.mxu1 %v14733_v49 }
 0x46e   : > { %14731 = vst [vmem:[#allocation173_spill] sm:$0xff] %v12808_v47  ;;  %v12812_v63 = vadd.f32 %v5779_v24, %v5426_v15  ;;  %6060 = vmatprep.mubr.bf16.mxu0 %v14735_v1  ;;  %6413 = vmatprep.mubr.bf16.mxu1 %v14736_v51  ;;  %v14740_v15 = vld [vmem:[#allocation168_spill] sm:$0xff]  ;;  %v14741_v24 = vld [vmem:[#allocation169_spill] sm:$0xff]  ;;  %v14743_v51 = vld [vmem:[#allocation171_spill] sm:$0xff] }
 0x46f   : > { %v5428_v3 = vpop.f32.mrf.mxu0  ;;  %v5781_v8 = vpop.f32.mrf.mxu1 }
 0x470   : > { %14734 = vst [vmem:[#allocation35_spill] sm:$0xff] %v12812_v63  ;;  %v12816_v36 = vadd.f32 %v5781_v8, %v5428_v3  ;;  %v14744_v8 = vld [vmem:[#allocation172_spill] sm:$0xff] }
 0x471   : > { %v5430_v48 = vpop.f32.mrf.mxu0  ;;  %v5783_v18 = vpop.f32.mrf.mxu1 }
 0x472   : > { %14737 = vst [vmem:[#allocation36_spill] sm:$0xff] %v12816_v36  ;;  %v12818_v9 = vadd.f32 %v5783_v18, %v5430_v48 }
 0x473   : > { %v5432_v45 = vpop.f32.mrf.mxu0  ;;  %v5785_v47 = vpop.f32.mrf.mxu1 }
 0x474   : > { %14738 = vst [vmem:[#allocation174_spill] sm:$0xff] %v12818_v9  ;;  %v12820_v37 = vadd.f32 %v5785_v47, %v5432_v45 }
 0x475   : > { %v5436_v53 = vpop.f32.mrf.mxu0  ;;  %v5789_v49 = vpop.f32.mrf.mxu1  ;;  %6061 = vmatmul.mubr.bf16.gmra.mxu0 %v14740_v15  ;;  %6414 = vmatmul.mubr.bf16.gmra.mxu1 %v14741_v24 }
 0x476   : > { %14739 = vst [vmem:[#allocation37_spill] sm:$0xff] %v12820_v37  ;;  %v12824_v1 = vadd.f32 %v5789_v49, %v5436_v53  ;;  %6070 = vmatprep.mubr.bf16.mxu0 %v14743_v51  ;;  %6423 = vmatprep.mubr.bf16.mxu1 %v14744_v8  ;;  %v14748_v53 = vld [vmem:[#allocation176_spill] sm:$0xff]  ;;  %v14749_v49 = vld [vmem:[#allocation177_spill] sm:$0xff]  ;;  %v14751_v8 = vld [vmem:[#allocation179_spill] sm:$0xff] }
 0x477   : > { %v5438_v3 = vpop.f32.mrf.mxu0  ;;  %v5791_v36 = vpop.f32.mrf.mxu1 }
 0x478   : > { %14742 = vst [vmem:[#allocation38_spill] sm:$0xff] %v12824_v1  ;;  %v12828_v18 = vadd.f32 %v5791_v36, %v5438_v3  ;;  %v14752_v36 = vld [vmem:[#allocation180_spill] sm:$0xff] }
 0x479   : > { %v5440_v48 = vpop.f32.mrf.mxu0  ;;  %v5793_v9 = vpop.f32.mrf.mxu1 }
 0x47a   : > { %14745 = vst [vmem:[#allocation175_spill] sm:$0xff] %v12828_v18  ;;  %v12830_v47 = vadd.f32 %v5793_v9, %v5440_v48 }
 0x47b   : > { %v5442_v45 = vpop.f32.mrf.mxu0  ;;  %v5795_v37 = vpop.f32.mrf.mxu1 }
 0x47c   : > { %14746 = vst [vmem:[#allocation178_spill] sm:$0xff] %v12830_v47  ;;  %v12832_v63 = vadd.f32 %v5795_v37, %v5442_v45 }
 0x47d   : > { %v5446_v15 = vpop.f32.mrf.mxu0  ;;  %v5799_v24 = vpop.f32.mrf.mxu1  ;;  %6071 = vmatmul.mubr.bf16.gmra.mxu0 %v14748_v53  ;;  %6424 = vmatmul.mubr.bf16.gmra.mxu1 %v14749_v49 }
 0x47e   : > { %14747 = vst [vmem:[#allocation181_spill] sm:$0xff] %v12832_v63  ;;  %v12836_v51 = vadd.f32 %v5799_v24, %v5446_v15  ;;  %6080 = vmatprep.mubr.bf16.mxu0 %v14751_v8  ;;  %6433 = vmatprep.mubr.bf16.mxu1 %v14752_v36  ;;  %v14756_v15 = vld [vmem:[#allocation184_spill] sm:$0xff]  ;;  %v14757_v24 = vld [vmem:[#allocation185_spill] sm:$0xff]  ;;  %v14759_v36 = vld [vmem:[#allocation187_spill] sm:$0xff] }
 0x47f   : > { %v5448_v3 = vpop.f32.mrf.mxu0  ;;  %v5801_v18 = vpop.f32.mrf.mxu1 }
 0x480   : > { %14750 = vst [vmem:[#allocation39_spill] sm:$0xff] %v12836_v51  ;;  %v12840_v9 = vadd.f32 %v5801_v18, %v5448_v3  ;;  %v14760_v18 = vld [vmem:[#allocation188_spill] sm:$0xff] }
 0x481   : > { %v5450_v48 = vpop.f32.mrf.mxu0  ;;  %v5803_v47 = vpop.f32.mrf.mxu1 }
 0x482   : > { %14753 = vst [vmem:[#allocation40_spill] sm:$0xff] %v12840_v9  ;;  %v12842_v37 = vadd.f32 %v5803_v47, %v5450_v48 }
 0x483   : > { %v5452_v45 = vpop.f32.mrf.mxu0  ;;  %v5805_v63 = vpop.f32.mrf.mxu1 }
 0x484   : > { %14754 = vst [vmem:[#allocation182_spill] sm:$0xff] %v12842_v37  ;;  %v12844_v1 = vadd.f32 %v5805_v63, %v5452_v45 }
 0x485   : > { %v5456_v53 = vpop.f32.mrf.mxu0  ;;  %v5809_v49 = vpop.f32.mrf.mxu1  ;;  %6081 = vmatmul.mubr.bf16.gmra.mxu0 %v14756_v15  ;;  %6434 = vmatmul.mubr.bf16.gmra.mxu1 %v14757_v24 }
 0x486   : > { %14755 = vst [vmem:[#allocation41_spill] sm:$0xff] %v12844_v1  ;;  %v12848_v8 = vadd.f32 %v5809_v49, %v5456_v53  ;;  %6090 = vmatprep.mubr.bf16.mxu0 %v14759_v36  ;;  %6443 = vmatprep.mubr.bf16.mxu1 %v14760_v18  ;;  %v14764_v53 = vld [vmem:[#allocation192_spill] sm:$0xff]  ;;  %v14765_v49 = vld [vmem:[#allocation193_spill] sm:$0xff]  ;;  %v14767_v18 = vld [vmem:[#allocation195_spill] sm:$0xff] }
 0x487   : > { %v5458_v3 = vpop.f32.mrf.mxu0  ;;  %v5811_v9 = vpop.f32.mrf.mxu1 }
 0x488   : > { %14758 = vst [vmem:[#allocation42_spill] sm:$0xff] %v12848_v8  ;;  %v12852_v47 = vadd.f32 %v5811_v9, %v5458_v3  ;;  %v14768_v9 = vld [vmem:[#allocation196_spill] sm:$0xff] }
 0x489   : > { %v5460_v48 = vpop.f32.mrf.mxu0  ;;  %v5813_v37 = vpop.f32.mrf.mxu1 }
 0x48a   : > { %14761 = vst [vmem:[#allocation183_spill] sm:$0xff] %v12852_v47  ;;  %v12854_v63 = vadd.f32 %v5813_v37, %v5460_v48 }
 0x48b   : > { %v5462_v45 = vpop.f32.mrf.mxu0  ;;  %v5815_v1 = vpop.f32.mrf.mxu1 }
 0x48c   : > { %14762 = vst [vmem:[#allocation186_spill] sm:$0xff] %v12854_v63  ;;  %v12856_v51 = vadd.f32 %v5815_v1, %v5462_v45 }
 0x48d   : > { %v5466_v15 = vpop.f32.mrf.mxu0  ;;  %v5819_v24 = vpop.f32.mrf.mxu1  ;;  %6091 = vmatmul.mubr.bf16.gmra.mxu0 %v14764_v53  ;;  %6444 = vmatmul.mubr.bf16.gmra.mxu1 %v14765_v49 }
 0x48e   : > { %14763 = vst [vmem:[#allocation189_spill] sm:$0xff] %v12856_v51  ;;  %v12860_v36 = vadd.f32 %v5819_v24, %v5466_v15  ;;  %6100 = vmatprep.mubr.bf16.mxu0 %v14767_v18  ;;  %6453 = vmatprep.mubr.bf16.mxu1 %v14768_v9  ;;  %v14772_v15 = vld [vmem:[#allocation200_spill] sm:$0xff]  ;;  %v14773_v24 = vld [vmem:[#allocation201_spill] sm:$0xff]  ;;  %v14775_v9 = vld [vmem:[#allocation203_spill] sm:$0xff] }
 0x48f   : > { %v5468_v3 = vpop.f32.mrf.mxu0  ;;  %v5821_v47 = vpop.f32.mrf.mxu1 }
 0x490   : > { %14766 = vst [vmem:[#allocation43_spill] sm:$0xff] %v12860_v36  ;;  %v12864_v37 = vadd.f32 %v5821_v47, %v5468_v3  ;;  %v14776_v47 = vld [vmem:[#allocation204_spill] sm:$0xff] }
 0x491   : > { %v5470_v48 = vpop.f32.mrf.mxu0  ;;  %v5823_v63 = vpop.f32.mrf.mxu1 }
 0x492   : > { %14769 = vst [vmem:[#allocation44_spill] sm:$0xff] %v12864_v37  ;;  %v12866_v1 = vadd.f32 %v5823_v63, %v5470_v48 }
 0x493   : > { %v5472_v45 = vpop.f32.mrf.mxu0  ;;  %v5825_v51 = vpop.f32.mrf.mxu1 }
 0x494   : > { %14770 = vst [vmem:[#allocation190_spill] sm:$0xff] %v12866_v1  ;;  %v12868_v8 = vadd.f32 %v5825_v51, %v5472_v45 }
 0x495   : > { %v5476_v53 = vpop.f32.mrf.mxu0  ;;  %v5829_v49 = vpop.f32.mrf.mxu1  ;;  %6101 = vmatmul.mubr.bf16.gmra.mxu0 %v14772_v15  ;;  %6454 = vmatmul.mubr.bf16.gmra.mxu1 %v14773_v24 }
 0x496   : > { %14771 = vst [vmem:[#allocation45_spill] sm:$0xff] %v12868_v8  ;;  %v12872_v18 = vadd.f32 %v5829_v49, %v5476_v53  ;;  %6110 = vmatprep.mubr.bf16.mxu0 %v14775_v9  ;;  %6463 = vmatprep.mubr.bf16.mxu1 %v14776_v47  ;;  %v14780_v53 = vld [vmem:[#allocation208_spill] sm:$0xff]  ;;  %v14781_v49 = vld [vmem:[#allocation209_spill] sm:$0xff]  ;;  %v14783_v47 = vld [vmem:[#allocation211_spill] sm:$0xff] }
 0x497   : > { %v5478_v3 = vpop.f32.mrf.mxu0  ;;  %v5831_v37 = vpop.f32.mrf.mxu1 }
 0x498   : > { %14774 = vst [vmem:[#allocation46_spill] sm:$0xff] %v12872_v18  ;;  %v12876_v63 = vadd.f32 %v5831_v37, %v5478_v3  ;;  %v14784_v37 = vld [vmem:[#allocation212_spill] sm:$0xff] }
 0x499   : > { %v5480_v48 = vpop.f32.mrf.mxu0  ;;  %v5833_v1 = vpop.f32.mrf.mxu1 }
 0x49a   : > { %14777 = vst [vmem:[#allocation191_spill] sm:$0xff] %v12876_v63  ;;  %v12878_v51 = vadd.f32 %v5833_v1, %v5480_v48 }
 0x49b   : > { %v5482_v45 = vpop.f32.mrf.mxu0  ;;  %v5835_v8 = vpop.f32.mrf.mxu1 }
 0x49c   : > { %14778 = vst [vmem:[#allocation194_spill] sm:$0xff] %v12878_v51  ;;  %v12880_v36 = vadd.f32 %v5835_v8, %v5482_v45 }
 0x49d   : > { %v5486_v15 = vpop.f32.mrf.mxu0  ;;  %v5839_v24 = vpop.f32.mrf.mxu1  ;;  %6111 = vmatmul.mubr.bf16.gmra.mxu0 %v14780_v53  ;;  %6464 = vmatmul.mubr.bf16.gmra.mxu1 %v14781_v49 }
 0x49e   : > { %14779 = vst [vmem:[#allocation197_spill] sm:$0xff] %v12880_v36  ;;  %v12884_v9 = vadd.f32 %v5839_v24, %v5486_v15  ;;  %6120 = vmatprep.mubr.bf16.mxu0 %v14783_v47  ;;  %6473 = vmatprep.mubr.bf16.mxu1 %v14784_v37  ;;  %v14788_v15 = vld [vmem:[#allocation216_spill] sm:$0xff]  ;;  %v14789_v24 = vld [vmem:[#allocation217_spill] sm:$0xff]  ;;  %v14791_v37 = vld [vmem:[#allocation219_spill] sm:$0xff] }
 0x49f   : > { %v5488_v3 = vpop.f32.mrf.mxu0  ;;  %v5841_v63 = vpop.f32.mrf.mxu1 }
 0x4a0   : > { %14782 = vst [vmem:[#allocation47_spill] sm:$0xff] %v12884_v9  ;;  %v12888_v1 = vadd.f32 %v5841_v63, %v5488_v3  ;;  %v14792_v63 = vld [vmem:[#allocation220_spill] sm:$0xff] }
 0x4a1   : > { %v5490_v48 = vpop.f32.mrf.mxu0  ;;  %v5843_v51 = vpop.f32.mrf.mxu1 }
 0x4a2   : > { %14785 = vst [vmem:[#allocation48_spill] sm:$0xff] %v12888_v1  ;;  %v12890_v8 = vadd.f32 %v5843_v51, %v5490_v48 }
 0x4a3   : > { %v5492_v45 = vpop.f32.mrf.mxu0  ;;  %v5845_v36 = vpop.f32.mrf.mxu1 }
 0x4a4   : > { %14786 = vst [vmem:[#allocation198_spill] sm:$0xff] %v12890_v8  ;;  %v12892_v18 = vadd.f32 %v5845_v36, %v5492_v45 }
 0x4a5   : > { %v5496_v53 = vpop.f32.mrf.mxu0  ;;  %v5849_v49 = vpop.f32.mrf.mxu1  ;;  %6121 = vmatmul.mubr.bf16.gmra.mxu0 %v14788_v15  ;;  %6474 = vmatmul.mubr.bf16.gmra.mxu1 %v14789_v24 }
 0x4a6   : > { %14787 = vst [vmem:[#allocation49_spill] sm:$0xff] %v12892_v18  ;;  %v12896_v47 = vadd.f32 %v5849_v49, %v5496_v53  ;;  %6130 = vmatprep.mubr.bf16.mxu0 %v14791_v37  ;;  %6483 = vmatprep.mubr.bf16.mxu1 %v14792_v63  ;;  %v14796_v53 = vld [vmem:[#allocation224_spill] sm:$0xff]  ;;  %v14797_v49 = vld [vmem:[#allocation225_spill] sm:$0xff]  ;;  %v14799_v63 = vld [vmem:[#allocation227_spill] sm:$0xff] }
 0x4a7   : > { %v5498_v3 = vpop.f32.mrf.mxu0  ;;  %v5851_v1 = vpop.f32.mrf.mxu1 }
 0x4a8   : > { %14790 = vst [vmem:[#allocation50_spill] sm:$0xff] %v12896_v47  ;;  %v12900_v51 = vadd.f32 %v5851_v1, %v5498_v3  ;;  %v14800_v1 = vld [vmem:[#allocation228_spill] sm:$0xff] }
 0x4a9   : > { %v5500_v48 = vpop.f32.mrf.mxu0  ;;  %v5853_v8 = vpop.f32.mrf.mxu1 }
 0x4aa   : > { %14793 = vst [vmem:[#allocation199_spill] sm:$0xff] %v12900_v51  ;;  %v12902_v36 = vadd.f32 %v5853_v8, %v5500_v48 }
 0x4ab   : > { %v5502_v45 = vpop.f32.mrf.mxu0  ;;  %v5855_v18 = vpop.f32.mrf.mxu1 }
 0x4ac   : > { %14794 = vst [vmem:[#allocation202_spill] sm:$0xff] %v12902_v36  ;;  %v12904_v9 = vadd.f32 %v5855_v18, %v5502_v45 }
 0x4ad   : > { %v5506_v15 = vpop.f32.mrf.mxu0  ;;  %v5859_v24 = vpop.f32.mrf.mxu1  ;;  %6131 = vmatmul.mubr.bf16.gmra.mxu0 %v14796_v53  ;;  %6484 = vmatmul.mubr.bf16.gmra.mxu1 %v14797_v49 }
 0x4ae   : > { %14795 = vst [vmem:[#allocation205_spill] sm:$0xff] %v12904_v9  ;;  %v12908_v37 = vadd.f32 %v5859_v24, %v5506_v15  ;;  %6140 = vmatprep.mubr.bf16.mxu0 %v14799_v63  ;;  %6493 = vmatprep.mubr.bf16.mxu1 %v14800_v1  ;;  %v14804_v15 = vld [vmem:[#allocation232_spill] sm:$0xff]  ;;  %v14805_v24 = vld [vmem:[#allocation233_spill] sm:$0xff]  ;;  %v14807_v1 = vld [vmem:[#allocation235_spill] sm:$0xff] }
 0x4af   : > { %v5508_v3 = vpop.f32.mrf.mxu0  ;;  %v5861_v51 = vpop.f32.mrf.mxu1 }
 0x4b0   : > { %14798 = vst [vmem:[#allocation51_spill] sm:$0xff] %v12908_v37  ;;  %v12912_v8 = vadd.f32 %v5861_v51, %v5508_v3  ;;  %v14808_v51 = vld [vmem:[#allocation236_spill] sm:$0xff] }
 0x4b1   : > { %v5510_v48 = vpop.f32.mrf.mxu0  ;;  %v5863_v36 = vpop.f32.mrf.mxu1 }
 0x4b2   : > { %14801 = vst [vmem:[#allocation52_spill] sm:$0xff] %v12912_v8  ;;  %v12914_v18 = vadd.f32 %v5863_v36, %v5510_v48 }
 0x4b3   : > { %v5512_v45 = vpop.f32.mrf.mxu0  ;;  %v5865_v9 = vpop.f32.mrf.mxu1 }
 0x4b4   : > { %14802 = vst [vmem:[#allocation206_spill] sm:$0xff] %v12914_v18  ;;  %v12916_v47 = vadd.f32 %v5865_v9, %v5512_v45 }
 0x4b5   : > { %v5516_v53 = vpop.f32.mrf.mxu0  ;;  %v5869_v49 = vpop.f32.mrf.mxu1  ;;  %6141 = vmatmul.mubr.bf16.gmra.mxu0 %v14804_v15  ;;  %6494 = vmatmul.mubr.bf16.gmra.mxu1 %v14805_v24 }
 0x4b6   : > { %14803 = vst [vmem:[#allocation53_spill] sm:$0xff] %v12916_v47  ;;  %v12920_v63 = vadd.f32 %v5869_v49, %v5516_v53  ;;  %6150 = vmatprep.mubr.bf16.mxu0 %v14807_v1  ;;  %6503 = vmatprep.mubr.bf16.mxu1 %v14808_v51  ;;  %v14812_v53 = vld [vmem:[#allocation240_spill] sm:$0xff]  ;;  %v14813_v49 = vld [vmem:[#allocation241_spill] sm:$0xff]  ;;  %v14815_v51 = vld [vmem:[#allocation243_spill] sm:$0xff] }
 0x4b7   : > { %v5518_v3 = vpop.f32.mrf.mxu0  ;;  %v5871_v8 = vpop.f32.mrf.mxu1 }
 0x4b8   : > { %14806 = vst [vmem:[#allocation54_spill] sm:$0xff] %v12920_v63  ;;  %v12924_v36 = vadd.f32 %v5871_v8, %v5518_v3  ;;  %v14816_v8 = vld [vmem:[#allocation244_spill] sm:$0xff] }
 0x4b9   : > { %v5520_v48 = vpop.f32.mrf.mxu0  ;;  %v5873_v18 = vpop.f32.mrf.mxu1 }
 0x4ba   : > { %14809 = vst [vmem:[#allocation207_spill] sm:$0xff] %v12924_v36  ;;  %v12926_v9 = vadd.f32 %v5873_v18, %v5520_v48 }
 0x4bb   : > { %v5522_v45 = vpop.f32.mrf.mxu0  ;;  %v5875_v47 = vpop.f32.mrf.mxu1 }
 0x4bc   : > { %14810 = vst [vmem:[#allocation210_spill] sm:$0xff] %v12926_v9  ;;  %v12928_v37 = vadd.f32 %v5875_v47, %v5522_v45 }
 0x4bd   : > { %v5526_v15 = vpop.f32.mrf.mxu0  ;;  %v5879_v24 = vpop.f32.mrf.mxu1  ;;  %6151 = vmatmul.mubr.bf16.gmra.mxu0 %v14812_v53  ;;  %6504 = vmatmul.mubr.bf16.gmra.mxu1 %v14813_v49 }
 0x4be   : > { %14811 = vst [vmem:[#allocation213_spill] sm:$0xff] %v12928_v37  ;;  %v12932_v1 = vadd.f32 %v5879_v24, %v5526_v15  ;;  %6160 = vmatprep.mubr.bf16.mxu0 %v14815_v51  ;;  %6513 = vmatprep.mubr.bf16.mxu1 %v14816_v8  ;;  %v14820_v15 = vld [vmem:[#allocation248_spill] sm:$0xff]  ;;  %v14821_v24 = vld [vmem:[#allocation249_spill] sm:$0xff]  ;;  %v14823_v8 = vld [vmem:[#allocation251_spill] sm:$0xff] }
 0x4bf   : > { %v5528_v3 = vpop.f32.mrf.mxu0  ;;  %v5881_v36 = vpop.f32.mrf.mxu1 }
 0x4c0   : > { %14814 = vst [vmem:[#allocation55_spill] sm:$0xff] %v12932_v1  ;;  %v12936_v18 = vadd.f32 %v5881_v36, %v5528_v3  ;;  %v14824_v36 = vld [vmem:[#allocation252_spill] sm:$0xff] }
 0x4c1   : > { %v5530_v48 = vpop.f32.mrf.mxu0  ;;  %v5883_v9 = vpop.f32.mrf.mxu1 }
 0x4c2   : > { %14817 = vst [vmem:[#allocation56_spill] sm:$0xff] %v12936_v18  ;;  %v12938_v47 = vadd.f32 %v5883_v9, %v5530_v48 }
 0x4c3   : > { %v5532_v45 = vpop.f32.mrf.mxu0  ;;  %v5885_v37 = vpop.f32.mrf.mxu1 }
 0x4c4   : > { %14818 = vst [vmem:[#allocation214_spill] sm:$0xff] %v12938_v47  ;;  %v12940_v63 = vadd.f32 %v5885_v37, %v5532_v45 }
 0x4c5   : > { %v5536_v53 = vpop.f32.mrf.mxu0  ;;  %v5889_v49 = vpop.f32.mrf.mxu1  ;;  %6161 = vmatmul.mubr.bf16.gmra.mxu0 %v14820_v15  ;;  %6514 = vmatmul.mubr.bf16.gmra.mxu1 %v14821_v24 }
 0x4c6   : > { %14819 = vst [vmem:[#allocation57_spill] sm:$0xff] %v12940_v63  ;;  %v12944_v51 = vadd.f32 %v5889_v49, %v5536_v53  ;;  %6170 = vmatprep.mubr.bf16.mxu0 %v14823_v8  ;;  %6523 = vmatprep.mubr.bf16.mxu1 %v14824_v36  ;;  %v14828_v53 = vld [vmem:[#allocation256_spill] sm:$0xff]  ;;  %v14829_v49 = vld [vmem:[#allocation257_spill] sm:$0xff]  ;;  %v14831_v36 = vld [vmem:[#allocation259_spill] sm:$0xff] }
 0x4c7   : > { %v5538_v3 = vpop.f32.mrf.mxu0  ;;  %v5891_v18 = vpop.f32.mrf.mxu1 }
 0x4c8   : > { %14822 = vst [vmem:[#allocation58_spill] sm:$0xff] %v12944_v51  ;;  %v12948_v9 = vadd.f32 %v5891_v18, %v5538_v3  ;;  %v14832_v18 = vld [vmem:[#allocation260_spill] sm:$0xff] }
 0x4c9   : > { %v5540_v48 = vpop.f32.mrf.mxu0  ;;  %v5893_v47 = vpop.f32.mrf.mxu1 }
 0x4ca   : > { %14825 = vst [vmem:[#allocation215_spill] sm:$0xff] %v12948_v9  ;;  %v12950_v37 = vadd.f32 %v5893_v47, %v5540_v48 }
 0x4cb   : > { %v5542_v45 = vpop.f32.mrf.mxu0  ;;  %v5895_v63 = vpop.f32.mrf.mxu1 }
 0x4cc   : > { %14826 = vst [vmem:[#allocation218_spill] sm:$0xff] %v12950_v37  ;;  %v12952_v1 = vadd.f32 %v5895_v63, %v5542_v45 }
 0x4cd   : > { %v5546_v15 = vpop.f32.mrf.mxu0  ;;  %v5899_v24 = vpop.f32.mrf.mxu1  ;;  %6171 = vmatmul.mubr.bf16.gmra.mxu0 %v14828_v53  ;;  %6524 = vmatmul.mubr.bf16.gmra.mxu1 %v14829_v49 }
 0x4ce   : > { %14827 = vst [vmem:[#allocation221_spill] sm:$0xff] %v12952_v1  ;;  %v12956_v8 = vadd.f32 %v5899_v24, %v5546_v15  ;;  %6180 = vmatprep.mubr.bf16.mxu0 %v14831_v36  ;;  %6533 = vmatprep.mubr.bf16.mxu1 %v14832_v18  ;;  %v14836_v15 = vld [vmem:[#allocation264_spill] sm:$0xff]  ;;  %v14837_v24 = vld [vmem:[#allocation265_spill] sm:$0xff]  ;;  %v14839_v18 = vld [vmem:[#allocation267_spill] sm:$0xff] }
 0x4cf   : > { %v5548_v3 = vpop.f32.mrf.mxu0  ;;  %v5901_v9 = vpop.f32.mrf.mxu1 }
 0x4d0   : > { %14830 = vst [vmem:[#allocation59_spill] sm:$0xff] %v12956_v8  ;;  %v12960_v47 = vadd.f32 %v5901_v9, %v5548_v3  ;;  %v14840_v9 = vld [vmem:[#allocation268_spill] sm:$0xff] }
 0x4d1   : > { %v5550_v48 = vpop.f32.mrf.mxu0  ;;  %v5903_v37 = vpop.f32.mrf.mxu1 }
 0x4d2   : > { %14833 = vst [vmem:[#allocation60_spill] sm:$0xff] %v12960_v47  ;;  %v12962_v63 = vadd.f32 %v5903_v37, %v5550_v48 }
 0x4d3   : > { %v5552_v45 = vpop.f32.mrf.mxu0  ;;  %v5905_v1 = vpop.f32.mrf.mxu1 }
 0x4d4   : > { %14834 = vst [vmem:[#allocation222_spill] sm:$0xff] %v12962_v63  ;;  %v12964_v51 = vadd.f32 %v5905_v1, %v5552_v45 }
 0x4d5   : > { %v5556_v53 = vpop.f32.mrf.mxu0  ;;  %v5909_v49 = vpop.f32.mrf.mxu1  ;;  %6181 = vmatmul.mubr.bf16.gmra.mxu0 %v14836_v15  ;;  %6534 = vmatmul.mubr.bf16.gmra.mxu1 %v14837_v24 }
 0x4d6   : > { %14835 = vst [vmem:[#allocation61_spill] sm:$0xff] %v12964_v51  ;;  %v12968_v36 = vadd.f32 %v5909_v49, %v5556_v53  ;;  %6190 = vmatprep.mubr.bf16.mxu0 %v14839_v18  ;;  %6543 = vmatprep.mubr.bf16.mxu1 %v14840_v9  ;;  %v14844_v53 = vld [vmem:[#allocation272_spill] sm:$0xff]  ;;  %v14845_v49 = vld [vmem:[#allocation273_spill] sm:$0xff]  ;;  %v14847_v9 = vld [vmem:[#allocation275_spill] sm:$0xff] }
 0x4d7   : > { %v5558_v3 = vpop.f32.mrf.mxu0  ;;  %v5911_v47 = vpop.f32.mrf.mxu1 }
 0x4d8   : > { %14838 = vst [vmem:[#allocation62_spill] sm:$0xff] %v12968_v36  ;;  %v12972_v37 = vadd.f32 %v5911_v47, %v5558_v3  ;;  %v14848_v47 = vld [vmem:[#allocation276_spill] sm:$0xff] }
 0x4d9   : > { %v5560_v48 = vpop.f32.mrf.mxu0  ;;  %v5913_v63 = vpop.f32.mrf.mxu1 }
 0x4da   : > { %14841 = vst [vmem:[#allocation223_spill] sm:$0xff] %v12972_v37  ;;  %v12974_v1 = vadd.f32 %v5913_v63, %v5560_v48 }
 0x4db   : > { %v5562_v45 = vpop.f32.mrf.mxu0  ;;  %v5915_v51 = vpop.f32.mrf.mxu1 }
 0x4dc   : > { %14842 = vst [vmem:[#allocation226_spill] sm:$0xff] %v12974_v1  ;;  %v12976_v8 = vadd.f32 %v5915_v51, %v5562_v45 }
 0x4dd   : > { %v5566_v15 = vpop.f32.mrf.mxu0  ;;  %v5919_v24 = vpop.f32.mrf.mxu1  ;;  %6191 = vmatmul.mubr.bf16.gmra.mxu0 %v14844_v53  ;;  %6544 = vmatmul.mubr.bf16.gmra.mxu1 %v14845_v49 }
 0x4de   : > { %14843 = vst [vmem:[#allocation229_spill] sm:$0xff] %v12976_v8  ;;  %v12980_v18 = vadd.f32 %v5919_v24, %v5566_v15  ;;  %6200 = vmatprep.mubr.bf16.mxu0 %v14847_v9  ;;  %6553 = vmatprep.mubr.bf16.mxu1 %v14848_v47  ;;  %v14852_v15 = vld [vmem:[#allocation280_spill] sm:$0xff]  ;;  %v14853_v24 = vld [vmem:[#allocation281_spill] sm:$0xff]  ;;  %v14855_v47 = vld [vmem:[#allocation283_spill] sm:$0xff] }
 0x4df   : > { %v5568_v3 = vpop.f32.mrf.mxu0  ;;  %v5921_v37 = vpop.f32.mrf.mxu1 }
 0x4e0   : > { %14846 = vst [vmem:[#allocation63_spill] sm:$0xff] %v12980_v18  ;;  %v12984_v63 = vadd.f32 %v5921_v37, %v5568_v3  ;;  %v14856_v37 = vld [vmem:[#allocation284_spill] sm:$0xff] }
 0x4e1   : > { %v5570_v48 = vpop.f32.mrf.mxu0  ;;  %v5923_v1 = vpop.f32.mrf.mxu1 }
 0x4e2   : > { %14849 = vst [vmem:[#allocation64_spill] sm:$0xff] %v12984_v63  ;;  %v12986_v51 = vadd.f32 %v5923_v1, %v5570_v48 }
 0x4e3   : > { %v5572_v45 = vpop.f32.mrf.mxu0  ;;  %v5925_v8 = vpop.f32.mrf.mxu1 }
 0x4e4   : > { %14850 = vst [vmem:[#allocation230_spill] sm:$0xff] %v12986_v51  ;;  %v12988_v36 = vadd.f32 %v5925_v8, %v5572_v45 }
 0x4e5   : > { %v5576_v53 = vpop.f32.mrf.mxu0  ;;  %v5929_v49 = vpop.f32.mrf.mxu1  ;;  %6201 = vmatmul.mubr.bf16.gmra.mxu0 %v14852_v15  ;;  %6554 = vmatmul.mubr.bf16.gmra.mxu1 %v14853_v24 }
 0x4e6   : > { %14851 = vst [vmem:[#allocation65_spill] sm:$0xff] %v12988_v36  ;;  %v12992_v9 = vadd.f32 %v5929_v49, %v5576_v53  ;;  %6210 = vmatprep.mubr.bf16.mxu0 %v14855_v47  ;;  %6563 = vmatprep.mubr.bf16.mxu1 %v14856_v37  ;;  %v14860_v53 = vld [vmem:[#allocation288_spill] sm:$0xff]  ;;  %v14861_v49 = vld [vmem:[#allocation289_spill] sm:$0xff]  ;;  %v14863_v37 = vld [vmem:[#allocation291_spill] sm:$0xff] }
 0x4e7   : > { %v5578_v3 = vpop.f32.mrf.mxu0  ;;  %v5931_v63 = vpop.f32.mrf.mxu1 }
 0x4e8   : > { %14854 = vst [vmem:[#allocation66_spill] sm:$0xff] %v12992_v9  ;;  %v12996_v1 = vadd.f32 %v5931_v63, %v5578_v3  ;;  %v14864_v63 = vld [vmem:[#allocation292_spill] sm:$0xff] }
 0x4e9   : > { %v5580_v48 = vpop.f32.mrf.mxu0  ;;  %v5933_v51 = vpop.f32.mrf.mxu1 }
 0x4ea   : > { %14857 = vst [vmem:[#allocation231_spill] sm:$0xff] %v12996_v1  ;;  %v12998_v8 = vadd.f32 %v5933_v51, %v5580_v48 }
 0x4eb   : > { %v5582_v45 = vpop.f32.mrf.mxu0  ;;  %v5935_v36 = vpop.f32.mrf.mxu1 }
 0x4ec   : > { %14858 = vst [vmem:[#allocation234_spill] sm:$0xff] %v12998_v8  ;;  %v13000_v18 = vadd.f32 %v5935_v36, %v5582_v45 }
 0x4ed   : > { %v5586_v15 = vpop.f32.mrf.mxu0  ;;  %v5939_v24 = vpop.f32.mrf.mxu1  ;;  %6211 = vmatmul.mubr.bf16.gmra.mxu0 %v14860_v53  ;;  %6564 = vmatmul.mubr.bf16.gmra.mxu1 %v14861_v49 }
 0x4ee   : > { %14859 = vst [vmem:[#allocation237_spill] sm:$0xff] %v13000_v18  ;;  %v13004_v47 = vadd.f32 %v5939_v24, %v5586_v15  ;;  %6220 = vmatprep.mubr.bf16.mxu0 %v14863_v37  ;;  %6573 = vmatprep.mubr.bf16.mxu1 %v14864_v63  ;;  %v14868_v15 = vld [vmem:[#allocation296_spill] sm:$0xff]  ;;  %v14869_v24 = vld [vmem:[#allocation297_spill] sm:$0xff]  ;;  %v14871_v63 = vld [vmem:[#allocation299_spill] sm:$0xff] }
 0x4ef   : > { %v5588_v3 = vpop.f32.mrf.mxu0  ;;  %v5941_v1 = vpop.f32.mrf.mxu1 }
 0x4f0   : > { %14862 = vst [vmem:[#allocation67_spill] sm:$0xff] %v13004_v47  ;;  %v13008_v51 = vadd.f32 %v5941_v1, %v5588_v3  ;;  %v14872_v1 = vld [vmem:[#allocation300_spill] sm:$0xff] }
 0x4f1   : > { %v5590_v48 = vpop.f32.mrf.mxu0  ;;  %v5943_v8 = vpop.f32.mrf.mxu1 }
 0x4f2   : > { %14865 = vst [vmem:[#allocation68_spill] sm:$0xff] %v13008_v51  ;;  %v13010_v36 = vadd.f32 %v5943_v8, %v5590_v48 }
 0x4f3   : > { %v5592_v45 = vpop.f32.mrf.mxu0  ;;  %v5945_v18 = vpop.f32.mrf.mxu1 }
 0x4f4   : > { %14866 = vst [vmem:[#allocation238_spill] sm:$0xff] %v13010_v36  ;;  %v13012_v9 = vadd.f32 %v5945_v18, %v5592_v45 }
 0x4f5   : > { %v5596_v53 = vpop.f32.mrf.mxu0  ;;  %v5949_v49 = vpop.f32.mrf.mxu1  ;;  %6221 = vmatmul.mubr.bf16.gmra.mxu0 %v14868_v15  ;;  %6574 = vmatmul.mubr.bf16.gmra.mxu1 %v14869_v24 }
 0x4f6   : > { %14867 = vst [vmem:[#allocation69_spill] sm:$0xff] %v13012_v9  ;;  %v13016_v37 = vadd.f32 %v5949_v49, %v5596_v53  ;;  %6230 = vmatprep.mubr.bf16.mxu0 %v14871_v63  ;;  %6583 = vmatprep.mubr.bf16.mxu1 %v14872_v1  ;;  %v14876_v53 = vld [vmem:[#allocation304_spill] sm:$0xff]  ;;  %v14877_v49 = vld [vmem:[#allocation305_spill] sm:$0xff]  ;;  %v14879_v1 = vld [vmem:[#allocation307_spill] sm:$0xff] }
 0x4f7   : > { %v5598_v3 = vpop.f32.mrf.mxu0  ;;  %v5951_v51 = vpop.f32.mrf.mxu1 }
 0x4f8   : > { %14870 = vst [vmem:[#allocation70_spill] sm:$0xff] %v13016_v37  ;;  %v13020_v8 = vadd.f32 %v5951_v51, %v5598_v3  ;;  %v14880_v51 = vld [vmem:[#allocation308_spill] sm:$0xff] }
 0x4f9   : > { %v5600_v48 = vpop.f32.mrf.mxu0  ;;  %v5953_v36 = vpop.f32.mrf.mxu1 }
 0x4fa   : > { %14873 = vst [vmem:[#allocation239_spill] sm:$0xff] %v13020_v8  ;;  %v13022_v18 = vadd.f32 %v5953_v36, %v5600_v48 }
 0x4fb   : > { %v5602_v45 = vpop.f32.mrf.mxu0  ;;  %v5955_v9 = vpop.f32.mrf.mxu1 }
 0x4fc   : > { %14874 = vst [vmem:[#allocation242_spill] sm:$0xff] %v13022_v18  ;;  %v13024_v47 = vadd.f32 %v5955_v9, %v5602_v45 }
 0x4fd   : > { %v5606_v15 = vpop.f32.mrf.mxu0  ;;  %v5959_v24 = vpop.f32.mrf.mxu1  ;;  %6231 = vmatmul.mubr.bf16.gmra.mxu0 %v14876_v53  ;;  %6584 = vmatmul.mubr.bf16.gmra.mxu1 %v14877_v49 }
 0x4fe   : > { %14875 = vst [vmem:[#allocation245_spill] sm:$0xff] %v13024_v47  ;;  %v13028_v63 = vadd.f32 %v5959_v24, %v5606_v15  ;;  %6240 = vmatprep.mubr.bf16.mxu0 %v14879_v1  ;;  %6593 = vmatprep.mubr.bf16.mxu1 %v14880_v51  ;;  %v14884_v15 = vld [vmem:[#allocation312_spill] sm:$0xff]  ;;  %v14885_v24 = vld [vmem:[#allocation313_spill] sm:$0xff]  ;;  %v14887_v51 = vld [vmem:[#allocation315_spill] sm:$0xff] }
 0x4ff   : > { %v5608_v3 = vpop.f32.mrf.mxu0  ;;  %v5961_v8 = vpop.f32.mrf.mxu1 }
 0x500   : > { %14878 = vst [vmem:[#allocation71_spill] sm:$0xff] %v13028_v63  ;;  %v13032_v36 = vadd.f32 %v5961_v8, %v5608_v3  ;;  %v14888_v8 = vld [vmem:[#allocation316_spill] sm:$0xff] }
 0x501   : > { %v5610_v48 = vpop.f32.mrf.mxu0  ;;  %v5963_v18 = vpop.f32.mrf.mxu1 }
 0x502   : > { %14881 = vst [vmem:[#allocation72_spill] sm:$0xff] %v13032_v36  ;;  %v13034_v9 = vadd.f32 %v5963_v18, %v5610_v48 }
 0x503   : > { %v5612_v45 = vpop.f32.mrf.mxu0  ;;  %v5965_v47 = vpop.f32.mrf.mxu1 }
 0x504   : > { %14882 = vst [vmem:[#allocation246_spill] sm:$0xff] %v13034_v9  ;;  %v13036_v37 = vadd.f32 %v5965_v47, %v5612_v45 }
 0x505   : > { %v5616_v53 = vpop.f32.mrf.mxu0  ;;  %v5969_v49 = vpop.f32.mrf.mxu1  ;;  %6241 = vmatmul.mubr.bf16.gmra.mxu0 %v14884_v15  ;;  %6594 = vmatmul.mubr.bf16.gmra.mxu1 %v14885_v24 }
 0x506   : > { %14883 = vst [vmem:[#allocation73_spill] sm:$0xff] %v13036_v37  ;;  %v13040_v1 = vadd.f32 %v5969_v49, %v5616_v53  ;;  %6250 = vmatprep.mubr.bf16.mxu0 %v14887_v51  ;;  %6603 = vmatprep.mubr.bf16.mxu1 %v14888_v8  ;;  %v14892_v53 = vld [vmem:[#allocation320_spill] sm:$0xff]  ;;  %v14893_v49 = vld [vmem:[#allocation321_spill] sm:$0xff]  ;;  %v14895_v8 = vld [vmem:[#allocation323_spill] sm:$0xff] }
 0x507   : > { %v5618_v3 = vpop.f32.mrf.mxu0  ;;  %v5971_v36 = vpop.f32.mrf.mxu1 }
 0x508   : > { %14886 = vst [vmem:[#allocation74_spill] sm:$0xff] %v13040_v1  ;;  %v13044_v18 = vadd.f32 %v5971_v36, %v5618_v3  ;;  %v14896_v36 = vld [vmem:[#allocation324_spill] sm:$0xff] }
 0x509   : > { %v5620_v48 = vpop.f32.mrf.mxu0  ;;  %v5973_v9 = vpop.f32.mrf.mxu1 }
 0x50a   : > { %14889 = vst [vmem:[#allocation247_spill] sm:$0xff] %v13044_v18  ;;  %v13046_v47 = vadd.f32 %v5973_v9, %v5620_v48 }
 0x50b   : > { %v5622_v45 = vpop.f32.mrf.mxu0  ;;  %v5975_v37 = vpop.f32.mrf.mxu1 }
 0x50c   : > { %14890 = vst [vmem:[#allocation250_spill] sm:$0xff] %v13046_v47  ;;  %v13048_v63 = vadd.f32 %v5975_v37, %v5622_v45 }
 0x50d   : > { %v5626_v15 = vpop.f32.mrf.mxu0  ;;  %v5979_v24 = vpop.f32.mrf.mxu1  ;;  %6251 = vmatmul.mubr.bf16.gmra.mxu0 %v14892_v53  ;;  %6604 = vmatmul.mubr.bf16.gmra.mxu1 %v14893_v49 }
 0x50e   : > { %14891 = vst [vmem:[#allocation253_spill] sm:$0xff] %v13048_v63  ;;  %v13052_v51 = vadd.f32 %v5979_v24, %v5626_v15  ;;  %6260 = vmatprep.mubr.bf16.mxu0 %v14895_v8  ;;  %6613 = vmatprep.mubr.bf16.mxu1 %v14896_v36  ;;  %v14900_v15 = vld [vmem:[#allocation328_spill] sm:$0xff]  ;;  %v14901_v24 = vld [vmem:[#allocation329_spill] sm:$0xff]  ;;  %v14903_v36 = vld [vmem:[#allocation331_spill] sm:$0xff] }
 0x50f   : > { %v5628_v3 = vpop.f32.mrf.mxu0  ;;  %v5981_v18 = vpop.f32.mrf.mxu1 }
 0x510   : > { %14894 = vst [vmem:[#allocation75_spill] sm:$0xff] %v13052_v51  ;;  %v13056_v9 = vadd.f32 %v5981_v18, %v5628_v3  ;;  %v14904_v18 = vld [vmem:[#allocation332_spill] sm:$0xff] }
 0x511   : > { %v5630_v48 = vpop.f32.mrf.mxu0  ;;  %v5983_v47 = vpop.f32.mrf.mxu1 }
 0x512   : > { %14897 = vst [vmem:[#allocation76_spill] sm:$0xff] %v13056_v9  ;;  %v13058_v37 = vadd.f32 %v5983_v47, %v5630_v48 }
 0x513   : > { %v5632_v45 = vpop.f32.mrf.mxu0  ;;  %v5985_v63 = vpop.f32.mrf.mxu1 }
 0x514   : > { %14898 = vst [vmem:[#allocation254_spill] sm:$0xff] %v13058_v37  ;;  %v13060_v1 = vadd.f32 %v5985_v63, %v5632_v45 }
 0x515   : > { %v5636_v53 = vpop.f32.mrf.mxu0  ;;  %v5989_v49 = vpop.f32.mrf.mxu1  ;;  %6261 = vmatmul.mubr.bf16.gmra.mxu0 %v14900_v15  ;;  %6614 = vmatmul.mubr.bf16.gmra.mxu1 %v14901_v24 }
 0x516   : > { %14899 = vst [vmem:[#allocation77_spill] sm:$0xff] %v13060_v1  ;;  %v13064_v8 = vadd.f32 %v5989_v49, %v5636_v53  ;;  %6270 = vmatprep.mubr.bf16.mxu0 %v14903_v36  ;;  %6623 = vmatprep.mubr.bf16.mxu1 %v14904_v18  ;;  %v14908_v53 = vld [vmem:[#allocation336_spill] sm:$0xff]  ;;  %v14909_v49 = vld [vmem:[#allocation337_spill] sm:$0xff]  ;;  %v14911_v18 = vld [vmem:[#allocation339_spill] sm:$0xff] }
 0x517   : > { %v5638_v3 = vpop.f32.mrf.mxu0  ;;  %v5991_v9 = vpop.f32.mrf.mxu1 }
 0x518   : > { %14902 = vst [vmem:[#allocation78_spill] sm:$0xff] %v13064_v8  ;;  %v13068_v47 = vadd.f32 %v5991_v9, %v5638_v3  ;;  %v14912_v9 = vld [vmem:[#allocation340_spill] sm:$0xff] }
 0x519   : > { %v5640_v48 = vpop.f32.mrf.mxu0  ;;  %v5993_v37 = vpop.f32.mrf.mxu1 }
 0x51a   : > { %14905 = vst [vmem:[#allocation255_spill] sm:$0xff] %v13068_v47  ;;  %v13070_v63 = vadd.f32 %v5993_v37, %v5640_v48 }
 0x51b   : > { %v5642_v45 = vpop.f32.mrf.mxu0  ;;  %v5995_v1 = vpop.f32.mrf.mxu1 }
 0x51c   : > { %14906 = vst [vmem:[#allocation258_spill] sm:$0xff] %v13070_v63  ;;  %v13072_v51 = vadd.f32 %v5995_v1, %v5642_v45 }
 0x51d   : > { %v5646_v15 = vpop.f32.mrf.mxu0  ;;  %v5999_v24 = vpop.f32.mrf.mxu1  ;;  %6271 = vmatmul.mubr.bf16.gmra.mxu0 %v14908_v53  ;;  %6624 = vmatmul.mubr.bf16.gmra.mxu1 %v14909_v49  ;;  %v14916_v49 = vld [vmem:[#allocation344_spill] sm:$0xff] }
 0x51e   : > { %14907 = vst [vmem:[#allocation261_spill] sm:$0xff] %v13072_v51  ;;  %v13076_v36 = vadd.f32 %v5999_v24, %v5646_v15  ;;  %6280 = vmatprep.mubr.bf16.mxu0 %v14911_v18  ;;  %6633 = vmatprep.mubr.bf16.mxu1 %v14912_v9  ;;  %v14917_v24 = vld [vmem:[#allocation345_spill] sm:$0xff]  ;;  %v14918_v9 = vld [vmem:[#allocation347_spill] sm:$0xff] }
 0x51f   : > { %v5648_v3 = vpop.f32.mrf.mxu0  ;;  %v6001_v47 = vpop.f32.mrf.mxu1 }
 0x520   : > { %14910 = vst [vmem:[#allocation79_spill] sm:$0xff] %v13076_v36  ;;  %v13080_v37 = vadd.f32 %v6001_v47, %v5648_v3  ;;  %v14919_v47 = vld [vmem:[#allocation348_spill] sm:$0xff] }
 0x521   : > { %v5650_v48 = vpop.f32.mrf.mxu0  ;;  %v6003_v63 = vpop.f32.mrf.mxu1  ;;  %v564_v3 = vld [vmem:[#allocation2 + $0x4d8] sm:$0xff] }
 0x522   : > { %14913 = vst [vmem:[#allocation80_spill] sm:$0xff] %v13080_v37  ;;  %v13082_v1 = vadd.f32 %v6003_v63, %v5650_v48 }
 0x523   : > { %v5652_v45 = vpop.f32.mrf.mxu0  ;;  %v6005_v51 = vpop.f32.mrf.mxu1 }
 0x524   : > { %14914 = vst [vmem:[#allocation262_spill] sm:$0xff] %v13082_v1  ;;  %v13084_v8 = vadd.f32 %v6005_v51, %v5652_v45  ;;  %v565_v51 = vld [vmem:[#allocation2 + $0x18] sm:$0xff] }
 0x525   : > { %v6042_v53 = vpop.f32.mrf.mxu0  ;;  %6281 = vmatmul.mubr.bf16.gmra.mxu0 %v14916_v49  ;;  %v6395_v15 = vpop.f32.mrf.mxu1  ;;  %6634 = vmatmul.mubr.bf16.gmra.mxu1 %v14917_v24  ;;  %v568_v24 = vld [vmem:[#allocation2 + $0x330] sm:$0xff] }
 0x526   : > { %14915 = vst [vmem:[#allocation81_spill] sm:$0xff] %v13084_v8  ;;  %v6043_v18 = vadd.f32 %v6042_v53, %v12704_v23  ;;  %6290 = vmatprep.mubr.bf16.mxu0 %v14918_v9  ;;  %6643 = vmatprep.mubr.bf16.mxu1 %v14919_v47 }
 0x527   : > { %v6044_v37 = vpop.f32.mrf.mxu0  ;;  %v6397_v63 = vpop.f32.mrf.mxu1 }
 0x528   : > { %v6396_v48 = vadd.f32 %v6395_v15, %v6043_v18  ;;  %v6045_v1 = vadd.f32 %v6044_v37, %v12708_v44  ;;  %v14920_v15 = vld [vmem:[#allocation350_spill] sm:$0xff]  ;;  %v14921_v18 = vld [vmem:[#allocation351_spill] sm:$0xff] }
 0x529   : > { %v6046_v45 = vpop.f32.mrf.mxu0  ;;  %v6399_v8 = vpop.f32.mrf.mxu1 }
 0x52a   : > { %v6716_v36 = vadd.f32 %v6396_v48, %v564_v3  ;;  %v6398_v49 = vadd.f32 %v6397_v63, %v6045_v1  ;;  %v6047_v42 = vadd.f32 %v6046_v45, %v12710_v35  ;;  %v573_v3 = vld [vmem:[#allocation2 + $0x498] sm:$0xff] }
 0x52b   : > { %v6048_v30 = vpop.f32.mrf.mxu0  ;;  %v6401_v23 = vpop.f32.mrf.mxu1 }
 0x52c   : > { %6972 = vst [vmem:[#allocation2 + $0x4d8] sm:$0xff] %v6716_v36  ;;  %v6717_v53 = vadd.f32 %v6398_v49, %v565_v51  ;;  %v6400_v9 = vadd.f32 %v6399_v8, %v6047_v42  ;;  %v6049_v47 = vadd.f32 %v6048_v30, %v12712_v28  ;;  %v572_v36 = vld [vmem:[#allocation2 + $0x518] sm:$0xff] }
 0x52d   : > { %v6052_v57 = vpop.f32.mrf.mxu0  ;;  %6291 = vmatmul.mubr.bf16.gmra.mxu0 %v12318_v0  ;;  %v6405_v44 = vpop.f32.mrf.mxu1  ;;  %6644 = vmatmul.mubr.bf16.gmra.mxu1 %v12320_v59 }
 0x52e   : > { %6973 = vst [vmem:[#allocation2 + $0x18] sm:$0xff] %v6717_v53  ;;  %v6720_v37 = vadd.f32 %v6400_v9, %v568_v24  ;;  %v6402_v1 = vadd.f32 %v6401_v23, %v6049_v47  ;;  %v6053_v35 = vadd.f32 %v6052_v57, %v12716_v40  ;;  %6300 = vmatprep.mubr.bf16.mxu0 %v14920_v15  ;;  %v576_v57 = vld [vmem:[#allocation2 + $0x508] sm:$0xff] }
 0x52f   : > { %6653 = vmatprep.mubr.bf16.mxu1 %v14921_v18  ;;  %v6054_v42 = vpop.f32.mrf.mxu0  ;;  %v6407_v8 = vpop.f32.mrf.mxu1  ;;  %v581_v18 = vld [vmem:[#allocation2 + $0x740] sm:$0xff] }
 0x530   : > { %6976 = vst [vmem:[#allocation2 + $0x330] sm:$0xff] %v6720_v37  ;;  %v6721_v30 = vadd.f32 %v6402_v1, %v569_v5  ;;  %v6406_v28 = vadd.f32 %v6405_v44, %v6053_v35  ;;  %v6055_v0 = vadd.f32 %v6054_v42, %v12720_v41  ;;  %v577_v5 = vld [vmem:[#allocation2 + $0x720] sm:$0xff]  ;;  %v580_v37 = vld [vmem:[#allocation2 + $0x338] sm:$0xff] }
 0x531   : > { %v6056_v63 = vpop.f32.mrf.mxu0  ;;  %v6409_v59 = vpop.f32.mrf.mxu1 }
 0x532   : > { %6977 = vst [vmem:[#allocation2 + $0x448] sm:$0xff] %v6721_v30  ;;  %v6724_v48 = vadd.f32 %v6406_v28, %v572_v36  ;;  %v6408_v51 = vadd.f32 %v6407_v8, %v6055_v0  ;;  %v6057_v40 = vadd.f32 %v6056_v63, %v12722_v14  ;;  %v584_v30 = vld [vmem:[#allocation2 + $0x5b8] sm:$0xff]  ;;  %v585_v63 = vld [vmem:[#allocation2 + $0x568] sm:$0xff] }
 0x533   : > { %v6058_v45 = vpop.f32.mrf.mxu0  ;;  %v6411_v49 = vpop.f32.mrf.mxu1 }
 0x534   : > { %6980 = vst [vmem:[#allocation2 + $0x518] sm:$0xff] %v6724_v48  ;;  %v6725_v24 = vadd.f32 %v6408_v51, %v573_v3  ;;  %v6410_v23 = vadd.f32 %v6409_v59, %v6057_v40  ;;  %v6059_v53 = vadd.f32 %v6058_v45, %v12724_v7  ;;  %v588_v40 = vld [vmem:[#allocation2 + $0x690] sm:$0xff] }
 0x535   : > { %v6062_v9 = vpop.f32.mrf.mxu0  ;;  %6301 = vmatmul.mubr.bf16.gmra.mxu0 %v12338_v11  ;;  %v6415_v41 = vpop.f32.mrf.mxu1  ;;  %6654 = vmatmul.mubr.bf16.gmra.mxu1 %v12340_v33 }
 0x536   : > { %6981 = vst [vmem:[#allocation2 + $0x498] sm:$0xff] %v6725_v24  ;;  %v6728_v47 = vadd.f32 %v6410_v23, %v576_v57  ;;  %v6412_v44 = vadd.f32 %v6411_v49, %v6059_v53  ;;  %v6063_v14 = vadd.f32 %v6062_v9, %v12728_v17  ;;  %6310 = vmatprep.mubr.bf16.mxu0 %v12342_v39  ;;  %v589_v24 = vld [vmem:[#allocation2 + $0x368] sm:$0xff]  ;;  %v592_v9 = vld [vmem:[#allocation2 + $0x1c0] sm:$0xff] }
 0x537   : > { %6663 = vmatprep.mubr.bf16.mxu1 %v12345_v2  ;;  %v6064_v1 = vpop.f32.mrf.mxu0  ;;  %v6417_v35 = vpop.f32.mrf.mxu1 }
 0x538   : > { %6984 = vst [vmem:[#allocation2 + $0x508] sm:$0xff] %v6728_v47  ;;  %v6729_v7 = vadd.f32 %v6412_v44, %v577_v5  ;;  %v6416_v15 = vadd.f32 %v6415_v41, %v6063_v14  ;;  %v6065_v11 = vadd.f32 %v6064_v1, %v12732_v21  ;;  %v593_v14 = vld [vmem:[#allocation2 + $0x280] sm:$0xff] }
 0x539   : > { %v6066_v36 = vpop.f32.mrf.mxu0  ;;  %v6419_v33 = vpop.f32.mrf.mxu1 }
 0x53a   : > { %6985 = vst [vmem:[#allocation2 + $0x720] sm:$0xff] %v6729_v7  ;;  %v6732_v42 = vadd.f32 %v6416_v15, %v580_v37  ;;  %v6418_v8 = vadd.f32 %v6417_v35, %v6065_v11  ;;  %v6067_v17 = vadd.f32 %v6066_v36, %v12734_v12  ;;  %v596_v7 = vld [vmem:[#allocation2 + $0x558] sm:$0xff]  ;;  %v597_v36 = vld [vmem:[#allocation2 + $0x3e0] sm:$0xff] }
 0x53b   : > { %v6068_v39 = vpop.f32.mrf.mxu0  ;;  %v6421_v28 = vpop.f32.mrf.mxu1 }
 0x53c   : > { %6988 = vst [vmem:[#allocation2 + $0x338] sm:$0xff] %v6732_v42  ;;  %v6733_v2 = vadd.f32 %v6418_v8, %v581_v18  ;;  %v6420_v0 = vadd.f32 %v6419_v33, %v6067_v17  ;;  %v6069_v3 = vadd.f32 %v6068_v39, %v12736_v4  ;;  %v600_v17 = vld [vmem:[#allocation2 + $0x70] sm:$0xff] }
 0x53d   : > { %v6072_v59 = vpop.f32.mrf.mxu0  ;;  %6311 = vmatmul.mubr.bf16.gmra.mxu0 %v12358_v34  ;;  %v6425_v21 = vpop.f32.mrf.mxu1  ;;  %6664 = vmatmul.mubr.bf16.gmra.mxu1 %v12360_v31 }
 0x53e   : > { %6989 = vst [vmem:[#allocation2 + $0x740] sm:$0xff] %v6733_v2  ;;  %v6736_v48 = vadd.f32 %v6420_v0, %v584_v30  ;;  %v6422_v51 = vadd.f32 %v6421_v28, %v6069_v3  ;;  %v6073_v12 = vadd.f32 %v6072_v59, %v12740_v55  ;;  %6320 = vmatprep.mubr.bf16.mxu0 %v12362_v38  ;;  %v601_v2 = vld [vmem:[#allocation2 + $0x7b8] sm:$0xff] }
 0x53f   : > { %6673 = vmatprep.mubr.bf16.mxu1 %v12365_v25  ;;  %v6074_v57 = vpop.f32.mrf.mxu0  ;;  %v6427_v45 = vpop.f32.mrf.mxu1  ;;  %v604_v59 = vld [vmem:[#allocation2 + $0x3f8] sm:$0xff] }
 0x540   : > { %6992 = vst [vmem:[#allocation2 + $0x5b8] sm:$0xff] %v6736_v48  ;;  %v6737_v4 = vadd.f32 %v6422_v51, %v585_v63  ;;  %v6426_v49 = vadd.f32 %v6425_v21, %v6073_v12  ;;  %v6075_v34 = vadd.f32 %v6074_v57, %v12744_v61  ;;  %v605_v12 = vld [vmem:[#allocation2 + $0x2e8] sm:$0xff] }
 0x541   : > { %v6076_v23 = vpop.f32.mrf.mxu0  ;;  %v6429_v31 = vpop.f32.mrf.mxu1 }
 0x542   : > { %6993 = vst [vmem:[#allocation2 + $0x568] sm:$0xff] %v6737_v4  ;;  %v6740_v53 = vadd.f32 %v6426_v49, %v588_v40  ;;  %v6428_v5 = vadd.f32 %v6427_v45, %v6075_v34  ;;  %v6077_v55 = vadd.f32 %v6076_v23, %v12746_v13  ;;  %v608_v4 = vld [vmem:[#allocation2 + $0x5e8] sm:$0xff]  ;;  %v609_v23 = vld [vmem:[#allocation2 + $0x5f8] sm:$0xff] }
 0x543   : > { %v6078_v38 = vpop.f32.mrf.mxu0  ;;  %v6431_v41 = vpop.f32.mrf.mxu1 }
 0x544   : > { %6996 = vst [vmem:[#allocation2 + $0x690] sm:$0xff] %v6740_v53  ;;  %v6741_v25 = vadd.f32 %v6428_v5, %v589_v24  ;;  %v6430_v47 = vadd.f32 %v6429_v31, %v6077_v55  ;;  %v6079_v44 = vadd.f32 %v6078_v38, %v12748_v32  ;;  %v14922_v55 = vld [vmem:[#allocation30_spill] sm:$0xff]  ;;  %v14924_v38 = vld [vmem:[#allocation353_spill] sm:$0xff] }
 0x545   : > { %v6082_v37 = vpop.f32.mrf.mxu0  ;;  %6321 = vmatmul.mubr.bf16.gmra.mxu0 %v12378_v50  ;;  %v6435_v61 = vpop.f32.mrf.mxu1  ;;  %6674 = vmatmul.mubr.bf16.gmra.mxu1 %v12380_v52 }
 0x546   : > { %6997 = vst [vmem:[#allocation2 + $0x368] sm:$0xff] %v6741_v25  ;;  %v6744_v1 = vadd.f32 %v6430_v47, %v592_v9  ;;  %v6432_v35 = vadd.f32 %v6431_v41, %v6079_v44  ;;  %v6083_v13 = vadd.f32 %v6082_v37, %v12752_v43  ;;  %6330 = vmatprep.mubr.bf16.mxu0 %v12382_v27  ;;  %v14923_v9 = vld [vmem:[#allocation352_spill] sm:$0xff]  ;;  %v612_v41 = vld [vmem:[#allocation2 + $0x640] sm:$0xff]  ;;  %v613_v37 = vld [vmem:[#allocation2 + $0x250] sm:$0xff] }
 0x547   : > { %6683 = vmatprep.mubr.bf16.mxu1 %v12385_v19  ;;  %v6084_v15 = vpop.f32.mrf.mxu0  ;;  %v6437_v11 = vpop.f32.mrf.mxu1 }
 0x548   : > { %7000 = vst [vmem:[#allocation2 + $0x1c0] sm:$0xff] %v6744_v1  ;;  %v6745_v32 = vadd.f32 %v6432_v35, %v593_v14  ;;  %v6436_v18 = vadd.f32 %v6435_v61, %v6083_v13  ;;  %v6085_v50 = vadd.f32 %v6084_v15, %v12756_v56  ;;  %v14925_v14 = vld [vmem:[#allocation159_spill] sm:$0xff]  ;;  %v14926_v13 = vld [vmem:[#allocation162_spill] sm:$0xff]  ;;  %v616_v15 = vld [vmem:[#allocation2 + $0xe0] sm:$0xff] }
 0x549   : > { %v6086_v33 = vpop.f32.mrf.mxu0  ;;  %v6439_v52 = vpop.f32.mrf.mxu1 }
 0x54a   : > { %7001 = vst [vmem:[#allocation2 + $0x280] sm:$0xff] %v6745_v32  ;;  %v6748_v42 = vadd.f32 %v6436_v18, %v596_v7  ;;  %v6438_v8 = vadd.f32 %v6437_v11, %v6085_v50  ;;  %v6087_v43 = vadd.f32 %v6086_v33, %v12758_v58 }
 0x54b   : > { %v6088_v27 = vpop.f32.mrf.mxu0  ;;  %v6441_v30 = vpop.f32.mrf.mxu1 }
 0x54c   : > { %7004 = vst [vmem:[#allocation2 + $0x558] sm:$0xff] %v6748_v42  ;;  %v6749_v19 = vadd.f32 %v6438_v8, %v597_v36  ;;  %v6440_v39 = vadd.f32 %v6439_v52, %v6087_v43  ;;  %v6089_v28 = vadd.f32 %v6088_v27, %v12760_v22  ;;  %v14927_v36 = vld [vmem:[#allocation165_spill] sm:$0xff]  ;;  %v14928_v8 = vld [vmem:[#allocation354_spill] sm:$0xff] }
 0x54d   : > { %v6092_v0 = vpop.f32.mrf.mxu0  ;;  %6331 = vmatmul.mubr.bf16.gmra.mxu0 %v12398_v26  ;;  %v6445_v56 = vpop.f32.mrf.mxu1  ;;  %6684 = vmatmul.mubr.bf16.gmra.mxu1 %v12400_v46  ;;  %v617_v52 = vld [vmem:[#allocation2 + $0x620] sm:$0xff] }
 0x54e   : > { %7005 = vst [vmem:[#allocation2 + $0x3e0] sm:$0xff] %v6749_v19  ;;  %v6752_v3 = vadd.f32 %v6440_v39, %v600_v17  ;;  %v6442_v63 = vadd.f32 %v6441_v30, %v6089_v28  ;;  %v6093_v58 = vadd.f32 %v6092_v0, %v12764_v62  ;;  %6340 = vmatprep.mubr.bf16.mxu0 %v12402_v6  ;;  %v14929_v17 = vld [vmem:[#allocation355_spill] sm:$0xff]  ;;  %v620_v28 = vld [vmem:[#allocation2 + $0x4e8] sm:$0xff] }
 0x54f   : > { %6693 = vmatprep.mubr.bf16.mxu1 %v12405_v60  ;;  %v6094_v21 = vpop.f32.mrf.mxu0  ;;  %v6447_v48 = vpop.f32.mrf.mxu1  ;;  %v14930_v19 = vld [vmem:[#allocation31_spill] sm:$0xff] }
 0x550   : > { %7008 = vst [vmem:[#allocation2 + $0x70] sm:$0xff] %v6752_v3  ;;  %v6753_v22 = vadd.f32 %v6442_v63, %v601_v2  ;;  %v6446_v51 = vadd.f32 %v6445_v56, %v6093_v58  ;;  %v6095_v26 = vadd.f32 %v6094_v21, %v12768_v20  ;;  %v14931_v63 = vld [vmem:[#allocation32_spill] sm:$0xff] }
 0x551   : > { %v6096_v40 = vpop.f32.mrf.mxu0  ;;  %v6449_v46 = vpop.f32.mrf.mxu1 }
 0x552   : > { %7009 = vst [vmem:[#allocation2 + $0x7b8] sm:$0xff] %v6753_v22  ;;  %v6756_v57 = vadd.f32 %v6446_v51, %v604_v59  ;;  %v6448_v45 = vadd.f32 %v6447_v48, %v6095_v26  ;;  %v6097_v62 = vadd.f32 %v6096_v40, %v12770_v29  ;;  %v621_v59 = vld [vmem:[#allocation2 + $0x310] sm:$0xff]  ;;  %v14932_v26 = vld [vmem:[#allocation166_spill] sm:$0xff] }
 0x553   : > { %v6098_v6 = vpop.f32.mrf.mxu0  ;;  %v6451_v49 = vpop.f32.mrf.mxu1  ;;  %v624_v40 = vld [vmem:[#allocation2 + $0x50] sm:$0xff] }
 0x554   : > { %7012 = vst [vmem:[#allocation2 + $0x3f8] sm:$0xff] %v6756_v57  ;;  %v6757_v60 = vadd.f32 %v6448_v45, %v605_v12  ;;  %v6450_v34 = vadd.f32 %v6449_v46, %v6097_v62  ;;  %v6099_v24 = vadd.f32 %v6098_v6, %v12772_v54 }
 0x555   : > { %v6102_v31 = vpop.f32.mrf.mxu0  ;;  %6341 = vmatmul.mubr.bf16.gmra.mxu0 %v12418_v10  ;;  %v6455_v20 = vpop.f32.mrf.mxu1  ;;  %6694 = vmatmul.mubr.bf16.gmra.mxu1 %v12420_v16 }
 0x556   : > { %7013 = vst [vmem:[#allocation2 + $0x2e8] sm:$0xff] %v6757_v60  ;;  %v6760_v53 = vadd.f32 %v6450_v34, %v608_v4  ;;  %v6452_v5 = vadd.f32 %v6451_v49, %v6099_v24  ;;  %v6103_v29 = vadd.f32 %v6102_v31, %v14922_v55  ;;  %6350 = vmatprep.mubr.bf16.mxu0 %v14923_v9  ;;  %v14933_v4 = vld [vmem:[#allocation33_spill] sm:$0xff]  ;;  %v625_v49 = vld [vmem:[#allocation2 + $0x390] sm:$0xff]  ;;  %v14934_v31 = vld [vmem:[#allocation34_spill] sm:$0xff] }
 0x557   : > { %6703 = vmatprep.mubr.bf16.mxu1 %v14924_v38  ;;  %v6104_v25 = vpop.f32.mrf.mxu0  ;;  %v6457_v47 = vpop.f32.mrf.mxu1  ;;  %v14935_v38 = vld [vmem:[#allocation167_spill] sm:$0xff] }
 0x558   : > { %7016 = vst [vmem:[#allocation2 + $0x5e8] sm:$0xff] %v6760_v53  ;;  %v6761_v54 = vadd.f32 %v6452_v5, %v609_v23  ;;  %v6456_v44 = vadd.f32 %v6455_v20, %v6103_v29  ;;  %v6105_v10 = vadd.f32 %v6104_v25, %v14925_v14  ;;  %v628_v53 = vld [vmem:[#allocation2 + $0x790] sm:$0xff]  ;;  %v629_v25 = vld [vmem:[#allocation2 + $0x680] sm:$0xff] }
 0x559   : > { %v6106_v61 = vpop.f32.mrf.mxu0  ;;  %v6459_v16 = vpop.f32.mrf.mxu1 }
 0x55a   : > { %7017 = vst [vmem:[#allocation2 + $0x5f8] sm:$0xff] %v6761_v54  ;;  %v6764_v1 = vadd.f32 %v6456_v44, %v612_v41  ;;  %v6458_v35 = vadd.f32 %v6457_v47, %v6105_v10  ;;  %v6107_v7 = vadd.f32 %v6106_v61, %v14926_v13  ;;  %v14936_v10 = vld [vmem:[#allocation170_spill] sm:$0xff]  ;;  %v632_v61 = vld [vmem:[#allocation2 + $0xd0] sm:$0xff] }
 0x55b   : > { %v6108_v11 = vpop.f32.mrf.mxu0  ;;  %v6461_v32 = vpop.f32.mrf.mxu1 }
 0x55c   : > { %7020 = vst [vmem:[#allocation2 + $0x640] sm:$0xff] %v6764_v1  ;;  %v6765_v18 = vadd.f32 %v6458_v35, %v613_v37  ;;  %v6460_v50 = vadd.f32 %v6459_v16, %v6107_v7  ;;  %v6109_v33 = vadd.f32 %v6108_v11, %v14927_v36  ;;  %v14937_v7 = vld [vmem:[#allocation173_spill] sm:$0xff] }
 0x55d   : > { %v6112_v42 = vpop.f32.mrf.mxu0  ;;  %6351 = vmatmul.mubr.bf16.gmra.mxu0 %v14928_v8  ;;  %v6465_v43 = vpop.f32.mrf.mxu1  ;;  %6704 = vmatmul.mubr.bf16.gmra.mxu1 %v14929_v17  ;;  %v633_v11 = vld [vmem:[#allocation2 + $0x40] sm:$0xff] }
 0x55e   : > { %7021 = vst [vmem:[#allocation2 + $0x250] sm:$0xff] %v6765_v18  ;;  %v6768_v27 = vadd.f32 %v6460_v50, %v616_v15  ;;  %v6462_v30 = vadd.f32 %v6461_v32, %v6109_v33  ;;  %v6113_v39 = vadd.f32 %v6112_v42, %v14930_v19  ;;  %v14938_v33 = vld [vmem:[#allocation35_spill] sm:$0xff]  ;;  %v636_v42 = vld [vmem:[#allocation2 + $0x758] sm:$0xff] }
 0x55f   : > { %v6114_v2 = vpop.f32.mrf.mxu0  ;;  %v6467_v0 = vpop.f32.mrf.mxu1 }
 0x560   : > { %7024 = vst [vmem:[#allocation2 + $0xe0] sm:$0xff] %v6768_v27  ;;  %v6769_v56 = vadd.f32 %v6462_v30, %v617_v52  ;;  %v6466_v3 = vadd.f32 %v6465_v43, %v6113_v39  ;;  %v6115_v58 = vadd.f32 %v6114_v2, %v14931_v63  ;;  %v14939_v30 = vld [vmem:[#allocation36_spill] sm:$0xff] }
 0x561   : > { %v6116_v21 = vpop.f32.mrf.mxu0  ;;  %v6469_v48 = vpop.f32.mrf.mxu1  ;;  %v637_v39 = vld [vmem:[#allocation2 + $0x178] sm:$0xff] }
 0x562   : > { %7025 = vst [vmem:[#allocation2 + $0x620] sm:$0xff] %v6769_v56  ;;  %v6772_v22 = vadd.f32 %v6466_v3, %v620_v28  ;;  %v6468_v51 = vadd.f32 %v6467_v0, %v6115_v58  ;;  %v6117_v12 = vadd.f32 %v6116_v21, %v14932_v26  ;;  %v14940_v3 = vld [vmem:[#allocation174_spill] sm:$0xff]  ;;  %v640_v58 = vld [vmem:[#allocation2 + $0x7d8] sm:$0xff] }
 0x563   : > { %v6118_v46 = vpop.f32.mrf.mxu0  ;;  %v6471_v57 = vpop.f32.mrf.mxu1 }
 0x564   : > { %7028 = vst [vmem:[#allocation2 + $0x4e8] sm:$0xff] %v6772_v22  ;;  %v6773_v45 = vadd.f32 %v6468_v51, %v621_v59  ;;  %v6470_v62 = vadd.f32 %v6469_v48, %v6117_v12  ;;  %v6119_v6 = vadd.f32 %v6118_v46, %v14933_v4  ;;  %v14941_v51 = vld [vmem:[#allocation37_spill] sm:$0xff]  ;;  %v641_v12 = vld [vmem:[#allocation2 + $0x6d8] sm:$0xff] }
 0x565   : > { %v6122_v60 = vpop.f32.mrf.mxu0  ;;  %v6475_v34 = vpop.f32.mrf.mxu1 }
 0x566   : > { %7029 = vst [vmem:[#allocation2 + $0x310] sm:$0xff] %v6773_v45  ;;  %v6776_v24 = vadd.f32 %v6470_v62, %v624_v40  ;;  %v6472_v23 = vadd.f32 %v6471_v57, %v6119_v6  ;;  %v6123_v20 = vadd.f32 %v6122_v60, %v14934_v31  ;;  %v14942_v62 = vld [vmem:[#allocation38_spill] sm:$0xff]  ;;  %v644_v6 = vld [vmem:[#allocation2 + $0x698] sm:$0xff] }
 0x567   : > { %v6124_v5 = vpop.f32.mrf.mxu0  ;;  %v6477_v55 = vpop.f32.mrf.mxu1 }
 0x568   : > { %7032 = vst [vmem:[#allocation2 + $0x50] sm:$0xff] %v6776_v24  ;;  %v6777_v29 = vadd.f32 %v6472_v23, %v625_v49  ;;  %v6476_v9 = vadd.f32 %v6475_v34, %v6123_v20  ;;  %v6125_v41 = vadd.f32 %v6124_v5, %v14935_v38  ;;  %v14943_v23 = vld [vmem:[#allocation175_spill] sm:$0xff]  ;;  %v645_v20 = vld [vmem:[#allocation2 + $0x3b8] sm:$0xff] }
 0x569   : > { %v6126_v47 = vpop.f32.mrf.mxu0  ;;  %v6479_v54 = vpop.f32.mrf.mxu1 }
 0x56a   : > { %7033 = vst [vmem:[#allocation2 + $0x390] sm:$0xff] %v6777_v29  ;;  %v6780_v44 = vadd.f32 %v6476_v9, %v628_v53  ;;  %v6478_v14 = vadd.f32 %v6477_v55, %v6125_v41  ;;  %v6127_v37 = vadd.f32 %v6126_v47, %v14936_v10  ;;  %v14944_v9 = vld [vmem:[#allocation178_spill] sm:$0xff]  ;;  %v648_v41 = vld [vmem:[#allocation2 + $0x218] sm:$0xff] }
 0x56b   : > { %v6128_v16 = vpop.f32.mrf.mxu0  ;;  %v6481_v1 = vpop.f32.mrf.mxu1 }
 0x56c   : > { %7036 = vst [vmem:[#allocation2 + $0x790] sm:$0xff] %v6780_v44  ;;  %v6781_v35 = vadd.f32 %v6478_v14, %v629_v25  ;;  %v6480_v13 = vadd.f32 %v6479_v54, %v6127_v37  ;;  %v6129_v15 = vadd.f32 %v6128_v16, %v14937_v7  ;;  %v14945_v14 = vld [vmem:[#allocation181_spill] sm:$0xff]  ;;  %v649_v37 = vld [vmem:[#allocation2 + $0x1d8] sm:$0xff] }
 0x56d   : > { %v6132_v32 = vpop.f32.mrf.mxu0  ;;  %v6485_v18 = vpop.f32.mrf.mxu1 }
 0x56e   : > { %7037 = vst [vmem:[#allocation2 + $0x680] sm:$0xff] %v6781_v35  ;;  %v6784_v50 = vadd.f32 %v6480_v13, %v632_v61  ;;  %v6482_v36 = vadd.f32 %v6481_v1, %v6129_v15  ;;  %v6133_v52 = vadd.f32 %v6132_v32, %v14938_v33  ;;  %v14946_v13 = vld [vmem:[#allocation39_spill] sm:$0xff]  ;;  %v652_v15 = vld [vmem:[#allocation2 + $0x388] sm:$0xff] }
 0x56f   : > { %v6134_v8 = vpop.f32.mrf.mxu0  ;;  %v6487_v43 = vpop.f32.mrf.mxu1 }
 0x570   : > { %7040 = vst [vmem:[#allocation2 + $0xd0] sm:$0xff] %v6784_v50  ;;  %v6785_v17 = vadd.f32 %v6482_v36, %v633_v11  ;;  %v6486_v27 = vadd.f32 %v6485_v18, %v6133_v52  ;;  %v6135_v19 = vadd.f32 %v6134_v8, %v14939_v30  ;;  %v14947_v36 = vld [vmem:[#allocation40_spill] sm:$0xff] }
 0x571   : > { %v6136_v28 = vpop.f32.mrf.mxu0  ;;  %v6489_v2 = vpop.f32.mrf.mxu1  ;;  %v653_v52 = vld [vmem:[#allocation2 + $0x278] sm:$0xff] }
 0x572   : > { %7041 = vst [vmem:[#allocation2 + $0x40] sm:$0xff] %v6785_v17  ;;  %v6788_v0 = vadd.f32 %v6486_v27, %v636_v42  ;;  %v6488_v56 = vadd.f32 %v6487_v43, %v6135_v19  ;;  %v6137_v63 = vadd.f32 %v6136_v28, %v14940_v3  ;;  %v14948_v27 = vld [vmem:[#allocation182_spill] sm:$0xff] }
 0x573   : > { %v6138_v59 = vpop.f32.mrf.mxu0  ;;  %v6491_v21 = vpop.f32.mrf.mxu1  ;;  %v656_v19 = vld [vmem:[#allocation2 + $0x1c8] sm:$0xff] }
 0x574   : > { %7044 = vst [vmem:[#allocation2 + $0x758] sm:$0xff] %v6788_v0  ;;  %v6789_v48 = vadd.f32 %v6488_v56, %v637_v39  ;;  %v6490_v22 = vadd.f32 %v6489_v2, %v6137_v63  ;;  %v6139_v26 = vadd.f32 %v6138_v59, %v14941_v51  ;;  %v14949_v56 = vld [vmem:[#allocation41_spill] sm:$0xff] }
 0x575   : > { %v6142_v40 = vpop.f32.mrf.mxu0  ;;  %v6495_v46 = vpop.f32.mrf.mxu1  ;;  %v657_v63 = vld [vmem:[#allocation2 + $0x7c0] sm:$0xff] }
 0x576   : > { %7045 = vst [vmem:[#allocation2 + $0x178] sm:$0xff] %v6789_v48  ;;  %v6792_v57 = vadd.f32 %v6490_v22, %v640_v58  ;;  %v6492_v45 = vadd.f32 %v6491_v21, %v6139_v26  ;;  %v6143_v4 = vadd.f32 %v6142_v40, %v14942_v62  ;;  %v14950_v22 = vld [vmem:[#allocation42_spill] sm:$0xff]  ;;  %v660_v26 = vld [vmem:[#allocation2 + $0x4b0] sm:$0xff] }
 0x577   : > { %v6144_v49 = vpop.f32.mrf.mxu0  ;;  %v6497_v60 = vpop.f32.mrf.mxu1 }
 0x578   : > { %7048 = vst [vmem:[#allocation2 + $0x7d8] sm:$0xff] %v6792_v57  ;;  %v6793_v34 = vadd.f32 %v6492_v45, %v641_v12  ;;  %v6496_v24 = vadd.f32 %v6495_v46, %v6143_v4  ;;  %v6145_v31 = vadd.f32 %v6144_v49, %v14943_v23  ;;  %v14951_v45 = vld [vmem:[#allocation183_spill] sm:$0xff]  ;;  %v661_v4 = vld [vmem:[#allocation2 + $0x318] sm:$0xff] }
 0x579   : > { %v6146_v53 = vpop.f32.mrf.mxu0  ;;  %v6499_v5 = vpop.f32.mrf.mxu1 }
 0x57a   : > { %7049 = vst [vmem:[#allocation2 + $0x6d8] sm:$0xff] %v6793_v34  ;;  %v6796_v55 = vadd.f32 %v6496_v24, %v644_v6  ;;  %v6498_v29 = vadd.f32 %v6497_v60, %v6145_v31  ;;  %v6147_v38 = vadd.f32 %v6146_v53, %v14944_v9  ;;  %v14952_v24 = vld [vmem:[#allocation186_spill] sm:$0xff] }
 0x57b   : > { %v6148_v25 = vpop.f32.mrf.mxu0  ;;  %v6501_v47 = vpop.f32.mrf.mxu1  ;;  %v664_v31 = vld [vmem:[#allocation2 + $0x588] sm:$0xff] }
 0x57c   : > { %7052 = vst [vmem:[#allocation2 + $0x698] sm:$0xff] %v6796_v55  ;;  %v6797_v54 = vadd.f32 %v6498_v29, %v645_v20  ;;  %v6500_v44 = vadd.f32 %v6499_v5, %v6147_v38  ;;  %v6149_v10 = vadd.f32 %v6148_v25, %v14945_v14  ;;  %v14953_v29 = vld [vmem:[#allocation189_spill] sm:$0xff]  ;;  %v665_v38 = vld [vmem:[#allocation2 + $0x648] sm:$0xff] }
 0x57d   : > { %v6152_v61 = vpop.f32.mrf.mxu0  ;;  %v6505_v16 = vpop.f32.mrf.mxu1 }
 0x57e   : > { %7053 = vst [vmem:[#allocation2 + $0x3b8] sm:$0xff] %v6797_v54  ;;  %v6800_v1 = vadd.f32 %v6500_v44, %v648_v41  ;;  %v6502_v35 = vadd.f32 %v6501_v47, %v6149_v10  ;;  %v6153_v7 = vadd.f32 %v6152_v61, %v14946_v13  ;;  %v14954_v44 = vld [vmem:[#allocation43_spill] sm:$0xff]  ;;  %v668_v10 = vld [vmem:[#allocation2 + $0x68] sm:$0xff] }
 0x57f   : > { %v6154_v11 = vpop.f32.mrf.mxu0  ;;  %v6507_v32 = vpop.f32.mrf.mxu1 }
 0x580   : > { %7056 = vst [vmem:[#allocation2 + $0x218] sm:$0xff] %v6800_v1  ;;  %v6801_v18 = vadd.f32 %v6502_v35, %v649_v37  ;;  %v6506_v50 = vadd.f32 %v6505_v16, %v6153_v7  ;;  %v6155_v33 = vadd.f32 %v6154_v11, %v14947_v36  ;;  %v14955_v35 = vld [vmem:[#allocation44_spill] sm:$0xff]  ;;  %v669_v7 = vld [vmem:[#allocation2 + $0x600] sm:$0xff] }
 0x581   : > { %v6156_v42 = vpop.f32.mrf.mxu0  ;;  %v6509_v8 = vpop.f32.mrf.mxu1 }
 0x582   : > { %7057 = vst [vmem:[#allocation2 + $0x1d8] sm:$0xff] %v6801_v18  ;;  %v6804_v43 = vadd.f32 %v6506_v50, %v652_v15  ;;  %v6508_v17 = vadd.f32 %v6507_v32, %v6155_v33  ;;  %v6157_v30 = vadd.f32 %v6156_v42, %v14948_v27  ;;  %v14956_v50 = vld [vmem:[#allocation190_spill] sm:$0xff]  ;;  %v672_v33 = vld [vmem:[#allocation2 + $0x630] sm:$0xff] }
 0x583   : > { %v6158_v39 = vpop.f32.mrf.mxu0  ;;  %v6511_v28 = vpop.f32.mrf.mxu1 }
 0x584   : > { %7060 = vst [vmem:[#allocation2 + $0x388] sm:$0xff] %v6804_v43  ;;  %v6805_v2 = vadd.f32 %v6508_v17, %v653_v52  ;;  %v6510_v0 = vadd.f32 %v6509_v8, %v6157_v30  ;;  %v6159_v3 = vadd.f32 %v6158_v39, %v14949_v56  ;;  %v14957_v17 = vld [vmem:[#allocation45_spill] sm:$0xff]  ;;  %v673_v30 = vld [vmem:[#allocation2 + $0x158] sm:$0xff] }
 0x585   : > { %v6162_v58 = vpop.f32.mrf.mxu0  ;;  %v6515_v59 = vpop.f32.mrf.mxu1 }
 0x586   : > { %7061 = vst [vmem:[#allocation2 + $0x278] sm:$0xff] %v6805_v2  ;;  %v6808_v21 = vadd.f32 %v6510_v0, %v656_v19  ;;  %v6512_v48 = vadd.f32 %v6511_v28, %v6159_v3  ;;  %v6163_v51 = vadd.f32 %v6162_v58, %v14950_v22  ;;  %v14958_v0 = vld [vmem:[#allocation46_spill] sm:$0xff]  ;;  %v676_v3 = vld [vmem:[#allocation2 + $0x7b0] sm:$0xff] }
 0x587   : > { %v6164_v12 = vpop.f32.mrf.mxu0  ;;  %v6517_v40 = vpop.f32.mrf.mxu1 }
 0x588   : > { %7064 = vst [vmem:[#allocation2 + $0x1c8] sm:$0xff] %v6808_v21  ;;  %v6809_v46 = vadd.f32 %v6512_v48, %v657_v63  ;;  %v6516_v57 = vadd.f32 %v6515_v59, %v6163_v51  ;;  %v6165_v62 = vadd.f32 %v6164_v12, %v14951_v45  ;;  %v14959_v48 = vld [vmem:[#allocation191_spill] sm:$0xff]  ;;  %v677_v51 = vld [vmem:[#allocation2 + $0x6c0] sm:$0xff] }
 0x589   : > { %v6166_v6 = vpop.f32.mrf.mxu0  ;;  %v6519_v49 = vpop.f32.mrf.mxu1 }
 0x58a   : > { %7065 = vst [vmem:[#allocation2 + $0x7c0] sm:$0xff] %v6809_v46  ;;  %v6812_v60 = vadd.f32 %v6516_v57, %v660_v26  ;;  %v6518_v34 = vadd.f32 %v6517_v40, %v6165_v62  ;;  %v6167_v23 = vadd.f32 %v6166_v6, %v14952_v24  ;;  %v14960_v57 = vld [vmem:[#allocation194_spill] sm:$0xff]  ;;  %v680_v62 = vld [vmem:[#allocation2 + $0x140] sm:$0xff] }
 0x58b   : > { %v6168_v20 = vpop.f32.mrf.mxu0  ;;  %v6521_v53 = vpop.f32.mrf.mxu1 }
 0x58c   : > { %7068 = vst [vmem:[#allocation2 + $0x4b0] sm:$0xff] %v6812_v60  ;;  %v6813_v5 = vadd.f32 %v6518_v34, %v661_v4  ;;  %v6520_v55 = vadd.f32 %v6519_v49, %v6167_v23  ;;  %v6169_v9 = vadd.f32 %v6168_v20, %v14953_v29  ;;  %v14961_v34 = vld [vmem:[#allocation197_spill] sm:$0xff]  ;;  %v681_v23 = vld [vmem:[#allocation2 + $0x5b0] sm:$0xff] }
 0x58d   : > { %v6172_v41 = vpop.f32.mrf.mxu0  ;;  %v6525_v25 = vpop.f32.mrf.mxu1 }
 0x58e   : > { %7069 = vst [vmem:[#allocation2 + $0x318] sm:$0xff] %v6813_v5  ;;  %v6816_v47 = vadd.f32 %v6520_v55, %v664_v31  ;;  %v6522_v54 = vadd.f32 %v6521_v53, %v6169_v9  ;;  %v6173_v14 = vadd.f32 %v6172_v41, %v14954_v44  ;;  %v14962_v55 = vld [vmem:[#allocation47_spill] sm:$0xff]  ;;  %v684_v9 = vld [vmem:[#allocation2 + $0x1a0] sm:$0xff] }
 0x58f   : > { %v6174_v37 = vpop.f32.mrf.mxu0  ;;  %v6527_v61 = vpop.f32.mrf.mxu1 }
 0x590   : > { %7072 = vst [vmem:[#allocation2 + $0x588] sm:$0xff] %v6816_v47  ;;  %v6817_v16 = vadd.f32 %v6522_v54, %v665_v38  ;;  %v6526_v1 = vadd.f32 %v6525_v25, %v6173_v14  ;;  %v6175_v13 = vadd.f32 %v6174_v37, %v14955_v35  ;;  %v14963_v54 = vld [vmem:[#allocation48_spill] sm:$0xff]  ;;  %v685_v14 = vld [vmem:[#allocation2 + $0x5f0] sm:$0xff] }
 0x591   : > { %v6176_v15 = vpop.f32.mrf.mxu0  ;;  %v6529_v11 = vpop.f32.mrf.mxu1 }
 0x592   : > { %7073 = vst [vmem:[#allocation2 + $0x648] sm:$0xff] %v6817_v16  ;;  %v6820_v32 = vadd.f32 %v6526_v1, %v668_v10  ;;  %v6528_v18 = vadd.f32 %v6527_v61, %v6175_v13  ;;  %v6177_v36 = vadd.f32 %v6176_v15, %v14956_v50  ;;  %v14964_v1 = vld [vmem:[#allocation198_spill] sm:$0xff]  ;;  %v688_v13 = vld [vmem:[#allocation2 + $0x118] sm:$0xff] }
 0x593   : > { %v6178_v52 = vpop.f32.mrf.mxu0  ;;  %v6531_v42 = vpop.f32.mrf.mxu1 }
 0x594   : > { %7076 = vst [vmem:[#allocation2 + $0x68] sm:$0xff] %v6820_v32  ;;  %v6821_v8 = vadd.f32 %v6528_v18, %v669_v7  ;;  %v6530_v43 = vadd.f32 %v6529_v11, %v6177_v36  ;;  %v6179_v27 = vadd.f32 %v6178_v52, %v14957_v17  ;;  %v14965_v18 = vld [vmem:[#allocation49_spill] sm:$0xff]  ;;  %v689_v36 = vld [vmem:[#allocation2 + $0x268] sm:$0xff] }
 0x595   : > { %v6182_v19 = vpop.f32.mrf.mxu0  ;;  %v6535_v39 = vpop.f32.mrf.mxu1 }
 0x596   : > { %7077 = vst [vmem:[#allocation2 + $0x600] sm:$0xff] %v6821_v8  ;;  %v6824_v28 = vadd.f32 %v6530_v43, %v672_v33  ;;  %v6532_v2 = vadd.f32 %v6531_v42, %v6179_v27  ;;  %v6183_v56 = vadd.f32 %v6182_v19, %v14958_v0  ;;  %v14966_v43 = vld [vmem:[#allocation50_spill] sm:$0xff]  ;;  %v692_v27 = vld [vmem:[#allocation2 + $0x438] sm:$0xff] }
 0x597   : > { %v6184_v63 = vpop.f32.mrf.mxu0  ;;  %v6537_v58 = vpop.f32.mrf.mxu1 }
 0x598   : > { %7080 = vst [vmem:[#allocation2 + $0x630] sm:$0xff] %v6824_v28  ;;  %v6825_v59 = vadd.f32 %v6532_v2, %v673_v30  ;;  %v6536_v21 = vadd.f32 %v6535_v39, %v6183_v56  ;;  %v6185_v22 = vadd.f32 %v6184_v63, %v14959_v48  ;;  %v14967_v2 = vld [vmem:[#allocation199_spill] sm:$0xff] }
 0x599   : > { %v6186_v26 = vpop.f32.mrf.mxu0  ;;  %v6539_v12 = vpop.f32.mrf.mxu1  ;;  %v693_v56 = vld [vmem:[#allocation2 + $0x350] sm:$0xff] }
 0x59a   : > { %7081 = vst [vmem:[#allocation2 + $0x158] sm:$0xff] %v6825_v59  ;;  %v6828_v40 = vadd.f32 %v6536_v21, %v676_v3  ;;  %v6538_v46 = vadd.f32 %v6537_v58, %v6185_v22  ;;  %v6187_v45 = vadd.f32 %v6186_v26, %v14960_v57  ;;  %v14968_v21 = vld [vmem:[#allocation202_spill] sm:$0xff] }
 0x59b   : > { %v6188_v4 = vpop.f32.mrf.mxu0  ;;  %v6541_v6 = vpop.f32.mrf.mxu1  ;;  %v696_v22 = vld [vmem:[#allocation2 + $0x488] sm:$0xff] }
 0x59c   : > { %7084 = vst [vmem:[#allocation2 + $0x7b0] sm:$0xff] %v6828_v40  ;;  %v6829_v49 = vadd.f32 %v6538_v46, %v677_v51  ;;  %v6540_v60 = vadd.f32 %v6539_v12, %v6187_v45  ;;  %v6189_v24 = vadd.f32 %v6188_v4, %v14961_v34  ;;  %v14969_v46 = vld [vmem:[#allocation205_spill] sm:$0xff] }
 0x59d   : > { %v6192_v31 = vpop.f32.mrf.mxu0  ;;  %v6545_v20 = vpop.f32.mrf.mxu1  ;;  %v697_v45 = vld [vmem:[#allocation2 + $0x6a0] sm:$0xff] }
 0x59e   : > { %7085 = vst [vmem:[#allocation2 + $0x6c0] sm:$0xff] %v6829_v49  ;;  %v6832_v53 = vadd.f32 %v6540_v60, %v680_v62  ;;  %v6542_v5 = vadd.f32 %v6541_v6, %v6189_v24  ;;  %v6193_v29 = vadd.f32 %v6192_v31, %v14962_v55  ;;  %v14970_v60 = vld [vmem:[#allocation51_spill] sm:$0xff] }
 0x59f   : > { %v6194_v38 = vpop.f32.mrf.mxu0  ;;  %v6547_v41 = vpop.f32.mrf.mxu1  ;;  %v700_v24 = vld [vmem:[#allocation2 + $0x6d0] sm:$0xff] }
 0x5a0   : > { %7088 = vst [vmem:[#allocation2 + $0x140] sm:$0xff] %v6832_v53  ;;  %v6833_v25 = vadd.f32 %v6542_v5, %v681_v23  ;;  %v6546_v47 = vadd.f32 %v6545_v20, %v6193_v29  ;;  %v6195_v44 = vadd.f32 %v6194_v38, %v14963_v54  ;;  %v14971_v5 = vld [vmem:[#allocation52_spill] sm:$0xff]  ;;  %v701_v29 = vld [vmem:[#allocation2 + $0x688] sm:$0xff] }
 0x5a1   : > { %v6196_v10 = vpop.f32.mrf.mxu0  ;;  %v6549_v37 = vpop.f32.mrf.mxu1 }
 0x5a2   : > { %7089 = vst [vmem:[#allocation2 + $0x5b0] sm:$0xff] %v6833_v25  ;;  %v6836_v61 = vadd.f32 %v6546_v47, %v684_v9  ;;  %v6548_v16 = vadd.f32 %v6547_v41, %v6195_v44  ;;  %v6197_v35 = vadd.f32 %v6196_v10, %v14964_v1  ;;  %v14972_v47 = vld [vmem:[#allocation206_spill] sm:$0xff]  ;;  %v704_v44 = vld [vmem:[#allocation2 + $0x458] sm:$0xff] }
 0x5a3   : > { %v6198_v7 = vpop.f32.mrf.mxu0  ;;  %v6551_v15 = vpop.f32.mrf.mxu1 }
 0x5a4   : > { %7092 = vst [vmem:[#allocation2 + $0x1a0] sm:$0xff] %v6836_v61  ;;  %v6837_v11 = vadd.f32 %v6548_v16, %v685_v14  ;;  %v6550_v32 = vadd.f32 %v6549_v37, %v6197_v35  ;;  %v6199_v50 = vadd.f32 %v6198_v7, %v14965_v18  ;;  %v14973_v16 = vld [vmem:[#allocation53_spill] sm:$0xff]  ;;  %v705_v35 = vld [vmem:[#allocation2 + $0x1b8] sm:$0xff] }
 0x5a5   : > { %v6202_v33 = vpop.f32.mrf.mxu0  ;;  %v6555_v52 = vpop.f32.mrf.mxu1 }
 0x5a6   : > { %7093 = vst [vmem:[#allocation2 + $0x5f0] sm:$0xff] %v6837_v11  ;;  %v6840_v42 = vadd.f32 %v6550_v32, %v688_v13  ;;  %v6552_v8 = vadd.f32 %v6551_v15, %v6199_v50  ;;  %v6203_v17 = vadd.f32 %v6202_v33, %v14966_v43  ;;  %v14974_v32 = vld [vmem:[#allocation54_spill] sm:$0xff] }
 0x5a7   : > { %v6204_v30 = vpop.f32.mrf.mxu0  ;;  %v6557_v19 = vpop.f32.mrf.mxu1  ;;  %v708_v50 = vld [vmem:[#allocation2 + $0x528] sm:$0xff] }
 0x5a8   : > { %7096 = vst [vmem:[#allocation2 + $0x118] sm:$0xff] %v6840_v42  ;;  %v6841_v39 = vadd.f32 %v6552_v8, %v689_v36  ;;  %v6556_v28 = vadd.f32 %v6555_v52, %v6203_v17  ;;  %v6205_v0 = vadd.f32 %v6204_v30, %v14967_v2  ;;  %v14975_v8 = vld [vmem:[#allocation207_spill] sm:$0xff]  ;;  %v709_v17 = vld [vmem:[#allocation2 + $0x258] sm:$0xff] }
 0x5a9   : > { %v6206_v3 = vpop.f32.mrf.mxu0  ;;  %v6559_v63 = vpop.f32.mrf.mxu1 }
 0x5aa   : > { %7097 = vst [vmem:[#allocation2 + $0x268] sm:$0xff] %v6841_v39  ;;  %v6844_v58 = vadd.f32 %v6556_v28, %v692_v27  ;;  %v6558_v59 = vadd.f32 %v6557_v19, %v6205_v0  ;;  %v6207_v48 = vadd.f32 %v6206_v3, %v14968_v21  ;;  %v14976_v28 = vld [vmem:[#allocation210_spill] sm:$0xff]  ;;  %v712_v0 = vld [vmem:[#allocation2 + $0x78] sm:$0xff] }
 0x5ab   : > { %v6208_v51 = vpop.f32.mrf.mxu0  ;;  %v6561_v26 = vpop.f32.mrf.mxu1 }
 0x5ac   : > { %7100 = vst [vmem:[#allocation2 + $0x438] sm:$0xff] %v6844_v58  ;;  %v6845_v12 = vadd.f32 %v6558_v59, %v693_v56  ;;  %v6560_v40 = vadd.f32 %v6559_v63, %v6207_v48  ;;  %v6209_v57 = vadd.f32 %v6208_v51, %v14969_v46  ;;  %v14977_v59 = vld [vmem:[#allocation213_spill] sm:$0xff] }
 0x5ad   : > { %v6212_v62 = vpop.f32.mrf.mxu0  ;;  %v6565_v4 = vpop.f32.mrf.mxu1  ;;  %v713_v48 = vld [vmem:[#allocation2 + $0x2a0] sm:$0xff] }
 0x5ae   : > { %7101 = vst [vmem:[#allocation2 + $0x350] sm:$0xff] %v6845_v12  ;;  %v6848_v6 = vadd.f32 %v6560_v40, %v696_v22  ;;  %v6562_v49 = vadd.f32 %v6561_v26, %v6209_v57  ;;  %v6213_v34 = vadd.f32 %v6212_v62, %v14970_v60  ;;  %v14978_v40 = vld [vmem:[#allocation55_spill] sm:$0xff]  ;;  %v716_v57 = vld [vmem:[#allocation2 + $0x7a8] sm:$0xff] }
 0x5af   : > { %v6214_v23 = vpop.f32.mrf.mxu0  ;;  %v6567_v31 = vpop.f32.mrf.mxu1 }
 0x5b0   : > { %7104 = vst [vmem:[#allocation2 + $0x488] sm:$0xff] %v6848_v6  ;;  %v6849_v20 = vadd.f32 %v6562_v49, %v697_v45  ;;  %v6566_v53 = vadd.f32 %v6565_v4, %v6213_v34  ;;  %v6215_v55 = vadd.f32 %v6214_v23, %v14971_v5  ;;  %v14979_v49 = vld [vmem:[#allocation56_spill] sm:$0xff]  ;;  %v717_v34 = vld [vmem:[#allocation2 + $0x530] sm:$0xff] }
 0x5b1   : > { %v6216_v9 = vpop.f32.mrf.mxu0  ;;  %v6569_v38 = vpop.f32.mrf.mxu1 }
 0x5b2   : > { %7105 = vst [vmem:[#allocation2 + $0x6a0] sm:$0xff] %v6849_v20  ;;  %v6852_v41 = vadd.f32 %v6566_v53, %v700_v24  ;;  %v6568_v25 = vadd.f32 %v6567_v31, %v6215_v55  ;;  %v6217_v54 = vadd.f32 %v6216_v9, %v14972_v47  ;;  %v14980_v53 = vld [vmem:[#allocation214_spill] sm:$0xff]  ;;  %v720_v55 = vld [vmem:[#allocation2 + $0x358] sm:$0xff] }
 0x5b3   : > { %v6218_v14 = vpop.f32.mrf.mxu0  ;;  %v6571_v10 = vpop.f32.mrf.mxu1 }
 0x5b4   : > { %7108 = vst [vmem:[#allocation2 + $0x6d0] sm:$0xff] %v6852_v41  ;;  %v6853_v37 = vadd.f32 %v6568_v25, %v701_v29  ;;  %v6570_v61 = vadd.f32 %v6569_v38, %v6217_v54  ;;  %v6219_v1 = vadd.f32 %v6218_v14, %v14973_v16  ;;  %v14981_v25 = vld [vmem:[#allocation57_spill] sm:$0xff] }
 0x5b5   : > { %v6222_v13 = vpop.f32.mrf.mxu0  ;;  %v6575_v7 = vpop.f32.mrf.mxu1  ;;  %v721_v54 = vld [vmem:[#allocation2 + $0x700] sm:$0xff] }
 0x5b6   : > { %7109 = vst [vmem:[#allocation2 + $0x688] sm:$0xff] %v6853_v37  ;;  %v6856_v15 = vadd.f32 %v6570_v61, %v704_v44  ;;  %v6572_v11 = vadd.f32 %v6571_v10, %v6219_v1  ;;  %v6223_v18 = vadd.f32 %v6222_v13, %v14974_v32  ;;  %v14982_v61 = vld [vmem:[#allocation58_spill] sm:$0xff]  ;;  %v724_v1 = vld [vmem:[#allocation2 + $0x3d0] sm:$0xff] }
 0x5b7   : > { %v6224_v36 = vpop.f32.mrf.mxu0  ;;  %v6577_v33 = vpop.f32.mrf.mxu1 }
 0x5b8   : > { %7112 = vst [vmem:[#allocation2 + $0x458] sm:$0xff] %v6856_v15  ;;  %v6857_v52 = vadd.f32 %v6572_v11, %v705_v35  ;;  %v6576_v42 = vadd.f32 %v6575_v7, %v6223_v18  ;;  %v6225_v43 = vadd.f32 %v6224_v36, %v14975_v8  ;;  %v14983_v11 = vld [vmem:[#allocation215_spill] sm:$0xff] }
 0x5b9   : > { %v6226_v27 = vpop.f32.mrf.mxu0  ;;  %v6579_v30 = vpop.f32.mrf.mxu1  ;;  %v725_v18 = vld [vmem:[#allocation2 + $0x230] sm:$0xff] }
 0x5ba   : > { %7113 = vst [vmem:[#allocation2 + $0x1b8] sm:$0xff] %v6857_v52  ;;  %v6860_v19 = vadd.f32 %v6576_v42, %v708_v50  ;;  %v6578_v39 = vadd.f32 %v6577_v33, %v6225_v43  ;;  %v6227_v2 = vadd.f32 %v6226_v27, %v14976_v28  ;;  %v14984_v42 = vld [vmem:[#allocation218_spill] sm:$0xff]  ;;  %v728_v43 = vld [vmem:[#allocation2 + $0x4e0] sm:$0xff] }
 0x5bb   : > { %v6228_v56 = vpop.f32.mrf.mxu0  ;;  %v6581_v3 = vpop.f32.mrf.mxu1 }
 0x5bc   : > { %7116 = vst [vmem:[#allocation2 + $0x528] sm:$0xff] %v6860_v19  ;;  %v6861_v63 = vadd.f32 %v6578_v39, %v709_v17  ;;  %v6580_v58 = vadd.f32 %v6579_v30, %v6227_v2  ;;  %v6229_v21 = vadd.f32 %v6228_v56, %v14977_v59  ;;  %v14985_v39 = vld [vmem:[#allocation221_spill] sm:$0xff] }
 0x5bd   : > { %v6232_v22 = vpop.f32.mrf.mxu0  ;;  %v6585_v51 = vpop.f32.mrf.mxu1  ;;  %v729_v2 = vld [vmem:[#allocation2 + $0x200] sm:$0xff] }
 0x5be   : > { %7117 = vst [vmem:[#allocation2 + $0x258] sm:$0xff] %v6861_v63  ;;  %v6864_v26 = vadd.f32 %v6580_v58, %v712_v0  ;;  %v6582_v12 = vadd.f32 %v6581_v3, %v6229_v21  ;;  %v6233_v46 = vadd.f32 %v6232_v22, %v14978_v40  ;;  %v14986_v58 = vld [vmem:[#allocation59_spill] sm:$0xff] }
 0x5bf   : > { %v6234_v45 = vpop.f32.mrf.mxu0  ;;  %v6587_v62 = vpop.f32.mrf.mxu1  ;;  %v732_v21 = vld [vmem:[#allocation2 + $0x1d0] sm:$0xff] }
 0x5c0   : > { %7120 = vst [vmem:[#allocation2 + $0x78] sm:$0xff] %v6864_v26  ;;  %v6865_v4 = vadd.f32 %v6582_v12, %v713_v48  ;;  %v6586_v6 = vadd.f32 %v6585_v51, %v6233_v46  ;;  %v6235_v60 = vadd.f32 %v6234_v45, %v14979_v49  ;;  %v14987_v12 = vld [vmem:[#allocation60_spill] sm:$0xff]  ;;  %v733_v46 = vld [vmem:[#allocation2 + $0x510] sm:$0xff] }
 0x5c1   : > { %v6236_v24 = vpop.f32.mrf.mxu0  ;;  %v6589_v23 = vpop.f32.mrf.mxu1 }
 0x5c2   : > { %7121 = vst [vmem:[#allocation2 + $0x2a0] sm:$0xff] %v6865_v4  ;;  %v6868_v31 = vadd.f32 %v6586_v6, %v716_v57  ;;  %v6588_v20 = vadd.f32 %v6587_v62, %v6235_v60  ;;  %v6237_v5 = vadd.f32 %v6236_v24, %v14980_v53  ;;  %v14988_v6 = vld [vmem:[#allocation222_spill] sm:$0xff] }
 0x5c3   : > { %v6238_v29 = vpop.f32.mrf.mxu0  ;;  %v6591_v9 = vpop.f32.mrf.mxu1  ;;  %v736_v60 = vld [vmem:[#allocation2 + $0x28] sm:$0xff] }
 0x5c4   : > { %7124 = vst [vmem:[#allocation2 + $0x7a8] sm:$0xff] %v6868_v31  ;;  %v6869_v38 = vadd.f32 %v6588_v20, %v717_v34  ;;  %v6590_v41 = vadd.f32 %v6589_v23, %v6237_v5  ;;  %v6239_v47 = vadd.f32 %v6238_v29, %v14981_v25  ;;  %v14989_v20 = vld [vmem:[#allocation61_spill] sm:$0xff] }
 0x5c5   : > { %v6242_v44 = vpop.f32.mrf.mxu0  ;;  %v6595_v14 = vpop.f32.mrf.mxu1  ;;  %v737_v5 = vld [vmem:[#allocation2 + $0x760] sm:$0xff] }
 0x5c6   : > { %7125 = vst [vmem:[#allocation2 + $0x530] sm:$0xff] %v6869_v38  ;;  %v6872_v10 = vadd.f32 %v6590_v41, %v720_v55  ;;  %v6592_v37 = vadd.f32 %v6591_v9, %v6239_v47  ;;  %v6243_v16 = vadd.f32 %v6242_v44, %v14982_v61  ;;  %v14990_v41 = vld [vmem:[#allocation62_spill] sm:$0xff] }
 0x5c7   : > { %v6244_v35 = vpop.f32.mrf.mxu0  ;;  %v6597_v13 = vpop.f32.mrf.mxu1  ;;  %v740_v47 = vld [vmem:[#allocation2 + $0x208] sm:$0xff] }
 0x5c8   : > { %7128 = vst [vmem:[#allocation2 + $0x358] sm:$0xff] %v6872_v10  ;;  %v6873_v7 = vadd.f32 %v6592_v37, %v721_v54  ;;  %v6596_v15 = vadd.f32 %v6595_v14, %v6243_v16  ;;  %v6245_v32 = vadd.f32 %v6244_v35, %v14983_v11  ;;  %v14991_v37 = vld [vmem:[#allocation223_spill] sm:$0xff] }
 0x5c9   : > { %v6246_v50 = vpop.f32.mrf.mxu0  ;;  %v6599_v36 = vpop.f32.mrf.mxu1  ;;  %v741_v16 = vld [vmem:[#allocation2 + $0x290] sm:$0xff] }
 0x5ca   : > { %7129 = vst [vmem:[#allocation2 + $0x700] sm:$0xff] %v6873_v7  ;;  %v6876_v33 = vadd.f32 %v6596_v15, %v724_v1  ;;  %v6598_v52 = vadd.f32 %v6597_v13, %v6245_v32  ;;  %v6247_v8 = vadd.f32 %v6246_v50, %v14984_v42  ;;  %v14992_v15 = vld [vmem:[#allocation226_spill] sm:$0xff] }
 0x5cb   : > { %v6248_v17 = vpop.f32.mrf.mxu0  ;;  %v6601_v27 = vpop.f32.mrf.mxu1  ;;  %v744_v32 = vld [vmem:[#allocation2 + $0x4c8] sm:$0xff] }
 0x5cc   : > { %7132 = vst [vmem:[#allocation2 + $0x3d0] sm:$0xff] %v6876_v33  ;;  %v6877_v30 = vadd.f32 %v6598_v52, %v725_v18  ;;  %v6600_v19 = vadd.f32 %v6599_v36, %v6247_v8  ;;  %v6249_v28 = vadd.f32 %v6248_v17, %v14985_v39  ;;  %v14993_v52 = vld [vmem:[#allocation229_spill] sm:$0xff]  ;;  %v745_v8 = vld [vmem:[#allocation2 + $0x3f0] sm:$0xff] }
 0x5cd   : > { %v6252_v0 = vpop.f32.mrf.mxu0  ;;  %v6605_v56 = vpop.f32.mrf.mxu1 }
 0x5ce   : > { %7133 = vst [vmem:[#allocation2 + $0x230] sm:$0xff] %v6877_v30  ;;  %v6880_v3 = vadd.f32 %v6600_v19, %v728_v43  ;;  %v6602_v63 = vadd.f32 %v6601_v27, %v6249_v28  ;;  %v6253_v59 = vadd.f32 %v6252_v0, %v14986_v58  ;;  %v14994_v19 = vld [vmem:[#allocation63_spill] sm:$0xff]  ;;  %v748_v28 = vld [vmem:[#allocation2 + $0x160] sm:$0xff] }
 0x5cf   : > { %v6254_v48 = vpop.f32.mrf.mxu0  ;;  %v6607_v22 = vpop.f32.mrf.mxu1 }
 0x5d0   : > { %7136 = vst [vmem:[#allocation2 + $0x4e0] sm:$0xff] %v6880_v3  ;;  %v6881_v51 = vadd.f32 %v6602_v63, %v729_v2  ;;  %v6606_v26 = vadd.f32 %v6605_v56, %v6253_v59  ;;  %v6255_v40 = vadd.f32 %v6254_v48, %v14987_v12  ;;  %v14995_v63 = vld [vmem:[#allocation64_spill] sm:$0xff]  ;;  %v749_v59 = vld [vmem:[#allocation2 + $0x260] sm:$0xff] }
 0x5d1   : > { %v6256_v57 = vpop.f32.mrf.mxu0  ;;  %v6609_v45 = vpop.f32.mrf.mxu1 }
 0x5d2   : > { %7137 = vst [vmem:[#allocation2 + $0x200] sm:$0xff] %v6881_v51  ;;  %v6884_v62 = vadd.f32 %v6606_v26, %v732_v21  ;;  %v6608_v4 = vadd.f32 %v6607_v22, %v6255_v40  ;;  %v6257_v49 = vadd.f32 %v6256_v57, %v14988_v6  ;;  %v14996_v26 = vld [vmem:[#allocation230_spill] sm:$0xff] }
 0x5d3   : > { %v6258_v34 = vpop.f32.mrf.mxu0  ;;  %v6611_v24 = vpop.f32.mrf.mxu1  ;;  %v752_v40 = vld [vmem:[#allocation2 + $0x188] sm:$0xff] }
 0x5d4   : > { %7140 = vst [vmem:[#allocation2 + $0x1d0] sm:$0xff] %v6884_v62  ;;  %v6885_v23 = vadd.f32 %v6608_v4, %v733_v46  ;;  %v6610_v31 = vadd.f32 %v6609_v45, %v6257_v49  ;;  %v6259_v53 = vadd.f32 %v6258_v34, %v14989_v20  ;;  %v14997_v4 = vld [vmem:[#allocation65_spill] sm:$0xff]  ;;  %v753_v49 = vld [vmem:[#allocation2 + $0x408] sm:$0xff] }
 0x5d5   : > { %v6262_v55 = vpop.f32.mrf.mxu0  ;;  %v6615_v29 = vpop.f32.mrf.mxu1 }
 0x5d6   : > { %7141 = vst [vmem:[#allocation2 + $0x510] sm:$0xff] %v6885_v23  ;;  %v6888_v9 = vadd.f32 %v6610_v31, %v736_v60  ;;  %v6612_v38 = vadd.f32 %v6611_v24, %v6259_v53  ;;  %v6263_v25 = vadd.f32 %v6262_v55, %v14990_v41  ;;  %v14998_v31 = vld [vmem:[#allocation66_spill] sm:$0xff]  ;;  %v756_v53 = vld [vmem:[#allocation2 + $0x470] sm:$0xff] }
 0x5d7   : > { %v6264_v54 = vpop.f32.mrf.mxu0  ;;  %v6617_v44 = vpop.f32.mrf.mxu1 }
 0x5d8   : > { %7144 = vst [vmem:[#allocation2 + $0x28] sm:$0xff] %v6888_v9  ;;  %v6889_v14 = vadd.f32 %v6612_v38, %v737_v5  ;;  %v6616_v10 = vadd.f32 %v6615_v29, %v6263_v25  ;;  %v6265_v61 = vadd.f32 %v6264_v54, %v14991_v37  ;;  %v14999_v38 = vld [vmem:[#allocation231_spill] sm:$0xff] }
 0x5d9   : > { %v6266_v1 = vpop.f32.mrf.mxu0  ;;  %v6619_v35 = vpop.f32.mrf.mxu1  ;;  %v757_v25 = vld [vmem:[#allocation2 + $0x410] sm:$0xff] }
 0x5da   : > { %7145 = vst [vmem:[#allocation2 + $0x760] sm:$0xff] %v6889_v14  ;;  %v6892_v13 = vadd.f32 %v6616_v10, %v740_v47  ;;  %v6618_v7 = vadd.f32 %v6617_v44, %v6265_v61  ;;  %v6267_v11 = vadd.f32 %v6266_v1, %v14992_v15  ;;  %v15000_v10 = vld [vmem:[#allocation234_spill] sm:$0xff]  ;;  %v760_v61 = vld [vmem:[#allocation2 + $0x220] sm:$0xff] }
 0x5db   : > { %v6268_v18 = vpop.f32.mrf.mxu0  ;;  %v6621_v50 = vpop.f32.mrf.mxu1 }
 0x5dc   : > { %7148 = vst [vmem:[#allocation2 + $0x208] sm:$0xff] %v6892_v13  ;;  %v6893_v36 = vadd.f32 %v6618_v7, %v741_v16  ;;  %v6620_v33 = vadd.f32 %v6619_v35, %v6267_v11  ;;  %v6269_v42 = vadd.f32 %v6268_v18, %v14993_v52  ;;  %v15001_v7 = vld [vmem:[#allocation237_spill] sm:$0xff] }
 0x5dd   : > { %v6272_v43 = vpop.f32.mrf.mxu0  ;;  %v6625_v17 = vpop.f32.mrf.mxu1  ;;  %v761_v11 = vld [vmem:[#allocation2 + $0x780] sm:$0xff] }
 0x5de   : > { %7149 = vst [vmem:[#allocation2 + $0x290] sm:$0xff] %v6893_v36  ;;  %v6896_v27 = vadd.f32 %v6620_v33, %v744_v32  ;;  %v6622_v30 = vadd.f32 %v6621_v50, %v6269_v42  ;;  %v6273_v39 = vadd.f32 %v6272_v43, %v14994_v19  ;;  %v15002_v33 = vld [vmem:[#allocation67_spill] sm:$0xff]  ;;  %v764_v42 = vld [vmem:[#allocation2 + $0x428] sm:$0xff] }
 0x5df   : > { %v6274_v2 = vpop.f32.mrf.mxu0  ;;  %v6627_v0 = vpop.f32.mrf.mxu1 }
 0x5e0   : > { %7152 = vst [vmem:[#allocation2 + $0x4c8] sm:$0xff] %v6896_v27  ;;  %v6897_v56 = vadd.f32 %v6622_v30, %v745_v8  ;;  %v6626_v3 = vadd.f32 %v6625_v17, %v6273_v39  ;;  %v6275_v58 = vadd.f32 %v6274_v2, %v14995_v63  ;;  %v15003_v30 = vld [vmem:[#allocation68_spill] sm:$0xff]  ;;  %v765_v39 = vld [vmem:[#allocation2 + $0x170] sm:$0xff] }
 0x5e1   : > { %v6276_v21 = vpop.f32.mrf.mxu0  ;;  %v6629_v48 = vpop.f32.mrf.mxu1 }
 0x5e2   : > { %7153 = vst [vmem:[#allocation2 + $0x3f0] sm:$0xff] %v6897_v56  ;;  %v6900_v22 = vadd.f32 %v6626_v3, %v748_v28  ;;  %v6628_v51 = vadd.f32 %v6627_v0, %v6275_v58  ;;  %v6277_v12 = vadd.f32 %v6276_v21, %v14996_v26  ;;  %v15004_v3 = vld [vmem:[#allocation238_spill] sm:$0xff] }
 0x5e3   : > { %v6278_v46 = vpop.f32.mrf.mxu0  ;;  %v6631_v57 = vpop.f32.mrf.mxu1  ;;  %v768_v58 = vld [vmem:[#allocation2 + $0x308] sm:$0xff] }
 0x5e4   : > { %7156 = vst [vmem:[#allocation2 + $0x160] sm:$0xff] %v6900_v22  ;;  %v6901_v45 = vadd.f32 %v6628_v51, %v749_v59  ;;  %v6630_v62 = vadd.f32 %v6629_v48, %v6277_v12  ;;  %v6279_v6 = vadd.f32 %v6278_v46, %v14997_v4  ;;  %v15005_v51 = vld [vmem:[#allocation69_spill] sm:$0xff]  ;;  %v769_v12 = vld [vmem:[#allocation2 + $0x88] sm:$0xff] }
 0x5e5   : > { %v6282_v60 = vpop.f32.mrf.mxu0  ;;  %v6635_v34 = vpop.f32.mrf.mxu1 }
 0x5e6   : > { %7157 = vst [vmem:[#allocation2 + $0x260] sm:$0xff] %v6901_v45  ;;  %v6904_v24 = vadd.f32 %v6630_v62, %v752_v40  ;;  %v6632_v23 = vadd.f32 %v6631_v57, %v6279_v6  ;;  %v6283_v20 = vadd.f32 %v6282_v60, %v14998_v31  ;;  %v15006_v62 = vld [vmem:[#allocation70_spill] sm:$0xff]  ;;  %v772_v6 = vld [vmem:[#allocation2 + $0x300] sm:$0xff] }
 0x5e7   : > { %v6284_v5 = vpop.f32.mrf.mxu0  ;;  %v6637_v55 = vpop.f32.mrf.mxu1 }
 0x5e8   : > { %7160 = vst [vmem:[#allocation2 + $0x188] sm:$0xff] %v6904_v24  ;;  %v6905_v29 = vadd.f32 %v6632_v23, %v753_v49  ;;  %v6636_v9 = vadd.f32 %v6635_v34, %v6283_v20  ;;  %v6285_v41 = vadd.f32 %v6284_v5, %v14999_v38  ;;  %v15007_v23 = vld [vmem:[#allocation239_spill] sm:$0xff]  ;;  %v773_v20 = vld [vmem:[#allocation2 + $0x108] sm:$0xff] }
 0x5e9   : > { %v6286_v47 = vpop.f32.mrf.mxu0  ;;  %v6639_v54 = vpop.f32.mrf.mxu1 }
 0x5ea   : > { %7161 = vst [vmem:[#allocation2 + $0x408] sm:$0xff] %v6905_v29  ;;  %v6908_v44 = vadd.f32 %v6636_v9, %v756_v53  ;;  %v6638_v14 = vadd.f32 %v6637_v55, %v6285_v41  ;;  %v6287_v37 = vadd.f32 %v6286_v47, %v15000_v10  ;;  %v15008_v9 = vld [vmem:[#allocation242_spill] sm:$0xff]  ;;  %v776_v41 = vld [vmem:[#allocation2 + $0x570] sm:$0xff] }
 0x5eb   : > { %v6288_v16 = vpop.f32.mrf.mxu0  ;;  %v6641_v1 = vpop.f32.mrf.mxu1 }
 0x5ec   : > { %7164 = vst [vmem:[#allocation2 + $0x470] sm:$0xff] %v6908_v44  ;;  %v6909_v35 = vadd.f32 %v6638_v14, %v757_v25  ;;  %v6640_v13 = vadd.f32 %v6639_v54, %v6287_v37  ;;  %v6289_v15 = vadd.f32 %v6288_v16, %v15001_v7  ;;  %v15009_v14 = vld [vmem:[#allocation245_spill] sm:$0xff] }
 0x5ed   : > { %v6292_v32 = vpop.f32.mrf.mxu0  ;;  %v6645_v18 = vpop.f32.mrf.mxu1  ;;  %v777_v37 = vld [vmem:[#allocation2 + $0x500] sm:$0xff] }
 0x5ee   : > { %7165 = vst [vmem:[#allocation2 + $0x410] sm:$0xff] %v6909_v35  ;;  %v6912_v50 = vadd.f32 %v6640_v13, %v760_v61  ;;  %v6642_v36 = vadd.f32 %v6641_v1, %v6289_v15  ;;  %v6293_v52 = vadd.f32 %v6292_v32, %v15002_v33  ;;  %v15010_v13 = vld [vmem:[#allocation71_spill] sm:$0xff]  ;;  %v780_v15 = vld [vmem:[#allocation2 + $0x7e8] sm:$0xff] }
 0x5ef   : > { %v6294_v8 = vpop.f32.mrf.mxu0  ;;  %v6647_v43 = vpop.f32.mrf.mxu1 }
 0x5f0   : > { %7168 = vst [vmem:[#allocation2 + $0x220] sm:$0xff] %v6912_v50  ;;  %v6913_v17 = vadd.f32 %v6642_v36, %v761_v11  ;;  %v6646_v27 = vadd.f32 %v6645_v18, %v6293_v52  ;;  %v6295_v19 = vadd.f32 %v6294_v8, %v15003_v30  ;;  %v15011_v36 = vld [vmem:[#allocation72_spill] sm:$0xff]  ;;  %v781_v52 = vld [vmem:[#allocation2 + $0x360] sm:$0xff] }
 0x5f1   : > { %v6296_v28 = vpop.f32.mrf.mxu0  ;;  %v6649_v2 = vpop.f32.mrf.mxu1 }
 0x5f2   : > { %7169 = vst [vmem:[#allocation2 + $0x780] sm:$0xff] %v6913_v17  ;;  %v6916_v0 = vadd.f32 %v6646_v27, %v764_v42  ;;  %v6648_v56 = vadd.f32 %v6647_v43, %v6295_v19  ;;  %v6297_v63 = vadd.f32 %v6296_v28, %v15004_v3  ;;  %v15012_v27 = vld [vmem:[#allocation246_spill] sm:$0xff]  ;;  %v784_v19 = vld [vmem:[#allocation2 + $0x4a0] sm:$0xff] }
 0x5f3   : > { %v6298_v59 = vpop.f32.mrf.mxu0  ;;  %v6651_v21 = vpop.f32.mrf.mxu1 }
 0x5f4   : > { %7172 = vst [vmem:[#allocation2 + $0x428] sm:$0xff] %v6916_v0  ;;  %v6917_v48 = vadd.f32 %v6648_v56, %v765_v39  ;;  %v6650_v22 = vadd.f32 %v6649_v2, %v6297_v63  ;;  %v6299_v26 = vadd.f32 %v6298_v59, %v15005_v51  ;;  %v15013_v56 = vld [vmem:[#allocation73_spill] sm:$0xff]  ;;  %v785_v63 = vld [vmem:[#allocation2 + $0x748] sm:$0xff] }
 0x5f5   : > { %v6302_v40 = vpop.f32.mrf.mxu0  ;;  %v6655_v46 = vpop.f32.mrf.mxu1 }
 0x5f6   : > { %7173 = vst [vmem:[#allocation2 + $0x170] sm:$0xff] %v6917_v48  ;;  %v6920_v57 = vadd.f32 %v6650_v22, %v768_v58  ;;  %v6652_v45 = vadd.f32 %v6651_v21, %v6299_v26  ;;  %v6303_v4 = vadd.f32 %v6302_v40, %v15006_v62  ;;  %v15014_v22 = vld [vmem:[#allocation74_spill] sm:$0xff]  ;;  %v788_v26 = vld [vmem:[#allocation2 + $0x270] sm:$0xff] }
 0x5f7   : > { %v6304_v49 = vpop.f32.mrf.mxu0  ;;  %v6657_v60 = vpop.f32.mrf.mxu1 }
 0x5f8   : > { %7176 = vst [vmem:[#allocation2 + $0x308] sm:$0xff] %v6920_v57  ;;  %v6921_v34 = vadd.f32 %v6652_v45, %v769_v12  ;;  %v6656_v24 = vadd.f32 %v6655_v46, %v6303_v4  ;;  %v6305_v31 = vadd.f32 %v6304_v49, %v15007_v23  ;;  %v15015_v45 = vld [vmem:[#allocation247_spill] sm:$0xff]  ;;  %v789_v4 = vld [vmem:[#allocation2 + $0x2d8] sm:$0xff] }
 0x5f9   : > { %v6306_v53 = vpop.f32.mrf.mxu0  ;;  %v6659_v5 = vpop.f32.mrf.mxu1 }
 0x5fa   : > { %7177 = vst [vmem:[#allocation2 + $0x88] sm:$0xff] %v6921_v34  ;;  %v6924_v55 = vadd.f32 %v6656_v24, %v772_v6  ;;  %v6658_v29 = vadd.f32 %v6657_v60, %v6305_v31  ;;  %v6307_v38 = vadd.f32 %v6306_v53, %v15008_v9  ;;  %v15016_v24 = vld [vmem:[#allocation250_spill] sm:$0xff] }
 0x5fb   : > { %v6308_v25 = vpop.f32.mrf.mxu0  ;;  %v6661_v47 = vpop.f32.mrf.mxu1  ;;  %v792_v31 = vld [vmem:[#allocation2 + $0x48] sm:$0xff] }
 0x5fc   : > { %7180 = vst [vmem:[#allocation2 + $0x300] sm:$0xff] %v6924_v55  ;;  %v6925_v54 = vadd.f32 %v6658_v29, %v773_v20  ;;  %v6660_v44 = vadd.f32 %v6659_v5, %v6307_v38  ;;  %v6309_v10 = vadd.f32 %v6308_v25, %v15009_v14  ;;  %v15017_v29 = vld [vmem:[#allocation253_spill] sm:$0xff]  ;;  %v793_v38 = vld [vmem:[#allocation2 + $0x328] sm:$0xff] }
 0x5fd   : > { %v6312_v61 = vpop.f32.mrf.mxu0  ;;  %v6665_v16 = vpop.f32.mrf.mxu1 }
 0x5fe   : > { %7181 = vst [vmem:[#allocation2 + $0x108] sm:$0xff] %v6925_v54  ;;  %v6928_v1 = vadd.f32 %v6660_v44, %v776_v41  ;;  %v6662_v35 = vadd.f32 %v6661_v47, %v6309_v10  ;;  %v6313_v7 = vadd.f32 %v6312_v61, %v15010_v13  ;;  %v15018_v44 = vld [vmem:[#allocation75_spill] sm:$0xff]  ;;  %v796_v10 = vld [vmem:[#allocation2 + $0x578] sm:$0xff] }
 0x5ff   : > { %v6314_v11 = vpop.f32.mrf.mxu0  ;;  %v6667_v32 = vpop.f32.mrf.mxu1 }
 0x600   : > { %7184 = vst [vmem:[#allocation2 + $0x570] sm:$0xff] %v6928_v1  ;;  %v6929_v18 = vadd.f32 %v6662_v35, %v777_v37  ;;  %v6666_v50 = vadd.f32 %v6665_v16, %v6313_v7  ;;  %v6315_v33 = vadd.f32 %v6314_v11, %v15011_v36  ;;  %v15019_v35 = vld [vmem:[#allocation76_spill] sm:$0xff]  ;;  %v797_v7 = vld [vmem:[#allocation2 + $0x608] sm:$0xff] }
 0x601   : > { %v6316_v42 = vpop.f32.mrf.mxu0  ;;  %v6669_v8 = vpop.f32.mrf.mxu1 }
 0x602   : > { %7185 = vst [vmem:[#allocation2 + $0x500] sm:$0xff] %v6929_v18  ;;  %v6932_v43 = vadd.f32 %v6666_v50, %v780_v15  ;;  %v6668_v17 = vadd.f32 %v6667_v32, %v6315_v33  ;;  %v6317_v30 = vadd.f32 %v6316_v42, %v15012_v27  ;;  %v15020_v50 = vld [vmem:[#allocation254_spill] sm:$0xff]  ;;  %v800_v33 = vld [vmem:[#allocation2 + $0x298] sm:$0xff] }
 0x603   : > { %v6318_v39 = vpop.f32.mrf.mxu0  ;;  %v6671_v28 = vpop.f32.mrf.mxu1 }
 0x604   : > { %7188 = vst [vmem:[#allocation2 + $0x7e8] sm:$0xff] %v6932_v43  ;;  %v6933_v2 = vadd.f32 %v6668_v17, %v781_v52  ;;  %v6670_v0 = vadd.f32 %v6669_v8, %v6317_v30  ;;  %v6319_v3 = vadd.f32 %v6318_v39, %v15013_v56  ;;  %v15021_v17 = vld [vmem:[#allocation77_spill] sm:$0xff]  ;;  %v801_v30 = vld [vmem:[#allocation2 + $0x1f0] sm:$0xff] }
 0x605   : > { %v6322_v58 = vpop.f32.mrf.mxu0  ;;  %v6675_v59 = vpop.f32.mrf.mxu1 }
 0x606   : > { %7189 = vst [vmem:[#allocation2 + $0x360] sm:$0xff] %v6933_v2  ;;  %v6936_v21 = vadd.f32 %v6670_v0, %v784_v19  ;;  %v6672_v48 = vadd.f32 %v6671_v28, %v6319_v3  ;;  %v6323_v51 = vadd.f32 %v6322_v58, %v15014_v22  ;;  %v15022_v0 = vld [vmem:[#allocation78_spill] sm:$0xff]  ;;  %v804_v3 = vld [vmem:[#allocation2 + $0x650] sm:$0xff] }
 0x607   : > { %v6324_v12 = vpop.f32.mrf.mxu0  ;;  %v6677_v40 = vpop.f32.mrf.mxu1 }
 0x608   : > { %7192 = vst [vmem:[#allocation2 + $0x4a0] sm:$0xff] %v6936_v21  ;;  %v6937_v46 = vadd.f32 %v6672_v48, %v785_v63  ;;  %v6676_v57 = vadd.f32 %v6675_v59, %v6323_v51  ;;  %v6325_v62 = vadd.f32 %v6324_v12, %v15015_v45  ;;  %v15023_v48 = vld [vmem:[#allocation255_spill] sm:$0xff]  ;;  %v805_v51 = vld [vmem:[#allocation2 + $0x480] sm:$0xff] }
 0x609   : > { %v6326_v6 = vpop.f32.mrf.mxu0  ;;  %v6679_v49 = vpop.f32.mrf.mxu1 }
 0x60a   : > { %7193 = vst [vmem:[#allocation2 + $0x748] sm:$0xff] %v6937_v46  ;;  %v6940_v60 = vadd.f32 %v6676_v57, %v788_v26  ;;  %v6678_v34 = vadd.f32 %v6677_v40, %v6325_v62  ;;  %v6327_v23 = vadd.f32 %v6326_v6, %v15016_v24  ;;  %v15024_v57 = vld [vmem:[#allocation258_spill] sm:$0xff]  ;;  %v808_v62 = vld [vmem:[#allocation2 + $0x7d0] sm:$0xff] }
 0x60b   : > { %v6328_v20 = vpop.f32.mrf.mxu0  ;;  %v6681_v53 = vpop.f32.mrf.mxu1 }
 0x60c   : > { %7196 = vst [vmem:[#allocation2 + $0x270] sm:$0xff] %v6940_v60  ;;  %v6941_v5 = vadd.f32 %v6678_v34, %v789_v4  ;;  %v6680_v55 = vadd.f32 %v6679_v49, %v6327_v23  ;;  %v6329_v9 = vadd.f32 %v6328_v20, %v15017_v29  ;;  %v15025_v34 = vld [vmem:[#allocation261_spill] sm:$0xff]  ;;  %v809_v23 = vld [vmem:[#allocation2 + $0x190] sm:$0xff] }
 0x60d   : > { %v6332_v41 = vpop.f32.mrf.mxu0  ;;  %v6685_v25 = vpop.f32.mrf.mxu1 }
 0x60e   : > { %7197 = vst [vmem:[#allocation2 + $0x2d8] sm:$0xff] %v6941_v5  ;;  %v6944_v47 = vadd.f32 %v6680_v55, %v792_v31  ;;  %v6682_v54 = vadd.f32 %v6681_v53, %v6329_v9  ;;  %v6333_v14 = vadd.f32 %v6332_v41, %v15018_v44  ;;  %v15026_v55 = vld [vmem:[#allocation79_spill] sm:$0xff]  ;;  %v812_v9 = vld [vmem:[#allocation2 + $0x2b8] sm:$0xff] }
 0x60f   : > { %v6334_v37 = vpop.f32.mrf.mxu0  ;;  %v6687_v61 = vpop.f32.mrf.mxu1 }
 0x610   : > { %7200 = vst [vmem:[#allocation2 + $0x48] sm:$0xff] %v6944_v47  ;;  %v6945_v16 = vadd.f32 %v6682_v54, %v793_v38  ;;  %v6686_v1 = vadd.f32 %v6685_v25, %v6333_v14  ;;  %v6335_v13 = vadd.f32 %v6334_v37, %v15019_v35  ;;  %v15027_v54 = vld [vmem:[#allocation80_spill] sm:$0xff] }
 0x611   : > { %v6336_v15 = vpop.f32.mrf.mxu0  ;;  %v6689_v11 = vpop.f32.mrf.mxu1  ;;  %v813_v14 = vld [vmem:[#allocation2 + $0x238] sm:$0xff] }
 0x612   : > { %7201 = vst [vmem:[#allocation2 + $0x328] sm:$0xff] %v6945_v16  ;;  %v6948_v32 = vadd.f32 %v6686_v1, %v796_v10  ;;  %v6688_v18 = vadd.f32 %v6687_v61, %v6335_v13  ;;  %v6337_v36 = vadd.f32 %v6336_v15, %v15020_v50  ;;  %v15028_v1 = vld [vmem:[#allocation262_spill] sm:$0xff]  ;;  %v816_v13 = vld [vmem:[#allocation2 + $0x580] sm:$0xff]  ;;  %v817_v50 = vld [vmem:[#allocation2 + $0x150] sm:$0xff] }
 0x613   : > { %v6338_v52 = vpop.f32.mrf.mxu0  ;;  %v6691_v42 = vpop.f32.mrf.mxu1 }
 0x614   : > { %7204 = vst [vmem:[#allocation2 + $0x578] sm:$0xff] %v6948_v32  ;;  %v6949_v8 = vadd.f32 %v6688_v18, %v797_v7  ;;  %v6690_v43 = vadd.f32 %v6689_v11, %v6337_v36  ;;  %v6339_v27 = vadd.f32 %v6338_v52, %v15021_v17  ;;  %v15029_v32 = vld [vmem:[#allocation81_spill] sm:$0xff] }
 0x615   : > { %v6342_v19 = vpop.f32.mrf.mxu0  ;;  %v6695_v39 = vpop.f32.mrf.mxu1 }
 0x616   : > { %7205 = vst [vmem:[#allocation2 + $0x608] sm:$0xff] %v6949_v8  ;;  %v6952_v28 = vadd.f32 %v6690_v43, %v800_v33  ;;  %v6692_v2 = vadd.f32 %v6691_v42, %v6339_v27  ;;  %v6343_v56 = vadd.f32 %v6342_v19, %v15022_v0 }
 0x617   : > { %v6344_v63 = vpop.f32.mrf.mxu0  ;;  %v6697_v58 = vpop.f32.mrf.mxu1 }
 0x618   : > { %7208 = vst [vmem:[#allocation2 + $0x298] sm:$0xff] %v6952_v28  ;;  %v6953_v59 = vadd.f32 %v6692_v2, %v801_v30  ;;  %v6696_v21 = vadd.f32 %v6695_v39, %v6343_v56  ;;  %v6345_v22 = vadd.f32 %v6344_v63, %v15023_v48 }
 0x619   : > { %v6346_v26 = vpop.f32.mrf.mxu0  ;;  %v6699_v12 = vpop.f32.mrf.mxu1 }
 0x61a   : > { %7209 = vst [vmem:[#allocation2 + $0x1f0] sm:$0xff] %v6953_v59  ;;  %v6956_v40 = vadd.f32 %v6696_v21, %v804_v3  ;;  %v6698_v46 = vadd.f32 %v6697_v58, %v6345_v22  ;;  %v6347_v45 = vadd.f32 %v6346_v26, %v15024_v57 }
 0x61b   : > { %v6348_v4 = vpop.f32.mrf.mxu0  ;;  %v6701_v6 = vpop.f32.mrf.mxu1 }
 0x61c   : > { %7212 = vst [vmem:[#allocation2 + $0x650] sm:$0xff] %v6956_v40  ;;  %v6957_v49 = vadd.f32 %v6698_v46, %v805_v51  ;;  %v6700_v60 = vadd.f32 %v6699_v12, %v6347_v45  ;;  %v6349_v24 = vadd.f32 %v6348_v4, %v15025_v34 }
 0x61d   : > { %v6352_v31 = vpop.f32.mrf.mxu0  ;;  %v6705_v20 = vpop.f32.mrf.mxu1 }
 0x61e   : > { %7213 = vst [vmem:[#allocation2 + $0x480] sm:$0xff] %v6957_v49  ;;  %v6960_v53 = vadd.f32 %v6700_v60, %v808_v62  ;;  %v6702_v5 = vadd.f32 %v6701_v6, %v6349_v24  ;;  %v6353_v29 = vadd.f32 %v6352_v31, %v15026_v55 }
 0x61f   : > { %v6354_v38 = vpop.f32.mrf.mxu0  ;;  %v6707_v41 = vpop.f32.mrf.mxu1 }
 0x620   : > { %7216 = vst [vmem:[#allocation2 + $0x7d0] sm:$0xff] %v6960_v53  ;;  %v6961_v25 = vadd.f32 %v6702_v5, %v809_v23  ;;  %v6706_v47 = vadd.f32 %v6705_v20, %v6353_v29  ;;  %v6355_v44 = vadd.f32 %v6354_v38, %v15027_v54 }
 0x621   : > { %v6356_v10 = vpop.f32.mrf.mxu0  ;;  %v6709_v37 = vpop.f32.mrf.mxu1 }
 0x622   : > { %7217 = vst [vmem:[#allocation2 + $0x190] sm:$0xff] %v6961_v25  ;;  %v6964_v61 = vadd.f32 %v6706_v47, %v812_v9  ;;  %v6708_v16 = vadd.f32 %v6707_v41, %v6355_v44  ;;  %v6357_v35 = vadd.f32 %v6356_v10, %v15028_v1 }
 0x623   : > { %v6358_v7 = vpop.f32.mrf.mxu0  ;;  %v6711_v36 = vpop.f32.mrf.mxu1 }
 0x624   : > { %7220 = vst [vmem:[#allocation2 + $0x2b8] sm:$0xff] %v6964_v61  ;;  %v6965_v15 = vadd.f32 %v6708_v16, %v813_v14  ;;  %v6710_v11 = vadd.f32 %v6709_v37, %v6357_v35  ;;  %v6359_v18 = vadd.f32 %v6358_v7, %v15029_v32 }
 0x626   : > { %7221 = vst [vmem:[#allocation2 + $0x238] sm:$0xff] %v6965_v15  ;;  %v6968_v33 = vadd.f32 %v6710_v11, %v816_v13  ;;  %v6712_v52 = vadd.f32 %v6711_v36, %v6359_v18  ;;  %7229 = sbr.rel (%p9482_p7) target bundleno = 1846 (0x736), region = 52 }
 0x628   : > { %7224 = vst [vmem:[#allocation2 + $0x580] sm:$0xff] %v6968_v33  ;;  %v6969_v42 = vadd.f32 %v6712_v52, %v817_v50 }
 0x62a   : > { %7225 = vst [vmem:[#allocation2 + $0x150] sm:$0xff] %v6969_v42 }
 0x62b   : > { %v7488_v8 = vlaneseq  ;;  %v7486_v17 = vld [vmem:[%s262_s16] sm:$0xf]  ;;  %v7230_v27 = vld [vmem:[#allocation2 + $0x2b0] sm:$0xff]  ;;  %v7232_v0 = vld [vmem:[#allocation2 + $0x4d8] sm:$0xff] }
 0x62c   : > { %v7231_v19 = vld [vmem:[#allocation2 + $0x3b0] sm:$0xff]  ;;  %v7233_v56 = vld [vmem:[#allocation2 + $0x18] sm:$0xff]  ;;  %v7235_v48 = vld [vmem:[#allocation2 + $0x768] sm:$0xff] }
 0x62d   : > { %v7489_v43 = vshrl.u32 %v7488_v8, 7  ;;  %v7234_v3 = vld [vmem:[#allocation2 + $0x450] sm:$0xff]  ;;  %v7237_v51 = vld [vmem:[#allocation2 + $0x448] sm:$0xff]  ;;  %v7238_v20 = vld [vmem:[#allocation2 + $0x380] sm:$0xff] }
 0x62e   : > { %v7236_v22 = vld [vmem:[#allocation2 + $0x330] sm:$0xff]  ;;  %v7240_v9 = vld [vmem:[#allocation2 + $0x518] sm:$0xff]  ;;  %v7242_v41 = vld [vmem:[#allocation2 + $0x320] sm:$0xff] }
 0x62f   : > { %v7490_v30 = vsub.s32 0, %v7489_v43  ;;  %v7494_v39 = vsub.s32 1, %v7489_v43  ;;  %v7498_v28 = vsub.s32 2, %v7489_v43  ;;  %v7502_v2 = vsub.s32 3, %v7489_v43  ;;  %v7239_v53 = vld [vmem:[#allocation2 + $0x110] sm:$0xff]  ;;  %v7241_v38 = vld [vmem:[#allocation2 + $0x498] sm:$0xff] }
 0x630   : > { %v7243_v35 = vld [vmem:[#allocation2 + $0x550] sm:$0xff]  ;;  %v7244_v13 = vld [vmem:[#allocation2 + $0x508] sm:$0xff]  ;;  %v7245_v11 = vld [vmem:[#allocation2 + $0x720] sm:$0xff] }
 0x631   : > { %v13247_v63 = vrot.slane %v7486_v17, %v7490_v30  ;;  %v13249_v58 = vrot.slane %v7486_v17, %v7494_v39  ;;  %v13251_v59 = vrot.slane %v7486_v17, %v7498_v28  ;;  %v13253_v21 = vrot.slane %v7486_v17, %v7502_v2  ;;  %v7246_v32 = vld [vmem:[#allocation2 + $0x6e0] sm:$0xff]  ;;  %v7248_v2 = vld [vmem:[#allocation2 + $0x338] sm:$0xff] }
 0x633   : > { %v7508_v26 = vadd.f32 %v13247_v63, %v7230_v27  ;;  %v7509_v12 = vadd.f32 %v13249_v58, %v7231_v19  ;;  %v7510_v40 = vadd.f32 %v13251_v59, %v7232_v0  ;;  %v7511_v46 = vadd.f32 %v13253_v21, %v7233_v56  ;;  %v7247_v27 = vld [vmem:[#allocation2 + $0x788] sm:$0xff]  ;;  %v7249_v0 = vld [vmem:[#allocation2 + $0x740] sm:$0xff] }
 0x634   : > { %v7512_v57 = vadd.f32 %v13247_v63, %v7234_v3  ;;  %v7513_v45 = vadd.f32 %v13249_v58, %v7235_v48  ;;  %v7514_v62 = vadd.f32 %v13251_v59, %v7236_v22  ;;  %v7515_v4 = vadd.f32 %v13253_v21, %v7237_v51  ;;  %v7250_v56 = vld [vmem:[#allocation2 + $0x2e0] sm:$0xff] }
 0x635   : > { %vm7764_vm0 = vcmp.ge.f32.partialorder %v7508_v26, 0.0  ;;  %v8020_v6 = vmul.f32 0.01, %v7508_v26  ;;  %vm7765_vm1 = vcmp.ge.f32.partialorder %v7509_v12, 0.0  ;;  %v8021_v49 = vmul.f32 0.01, %v7509_v12 }
 0x636   : > { %vm7766_vm2 = vcmp.ge.f32.partialorder %v7510_v40, 0.0  ;;  %v8022_v60 = vmul.f32 0.01, %v7510_v40  ;;  %vm7767_vm3 = vcmp.ge.f32.partialorder %v7511_v46, 0.0  ;;  %v8023_v34 = vmul.f32 0.01, %v7511_v46 }
 0x637   : > { %v8276_v24 = vsel %vm7764_vm0, %v7508_v26, %v8020_v6  ;;  %v8277_v23 = vsel %vm7765_vm1, %v7509_v12, %v8021_v49  ;;  %vm7768_vm4 = vcmp.ge.f32.partialorder %v7512_v57, 0.0  ;;  %v8024_v31 = vmul.f32 0.01, %v7512_v57  ;;  %v7252_v49 = vld [vmem:[#allocation2 + $0x5b8] sm:$0xff] }
 0x638   : > { %8532 = vst [vmem:[%s10681_s3] sm:$0xff] %v8276_v24  ;;  %8533 = vst [vmem:[%s10681_s3 + $0x8] sm:$0xff] %v8277_v23  ;;  %v8278_v5 = vsel %vm7766_vm2, %v7510_v40, %v8022_v60  ;;  %v8279_v55 = vsel %vm7767_vm3, %v7511_v46, %v8023_v34  ;;  %vm7769_vm5 = vcmp.ge.f32.partialorder %v7513_v45, 0.0  ;;  %v8025_v29 = vmul.f32 0.01, %v7513_v45  ;;  %v7253_v60 = vld [vmem:[#allocation2 + $0x568] sm:$0xff] }
 0x639   : > { %8534 = vst [vmem:[%s10681_s3 + $0x10] sm:$0xff] %v8278_v5  ;;  %8535 = vst [vmem:[%s10681_s3 + $0x18] sm:$0xff] %v8279_v55  ;;  %v8280_v25 = vsel %vm7768_vm4, %v7512_v57, %v8024_v31  ;;  %vm7770_vm6 = vcmp.ge.f32.partialorder %v7514_v62, 0.0  ;;  %v8026_v47 = vmul.f32 0.01, %v7514_v62  ;;  %vm7771_vm7 = vcmp.ge.f32.partialorder %v7515_v4, 0.0 }
 0x63a   : > { %8536 = vst [vmem:[%s10681_s3 + $0x20] sm:$0xff] %v8280_v25  ;;  %v8281_v54 = vsel %vm7769_vm5, %v7513_v45, %v8025_v29  ;;  %v8027_v44 = vmul.f32 0.01, %v7515_v4  ;;  %v7516_v14 = vadd.f32 %v13247_v63, %v7238_v20  ;;  %v7517_v10 = vadd.f32 %v13249_v58, %v7239_v53  ;;  %v7251_v57 = vld [vmem:[#allocation2 + $0x5a8] sm:$0xff] }
 0x63b   : > { %8537 = vst [vmem:[%s10681_s3 + $0x28] sm:$0xff] %v8281_v54  ;;  %v8282_v37 = vsel %vm7770_vm6, %v7514_v62, %v8026_v47  ;;  %v7518_v61 = vadd.f32 %v13251_v59, %v7240_v9  ;;  %v7519_v16 = vadd.f32 %v13253_v21, %v7241_v38  ;;  %v7520_v1 = vadd.f32 %v13247_v63, %v7242_v41  ;;  %v7254_v34 = vld [vmem:[#allocation2 + $0x3e8] sm:$0xff]  ;;  %v7255_v9 = vld [vmem:[#allocation2 + $0x6f8] sm:$0xff]  ;;  %v7256_v54 = vld [vmem:[#allocation2 + $0x690] sm:$0xff] }
 0x63c   : > { %8538 = vst [vmem:[%s10681_s3 + $0x30] sm:$0xff] %v8282_v37  ;;  %v8283_v7 = vsel %vm7771_vm7, %v7515_v4, %v8027_v44  ;;  %vm7772_vm8 = vcmp.ge.f32.partialorder %v7516_v14, 0.0  ;;  %v8028_v15 = vmul.f32 0.01, %v7516_v14  ;;  %vm7773_vm9 = vcmp.ge.f32.partialorder %v7517_v10, 0.0  ;;  %v7257_v44 = vld [vmem:[#allocation2 + $0x368] sm:$0xff] }
 0x63d   : > { %8539 = vst [vmem:[%s10681_s3 + $0x38] sm:$0xff] %v8283_v7  ;;  %v8029_v18 = vmul.f32 0.01, %v7517_v10  ;;  %vm7774_vm10 = vcmp.ge.f32.partialorder %v7518_v61, 0.0  ;;  %v8030_v50 = vmul.f32 0.01, %v7518_v61  ;;  %v7521_v43 = vadd.f32 %v13249_v58, %v7243_v35 }
 0x63e   : > { %vm7775_vm11 = vcmp.ge.f32.partialorder %v7519_v16, 0.0  ;;  %v8284_v36 = vsel %vm7772_vm8, %v7516_v14, %v8028_v15  ;;  %v8031_v33 = vmul.f32 0.01, %v7519_v16  ;;  %vm7776_vm12 = vcmp.ge.f32.partialorder %v7520_v1, 0.0  ;;  %v7258_v14 = vld [vmem:[#allocation2 + $0x138] sm:$0xff]  ;;  %v7259_v15 = vld [vmem:[#allocation2 + $0xc0] sm:$0xff] }
 0x63f   : > { %v8032_v52 = vmul.f32 0.01, %v7520_v1  ;;  %8540 = vst [vmem:[%s10681_s3 + $0x40] sm:$0xff] %v8284_v36  ;;  %v8285_v42 = vsel %vm7773_vm9, %v7517_v10, %v8029_v18  ;;  %v8286_v8 = vsel %vm7774_vm10, %v7518_v61, %v8030_v50  ;;  %v7522_v17 = vadd.f32 %v13251_v59, %v7244_v13  ;;  %v7260_v36 = vld [vmem:[#allocation2 + $0x1c0] sm:$0xff] }
 0x640   : > { %8541 = vst [vmem:[%s10681_s3 + $0x48] sm:$0xff] %v8285_v42  ;;  %8542 = vst [vmem:[%s10681_s3 + $0x50] sm:$0xff] %v8286_v8  ;;  %v8287_v30 = vsel %vm7775_vm11, %v7519_v16, %v8031_v33  ;;  %v7523_v39 = vadd.f32 %v13253_v21, %v7245_v11  ;;  %v7524_v28 = vadd.f32 %v13247_v63, %v7246_v32  ;;  %vm7777_vm13 = vcmp.ge.f32.partialorder %v7521_v43, 0.0  ;;  %v7261_v33 = vld [vmem:[#allocation2 + $0x280] sm:$0xff] }
 0x641   : > { %v8288_v19 = vsel %vm7776_vm12, %v7520_v1, %v8032_v52  ;;  %8543 = vst [vmem:[%s10681_s3 + $0x58] sm:$0xff] %v8287_v30  ;;  %v8033_v3 = vmul.f32 0.01, %v7521_v43  ;;  %vm7778_vm14 = vcmp.ge.f32.partialorder %v7522_v17, 0.0  ;;  %v8034_v48 = vmul.f32 0.01, %v7522_v17 }
 0x642   : > { %8544 = vst [vmem:[%s10681_s3 + $0x60] sm:$0xff] %v8288_v19  ;;  %vm7779_vm15 = vcmp.ge.f32.partialorder %v7523_v39, 0.0  ;;  %v8035_v22 = vmul.f32 0.01, %v7523_v39  ;;  %vm7780_vm0 = vcmp.ge.f32.partialorder %v7524_v28, 0.0  ;;  %v7525_v40 = vadd.f32 %v13249_v58, %v7247_v27  ;;  %v7262_v52 = vld [vmem:[#allocation2 + $0x100] sm:$0xff] }
 0x643   : > { %v8036_v51 = vmul.f32 0.01, %v7524_v28  ;;  %v8289_v26 = vsel %vm7777_vm13, %v7521_v43, %v8033_v3  ;;  %v8290_v12 = vsel %vm7778_vm14, %v7522_v17, %v8034_v48  ;;  %v7526_v46 = vadd.f32 %v13251_v59, %v7248_v2  ;;  %v7264_v48 = vld [vmem:[#allocation2 + $0x558] sm:$0xff] }
 0x644   : > { %8545 = vst [vmem:[%s10681_s3 + $0x68] sm:$0xff] %v8289_v26  ;;  %8546 = vst [vmem:[%s10681_s3 + $0x70] sm:$0xff] %v8290_v12  ;;  %v8291_v45 = vsel %vm7779_vm15, %v7523_v39, %v8035_v22  ;;  %v7527_v4 = vadd.f32 %v13253_v21, %v7249_v0  ;;  %v7528_v6 = vadd.f32 %v13247_v63, %v7250_v56  ;;  %vm7781_vm1 = vcmp.ge.f32.partialorder %v7525_v40, 0.0  ;;  %v7265_v22 = vld [vmem:[#allocation2 + $0x3e0] sm:$0xff] }
 0x645   : > { %v8292_v62 = vsel %vm7780_vm0, %v7524_v28, %v8036_v51  ;;  %8547 = vst [vmem:[%s10681_s3 + $0x78] sm:$0xff] %v8291_v45  ;;  %v8037_v24 = vmul.f32 0.01, %v7525_v40  ;;  %vm7782_vm2 = vcmp.ge.f32.partialorder %v7526_v46, 0.0  ;;  %v8038_v23 = vmul.f32 0.01, %v7526_v46 }
 0x646   : > { %8548 = vst [vmem:[%s10681_s3 + $0x80] sm:$0xff] %v8292_v62  ;;  %vm7783_vm3 = vcmp.ge.f32.partialorder %v7527_v4, 0.0  ;;  %v8039_v31 = vmul.f32 0.01, %v7527_v4  ;;  %vm7784_vm4 = vcmp.ge.f32.partialorder %v7528_v6, 0.0  ;;  %v7529_v55 = vadd.f32 %v13249_v58, %v7251_v57  ;;  %v7263_v28 = vld [vmem:[#allocation2 + $0x3c0] sm:$0xff] }
 0x647   : > { %v8040_v20 = vmul.f32 0.01, %v7528_v6  ;;  %v8293_v53 = vsel %vm7781_vm1, %v7525_v40, %v8037_v24  ;;  %v8294_v5 = vsel %vm7782_vm2, %v7526_v46, %v8038_v23  ;;  %v7530_v29 = vadd.f32 %v13251_v59, %v7252_v49  ;;  %v7266_v51 = vld [vmem:[#allocation2 + $0x618] sm:$0xff]  ;;  %v7268_v23 = vld [vmem:[#allocation2 + $0x70] sm:$0xff] }
 0x648   : > { %8549 = vst [vmem:[%s10681_s3 + $0x88] sm:$0xff] %v8293_v53  ;;  %8550 = vst [vmem:[%s10681_s3 + $0x90] sm:$0xff] %v8294_v5  ;;  %v8295_v38 = vsel %vm7783_vm3, %v7527_v4, %v8039_v31  ;;  %v7531_v25 = vadd.f32 %v13253_v21, %v7253_v60  ;;  %v7532_v47 = vadd.f32 %v13247_v63, %v7254_v34  ;;  %vm7785_vm5 = vcmp.ge.f32.partialorder %v7529_v55, 0.0  ;;  %v7269_v31 = vld [vmem:[#allocation2 + $0x7b8] sm:$0xff] }
 0x649   : > { %v8296_v41 = vsel %vm7784_vm4, %v7528_v6, %v8040_v20  ;;  %8551 = vst [vmem:[%s10681_s3 + $0x98] sm:$0xff] %v8295_v38  ;;  %v8041_v10 = vmul.f32 0.01, %v7529_v55  ;;  %vm7786_vm6 = vcmp.ge.f32.partialorder %v7530_v29, 0.0  ;;  %v8042_v37 = vmul.f32 0.01, %v7530_v29 }
 0x64a   : > { %8552 = vst [vmem:[%s10681_s3 + $0xa0] sm:$0xff] %v8296_v41  ;;  %vm7787_vm7 = vcmp.ge.f32.partialorder %v7531_v25, 0.0  ;;  %v8043_v61 = vmul.f32 0.01, %v7531_v25  ;;  %vm7788_vm8 = vcmp.ge.f32.partialorder %v7532_v47, 0.0  ;;  %v7533_v13 = vadd.f32 %v13249_v58, %v7255_v9  ;;  %v7267_v6 = vld [vmem:[#allocation2 + $0x4c0] sm:$0xff] }
 0x64b   : > { %v8044_v16 = vmul.f32 0.01, %v7532_v47  ;;  %v8297_v1 = vsel %vm7785_vm5, %v7529_v55, %v8041_v10  ;;  %v8298_v35 = vsel %vm7786_vm6, %v7530_v29, %v8042_v37  ;;  %v7534_v7 = vadd.f32 %v13251_v59, %v7256_v54  ;;  %v7270_v20 = vld [vmem:[#allocation2 + $0x400] sm:$0xff]  ;;  %v7272_v37 = vld [vmem:[#allocation2 + $0x3f8] sm:$0xff] }
 0x64c   : > { %8553 = vst [vmem:[%s10681_s3 + $0xa8] sm:$0xff] %v8297_v1  ;;  %8554 = vst [vmem:[%s10681_s3 + $0xb0] sm:$0xff] %v8298_v35  ;;  %v8299_v11 = vsel %vm7787_vm7, %v7531_v25, %v8043_v61  ;;  %v7535_v18 = vadd.f32 %v13253_v21, %v7257_v44  ;;  %v7536_v50 = vadd.f32 %v13247_v63, %v7258_v14  ;;  %vm7789_vm9 = vcmp.ge.f32.partialorder %v7533_v13, 0.0  ;;  %v7273_v61 = vld [vmem:[#allocation2 + $0x2e8] sm:$0xff] }
 0x64d   : > { %v8300_v32 = vsel %vm7788_vm8, %v7532_v47, %v8044_v16  ;;  %8555 = vst [vmem:[%s10681_s3 + $0xb8] sm:$0xff] %v8299_v11  ;;  %v8045_v42 = vmul.f32 0.01, %v7533_v13  ;;  %vm7790_vm10 = vcmp.ge.f32.partialorder %v7534_v7, 0.0  ;;  %v8046_v8 = vmul.f32 0.01, %v7534_v7 }
 0x64e   : > { %8556 = vst [vmem:[%s10681_s3 + $0xc0] sm:$0xff] %v8300_v32  ;;  %vm7791_vm11 = vcmp.ge.f32.partialorder %v7535_v18, 0.0  ;;  %v8047_v43 = vmul.f32 0.01, %v7535_v18  ;;  %vm7792_vm12 = vcmp.ge.f32.partialorder %v7536_v50, 0.0  ;;  %v7537_v19 = vadd.f32 %v13249_v58, %v7259_v15  ;;  %v7271_v47 = vld [vmem:[#allocation2 + $0x6a8] sm:$0xff] }
 0x64f   : > { %v8048_v17 = vmul.f32 0.01, %v7536_v50  ;;  %v8301_v27 = vsel %vm7789_vm9, %v7533_v13, %v8045_v42  ;;  %v8302_v30 = vsel %vm7790_vm10, %v7534_v7, %v8046_v8  ;;  %v7538_v39 = vadd.f32 %v13251_v59, %v7260_v36  ;;  %v7274_v16 = vld [vmem:[#allocation2 + $0x6c8] sm:$0xff] }
 0x650   : > { %8557 = vst [vmem:[%s10681_s3 + $0xc8] sm:$0xff] %v8301_v27  ;;  %8558 = vst [vmem:[%s10681_s3 + $0xd0] sm:$0xff] %v8302_v30  ;;  %v8303_v2 = vsel %vm7791_vm11, %v7535_v18, %v8047_v43  ;;  %v7539_v56 = vadd.f32 %v13253_v21, %v7261_v33  ;;  %v7540_v3 = vadd.f32 %v13247_v63, %v7262_v52  ;;  %vm7793_vm13 = vcmp.ge.f32.partialorder %v7537_v19, 0.0  ;;  %v7276_v8 = vld [vmem:[#allocation2 + $0x5e8] sm:$0xff]  ;;  %v7277_v43 = vld [vmem:[#allocation2 + $0x5f8] sm:$0xff] }
 0x651   : > { %v8304_v0 = vsel %vm7792_vm12, %v7536_v50, %v8048_v17  ;;  %8559 = vst [vmem:[%s10681_s3 + $0xd8] sm:$0xff] %v8303_v2  ;;  %v8049_v26 = vmul.f32 0.01, %v7537_v19  ;;  %vm7794_vm14 = vcmp.ge.f32.partialorder %v7538_v39, 0.0  ;;  %v8050_v12 = vmul.f32 0.01, %v7538_v39 }
 0x652   : > { %8560 = vst [vmem:[%s10681_s3 + $0xe0] sm:$0xff] %v8304_v0  ;;  %vm7795_vm15 = vcmp.ge.f32.partialorder %v7539_v56, 0.0  ;;  %v8051_v40 = vmul.f32 0.01, %v7539_v56  ;;  %vm7796_vm0 = vcmp.ge.f32.partialorder %v7540_v3, 0.0  ;;  %v7541_v62 = vadd.f32 %v13249_v58, %v7263_v28  ;;  %v7275_v50 = vld [vmem:[#allocation2 + $0x5c0] sm:$0xff] }
 0x653   : > { %v8052_v46 = vmul.f32 0.01, %v7540_v3  ;;  %v8305_v57 = vsel %vm7793_vm13, %v7537_v19, %v8049_v26  ;;  %v8306_v45 = vsel %vm7794_vm14, %v7538_v39, %v8050_v12  ;;  %v7542_v4 = vadd.f32 %v13251_v59, %v7264_v48  ;;  %v7278_v17 = vld [vmem:[#allocation2 + $0x770] sm:$0xff]  ;;  %v7280_v12 = vld [vmem:[#allocation2 + $0x640] sm:$0xff] }
 0x654   : > { %8561 = vst [vmem:[%s10681_s3 + $0xe8] sm:$0xff] %v8305_v57  ;;  %8562 = vst [vmem:[%s10681_s3 + $0xf0] sm:$0xff] %v8306_v45  ;;  %v8307_v49 = vsel %vm7795_vm15, %v7539_v56, %v8051_v40  ;;  %v7543_v34 = vadd.f32 %v13253_v21, %v7265_v22  ;;  %v7544_v24 = vadd.f32 %v13247_v63, %v7266_v51  ;;  %vm7797_vm1 = vcmp.ge.f32.partialorder %v7541_v62, 0.0  ;;  %v7281_v40 = vld [vmem:[#allocation2 + $0x250] sm:$0xff] }
 0x655   : > { %v8308_v60 = vsel %vm7796_vm0, %v7540_v3, %v8052_v46  ;;  %8563 = vst [vmem:[%s10681_s3 + $0xf8] sm:$0xff] %v8307_v49  ;;  %v8053_v53 = vmul.f32 0.01, %v7541_v62  ;;  %vm7798_vm2 = vcmp.ge.f32.partialorder %v7542_v4, 0.0  ;;  %v8054_v5 = vmul.f32 0.01, %v7542_v4 }
 0x656   : > { %8564 = vst [vmem:[%s10681_s3 + $0x100] sm:$0xff] %v8308_v60  ;;  %vm7799_vm3 = vcmp.ge.f32.partialorder %v7543_v34, 0.0  ;;  %v8055_v55 = vmul.f32 0.01, %v7543_v34  ;;  %vm7800_vm4 = vcmp.ge.f32.partialorder %v7544_v24, 0.0  ;;  %v7545_v41 = vadd.f32 %v13249_v58, %v7267_v6  ;;  %v7279_v3 = vld [vmem:[#allocation2 + $0x520] sm:$0xff] }
 0x657   : > { %v8056_v29 = vmul.f32 0.01, %v7544_v24  ;;  %v8309_v9 = vsel %vm7797_vm1, %v7541_v62, %v8053_v53  ;;  %v8310_v38 = vsel %vm7798_vm2, %v7542_v4, %v8054_v5  ;;  %v7546_v25 = vadd.f32 %v13251_v59, %v7268_v23  ;;  %v7282_v46 = vld [vmem:[#allocation2 + $0x348] sm:$0xff]  ;;  %v7284_v5 = vld [vmem:[#allocation2 + $0xe0] sm:$0xff] }
 0x658   : > { %8565 = vst [vmem:[%s10681_s3 + $0x108] sm:$0xff] %v8309_v9  ;;  %8566 = vst [vmem:[%s10681_s3 + $0x110] sm:$0xff] %v8310_v38  ;;  %v8311_v54 = vsel %vm7799_vm3, %v7543_v34, %v8055_v55  ;;  %v7547_v14 = vadd.f32 %v13253_v21, %v7269_v31  ;;  %v7548_v10 = vadd.f32 %v13247_v63, %v7270_v20  ;;  %vm7801_vm5 = vcmp.ge.f32.partialorder %v7545_v41, 0.0  ;;  %v7285_v55 = vld [vmem:[#allocation2 + $0x620] sm:$0xff] }
 0x659   : > { %v8312_v44 = vsel %vm7800_vm4, %v7544_v24, %v8056_v29  ;;  %8567 = vst [vmem:[%s10681_s3 + $0x118] sm:$0xff] %v8311_v54  ;;  %v8057_v1 = vmul.f32 0.01, %v7545_v41  ;;  %vm7802_vm6 = vcmp.ge.f32.partialorder %v7546_v25, 0.0  ;;  %v8058_v35 = vmul.f32 0.01, %v7546_v25 }
 0x65a   : > { %8568 = vst [vmem:[%s10681_s3 + $0x120] sm:$0xff] %v8312_v44  ;;  %vm7803_vm7 = vcmp.ge.f32.partialorder %v7547_v14, 0.0  ;;  %v8059_v13 = vmul.f32 0.01, %v7547_v14  ;;  %vm7804_vm8 = vcmp.ge.f32.partialorder %v7548_v10, 0.0  ;;  %v7549_v32 = vadd.f32 %v13249_v58, %v7271_v47  ;;  %v7283_v24 = vld [vmem:[#allocation2 + $0x420] sm:$0xff] }
 0x65b   : > { %v8060_v7 = vmul.f32 0.01, %v7548_v10  ;;  %v8313_v15 = vsel %vm7801_vm5, %v7545_v41, %v8057_v1  ;;  %v8314_v11 = vsel %vm7802_vm6, %v7546_v25, %v8058_v35  ;;  %v7550_v18 = vadd.f32 %v13251_v59, %v7272_v37  ;;  %v7286_v29 = vld [vmem:[#allocation2 + $0x148] sm:$0xff] }
 0x65c   : > { %8569 = vst [vmem:[%s10681_s3 + $0x128] sm:$0xff] %v8313_v15  ;;  %8570 = vst [vmem:[%s10681_s3 + $0x130] sm:$0xff] %v8314_v11  ;;  %v8315_v36 = vsel %vm7803_vm7, %v7547_v14, %v8059_v13  ;;  %v7551_v52 = vadd.f32 %v13253_v21, %v7273_v61  ;;  %v7552_v42 = vadd.f32 %v13247_v63, %v7274_v16  ;;  %vm7805_vm9 = vcmp.ge.f32.partialorder %v7549_v32, 0.0  ;;  %v7288_v35 = vld [vmem:[#allocation2 + $0x4e8] sm:$0xff]  ;;  %v7289_v13 = vld [vmem:[#allocation2 + $0x310] sm:$0xff] }
 0x65d   : > { %v8316_v33 = vsel %vm7804_vm8, %v7548_v10, %v8060_v7  ;;  %8571 = vst [vmem:[%s10681_s3 + $0x138] sm:$0xff] %v8315_v36  ;;  %v8061_v27 = vmul.f32 0.01, %v7549_v32  ;;  %vm7806_vm10 = vcmp.ge.f32.partialorder %v7550_v18, 0.0  ;;  %v8062_v30 = vmul.f32 0.01, %v7550_v18 }
 0x65e   : > { %8572 = vst [vmem:[%s10681_s3 + $0x140] sm:$0xff] %v8316_v33  ;;  %vm7807_vm11 = vcmp.ge.f32.partialorder %v7551_v52, 0.0  ;;  %v8063_v19 = vmul.f32 0.01, %v7551_v52  ;;  %vm7808_vm12 = vcmp.ge.f32.partialorder %v7552_v42, 0.0  ;;  %v7553_v0 = vadd.f32 %v13249_v58, %v7275_v50  ;;  %v7287_v10 = vld [vmem:[#allocation2 + $0x3a0] sm:$0xff] }
 0x65f   : > { %v8064_v39 = vmul.f32 0.01, %v7552_v42  ;;  %v8317_v28 = vsel %vm7805_vm9, %v7549_v32, %v8061_v27  ;;  %v8318_v2 = vsel %vm7806_vm10, %v7550_v18, %v8062_v30  ;;  %v7554_v56 = vadd.f32 %v13251_v59, %v7276_v8  ;;  %v7290_v7 = vld [vmem:[#allocation2 + $0x38] sm:$0xff]  ;;  %v7292_v30 = vld [vmem:[#allocation2 + $0x50] sm:$0xff] }
 0x660   : > { %8573 = vst [vmem:[%s10681_s3 + $0x148] sm:$0xff] %v8317_v28  ;;  %8574 = vst [vmem:[%s10681_s3 + $0x150] sm:$0xff] %v8318_v2  ;;  %v8319_v48 = vsel %vm7807_vm11, %v7551_v52, %v8063_v19  ;;  %v7555_v51 = vadd.f32 %v13253_v21, %v7277_v43  ;;  %v7556_v26 = vadd.f32 %v13247_v63, %v7278_v17  ;;  %vm7809_vm13 = vcmp.ge.f32.partialorder %v7553_v0, 0.0  ;;  %v7293_v19 = vld [vmem:[#allocation2 + $0x390] sm:$0xff] }
 0x661   : > { %v8320_v22 = vsel %vm7808_vm12, %v7552_v42, %v8064_v39  ;;  %8575 = vst [vmem:[%s10681_s3 + $0x158] sm:$0xff] %v8319_v48  ;;  %v8065_v57 = vmul.f32 0.01, %v7553_v0  ;;  %vm7810_vm14 = vcmp.ge.f32.partialorder %v7554_v56, 0.0  ;;  %v8066_v45 = vmul.f32 0.01, %v7554_v56 }
 0x662   : > { %8576 = vst [vmem:[%s10681_s3 + $0x160] sm:$0xff] %v8320_v22  ;;  %vm7811_vm15 = vcmp.ge.f32.partialorder %v7555_v51, 0.0  ;;  %v8067_v62 = vmul.f32 0.01, %v7555_v51  ;;  %vm7812_vm0 = vcmp.ge.f32.partialorder %v7556_v26, 0.0  ;;  %v7557_v60 = vadd.f32 %v13249_v58, %v7279_v3  ;;  %v7291_v42 = vld [vmem:[#allocation2 + $0x440] sm:$0xff] }
 0x663   : > { %v8068_v4 = vmul.f32 0.01, %v7556_v26  ;;  %v8321_v6 = vsel %vm7809_vm13, %v7553_v0, %v8065_v57  ;;  %v8322_v49 = vsel %vm7810_vm14, %v7554_v56, %v8066_v45  ;;  %v7558_v34 = vadd.f32 %v13251_v59, %v7280_v12  ;;  %v7294_v39 = vld [vmem:[#allocation2 + $0x538] sm:$0xff]  ;;  %v7296_v45 = vld [vmem:[#allocation2 + $0x790] sm:$0xff] }
 0x664   : > { %8577 = vst [vmem:[%s10681_s3 + $0x168] sm:$0xff] %v8321_v6  ;;  %8578 = vst [vmem:[%s10681_s3 + $0x170] sm:$0xff] %v8322_v49  ;;  %v8323_v23 = vsel %vm7811_vm15, %v7555_v51, %v8067_v62  ;;  %v7559_v20 = vadd.f32 %v13253_v21, %v7281_v40  ;;  %v7560_v53 = vadd.f32 %v13247_v63, %v7282_v46  ;;  %vm7813_vm1 = vcmp.ge.f32.partialorder %v7557_v60, 0.0  ;;  %v7297_v62 = vld [vmem:[#allocation2 + $0x680] sm:$0xff] }
 0x665   : > { %v8324_v31 = vsel %vm7812_vm0, %v7556_v26, %v8068_v4  ;;  %8579 = vst [vmem:[%s10681_s3 + $0x178] sm:$0xff] %v8323_v23  ;;  %v8069_v9 = vmul.f32 0.01, %v7557_v60  ;;  %vm7814_vm2 = vcmp.ge.f32.partialorder %v7558_v34, 0.0  ;;  %v8070_v38 = vmul.f32 0.01, %v7558_v34 }
 0x666   : > { %8580 = vst [vmem:[%s10681_s3 + $0x180] sm:$0xff] %v8324_v31  ;;  %vm7815_vm3 = vcmp.ge.f32.partialorder %v7559_v20, 0.0  ;;  %v8071_v41 = vmul.f32 0.01, %v7559_v20  ;;  %vm7816_vm4 = vcmp.ge.f32.partialorder %v7560_v53, 0.0  ;;  %v7561_v44 = vadd.f32 %v13249_v58, %v7283_v24  ;;  %v7295_v26 = vld [vmem:[#allocation2 + $0xf0] sm:$0xff] }
 0x667   : > { %v8072_v25 = vmul.f32 0.01, %v7560_v53  ;;  %v8325_v47 = vsel %vm7813_vm1, %v7557_v60, %v8069_v9  ;;  %v8326_v54 = vsel %vm7814_vm2, %v7558_v34, %v8070_v38  ;;  %v7562_v14 = vadd.f32 %v13251_v59, %v7284_v5  ;;  %v7298_v4 = vld [vmem:[#allocation2 + $0xb8] sm:$0xff]  ;;  %v7300_v38 = vld [vmem:[#allocation2 + $0xd0] sm:$0xff] }
 0x668   : > { %8581 = vst [vmem:[%s10681_s3 + $0x188] sm:$0xff] %v8325_v47  ;;  %8582 = vst [vmem:[%s10681_s3 + $0x190] sm:$0xff] %v8326_v54  ;;  %v8327_v37 = vsel %vm7815_vm3, %v7559_v20, %v8071_v41  ;;  %v7563_v16 = vadd.f32 %v13253_v21, %v7285_v55  ;;  %v7564_v1 = vadd.f32 %v13247_v63, %v7286_v29  ;;  %vm7817_vm5 = vcmp.ge.f32.partialorder %v7561_v44, 0.0  ;;  %v7301_v41 = vld [vmem:[#allocation2 + $0x40] sm:$0xff] }
 0x669   : > { %v8328_v61 = vsel %vm7816_vm4, %v7560_v53, %v8072_v25  ;;  %8583 = vst [vmem:[%s10681_s3 + $0x198] sm:$0xff] %v8327_v37  ;;  %v8073_v15 = vmul.f32 0.01, %v7561_v44  ;;  %vm7818_vm6 = vcmp.ge.f32.partialorder %v7562_v14, 0.0  ;;  %v8074_v11 = vmul.f32 0.01, %v7562_v14 }
 0x66a   : > { %8584 = vst [vmem:[%s10681_s3 + $0x1a0] sm:$0xff] %v8328_v61  ;;  %vm7819_vm7 = vcmp.ge.f32.partialorder %v7563_v16, 0.0  ;;  %v8075_v32 = vmul.f32 0.01, %v7563_v16  ;;  %vm7820_vm8 = vcmp.ge.f32.partialorder %v7564_v1, 0.0  ;;  %v7565_v33 = vadd.f32 %v13249_v58, %v7287_v10  ;;  %v7299_v53 = vld [vmem:[#allocation2 + $0x120] sm:$0xff] }
 0x66b   : > { %v8076_v18 = vmul.f32 0.01, %v7564_v1  ;;  %v8329_v50 = vsel %vm7817_vm5, %v7561_v44, %v8073_v15  ;;  %v8330_v36 = vsel %vm7818_vm6, %v7562_v14, %v8074_v11  ;;  %v7566_v52 = vadd.f32 %v13251_v59, %v7288_v35  ;;  %v7302_v25 = vld [vmem:[#allocation2 + $0x6f0] sm:$0xff]  ;;  %v7304_v11 = vld [vmem:[#allocation2 + $0x758] sm:$0xff] }
 0x66c   : > { %8585 = vst [vmem:[%s10681_s3 + $0x1a8] sm:$0xff] %v8329_v50  ;;  %8586 = vst [vmem:[%s10681_s3 + $0x1b0] sm:$0xff] %v8330_v36  ;;  %v8331_v8 = vsel %vm7819_vm7, %v7563_v16, %v8075_v32  ;;  %v7567_v17 = vadd.f32 %v13253_v21, %v7289_v13  ;;  %v7568_v27 = vadd.f32 %v13247_v63, %v7290_v7  ;;  %vm7821_vm9 = vcmp.ge.f32.partialorder %v7565_v33, 0.0  ;;  %v7305_v32 = vld [vmem:[#allocation2 + $0x178] sm:$0xff] }
 0x66d   : > { %v8332_v43 = vsel %vm7820_vm8, %v7564_v1, %v8076_v18  ;;  %8587 = vst [vmem:[%s10681_s3 + $0x1b8] sm:$0xff] %v8331_v8  ;;  %v8077_v28 = vmul.f32 0.01, %v7565_v33  ;;  %vm7822_vm10 = vcmp.ge.f32.partialorder %v7566_v52, 0.0  ;;  %v8078_v2 = vmul.f32 0.01, %v7566_v52 }
 0x66e   : > { %8588 = vst [vmem:[%s10681_s3 + $0x1c0] sm:$0xff] %v8332_v43  ;;  %vm7823_vm11 = vcmp.ge.f32.partialorder %v7567_v17, 0.0  ;;  %v8079_v0 = vmul.f32 0.01, %v7567_v17  ;;  %vm7824_vm12 = vcmp.ge.f32.partialorder %v7568_v27, 0.0  ;;  %v7569_v22 = vadd.f32 %v13249_v58, %v7291_v42  ;;  %v7303_v1 = vld [vmem:[#allocation2 + $0x2f8] sm:$0xff] }
 0x66f   : > { %v8080_v56 = vmul.f32 0.01, %v7568_v27  ;;  %v8333_v3 = vsel %vm7821_vm9, %v7565_v33, %v8077_v28  ;;  %v8334_v48 = vsel %vm7822_vm10, %v7566_v52, %v8078_v2  ;;  %v7570_v51 = vadd.f32 %v13251_v59, %v7292_v30  ;;  %v7306_v18 = vld [vmem:[#allocation2 + $0x738] sm:$0xff] }
 0x670   : > { %8589 = vst [vmem:[%s10681_s3 + $0x1c8] sm:$0xff] %v8333_v3  ;;  %8590 = vst [vmem:[%s10681_s3 + $0x1d0] sm:$0xff] %v8334_v48  ;;  %v8335_v12 = vsel %vm7823_vm11, %v7567_v17, %v8079_v0  ;;  %v7571_v46 = vadd.f32 %v13253_v21, %v7293_v19  ;;  %v7572_v57 = vadd.f32 %v13247_v63, %v7294_v39  ;;  %vm7825_vm13 = vcmp.ge.f32.partialorder %v7569_v22, 0.0  ;;  %v7308_v2 = vld [vmem:[#allocation2 + $0x7d8] sm:$0xff] }
 0x671   : > { %v8336_v40 = vsel %vm7824_vm12, %v7568_v27, %v8080_v56  ;;  %8591 = vst [vmem:[%s10681_s3 + $0x1d8] sm:$0xff] %v8335_v12  ;;  %v8081_v6 = vmul.f32 0.01, %v7569_v22  ;;  %vm7826_vm14 = vcmp.ge.f32.partialorder %v7570_v51, 0.0  ;;  %v8082_v49 = vmul.f32 0.01, %v7570_v51 }
 0x672   : > { %8592 = vst [vmem:[%s10681_s3 + $0x1e0] sm:$0xff] %v8336_v40  ;;  %vm7827_vm15 = vcmp.ge.f32.partialorder %v7571_v46, 0.0  ;;  %v8083_v60 = vmul.f32 0.01, %v7571_v46  ;;  %vm7828_vm0 = vcmp.ge.f32.partialorder %v7572_v57, 0.0  ;;  %v7573_v31 = vadd.f32 %v13249_v58, %v7295_v26  ;;  %v7307_v27 = vld [vmem:[#allocation2 + $0x598] sm:$0xff] }
 0x673   : > { %v8084_v34 = vmul.f32 0.01, %v7572_v57  ;;  %v8337_v24 = vsel %vm7825_vm13, %v7569_v22, %v8081_v6  ;;  %v8338_v23 = vsel %vm7826_vm14, %v7570_v51, %v8082_v49  ;;  %v7574_v20 = vadd.f32 %v13251_v59, %v7296_v45  ;;  %v7309_v0 = vld [vmem:[#allocation2 + $0x6d8] sm:$0xff] }
 0x674   : > { %8593 = vst [vmem:[%s10681_s3 + $0x1e8] sm:$0xff] %v8337_v24  ;;  %8594 = vst [vmem:[%s10681_s3 + $0x1f0] sm:$0xff] %v8338_v23  ;;  %v8339_v5 = vsel %vm7827_vm15, %v7571_v46, %v8083_v60  ;;  %v7575_v29 = vadd.f32 %v13253_v21, %v7297_v62  ;;  %v7576_v9 = vadd.f32 %v13247_v63, %v7298_v4  ;;  %vm7829_vm1 = vcmp.ge.f32.partialorder %v7573_v31, 0.0  ;;  %v7310_v56 = vld [vmem:[#allocation2 + $0x398] sm:$0xff] }
 0x675   : > { %v8340_v55 = vsel %vm7828_vm0, %v7572_v57, %v8084_v34  ;;  %8595 = vst [vmem:[%s10681_s3 + $0x1f8] sm:$0xff] %v8339_v5  ;;  %v8085_v47 = vmul.f32 0.01, %v7573_v31  ;;  %vm7830_vm2 = vcmp.ge.f32.partialorder %v7574_v20, 0.0  ;;  %v8086_v54 = vmul.f32 0.01, %v7574_v20 }
 0x676   : > { %8596 = vst [vmem:[%s10681_s3 + $0x200] sm:$0xff] %v8340_v55  ;;  %vm7831_vm3 = vcmp.ge.f32.partialorder %v7575_v29, 0.0  ;;  %v8087_v44 = vmul.f32 0.01, %v7575_v29  ;;  %vm7832_vm4 = vcmp.ge.f32.partialorder %v7576_v9, 0.0  ;;  %v7577_v61 = vadd.f32 %v13249_v58, %v7299_v53  ;;  %v7311_v57 = vld [vmem:[#allocation2 + $0x1a8] sm:$0xff] }
 0x677   : > { %v8088_v14 = vmul.f32 0.01, %v7576_v9  ;;  %v8341_v10 = vsel %vm7829_vm1, %v7573_v31, %v8085_v47  ;;  %v8342_v37 = vsel %vm7830_vm2, %v7574_v20, %v8086_v54  ;;  %v7578_v16 = vadd.f32 %v13251_v59, %v7300_v38  ;;  %v7312_v49 = vld [vmem:[#allocation2 + $0x698] sm:$0xff] }
 0x678   : > { %8597 = vst [vmem:[%s10681_s3 + $0x208] sm:$0xff] %v8341_v10  ;;  %8598 = vst [vmem:[%s10681_s3 + $0x210] sm:$0xff] %v8342_v37  ;;  %v8343_v35 = vsel %vm7831_vm3, %v7575_v29, %v8087_v44  ;;  %v7579_v7 = vadd.f32 %v13253_v21, %v7301_v41  ;;  %v7580_v15 = vadd.f32 %v13247_v63, %v7302_v25  ;;  %vm7833_vm5 = vcmp.ge.f32.partialorder %v7577_v61, 0.0  ;;  %v7313_v60 = vld [vmem:[#allocation2 + $0x3b8] sm:$0xff] }
 0x679   : > { %v8344_v13 = vsel %vm7832_vm4, %v7576_v9, %v8088_v14  ;;  %8599 = vst [vmem:[%s10681_s3 + $0x218] sm:$0xff] %v8343_v35  ;;  %v8089_v50 = vmul.f32 0.01, %v7577_v61  ;;  %vm7834_vm6 = vcmp.ge.f32.partialorder %v7578_v16, 0.0  ;;  %v8090_v36 = vmul.f32 0.01, %v7578_v16 }
 0x67a   : > { %8600 = vst [vmem:[%s10681_s3 + $0x220] sm:$0xff] %v8344_v13  ;;  %vm7835_vm7 = vcmp.ge.f32.partialorder %v7579_v7, 0.0  ;;  %v8091_v33 = vmul.f32 0.01, %v7579_v7  ;;  %vm7836_vm8 = vcmp.ge.f32.partialorder %v7580_v15, 0.0  ;;  %v7581_v43 = vadd.f32 %v13249_v58, %v7303_v1  ;;  %v7314_v34 = vld [vmem:[#allocation2 + $0x5d8] sm:$0xff] }
 0x67b   : > { %v8092_v52 = vmul.f32 0.01, %v7580_v15  ;;  %v8345_v42 = vsel %vm7833_vm5, %v7577_v61, %v8089_v50  ;;  %v8346_v8 = vsel %vm7834_vm6, %v7578_v16, %v8090_v36  ;;  %v7582_v17 = vadd.f32 %v13251_v59, %v7304_v11  ;;  %v7315_v9 = vld [vmem:[#allocation2 + $0x610] sm:$0xff]  ;;  %v7316_v54 = vld [vmem:[#allocation2 + $0x218] sm:$0xff]  ;;  %v7318_v14 = vld [vmem:[#allocation2 + $0x628] sm:$0xff] }
 0x67c   : > { %8601 = vst [vmem:[%s10681_s3 + $0x228] sm:$0xff] %v8345_v42  ;;  %8602 = vst [vmem:[%s10681_s3 + $0x230] sm:$0xff] %v8346_v8  ;;  %v8347_v30 = vsel %vm7835_vm7, %v7579_v7, %v8091_v33  ;;  %v7583_v39 = vadd.f32 %v13253_v21, %v7305_v32  ;;  %v7584_v28 = vadd.f32 %v13247_v63, %v7306_v18  ;;  %vm7837_vm9 = vcmp.ge.f32.partialorder %v7581_v43, 0.0  ;;  %v7317_v44 = vld [vmem:[#allocation2 + $0x1d8] sm:$0xff]  ;;  %v7320_v36 = vld [vmem:[#allocation2 + $0x388] sm:$0xff] }
 0x67d   : > { %v8348_v19 = vsel %vm7836_vm8, %v7580_v15, %v8092_v52  ;;  %8603 = vst [vmem:[%s10681_s3 + $0x238] sm:$0xff] %v8347_v30  ;;  %v8093_v3 = vmul.f32 0.01, %v7581_v43  ;;  %vm7838_vm10 = vcmp.ge.f32.partialorder %v7582_v17, 0.0  ;;  %v8094_v48 = vmul.f32 0.01, %v7582_v17 }
 0x67e   : > { %8604 = vst [vmem:[%s10681_s3 + $0x240] sm:$0xff] %v8348_v19  ;;  %vm7839_vm11 = vcmp.ge.f32.partialorder %v7583_v39, 0.0  ;;  %v8095_v22 = vmul.f32 0.01, %v7583_v39  ;;  %vm7840_vm12 = vcmp.ge.f32.partialorder %v7584_v28, 0.0  ;;  %v7585_v40 = vadd.f32 %v13249_v58, %v7307_v27  ;;  %v7319_v15 = vld [vmem:[#allocation2 + $0x1f8] sm:$0xff] }
 0x67f   : > { %v8096_v51 = vmul.f32 0.01, %v7584_v28  ;;  %v8349_v26 = vsel %vm7837_vm9, %v7581_v43, %v8093_v3  ;;  %v8350_v12 = vsel %vm7838_vm10, %v7582_v17, %v8094_v48  ;;  %v7586_v46 = vadd.f32 %v13251_v59, %v7308_v2  ;;  %v7321_v33 = vld [vmem:[#allocation2 + $0x278] sm:$0xff]  ;;  %v7324_v48 = vld [vmem:[#allocation2 + $0x1c8] sm:$0xff] }
 0x680   : > { %8605 = vst [vmem:[%s10681_s3 + $0x248] sm:$0xff] %v8349_v26  ;;  %8606 = vst [vmem:[%s10681_s3 + $0x250] sm:$0xff] %v8350_v12  ;;  %v8351_v45 = vsel %vm7839_vm11, %v7583_v39, %v8095_v22  ;;  %v7587_v4 = vadd.f32 %v13253_v21, %v7309_v0  ;;  %v7588_v6 = vadd.f32 %v13247_v63, %v7310_v56  ;;  %vm7841_vm13 = vcmp.ge.f32.partialorder %v7585_v40, 0.0  ;;  %v7322_v52 = vld [vmem:[#allocation2 + $0x478] sm:$0xff]  ;;  %v7325_v22 = vld [vmem:[#allocation2 + $0x7c0] sm:$0xff] }
 0x681   : > { %v8352_v62 = vsel %vm7840_vm12, %v7584_v28, %v8096_v51  ;;  %8607 = vst [vmem:[%s10681_s3 + $0x258] sm:$0xff] %v8351_v45  ;;  %v8097_v24 = vmul.f32 0.01, %v7585_v40  ;;  %vm7842_vm14 = vcmp.ge.f32.partialorder %v7586_v46, 0.0  ;;  %v8098_v23 = vmul.f32 0.01, %v7586_v46 }
 0x682   : > { %8608 = vst [vmem:[%s10681_s3 + $0x260] sm:$0xff] %v8352_v62  ;;  %vm7843_vm15 = vcmp.ge.f32.partialorder %v7587_v4, 0.0  ;;  %v8099_v31 = vmul.f32 0.01, %v7587_v4  ;;  %vm7844_vm0 = vcmp.ge.f32.partialorder %v7588_v6, 0.0  ;;  %v7589_v55 = vadd.f32 %v13249_v58, %v7311_v57  ;;  %v7323_v28 = vld [vmem:[#allocation2 + $0x2c0] sm:$0xff] }
 0x683   : > { %v8100_v20 = vmul.f32 0.01, %v7588_v6  ;;  %v8353_v53 = vsel %vm7841_vm13, %v7585_v40, %v8097_v24  ;;  %v8354_v5 = vsel %vm7842_vm14, %v7586_v46, %v8098_v23  ;;  %v7590_v29 = vadd.f32 %v13251_v59, %v7312_v49  ;;  %v7326_v51 = vld [vmem:[#allocation2 + $0x418] sm:$0xff]  ;;  %v7328_v23 = vld [vmem:[#allocation2 + $0x4b0] sm:$0xff] }
 0x684   : > { %8609 = vst [vmem:[%s10681_s3 + $0x268] sm:$0xff] %v8353_v53  ;;  %8610 = vst [vmem:[%s10681_s3 + $0x270] sm:$0xff] %v8354_v5  ;;  %v8355_v38 = vsel %vm7843_vm15, %v7587_v4, %v8099_v31  ;;  %v7591_v25 = vadd.f32 %v13253_v21, %v7313_v60  ;;  %v7592_v47 = vadd.f32 %v13247_v63, %v7314_v34  ;;  %vm7845_vm1 = vcmp.ge.f32.partialorder %v7589_v55, 0.0  ;;  %v7329_v31 = vld [vmem:[#allocation2 + $0x318] sm:$0xff] }
 0x685   : > { %v8356_v41 = vsel %vm7844_vm0, %v7588_v6, %v8100_v20  ;;  %8611 = vst [vmem:[%s10681_s3 + $0x278] sm:$0xff] %v8355_v38  ;;  %v8101_v10 = vmul.f32 0.01, %v7589_v55  ;;  %vm7846_vm2 = vcmp.ge.f32.partialorder %v7590_v29, 0.0  ;;  %v8102_v37 = vmul.f32 0.01, %v7590_v29 }
 0x686   : > { %8612 = vst [vmem:[%s10681_s3 + $0x280] sm:$0xff] %v8356_v41  ;;  %vm7847_vm3 = vcmp.ge.f32.partialorder %v7591_v25, 0.0  ;;  %v8103_v61 = vmul.f32 0.01, %v7591_v25  ;;  %vm7848_vm4 = vcmp.ge.f32.partialorder %v7592_v47, 0.0  ;;  %v7593_v13 = vadd.f32 %v13249_v58, %v7315_v9  ;;  %v7327_v6 = vld [vmem:[#allocation2 + $0x7f0] sm:$0xff] }
 0x687   : > { %v8104_v16 = vmul.f32 0.01, %v7592_v47  ;;  %v8357_v1 = vsel %vm7845_vm1, %v7589_v55, %v8101_v10  ;;  %v8358_v35 = vsel %vm7846_vm2, %v7590_v29, %v8102_v37  ;;  %v7594_v7 = vadd.f32 %v13251_v59, %v7316_v54  ;;  %v7330_v20 = vld [vmem:[#allocation2 + $0x90] sm:$0xff]  ;;  %v7332_v37 = vld [vmem:[#allocation2 + $0x588] sm:$0xff] }
 0x688   : > { %8613 = vst [vmem:[%s10681_s3 + $0x288] sm:$0xff] %v8357_v1  ;;  %8614 = vst [vmem:[%s10681_s3 + $0x290] sm:$0xff] %v8358_v35  ;;  %v8359_v11 = vsel %vm7847_vm3, %v7591_v25, %v8103_v61  ;;  %v7595_v18 = vadd.f32 %v13253_v21, %v7317_v44  ;;  %v7596_v50 = vadd.f32 %v13247_v63, %v7318_v14  ;;  %vm7849_vm5 = vcmp.ge.f32.partialorder %v7593_v13, 0.0  ;;  %v7333_v61 = vld [vmem:[#allocation2 + $0x648] sm:$0xff] }
 0x689   : > { %v8360_v32 = vsel %vm7848_vm4, %v7592_v47, %v8104_v16  ;;  %8615 = vst [vmem:[%s10681_s3 + $0x298] sm:$0xff] %v8359_v11  ;;  %v8105_v42 = vmul.f32 0.01, %v7593_v13  ;;  %vm7850_vm6 = vcmp.ge.f32.partialorder %v7594_v7, 0.0  ;;  %v8106_v8 = vmul.f32 0.01, %v7594_v7 }
 0x68a   : > { %8616 = vst [vmem:[%s10681_s3 + $0x2a0] sm:$0xff] %v8360_v32  ;;  %vm7851_vm7 = vcmp.ge.f32.partialorder %v7595_v18, 0.0  ;;  %v8107_v43 = vmul.f32 0.01, %v7595_v18  ;;  %vm7852_vm8 = vcmp.ge.f32.partialorder %v7596_v50, 0.0  ;;  %v7597_v19 = vadd.f32 %v13249_v58, %v7319_v15  ;;  %v7331_v47 = vld [vmem:[#allocation2 + $0x540] sm:$0xff] }
 0x68b   : > { %v8108_v17 = vmul.f32 0.01, %v7596_v50  ;;  %v8361_v27 = vsel %vm7849_vm5, %v7593_v13, %v8105_v42  ;;  %v8362_v30 = vsel %vm7850_vm6, %v7594_v7, %v8106_v8  ;;  %v7598_v39 = vadd.f32 %v13251_v59, %v7320_v36  ;;  %v7334_v16 = vld [vmem:[#allocation2 + $0x58] sm:$0xff]  ;;  %v7336_v8 = vld [vmem:[#allocation2 + $0x68] sm:$0xff] }
 0x68c   : > { %8617 = vst [vmem:[%s10681_s3 + $0x2a8] sm:$0xff] %v8361_v27  ;;  %8618 = vst [vmem:[%s10681_s3 + $0x2b0] sm:$0xff] %v8362_v30  ;;  %v8363_v2 = vsel %vm7851_vm7, %v7595_v18, %v8107_v43  ;;  %v7599_v56 = vadd.f32 %v13253_v21, %v7321_v33  ;;  %v7600_v3 = vadd.f32 %v13247_v63, %v7322_v52  ;;  %vm7853_vm9 = vcmp.ge.f32.partialorder %v7597_v19, 0.0  ;;  %v7337_v43 = vld [vmem:[#allocation2 + $0x600] sm:$0xff] }
 0x68d   : > { %v8364_v0 = vsel %vm7852_vm8, %v7596_v50, %v8108_v17  ;;  %8619 = vst [vmem:[%s10681_s3 + $0x2b8] sm:$0xff] %v8363_v2  ;;  %v8109_v26 = vmul.f32 0.01, %v7597_v19  ;;  %vm7854_vm10 = vcmp.ge.f32.partialorder %v7598_v39, 0.0  ;;  %v8110_v12 = vmul.f32 0.01, %v7598_v39 }
 0x68e   : > { %8620 = vst [vmem:[%s10681_s3 + $0x2c0] sm:$0xff] %v8364_v0  ;;  %vm7855_vm11 = vcmp.ge.f32.partialorder %v7599_v56, 0.0  ;;  %v8111_v40 = vmul.f32 0.01, %v7599_v56  ;;  %vm7856_vm12 = vcmp.ge.f32.partialorder %v7600_v3, 0.0  ;;  %v7601_v62 = vadd.f32 %v13249_v58, %v7323_v28  ;;  %v7335_v50 = vld [vmem:[#allocation2 + $0x198] sm:$0xff] }
 0x68f   : > { %v8112_v46 = vmul.f32 0.01, %v7600_v3  ;;  %v8365_v57 = vsel %vm7853_vm9, %v7597_v19, %v8109_v26  ;;  %v8366_v45 = vsel %vm7854_vm10, %v7598_v39, %v8110_v12  ;;  %v7602_v4 = vadd.f32 %v13251_v59, %v7324_v48  ;;  %v7338_v17 = vld [vmem:[#allocation2 + $0x3a8] sm:$0xff]  ;;  %v7340_v12 = vld [vmem:[#allocation2 + $0x630] sm:$0xff] }
 0x690   : > { %8621 = vst [vmem:[%s10681_s3 + $0x2c8] sm:$0xff] %v8365_v57  ;;  %8622 = vst [vmem:[%s10681_s3 + $0x2d0] sm:$0xff] %v8366_v45  ;;  %v8367_v49 = vsel %vm7855_vm11, %v7599_v56, %v8111_v40  ;;  %v7603_v34 = vadd.f32 %v13253_v21, %v7325_v22  ;;  %v7604_v24 = vadd.f32 %v13247_v63, %v7326_v51  ;;  %vm7857_vm13 = vcmp.ge.f32.partialorder %v7601_v62, 0.0  ;;  %v7341_v40 = vld [vmem:[#allocation2 + $0x158] sm:$0xff] }
 0x691   : > { %v8368_v60 = vsel %vm7856_vm12, %v7600_v3, %v8112_v46  ;;  %8623 = vst [vmem:[%s10681_s3 + $0x2d8] sm:$0xff] %v8367_v49  ;;  %v8113_v53 = vmul.f32 0.01, %v7601_v62  ;;  %vm7858_vm14 = vcmp.ge.f32.partialorder %v7602_v4, 0.0  ;;  %v8114_v5 = vmul.f32 0.01, %v7602_v4 }
 0x692   : > { %8624 = vst [vmem:[%s10681_s3 + $0x2e0] sm:$0xff] %v8368_v60  ;;  %vm7859_vm15 = vcmp.ge.f32.partialorder %v7603_v34, 0.0  ;;  %v8115_v55 = vmul.f32 0.01, %v7603_v34  ;;  %vm7860_vm0 = vcmp.ge.f32.partialorder %v7604_v24, 0.0  ;;  %v7605_v41 = vadd.f32 %v13249_v58, %v7327_v6  ;;  %v7339_v3 = vld [vmem:[#allocation2 + $0xb0] sm:$0xff] }
 0x693   : > { %v8116_v29 = vmul.f32 0.01, %v7604_v24  ;;  %v8369_v9 = vsel %vm7857_vm13, %v7601_v62, %v8113_v53  ;;  %v8370_v38 = vsel %vm7858_vm14, %v7602_v4, %v8114_v5  ;;  %v7606_v25 = vadd.f32 %v13251_v59, %v7328_v23  ;;  %v7342_v46 = vld [vmem:[#allocation2 + $0x370] sm:$0xff] }
 0x694   : > { %8625 = vst [vmem:[%s10681_s3 + $0x2e8] sm:$0xff] %v8369_v9  ;;  %8626 = vst [vmem:[%s10681_s3 + $0x2f0] sm:$0xff] %v8370_v38  ;;  %v8371_v54 = vsel %vm7859_vm15, %v7603_v34, %v8115_v55  ;;  %v7607_v14 = vadd.f32 %v13253_v21, %v7329_v31  ;;  %v7608_v10 = vadd.f32 %v13247_v63, %v7330_v20  ;;  %vm7861_vm1 = vcmp.ge.f32.partialorder %v7605_v41, 0.0  ;;  %v7344_v5 = vld [vmem:[#allocation2 + $0x7b0] sm:$0xff]  ;;  %v7345_v55 = vld [vmem:[#allocation2 + $0x6c0] sm:$0xff] }
 0x695   : > { %v8372_v44 = vsel %vm7860_vm0, %v7604_v24, %v8116_v29  ;;  %8627 = vst [vmem:[%s10681_s3 + $0x2f8] sm:$0xff] %v8371_v54  ;;  %v8117_v1 = vmul.f32 0.01, %v7605_v41  ;;  %vm7862_vm2 = vcmp.ge.f32.partialorder %v7606_v25, 0.0  ;;  %v8118_v35 = vmul.f32 0.01, %v7606_v25 }
 0x696   : > { %8628 = vst [vmem:[%s10681_s3 + $0x300] sm:$0xff] %v8372_v44  ;;  %vm7863_vm3 = vcmp.ge.f32.partialorder %v7607_v14, 0.0  ;;  %v8119_v13 = vmul.f32 0.01, %v7607_v14  ;;  %vm7864_vm4 = vcmp.ge.f32.partialorder %v7608_v10, 0.0  ;;  %v7609_v32 = vadd.f32 %v13249_v58, %v7331_v47  ;;  %v7343_v24 = vld [vmem:[#allocation2 + $0x1e0] sm:$0xff] }
 0x697   : > { %v8120_v7 = vmul.f32 0.01, %v7608_v10  ;;  %v8373_v15 = vsel %vm7861_vm1, %v7605_v41, %v8117_v1  ;;  %v8374_v11 = vsel %vm7862_vm2, %v7606_v25, %v8118_v35  ;;  %v7610_v18 = vadd.f32 %v13251_v59, %v7332_v37  ;;  %v7346_v29 = vld [vmem:[#allocation2 + $0xd8] sm:$0xff]  ;;  %v7348_v35 = vld [vmem:[#allocation2 + $0x140] sm:$0xff] }
 0x698   : > { %8629 = vst [vmem:[%s10681_s3 + $0x308] sm:$0xff] %v8373_v15  ;;  %8630 = vst [vmem:[%s10681_s3 + $0x310] sm:$0xff] %v8374_v11  ;;  %v8375_v36 = vsel %vm7863_vm3, %v7607_v14, %v8119_v13  ;;  %v7611_v52 = vadd.f32 %v13253_v21, %v7333_v61  ;;  %v7612_v42 = vadd.f32 %v13247_v63, %v7334_v16  ;;  %vm7865_vm5 = vcmp.ge.f32.partialorder %v7609_v32, 0.0  ;;  %v7349_v13 = vld [vmem:[#allocation2 + $0x5b0] sm:$0xff] }
 0x699   : > { %v8376_v33 = vsel %vm7864_vm4, %v7608_v10, %v8120_v7  ;;  %8631 = vst [vmem:[%s10681_s3 + $0x318] sm:$0xff] %v8375_v36  ;;  %v8121_v27 = vmul.f32 0.01, %v7609_v32  ;;  %vm7866_vm6 = vcmp.ge.f32.partialorder %v7610_v18, 0.0  ;;  %v8122_v30 = vmul.f32 0.01, %v7610_v18 }
 0x69a   : > { %8632 = vst [vmem:[%s10681_s3 + $0x320] sm:$0xff] %v8376_v33  ;;  %vm7867_vm7 = vcmp.ge.f32.partialorder %v7611_v52, 0.0  ;;  %v8123_v19 = vmul.f32 0.01, %v7611_v52  ;;  %vm7868_vm8 = vcmp.ge.f32.partialorder %v7612_v42, 0.0  ;;  %v7613_v0 = vadd.f32 %v13249_v58, %v7335_v50  ;;  %v7347_v10 = vld [vmem:[#allocation2 + $0x6b8] sm:$0xff] }
 0x69b   : > { %v8124_v39 = vmul.f32 0.01, %v7612_v42  ;;  %v8377_v28 = vsel %vm7865_vm5, %v7609_v32, %v8121_v27  ;;  %v8378_v2 = vsel %vm7866_vm6, %v7610_v18, %v8122_v30  ;;  %v7614_v56 = vadd.f32 %v13251_v59, %v7336_v8  ;;  %v7350_v7 = vld [vmem:[#allocation2 + $0x30] sm:$0xff]  ;;  %v7352_v30 = vld [vmem:[#allocation2 + $0x1a0] sm:$0xff] }
 0x69c   : > { %8633 = vst [vmem:[%s10681_s3 + $0x328] sm:$0xff] %v8377_v28  ;;  %8634 = vst [vmem:[%s10681_s3 + $0x330] sm:$0xff] %v8378_v2  ;;  %v8379_v48 = vsel %vm7867_vm7, %v7611_v52, %v8123_v19  ;;  %v7615_v51 = vadd.f32 %v13253_v21, %v7337_v43  ;;  %v7616_v26 = vadd.f32 %v13247_v63, %v7338_v17  ;;  %vm7869_vm9 = vcmp.ge.f32.partialorder %v7613_v0, 0.0  ;;  %v7353_v19 = vld [vmem:[#allocation2 + $0x5f0] sm:$0xff] }
 0x69d   : > { %v8380_v22 = vsel %vm7868_vm8, %v7612_v42, %v8124_v39  ;;  %8635 = vst [vmem:[%s10681_s3 + $0x338] sm:$0xff] %v8379_v48  ;;  %v8125_v57 = vmul.f32 0.01, %v7613_v0  ;;  %vm7870_vm10 = vcmp.ge.f32.partialorder %v7614_v56, 0.0  ;;  %v8126_v45 = vmul.f32 0.01, %v7614_v56 }
 0x69e   : > { %8636 = vst [vmem:[%s10681_s3 + $0x340] sm:$0xff] %v8380_v22  ;;  %vm7871_vm11 = vcmp.ge.f32.partialorder %v7615_v51, 0.0  ;;  %v8127_v62 = vmul.f32 0.01, %v7615_v51  ;;  %vm7872_vm12 = vcmp.ge.f32.partialorder %v7616_v26, 0.0  ;;  %v7617_v60 = vadd.f32 %v13249_v58, %v7339_v3  ;;  %v7351_v42 = vld [vmem:[#allocation2 + $0x128] sm:$0xff] }
 0x69f   : > { %v8128_v4 = vmul.f32 0.01, %v7616_v26  ;;  %v8381_v6 = vsel %vm7869_vm9, %v7613_v0, %v8125_v57  ;;  %v8382_v49 = vsel %vm7870_vm10, %v7614_v56, %v8126_v45  ;;  %v7618_v34 = vadd.f32 %v13251_v59, %v7340_v12  ;;  %v7354_v39 = vld [vmem:[#allocation2 + $0x670] sm:$0xff]  ;;  %v7356_v45 = vld [vmem:[#allocation2 + $0x118] sm:$0xff] }
 0x6a0   : > { %8637 = vst [vmem:[%s10681_s3 + $0x348] sm:$0xff] %v8381_v6  ;;  %8638 = vst [vmem:[%s10681_s3 + $0x350] sm:$0xff] %v8382_v49  ;;  %v8383_v23 = vsel %vm7871_vm11, %v7615_v51, %v8127_v62  ;;  %v7619_v20 = vadd.f32 %v13253_v21, %v7341_v40  ;;  %v7620_v53 = vadd.f32 %v13247_v63, %v7342_v46  ;;  %vm7873_vm13 = vcmp.ge.f32.partialorder %v7617_v60, 0.0  ;;  %v7357_v62 = vld [vmem:[#allocation2 + $0x268] sm:$0xff] }
 0x6a1   : > { %v8384_v31 = vsel %vm7872_vm12, %v7616_v26, %v8128_v4  ;;  %8639 = vst [vmem:[%s10681_s3 + $0x358] sm:$0xff] %v8383_v23  ;;  %v8129_v9 = vmul.f32 0.01, %v7617_v60  ;;  %vm7874_vm14 = vcmp.ge.f32.partialorder %v7618_v34, 0.0  ;;  %v8130_v38 = vmul.f32 0.01, %v7618_v34 }
 0x6a2   : > { %8640 = vst [vmem:[%s10681_s3 + $0x360] sm:$0xff] %v8384_v31  ;;  %vm7875_vm15 = vcmp.ge.f32.partialorder %v7619_v20, 0.0  ;;  %v8131_v41 = vmul.f32 0.01, %v7619_v20  ;;  %vm7876_vm0 = vcmp.ge.f32.partialorder %v7620_v53, 0.0  ;;  %v7621_v44 = vadd.f32 %v13249_v58, %v7343_v24  ;;  %v7355_v26 = vld [vmem:[#allocation2 + $0x240] sm:$0xff] }
 0x6a3   : > { %v8132_v25 = vmul.f32 0.01, %v7620_v53  ;;  %v8385_v47 = vsel %vm7873_vm13, %v7617_v60, %v8129_v9  ;;  %v8386_v54 = vsel %vm7874_vm14, %v7618_v34, %v8130_v38  ;;  %v7622_v14 = vadd.f32 %v13251_v59, %v7344_v5  ;;  %v7358_v4 = vld [vmem:[#allocation2 + $0x4a8] sm:$0xff]  ;;  %v7360_v38 = vld [vmem:[#allocation2 + $0x438] sm:$0xff] }
 0x6a4   : > { %8641 = vst [vmem:[%s10681_s3 + $0x368] sm:$0xff] %v8385_v47  ;;  %8642 = vst [vmem:[%s10681_s3 + $0x370] sm:$0xff] %v8386_v54  ;;  %v8387_v37 = vsel %vm7875_vm15, %v7619_v20, %v8131_v41  ;;  %v7623_v16 = vadd.f32 %v13253_v21, %v7345_v55  ;;  %v7624_v1 = vadd.f32 %v13247_v63, %v7346_v29  ;;  %vm7877_vm1 = vcmp.ge.f32.partialorder %v7621_v44, 0.0  ;;  %v7361_v41 = vld [vmem:[#allocation2 + $0x350] sm:$0xff] }
 0x6a5   : > { %v8388_v61 = vsel %vm7876_vm0, %v7620_v53, %v8132_v25  ;;  %8643 = vst [vmem:[%s10681_s3 + $0x378] sm:$0xff] %v8387_v37  ;;  %v8133_v15 = vmul.f32 0.01, %v7621_v44  ;;  %vm7878_vm2 = vcmp.ge.f32.partialorder %v7622_v14, 0.0  ;;  %v8134_v11 = vmul.f32 0.01, %v7622_v14 }
 0x6a6   : > { %8644 = vst [vmem:[%s10681_s3 + $0x380] sm:$0xff] %v8388_v61  ;;  %vm7879_vm3 = vcmp.ge.f32.partialorder %v7623_v16, 0.0  ;;  %v8135_v32 = vmul.f32 0.01, %v7623_v16  ;;  %vm7880_vm4 = vcmp.ge.f32.partialorder %v7624_v1, 0.0  ;;  %v7625_v33 = vadd.f32 %v13249_v58, %v7347_v10  ;;  %v7359_v53 = vld [vmem:[#allocation2 + $0x5c8] sm:$0xff] }
 0x6a7   : > { %v8136_v18 = vmul.f32 0.01, %v7624_v1  ;;  %v8389_v50 = vsel %vm7877_vm1, %v7621_v44, %v8133_v15  ;;  %v8390_v36 = vsel %vm7878_vm2, %v7622_v14, %v8134_v11  ;;  %v7626_v52 = vadd.f32 %v13251_v59, %v7348_v35  ;;  %v7362_v25 = vld [vmem:[#allocation2 + $0x2c8] sm:$0xff] }
 0x6a8   : > { %8645 = vst [vmem:[%s10681_s3 + $0x388] sm:$0xff] %v8389_v50  ;;  %8646 = vst [vmem:[%s10681_s3 + $0x390] sm:$0xff] %v8390_v36  ;;  %v8391_v8 = vsel %vm7879_vm3, %v7623_v16, %v8135_v32  ;;  %v7627_v17 = vadd.f32 %v13253_v21, %v7349_v13  ;;  %v7628_v27 = vadd.f32 %v13247_v63, %v7350_v7  ;;  %vm7881_vm5 = vcmp.ge.f32.partialorder %v7625_v33, 0.0  ;;  %v7364_v11 = vld [vmem:[#allocation2 + $0x488] sm:$0xff]  ;;  %v7365_v32 = vld [vmem:[#allocation2 + $0x6a0] sm:$0xff] }
 0x6a9   : > { %v8392_v43 = vsel %vm7880_vm4, %v7624_v1, %v8136_v18  ;;  %8647 = vst [vmem:[%s10681_s3 + $0x398] sm:$0xff] %v8391_v8  ;;  %v8137_v28 = vmul.f32 0.01, %v7625_v33  ;;  %vm7882_vm6 = vcmp.ge.f32.partialorder %v7626_v52, 0.0  ;;  %v8138_v2 = vmul.f32 0.01, %v7626_v52 }
 0x6aa   : > { %8648 = vst [vmem:[%s10681_s3 + $0x3a0] sm:$0xff] %v8392_v43  ;;  %vm7883_vm7 = vcmp.ge.f32.partialorder %v7627_v17, 0.0  ;;  %v8139_v0 = vmul.f32 0.01, %v7627_v17  ;;  %vm7884_vm8 = vcmp.ge.f32.partialorder %v7628_v27, 0.0  ;;  %v7629_v22 = vadd.f32 %v13249_v58, %v7351_v42  ;;  %v7363_v1 = vld [vmem:[#allocation2 + $0xf8] sm:$0xff] }
 0x6ab   : > { %v8140_v56 = vmul.f32 0.01, %v7628_v27  ;;  %v8393_v3 = vsel %vm7881_vm5, %v7625_v33, %v8137_v28  ;;  %v8394_v48 = vsel %vm7882_vm6, %v7626_v52, %v8138_v2  ;;  %v7630_v51 = vadd.f32 %v13251_v59, %v7352_v30  ;;  %v7366_v18 = vld [vmem:[#allocation2 + $0x3c8] sm:$0xff]  ;;  %v7368_v2 = vld [vmem:[#allocation2 + $0x6d0] sm:$0xff] }
 0x6ac   : > { %8649 = vst [vmem:[%s10681_s3 + $0x3a8] sm:$0xff] %v8393_v3  ;;  %8650 = vst [vmem:[%s10681_s3 + $0x3b0] sm:$0xff] %v8394_v48  ;;  %v8395_v12 = vsel %vm7883_vm7, %v7627_v17, %v8139_v0  ;;  %v7631_v46 = vadd.f32 %v13253_v21, %v7353_v19  ;;  %v7632_v57 = vadd.f32 %v13247_v63, %v7354_v39  ;;  %vm7885_vm9 = vcmp.ge.f32.partialorder %v7629_v22, 0.0  ;;  %v7369_v0 = vld [vmem:[#allocation2 + $0x688] sm:$0xff] }
 0x6ad   : > { %v8396_v40 = vsel %vm7884_vm8, %v7628_v27, %v8140_v56  ;;  %8651 = vst [vmem:[%s10681_s3 + $0x3b8] sm:$0xff] %v8395_v12  ;;  %v8141_v6 = vmul.f32 0.01, %v7629_v22  ;;  %vm7886_vm10 = vcmp.ge.f32.partialorder %v7630_v51, 0.0  ;;  %v8142_v49 = vmul.f32 0.01, %v7630_v51 }
 0x6ae   : > { %8652 = vst [vmem:[%s10681_s3 + $0x3c0] sm:$0xff] %v8396_v40  ;;  %vm7887_vm11 = vcmp.ge.f32.partialorder %v7631_v46, 0.0  ;;  %v8143_v60 = vmul.f32 0.01, %v7631_v46  ;;  %vm7888_vm12 = vcmp.ge.f32.partialorder %v7632_v57, 0.0  ;;  %v7633_v31 = vadd.f32 %v13249_v58, %v7355_v26  ;;  %v7367_v27 = vld [vmem:[#allocation2 + $0x1e8] sm:$0xff] }
 0x6af   : > { %v8144_v34 = vmul.f32 0.01, %v7632_v57  ;;  %v8397_v24 = vsel %vm7885_vm9, %v7629_v22, %v8141_v6  ;;  %v8398_v23 = vsel %vm7886_vm10, %v7630_v51, %v8142_v49  ;;  %v7634_v20 = vadd.f32 %v13251_v59, %v7356_v45  ;;  %v7370_v56 = vld [vmem:[#allocation2 + $0x730] sm:$0xff]  ;;  %v7372_v49 = vld [vmem:[#allocation2 + $0x458] sm:$0xff] }
 0x6b0   : > { %8653 = vst [vmem:[%s10681_s3 + $0x3c8] sm:$0xff] %v8397_v24  ;;  %8654 = vst [vmem:[%s10681_s3 + $0x3d0] sm:$0xff] %v8398_v23  ;;  %v8399_v5 = vsel %vm7887_vm11, %v7631_v46, %v8143_v60  ;;  %v7635_v29 = vadd.f32 %v13253_v21, %v7357_v62  ;;  %v7636_v9 = vadd.f32 %v13247_v63, %v7358_v4  ;;  %vm7889_vm13 = vcmp.ge.f32.partialorder %v7633_v31, 0.0  ;;  %v7373_v60 = vld [vmem:[#allocation2 + $0x1b8] sm:$0xff] }
 0x6b1   : > { %v8400_v55 = vsel %vm7888_vm12, %v7632_v57, %v8144_v34  ;;  %8655 = vst [vmem:[%s10681_s3 + $0x3d8] sm:$0xff] %v8399_v5  ;;  %v8145_v47 = vmul.f32 0.01, %v7633_v31  ;;  %vm7890_vm14 = vcmp.ge.f32.partialorder %v7634_v20, 0.0  ;;  %v8146_v54 = vmul.f32 0.01, %v7634_v20 }
 0x6b2   : > { %8656 = vst [vmem:[%s10681_s3 + $0x3e0] sm:$0xff] %v8400_v55  ;;  %vm7891_vm15 = vcmp.ge.f32.partialorder %v7635_v29, 0.0  ;;  %v8147_v44 = vmul.f32 0.01, %v7635_v29  ;;  %vm7892_vm0 = vcmp.ge.f32.partialorder %v7636_v9, 0.0  ;;  %v7637_v61 = vadd.f32 %v13249_v58, %v7359_v53  ;;  %v7371_v57 = vld [vmem:[#allocation2 + $0x658] sm:$0xff] }
 0x6b3   : > { %v8148_v14 = vmul.f32 0.01, %v7636_v9  ;;  %v8401_v10 = vsel %vm7889_vm13, %v7633_v31, %v8145_v47  ;;  %v8402_v37 = vsel %vm7890_vm14, %v7634_v20, %v8146_v54  ;;  %v7638_v16 = vadd.f32 %v13251_v59, %v7360_v38  ;;  %v7374_v34 = vld [vmem:[#allocation2 + $0x460] sm:$0xff]  ;;  %v7376_v54 = vld [vmem:[#allocation2 + $0x528] sm:$0xff] }
 0x6b4   : > { %8657 = vst [vmem:[%s10681_s3 + $0x3e8] sm:$0xff] %v8401_v10  ;;  %8658 = vst [vmem:[%s10681_s3 + $0x3f0] sm:$0xff] %v8402_v37  ;;  %v8403_v35 = vsel %vm7891_vm15, %v7635_v29, %v8147_v44  ;;  %v7639_v7 = vadd.f32 %v13253_v21, %v7361_v41  ;;  %v7640_v15 = vadd.f32 %v13247_v63, %v7362_v25  ;;  %vm7893_vm1 = vcmp.ge.f32.partialorder %v7637_v61, 0.0  ;;  %v7377_v44 = vld [vmem:[#allocation2 + $0x258] sm:$0xff] }
 0x6b5   : > { %v8404_v13 = vsel %vm7892_vm0, %v7636_v9, %v8148_v14  ;;  %8659 = vst [vmem:[%s10681_s3 + $0x3f8] sm:$0xff] %v8403_v35  ;;  %v8149_v50 = vmul.f32 0.01, %v7637_v61  ;;  %vm7894_vm2 = vcmp.ge.f32.partialorder %v7638_v16, 0.0  ;;  %v8150_v36 = vmul.f32 0.01, %v7638_v16 }
 0x6b6   : > { %8660 = vst [vmem:[%s10681_s3 + $0x400] sm:$0xff] %v8404_v13  ;;  %vm7895_vm3 = vcmp.ge.f32.partialorder %v7639_v7, 0.0  ;;  %v8151_v33 = vmul.f32 0.01, %v7639_v7  ;;  %vm7896_vm4 = vcmp.ge.f32.partialorder %v7640_v15, 0.0  ;;  %v7641_v43 = vadd.f32 %v13249_v58, %v7363_v1  ;;  %v7375_v9 = vld [vmem:[#allocation2 + $0x4f0] sm:$0xff] }
 0x6b7   : > { %v8152_v52 = vmul.f32 0.01, %v7640_v15  ;;  %v8405_v42 = vsel %vm7893_vm1, %v7637_v61, %v8149_v50  ;;  %v8406_v8 = vsel %vm7894_vm2, %v7638_v16, %v8150_v36  ;;  %v7642_v17 = vadd.f32 %v13251_v59, %v7364_v11  ;;  %v7378_v14 = vld [vmem:[#allocation2 + $0x4d0] sm:$0xff]  ;;  %v7380_v36 = vld [vmem:[#allocation2 + $0x78] sm:$0xff] }
 0x6b8   : > { %8661 = vst [vmem:[%s10681_s3 + $0x408] sm:$0xff] %v8405_v42  ;;  %8662 = vst [vmem:[%s10681_s3 + $0x410] sm:$0xff] %v8406_v8  ;;  %v8407_v30 = vsel %vm7895_vm3, %v7639_v7, %v8151_v33  ;;  %v7643_v39 = vadd.f32 %v13253_v21, %v7365_v32  ;;  %v7644_v28 = vadd.f32 %v13247_v63, %v7366_v18  ;;  %vm7897_vm5 = vcmp.ge.f32.partialorder %v7641_v43, 0.0  ;;  %v7381_v33 = vld [vmem:[#allocation2 + $0x2a0] sm:$0xff] }
 0x6b9   : > { %v8408_v19 = vsel %vm7896_vm4, %v7640_v15, %v8152_v52  ;;  %8663 = vst [vmem:[%s10681_s3 + $0x418] sm:$0xff] %v8407_v30  ;;  %v8153_v3 = vmul.f32 0.01, %v7641_v43  ;;  %vm7898_vm6 = vcmp.ge.f32.partialorder %v7642_v17, 0.0  ;;  %v8154_v48 = vmul.f32 0.01, %v7642_v17 }
 0x6ba   : > { %8664 = vst [vmem:[%s10681_s3 + $0x420] sm:$0xff] %v8408_v19  ;;  %vm7899_vm7 = vcmp.ge.f32.partialorder %v7643_v39, 0.0  ;;  %v8155_v22 = vmul.f32 0.01, %v7643_v39  ;;  %vm7900_vm8 = vcmp.ge.f32.partialorder %v7644_v28, 0.0  ;;  %v7645_v40 = vadd.f32 %v13249_v58, %v7367_v27  ;;  %v7379_v15 = vld [vmem:[#allocation2 + $0x4f8] sm:$0xff] }
 0x6bb   : > { %v8156_v51 = vmul.f32 0.01, %v7644_v28  ;;  %v8409_v26 = vsel %vm7897_vm5, %v7641_v43, %v8153_v3  ;;  %v8410_v12 = vsel %vm7898_vm6, %v7642_v17, %v8154_v48  ;;  %v7646_v46 = vadd.f32 %v13251_v59, %v7368_v2  ;;  %v7382_v52 = vld [vmem:[#allocation2 + $0x10] sm:$0xff]  ;;  %v7384_v48 = vld [vmem:[#allocation2 + $0x7a8] sm:$0xff] }
 0x6bc   : > { %8665 = vst [vmem:[%s10681_s3 + $0x428] sm:$0xff] %v8409_v26  ;;  %8666 = vst [vmem:[%s10681_s3 + $0x430] sm:$0xff] %v8410_v12  ;;  %v8411_v45 = vsel %vm7899_vm7, %v7643_v39, %v8155_v22  ;;  %v7647_v4 = vadd.f32 %v13253_v21, %v7369_v0  ;;  %v7648_v6 = vadd.f32 %v13247_v63, %v7370_v56  ;;  %vm7901_vm9 = vcmp.ge.f32.partialorder %v7645_v40, 0.0  ;;  %v7385_v22 = vld [vmem:[#allocation2 + $0x530] sm:$0xff] }
 0x6bd   : > { %v8412_v62 = vsel %vm7900_vm8, %v7644_v28, %v8156_v51  ;;  %8667 = vst [vmem:[%s10681_s3 + $0x438] sm:$0xff] %v8411_v45  ;;  %v8157_v24 = vmul.f32 0.01, %v7645_v40  ;;  %vm7902_vm10 = vcmp.ge.f32.partialorder %v7646_v46, 0.0  ;;  %v8158_v23 = vmul.f32 0.01, %v7646_v46 }
 0x6be   : > { %8668 = vst [vmem:[%s10681_s3 + $0x440] sm:$0xff] %v8412_v62  ;;  %vm7903_vm11 = vcmp.ge.f32.partialorder %v7647_v4, 0.0  ;;  %v8159_v31 = vmul.f32 0.01, %v7647_v4  ;;  %vm7904_vm12 = vcmp.ge.f32.partialorder %v7648_v6, 0.0  ;;  %v7649_v55 = vadd.f32 %v13249_v58, %v7371_v57  ;;  %v7383_v28 = vld [vmem:[#allocation2 + $0x778] sm:$0xff] }
 0x6bf   : > { %v8160_v20 = vmul.f32 0.01, %v7648_v6  ;;  %v8413_v53 = vsel %vm7901_vm9, %v7645_v40, %v8157_v24  ;;  %v8414_v5 = vsel %vm7902_vm10, %v7646_v46, %v8158_v23  ;;  %v7650_v29 = vadd.f32 %v13251_v59, %v7372_v49  ;;  %v7386_v51 = vld [vmem:[#allocation2 + $0x590] sm:$0xff]  ;;  %v7388_v23 = vld [vmem:[#allocation2 + $0x358] sm:$0xff] }
 0x6c0   : > { %8669 = vst [vmem:[%s10681_s3 + $0x448] sm:$0xff] %v8413_v53  ;;  %8670 = vst [vmem:[%s10681_s3 + $0x450] sm:$0xff] %v8414_v5  ;;  %v8415_v38 = vsel %vm7903_vm11, %v7647_v4, %v8159_v31  ;;  %v7651_v25 = vadd.f32 %v13253_v21, %v7373_v60  ;;  %v7652_v47 = vadd.f32 %v13247_v63, %v7374_v34  ;;  %vm7905_vm13 = vcmp.ge.f32.partialorder %v7649_v55, 0.0  ;;  %v7389_v31 = vld [vmem:[#allocation2 + $0x700] sm:$0xff] }
 0x6c1   : > { %v8416_v41 = vsel %vm7904_vm12, %v7648_v6, %v8160_v20  ;;  %8671 = vst [vmem:[%s10681_s3 + $0x458] sm:$0xff] %v8415_v38  ;;  %v8161_v10 = vmul.f32 0.01, %v7649_v55  ;;  %vm7906_vm14 = vcmp.ge.f32.partialorder %v7650_v29, 0.0  ;;  %v8162_v37 = vmul.f32 0.01, %v7650_v29 }
 0x6c2   : > { %8672 = vst [vmem:[%s10681_s3 + $0x460] sm:$0xff] %v8416_v41  ;;  %vm7907_vm15 = vcmp.ge.f32.partialorder %v7651_v25, 0.0  ;;  %v8163_v61 = vmul.f32 0.01, %v7651_v25  ;;  %vm7908_vm0 = vcmp.ge.f32.partialorder %v7652_v47, 0.0  ;;  %v7653_v13 = vadd.f32 %v13249_v58, %v7375_v9  ;;  %v7387_v6 = vld [vmem:[#allocation2 + $0x660] sm:$0xff] }
 0x6c3   : > { %v8164_v16 = vmul.f32 0.01, %v7652_v47  ;;  %v8417_v1 = vsel %vm7905_vm13, %v7649_v55, %v8161_v10  ;;  %v8418_v35 = vsel %vm7906_vm14, %v7650_v29, %v8162_v37  ;;  %v7654_v7 = vadd.f32 %v13251_v59, %v7376_v54  ;;  %v7390_v20 = vld [vmem:[#allocation2 + $0x340] sm:$0xff]  ;;  %v7392_v37 = vld [vmem:[#allocation2 + $0x3d0] sm:$0xff] }
 0x6c4   : > { %8673 = vst [vmem:[%s10681_s3 + $0x468] sm:$0xff] %v8417_v1  ;;  %8674 = vst [vmem:[%s10681_s3 + $0x470] sm:$0xff] %v8418_v35  ;;  %v8419_v11 = vsel %vm7907_vm15, %v7651_v25, %v8163_v61  ;;  %v7655_v18 = vadd.f32 %v13253_v21, %v7377_v44  ;;  %v7656_v50 = vadd.f32 %v13247_v63, %v7378_v14  ;;  %vm7909_vm1 = vcmp.ge.f32.partialorder %v7653_v13, 0.0  ;;  %v7393_v61 = vld [vmem:[#allocation2 + $0x230] sm:$0xff] }
 0x6c5   : > { %v8420_v32 = vsel %vm7908_vm0, %v7652_v47, %v8164_v16  ;;  %8675 = vst [vmem:[%s10681_s3 + $0x478] sm:$0xff] %v8419_v11  ;;  %v8165_v42 = vmul.f32 0.01, %v7653_v13  ;;  %vm7910_vm2 = vcmp.ge.f32.partialorder %v7654_v7, 0.0  ;;  %v8166_v8 = vmul.f32 0.01, %v7654_v7 }
 0x6c6   : > { %8676 = vst [vmem:[%s10681_s3 + $0x480] sm:$0xff] %v8420_v32  ;;  %vm7911_vm3 = vcmp.ge.f32.partialorder %v7655_v18, 0.0  ;;  %v8167_v43 = vmul.f32 0.01, %v7655_v18  ;;  %vm7912_vm4 = vcmp.ge.f32.partialorder %v7656_v50, 0.0  ;;  %v7657_v19 = vadd.f32 %v13249_v58, %v7379_v15  ;;  %v7391_v47 = vld [vmem:[#allocation2 + $0x5a0] sm:$0xff] }
 0x6c7   : > { %v8168_v17 = vmul.f32 0.01, %v7656_v50  ;;  %v8421_v27 = vsel %vm7909_vm1, %v7653_v13, %v8165_v42  ;;  %v8422_v30 = vsel %vm7910_vm2, %v7654_v7, %v8166_v8  ;;  %v7658_v39 = vadd.f32 %v13251_v59, %v7380_v36  ;;  %v7394_v16 = vld [vmem:[#allocation2 + $0x560] sm:$0xff] }
 0x6c8   : > { %8677 = vst [vmem:[%s10681_s3 + $0x488] sm:$0xff] %v8421_v27  ;;  %8678 = vst [vmem:[%s10681_s3 + $0x490] sm:$0xff] %v8422_v30  ;;  %v8423_v2 = vsel %vm7911_vm3, %v7655_v18, %v8167_v43  ;;  %v7659_v56 = vadd.f32 %v13253_v21, %v7381_v33  ;;  %v7660_v3 = vadd.f32 %v13247_v63, %v7382_v52  ;;  %vm7913_vm5 = vcmp.ge.f32.partialorder %v7657_v19, 0.0  ;;  %v7396_v8 = vld [vmem:[#allocation2 + $0x4e0] sm:$0xff] }
 0x6c9   : > { %v8424_v0 = vsel %vm7912_vm4, %v7656_v50, %v8168_v17  ;;  %8679 = vst [vmem:[%s10681_s3 + $0x498] sm:$0xff] %v8423_v2  ;;  %v8169_v26 = vmul.f32 0.01, %v7657_v19  ;;  %vm7914_vm6 = vcmp.ge.f32.partialorder %v7658_v39, 0.0  ;;  %v8170_v12 = vmul.f32 0.01, %v7658_v39 }
 0x6ca   : > { %8680 = vst [vmem:[%s10681_s3 + $0x4a0] sm:$0xff] %v8424_v0  ;;  %vm7915_vm7 = vcmp.ge.f32.partialorder %v7659_v56, 0.0  ;;  %v8171_v40 = vmul.f32 0.01, %v7659_v56  ;;  %vm7916_vm8 = vcmp.ge.f32.partialorder %v7660_v3, 0.0  ;;  %v7661_v62 = vadd.f32 %v13249_v58, %v7383_v28  ;;  %v7395_v50 = vld [vmem:[#allocation2 + $0x7f8] sm:$0xff] }
 0x6cb   : > { %v8172_v46 = vmul.f32 0.01, %v7660_v3  ;;  %v8425_v57 = vsel %vm7913_vm5, %v7657_v19, %v8169_v26  ;;  %v8426_v45 = vsel %vm7914_vm6, %v7658_v39, %v8170_v12  ;;  %v7662_v4 = vadd.f32 %v13251_v59, %v7384_v48  ;;  %v7397_v43 = vld [vmem:[#allocation2 + $0x200] sm:$0xff]  ;;  %v7398_v17 = vld [vmem:[#allocation2 + $0x468] sm:$0xff]  ;;  %v7400_v12 = vld [vmem:[#allocation2 + $0x1d0] sm:$0xff] }
 0x6cc   : > { %8681 = vst [vmem:[%s10681_s3 + $0x4a8] sm:$0xff] %v8425_v57  ;;  %8682 = vst [vmem:[%s10681_s3 + $0x4b0] sm:$0xff] %v8426_v45  ;;  %v8427_v49 = vsel %vm7915_vm7, %v7659_v56, %v8171_v40  ;;  %v7663_v34 = vadd.f32 %v13253_v21, %v7385_v22  ;;  %v7664_v24 = vadd.f32 %v13247_v63, %v7386_v51  ;;  %vm7917_vm9 = vcmp.ge.f32.partialorder %v7661_v62, 0.0  ;;  %v7401_v40 = vld [vmem:[#allocation2 + $0x510] sm:$0xff] }
 0x6cd   : > { %v8428_v60 = vsel %vm7916_vm8, %v7660_v3, %v8172_v46  ;;  %8683 = vst [vmem:[%s10681_s3 + $0x4b8] sm:$0xff] %v8427_v49  ;;  %v8173_v53 = vmul.f32 0.01, %v7661_v62  ;;  %vm7918_vm10 = vcmp.ge.f32.partialorder %v7662_v4, 0.0  ;;  %v8174_v5 = vmul.f32 0.01, %v7662_v4 }
 0x6ce   : > { %8684 = vst [vmem:[%s10681_s3 + $0x4c0] sm:$0xff] %v8428_v60  ;;  %vm7919_vm11 = vcmp.ge.f32.partialorder %v7663_v34, 0.0  ;;  %v8175_v55 = vmul.f32 0.01, %v7663_v34  ;;  %vm7920_vm12 = vcmp.ge.f32.partialorder %v7664_v24, 0.0  ;;  %v7665_v41 = vadd.f32 %v13249_v58, %v7387_v6  ;;  %v7399_v3 = vld [vmem:[#allocation2 + $0x2a8] sm:$0xff] }
 0x6cf   : > { %v8176_v29 = vmul.f32 0.01, %v7664_v24  ;;  %v8429_v9 = vsel %vm7917_vm9, %v7661_v62, %v8173_v53  ;;  %v8430_v38 = vsel %vm7918_vm10, %v7662_v4, %v8174_v5  ;;  %v7666_v25 = vadd.f32 %v13251_v59, %v7388_v23  ;;  %v7402_v46 = vld [vmem:[#allocation2 + $0x750] sm:$0xff]  ;;  %v7404_v5 = vld [vmem:[#allocation2 + $0x28] sm:$0xff] }
 0x6d0   : > { %8685 = vst [vmem:[%s10681_s3 + $0x4c8] sm:$0xff] %v8429_v9  ;;  %8686 = vst [vmem:[%s10681_s3 + $0x4d0] sm:$0xff] %v8430_v38  ;;  %v8431_v54 = vsel %vm7919_vm11, %v7663_v34, %v8175_v55  ;;  %v7667_v14 = vadd.f32 %v13253_v21, %v7389_v31  ;;  %v7668_v10 = vadd.f32 %v13247_v63, %v7390_v20  ;;  %vm7921_vm13 = vcmp.ge.f32.partialorder %v7665_v41, 0.0  ;;  %v7405_v55 = vld [vmem:[#allocation2 + $0x760] sm:$0xff] }
 0x6d1   : > { %v8432_v44 = vsel %vm7920_vm12, %v7664_v24, %v8176_v29  ;;  %8687 = vst [vmem:[%s10681_s3 + $0x4d8] sm:$0xff] %v8431_v54  ;;  %v8177_v1 = vmul.f32 0.01, %v7665_v41  ;;  %vm7922_vm14 = vcmp.ge.f32.partialorder %v7666_v25, 0.0  ;;  %v8178_v35 = vmul.f32 0.01, %v7666_v25 }
 0x6d2   : > { %8688 = vst [vmem:[%s10681_s3 + $0x4e0] sm:$0xff] %v8432_v44  ;;  %vm7923_vm15 = vcmp.ge.f32.partialorder %v7667_v14, 0.0  ;;  %v8179_v13 = vmul.f32 0.01, %v7667_v14  ;;  %vm7924_vm0 = vcmp.ge.f32.partialorder %v7668_v10, 0.0  ;;  %v7669_v32 = vadd.f32 %v13249_v58, %v7391_v47  ;;  %v7403_v24 = vld [vmem:[#allocation2 + $0x130] sm:$0xff] }
 0x6d3   : > { %v8180_v7 = vmul.f32 0.01, %v7668_v10  ;;  %v8433_v15 = vsel %vm7921_vm13, %v7665_v41, %v8177_v1  ;;  %v8434_v11 = vsel %vm7922_vm14, %v7666_v25, %v8178_v35  ;;  %v7670_v18 = vadd.f32 %v13251_v59, %v7392_v37  ;;  %v7406_v29 = vld [vmem:[#allocation2 + $0x5d0] sm:$0xff]  ;;  %v7408_v35 = vld [vmem:[#allocation2 + $0x208] sm:$0xff] }
 0x6d4   : > { %8689 = vst [vmem:[%s10681_s3 + $0x4e8] sm:$0xff] %v8433_v15  ;;  %8690 = vst [vmem:[%s10681_s3 + $0x4f0] sm:$0xff] %v8434_v11  ;;  %v8435_v36 = vsel %vm7923_vm15, %v7667_v14, %v8179_v13  ;;  %v7671_v52 = vadd.f32 %v13253_v21, %v7393_v61  ;;  %v7672_v42 = vadd.f32 %v13247_v63, %v7394_v16  ;;  %vm7925_vm1 = vcmp.ge.f32.partialorder %v7669_v32, 0.0  ;;  %v7409_v13 = vld [vmem:[#allocation2 + $0x290] sm:$0xff] }
 0x6d5   : > { %v8436_v33 = vsel %vm7924_vm0, %v7668_v10, %v8180_v7  ;;  %8691 = vst [vmem:[%s10681_s3 + $0x4f8] sm:$0xff] %v8435_v36  ;;  %v8181_v27 = vmul.f32 0.01, %v7669_v32  ;;  %vm7926_vm2 = vcmp.ge.f32.partialorder %v7670_v18, 0.0  ;;  %v8182_v30 = vmul.f32 0.01, %v7670_v18 }
 0x6d6   : > { %8692 = vst [vmem:[%s10681_s3 + $0x500] sm:$0xff] %v8436_v33  ;;  %vm7927_vm3 = vcmp.ge.f32.partialorder %v7671_v52, 0.0  ;;  %v8183_v19 = vmul.f32 0.01, %v7671_v52  ;;  %vm7928_vm4 = vcmp.ge.f32.partialorder %v7672_v42, 0.0  ;;  %v7673_v0 = vadd.f32 %v13249_v58, %v7395_v50  ;;  %v7407_v10 = vld [vmem:[#allocation2 + $0x228] sm:$0xff] }
 0x6d7   : > { %v8184_v39 = vmul.f32 0.01, %v7672_v42  ;;  %v8437_v28 = vsel %vm7925_vm1, %v7669_v32, %v8181_v27  ;;  %v8438_v2 = vsel %vm7926_vm2, %v7670_v18, %v8182_v30  ;;  %v7674_v56 = vadd.f32 %v13251_v59, %v7396_v8  ;;  %v7410_v7 = vld [vmem:[#allocation2 + $0x7a0] sm:$0xff]  ;;  %v7412_v30 = vld [vmem:[#allocation2 + $0x4c8] sm:$0xff] }
 0x6d8   : > { %8693 = vst [vmem:[%s10681_s3 + $0x508] sm:$0xff] %v8437_v28  ;;  %8694 = vst [vmem:[%s10681_s3 + $0x510] sm:$0xff] %v8438_v2  ;;  %v8439_v48 = vsel %vm7927_vm3, %v7671_v52, %v8183_v19  ;;  %v7675_v51 = vadd.f32 %v13253_v21, %v7397_v43  ;;  %v7676_v26 = vadd.f32 %v13247_v63, %v7398_v17  ;;  %vm7929_vm5 = vcmp.ge.f32.partialorder %v7673_v0, 0.0  ;;  %v7413_v19 = vld [vmem:[#allocation2 + $0x3f0] sm:$0xff] }
 0x6d9   : > { %v8440_v22 = vsel %vm7928_vm4, %v7672_v42, %v8184_v39  ;;  %8695 = vst [vmem:[%s10681_s3 + $0x518] sm:$0xff] %v8439_v48  ;;  %v8185_v57 = vmul.f32 0.01, %v7673_v0  ;;  %vm7930_vm6 = vcmp.ge.f32.partialorder %v7674_v56, 0.0  ;;  %v8186_v45 = vmul.f32 0.01, %v7674_v56 }
 0x6da   : > { %8696 = vst [vmem:[%s10681_s3 + $0x520] sm:$0xff] %v8440_v22  ;;  %vm7931_vm7 = vcmp.ge.f32.partialorder %v7675_v51, 0.0  ;;  %v8187_v62 = vmul.f32 0.01, %v7675_v51  ;;  %vm7932_vm8 = vcmp.ge.f32.partialorder %v7676_v26, 0.0  ;;  %v7677_v60 = vadd.f32 %v13249_v58, %v7399_v3  ;;  %v7411_v42 = vld [vmem:[#allocation2 + $0x80] sm:$0xff] }
 0x6db   : > { %v8188_v4 = vmul.f32 0.01, %v7676_v26  ;;  %v8441_v6 = vsel %vm7929_vm5, %v7673_v0, %v8185_v57  ;;  %v8442_v49 = vsel %vm7930_vm6, %v7674_v56, %v8186_v45  ;;  %v7678_v34 = vadd.f32 %v13251_v59, %v7400_v12  ;;  %v7414_v39 = vld [vmem:[#allocation2 + $0x798] sm:$0xff]  ;;  %v7416_v45 = vld [vmem:[#allocation2 + $0x160] sm:$0xff] }
 0x6dc   : > { %8697 = vst [vmem:[%s10681_s3 + $0x528] sm:$0xff] %v8441_v6  ;;  %8698 = vst [vmem:[%s10681_s3 + $0x530] sm:$0xff] %v8442_v49  ;;  %v8443_v23 = vsel %vm7931_vm7, %v7675_v51, %v8187_v62  ;;  %v7679_v20 = vadd.f32 %v13253_v21, %v7401_v40  ;;  %v7680_v53 = vadd.f32 %v13247_v63, %v7402_v46  ;;  %vm7933_vm9 = vcmp.ge.f32.partialorder %v7677_v60, 0.0  ;;  %v7417_v62 = vld [vmem:[#allocation2 + $0x260] sm:$0xff] }
 0x6dd   : > { %v8444_v31 = vsel %vm7932_vm8, %v7676_v26, %v8188_v4  ;;  %8699 = vst [vmem:[%s10681_s3 + $0x538] sm:$0xff] %v8443_v23  ;;  %v8189_v9 = vmul.f32 0.01, %v7677_v60  ;;  %vm7934_vm10 = vcmp.ge.f32.partialorder %v7678_v34, 0.0  ;;  %v8190_v38 = vmul.f32 0.01, %v7678_v34 }
 0x6de   : > { %8700 = vst [vmem:[%s10681_s3 + $0x540] sm:$0xff] %v8444_v31  ;;  %vm7935_vm11 = vcmp.ge.f32.partialorder %v7679_v20, 0.0  ;;  %v8191_v41 = vmul.f32 0.01, %v7679_v20  ;;  %vm7936_vm12 = vcmp.ge.f32.partialorder %v7680_v53, 0.0  ;;  %v7681_v44 = vadd.f32 %v13249_v58, %v7403_v24  ;;  %v7415_v26 = vld [vmem:[#allocation2 + $0x378] sm:$0xff] }
 0x6df   : > { %v8192_v25 = vmul.f32 0.01, %v7680_v53  ;;  %v8445_v47 = vsel %vm7933_vm9, %v7677_v60, %v8189_v9  ;;  %v8446_v54 = vsel %vm7934_vm10, %v7678_v34, %v8190_v38  ;;  %v7682_v14 = vadd.f32 %v13251_v59, %v7404_v5  ;;  %v7418_v4 = vld [vmem:[#allocation2 + $0x728] sm:$0xff] }
 0x6e0   : > { %8701 = vst [vmem:[%s10681_s3 + $0x548] sm:$0xff] %v8445_v47  ;;  %8702 = vst [vmem:[%s10681_s3 + $0x550] sm:$0xff] %v8446_v54  ;;  %v8447_v37 = vsel %vm7935_vm11, %v7679_v20, %v8191_v41  ;;  %v7683_v16 = vadd.f32 %v13253_v21, %v7405_v55  ;;  %v7684_v1 = vadd.f32 %v13247_v63, %v7406_v29  ;;  %vm7937_vm13 = vcmp.ge.f32.partialorder %v7681_v44, 0.0  ;;  %v7420_v38 = vld [vmem:[#allocation2 + $0x188] sm:$0xff] }
 0x6e1   : > { %v8448_v61 = vsel %vm7936_vm12, %v7680_v53, %v8192_v25  ;;  %8703 = vst [vmem:[%s10681_s3 + $0x558] sm:$0xff] %v8447_v37  ;;  %v8193_v15 = vmul.f32 0.01, %v7681_v44  ;;  %vm7938_vm14 = vcmp.ge.f32.partialorder %v7682_v14, 0.0  ;;  %v8194_v11 = vmul.f32 0.01, %v7682_v14 }
 0x6e2   : > { %8704 = vst [vmem:[%s10681_s3 + $0x560] sm:$0xff] %v8448_v61  ;;  %vm7939_vm15 = vcmp.ge.f32.partialorder %v7683_v16, 0.0  ;;  %v8195_v32 = vmul.f32 0.01, %v7683_v16  ;;  %vm7940_vm0 = vcmp.ge.f32.partialorder %v7684_v1, 0.0  ;;  %v7685_v33 = vadd.f32 %v13249_v58, %v7407_v10  ;;  %v7419_v53 = vld [vmem:[#allocation2 + $0x288] sm:$0xff] }
 0x6e3   : > { %v8196_v18 = vmul.f32 0.01, %v7684_v1  ;;  %v8449_v50 = vsel %vm7937_vm13, %v7681_v44, %v8193_v15  ;;  %v8450_v36 = vsel %vm7938_vm14, %v7682_v14, %v8194_v11  ;;  %v7686_v52 = vadd.f32 %v13251_v59, %v7408_v35  ;;  %v7421_v41 = vld [vmem:[#allocation2 + $0x408] sm:$0xff]  ;;  %v7422_v25 = vld [vmem:[#allocation2 + $0x678] sm:$0xff]  ;;  %v7424_v11 = vld [vmem:[#allocation2 + $0x470] sm:$0xff] }
 0x6e4   : > { %8705 = vst [vmem:[%s10681_s3 + $0x568] sm:$0xff] %v8449_v50  ;;  %8706 = vst [vmem:[%s10681_s3 + $0x570] sm:$0xff] %v8450_v36  ;;  %v8451_v8 = vsel %vm7939_vm15, %v7683_v16, %v8195_v32  ;;  %v7687_v17 = vadd.f32 %v13253_v21, %v7409_v13  ;;  %v7688_v27 = vadd.f32 %v13247_v63, %v7410_v7  ;;  %vm7941_vm1 = vcmp.ge.f32.partialorder %v7685_v33, 0.0  ;;  %v7425_v32 = vld [vmem:[#allocation2 + $0x410] sm:$0xff] }
 0x6e5   : > { %v8452_v43 = vsel %vm7940_vm0, %v7684_v1, %v8196_v18  ;;  %8707 = vst [vmem:[%s10681_s3 + $0x578] sm:$0xff] %v8451_v8  ;;  %v8197_v28 = vmul.f32 0.01, %v7685_v33  ;;  %vm7942_vm2 = vcmp.ge.f32.partialorder %v7686_v52, 0.0  ;;  %v8198_v2 = vmul.f32 0.01, %v7686_v52 }
 0x6e6   : > { %8708 = vst [vmem:[%s10681_s3 + $0x580] sm:$0xff] %v8452_v43  ;;  %vm7943_vm3 = vcmp.ge.f32.partialorder %v7687_v17, 0.0  ;;  %v8199_v0 = vmul.f32 0.01, %v7687_v17  ;;  %vm7944_vm4 = vcmp.ge.f32.partialorder %v7688_v27, 0.0  ;;  %v7689_v22 = vadd.f32 %v13249_v58, %v7411_v42  ;;  %v7423_v1 = vld [vmem:[#allocation2 + $0x98] sm:$0xff] }
 0x6e7   : > { %v8200_v56 = vmul.f32 0.01, %v7688_v27  ;;  %v8453_v3 = vsel %vm7941_vm1, %v7685_v33, %v8197_v28  ;;  %v8454_v48 = vsel %vm7942_vm2, %v7686_v52, %v8198_v2  ;;  %v7690_v51 = vadd.f32 %v13251_v59, %v7412_v30  ;;  %v7426_v18 = vld [vmem:[#allocation2 + $0x248] sm:$0xff]  ;;  %v7428_v2 = vld [vmem:[#allocation2 + $0x220] sm:$0xff] }
 0x6e8   : > { %8709 = vst [vmem:[%s10681_s3 + $0x588] sm:$0xff] %v8453_v3  ;;  %8710 = vst [vmem:[%s10681_s3 + $0x590] sm:$0xff] %v8454_v48  ;;  %v8455_v12 = vsel %vm7943_vm3, %v7687_v17, %v8199_v0  ;;  %v7691_v46 = vadd.f32 %v13253_v21, %v7413_v19  ;;  %v7692_v57 = vadd.f32 %v13247_v63, %v7414_v39  ;;  %vm7945_vm5 = vcmp.ge.f32.partialorder %v7689_v22, 0.0  ;;  %v7429_v0 = vld [vmem:[#allocation2 + $0x780] sm:$0xff] }
 0x6e9   : > { %v8456_v40 = vsel %vm7944_vm4, %v7688_v27, %v8200_v56  ;;  %8711 = vst [vmem:[%s10681_s3 + $0x598] sm:$0xff] %v8455_v12  ;;  %v8201_v6 = vmul.f32 0.01, %v7689_v22  ;;  %vm7946_vm6 = vcmp.ge.f32.partialorder %v7690_v51, 0.0  ;;  %v8202_v49 = vmul.f32 0.01, %v7690_v51 }
 0x6ea   : > { %8712 = vst [vmem:[%s10681_s3 + $0x5a0] sm:$0xff] %v8456_v40  ;;  %vm7947_vm7 = vcmp.ge.f32.partialorder %v7691_v46, 0.0  ;;  %v8203_v60 = vmul.f32 0.01, %v7691_v46  ;;  %vm7948_vm8 = vcmp.ge.f32.partialorder %v7692_v57, 0.0  ;;  %v7693_v31 = vadd.f32 %v13249_v58, %v7415_v26  ;;  %v7427_v27 = vld [vmem:[#allocation2 + $0x548] sm:$0xff] }
 0x6eb   : > { %v8204_v34 = vmul.f32 0.01, %v7692_v57  ;;  %v8457_v24 = vsel %vm7945_vm5, %v7689_v22, %v8201_v6  ;;  %v8458_v23 = vsel %vm7946_vm6, %v7690_v51, %v8202_v49  ;;  %v7694_v20 = vadd.f32 %v13251_v59, %v7416_v45  ;;  %v7430_v56 = vld [vmem:[#allocation2 + $0x708] sm:$0xff] }
 0x6ec   : > { %8713 = vst [vmem:[%s10681_s3 + $0x5a8] sm:$0xff] %v8457_v24  ;;  %8714 = vst [vmem:[%s10681_s3 + $0x5b0] sm:$0xff] %v8458_v23  ;;  %v8459_v5 = vsel %vm7947_vm7, %v7691_v46, %v8203_v60  ;;  %v7695_v29 = vadd.f32 %v13253_v21, %v7417_v62  ;;  %v7696_v9 = vadd.f32 %v13247_v63, %v7418_v4  ;;  %vm7949_vm9 = vcmp.ge.f32.partialorder %v7693_v31, 0.0  ;;  %v7432_v49 = vld [vmem:[#allocation2 + $0x428] sm:$0xff]  ;;  %v7433_v60 = vld [vmem:[#allocation2 + $0x170] sm:$0xff] }
 0x6ed   : > { %v8460_v55 = vsel %vm7948_vm8, %v7692_v57, %v8204_v34  ;;  %8715 = vst [vmem:[%s10681_s3 + $0x5b8] sm:$0xff] %v8459_v5  ;;  %v8205_v47 = vmul.f32 0.01, %v7693_v31  ;;  %vm7950_vm10 = vcmp.ge.f32.partialorder %v7694_v20, 0.0  ;;  %v8206_v54 = vmul.f32 0.01, %v7694_v20 }
 0x6ee   : > { %8716 = vst [vmem:[%s10681_s3 + $0x5c0] sm:$0xff] %v8460_v55  ;;  %vm7951_vm11 = vcmp.ge.f32.partialorder %v7695_v29, 0.0  ;;  %v8207_v44 = vmul.f32 0.01, %v7695_v29  ;;  %vm7952_vm12 = vcmp.ge.f32.partialorder %v7696_v9, 0.0  ;;  %v7697_v61 = vadd.f32 %v13249_v58, %v7419_v53  ;;  %v7431_v57 = vld [vmem:[#allocation2 + $0x8] sm:$0xff] }
 0x6ef   : > { %v8208_v14 = vmul.f32 0.01, %v7696_v9  ;;  %v8461_v10 = vsel %vm7949_vm9, %v7693_v31, %v8205_v47  ;;  %v8462_v37 = vsel %vm7950_vm10, %v7694_v20, %v8206_v54  ;;  %v7698_v16 = vadd.f32 %v13251_v59, %v7420_v38  ;;  %v7434_v34 = vld [vmem:[#allocation2 + $0x7e0] sm:$0xff]  ;;  %v7436_v54 = vld [vmem:[#allocation2 + $0x308] sm:$0xff] }
 0x6f0   : > { %8717 = vst [vmem:[%s10681_s3 + $0x5c8] sm:$0xff] %v8461_v10  ;;  %8718 = vst [vmem:[%s10681_s3 + $0x5d0] sm:$0xff] %v8462_v37  ;;  %v8463_v35 = vsel %vm7951_vm11, %v7695_v29, %v8207_v44  ;;  %v7699_v7 = vadd.f32 %v13253_v21, %v7421_v41  ;;  %v7700_v15 = vadd.f32 %v13247_v63, %v7422_v25  ;;  %vm7953_vm13 = vcmp.ge.f32.partialorder %v7697_v61, 0.0  ;;  %v7437_v44 = vld [vmem:[#allocation2 + $0x88] sm:$0xff] }
 0x6f1   : > { %v8464_v13 = vsel %vm7952_vm12, %v7696_v9, %v8208_v14  ;;  %8719 = vst [vmem:[%s10681_s3 + $0x5d8] sm:$0xff] %v8463_v35  ;;  %v8209_v50 = vmul.f32 0.01, %v7697_v61  ;;  %vm7954_vm14 = vcmp.ge.f32.partialorder %v7698_v16, 0.0  ;;  %v8210_v36 = vmul.f32 0.01, %v7698_v16 }
 0x6f2   : > { %8720 = vst [vmem:[%s10681_s3 + $0x5e0] sm:$0xff] %v8464_v13  ;;  %vm7955_vm15 = vcmp.ge.f32.partialorder %v7699_v7, 0.0  ;;  %v8211_v33 = vmul.f32 0.01, %v7699_v7  ;;  %vm7956_vm0 = vcmp.ge.f32.partialorder %v7700_v15, 0.0  ;;  %v7701_v43 = vadd.f32 %v13249_v58, %v7423_v1  ;;  %v7435_v9 = vld [vmem:[#allocation2 + $0x20] sm:$0xff] }
 0x6f3   : > { %v8212_v52 = vmul.f32 0.01, %v7700_v15  ;;  %v8465_v42 = vsel %vm7953_vm13, %v7697_v61, %v8209_v50  ;;  %v8466_v8 = vsel %vm7954_vm14, %v7698_v16, %v8210_v36  ;;  %v7702_v17 = vadd.f32 %v13251_v59, %v7424_v11  ;;  %v7438_v14 = vld [vmem:[#allocation2 + $0x6e8] sm:$0xff]  ;;  %v7440_v36 = vld [vmem:[#allocation2 + $0x300] sm:$0xff] }
 0x6f4   : > { %8721 = vst [vmem:[%s10681_s3 + $0x5e8] sm:$0xff] %v8465_v42  ;;  %8722 = vst [vmem:[%s10681_s3 + $0x5f0] sm:$0xff] %v8466_v8  ;;  %v8467_v30 = vsel %vm7955_vm15, %v7699_v7, %v8211_v33  ;;  %v7703_v39 = vadd.f32 %v13253_v21, %v7425_v32  ;;  %v7704_v28 = vadd.f32 %v13247_v63, %v7426_v18  ;;  %vm7957_vm1 = vcmp.ge.f32.partialorder %v7701_v43, 0.0  ;;  %v7441_v33 = vld [vmem:[#allocation2 + $0x108] sm:$0xff] }
 0x6f5   : > { %v8468_v19 = vsel %vm7956_vm0, %v7700_v15, %v8212_v52  ;;  %8723 = vst [vmem:[%s10681_s3 + $0x5f8] sm:$0xff] %v8467_v30  ;;  %v8213_v3 = vmul.f32 0.01, %v7701_v43  ;;  %vm7958_vm2 = vcmp.ge.f32.partialorder %v7702_v17, 0.0  ;;  %v8214_v48 = vmul.f32 0.01, %v7702_v17 }
 0x6f6   : > { %8724 = vst [vmem:[%s10681_s3 + $0x600] sm:$0xff] %v8468_v19  ;;  %vm7959_vm3 = vcmp.ge.f32.partialorder %v7703_v39, 0.0  ;;  %v8215_v22 = vmul.f32 0.01, %v7703_v39  ;;  %vm7960_vm4 = vcmp.ge.f32.partialorder %v7704_v28, 0.0  ;;  %v7705_v40 = vadd.f32 %v13249_v58, %v7427_v27  ;;  %v7439_v15 = vld [vmem:[#allocation2 + $0x6b0] sm:$0xff] }
 0x6f7   : > { %v8216_v51 = vmul.f32 0.01, %v7704_v28  ;;  %v8469_v26 = vsel %vm7957_vm1, %v7701_v43, %v8213_v3  ;;  %v8470_v12 = vsel %vm7958_vm2, %v7702_v17, %v8214_v48  ;;  %v7706_v46 = vadd.f32 %v13251_v59, %v7428_v2  ;;  %v7442_v52 = vld [vmem:[#allocation2 + $0x180] sm:$0xff]  ;;  %v7444_v48 = vld [vmem:[#allocation2 + $0x570] sm:$0xff] }
 0x6f8   : > { %8725 = vst [vmem:[%s10681_s3 + $0x608] sm:$0xff] %v8469_v26  ;;  %8726 = vst [vmem:[%s10681_s3 + $0x610] sm:$0xff] %v8470_v12  ;;  %v8471_v45 = vsel %vm7959_vm3, %v7703_v39, %v8215_v22  ;;  %v7707_v4 = vadd.f32 %v13253_v21, %v7429_v0  ;;  %v7708_v6 = vadd.f32 %v13247_v63, %v7430_v56  ;;  %vm7961_vm5 = vcmp.ge.f32.partialorder %v7705_v40, 0.0  ;;  %v7445_v22 = vld [vmem:[#allocation2 + $0x500] sm:$0xff] }
 0x6f9   : > { %v8472_v62 = vsel %vm7960_vm4, %v7704_v28, %v8216_v51  ;;  %8727 = vst [vmem:[%s10681_s3 + $0x618] sm:$0xff] %v8471_v45  ;;  %v8217_v24 = vmul.f32 0.01, %v7705_v40  ;;  %vm7962_vm6 = vcmp.ge.f32.partialorder %v7706_v46, 0.0  ;;  %v8218_v23 = vmul.f32 0.01, %v7706_v46 }
 0x6fa   : > { %8728 = vst [vmem:[%s10681_s3 + $0x620] sm:$0xff] %v8472_v62  ;;  %vm7963_vm7 = vcmp.ge.f32.partialorder %v7707_v4, 0.0  ;;  %v8219_v31 = vmul.f32 0.01, %v7707_v4  ;;  %vm7964_vm8 = vcmp.ge.f32.partialorder %v7708_v6, 0.0  ;;  %v7709_v55 = vadd.f32 %v13249_v58, %v7431_v57  ;;  %v7443_v28 = vld [vmem:[#allocation2 + $0x490] sm:$0xff] }
 0x6fb   : > { %v8220_v20 = vmul.f32 0.01, %v7708_v6  ;;  %v8473_v53 = vsel %vm7961_vm5, %v7705_v40, %v8217_v24  ;;  %v8474_v5 = vsel %vm7962_vm6, %v7706_v46, %v8218_v23  ;;  %v7710_v29 = vadd.f32 %v13251_v59, %v7432_v49  ;;  %v7446_v51 = vld [vmem:[#allocation2 + $0xe8] sm:$0xff] }
 0x6fc   : > { %8729 = vst [vmem:[%s10681_s3 + $0x628] sm:$0xff] %v8473_v53  ;;  %8730 = vst [vmem:[%s10681_s3 + $0x630] sm:$0xff] %v8474_v5  ;;  %v8475_v38 = vsel %vm7963_vm7, %v7707_v4, %v8219_v31  ;;  %v7711_v25 = vadd.f32 %v13253_v21, %v7433_v60  ;;  %v7712_v47 = vadd.f32 %v13247_v63, %v7434_v34  ;;  %vm7965_vm9 = vcmp.ge.f32.partialorder %v7709_v55, 0.0  ;;  %v7448_v23 = vld [vmem:[#allocation2 + $0x7e8] sm:$0xff]  ;;  %v7449_v31 = vld [vmem:[#allocation2 + $0x360] sm:$0xff] }
 0x6fd   : > { %v8476_v41 = vsel %vm7964_vm8, %v7708_v6, %v8220_v20  ;;  %8731 = vst [vmem:[%s10681_s3 + $0x638] sm:$0xff] %v8475_v38  ;;  %v8221_v10 = vmul.f32 0.01, %v7709_v55  ;;  %vm7966_vm10 = vcmp.ge.f32.partialorder %v7710_v29, 0.0  ;;  %v8222_v37 = vmul.f32 0.01, %v7710_v29 }
 0x6fe   : > { %8732 = vst [vmem:[%s10681_s3 + $0x640] sm:$0xff] %v8476_v41  ;;  %vm7967_vm11 = vcmp.ge.f32.partialorder %v7711_v25, 0.0  ;;  %v8223_v61 = vmul.f32 0.01, %v7711_v25  ;;  %vm7968_vm12 = vcmp.ge.f32.partialorder %v7712_v47, 0.0  ;;  %v7713_v13 = vadd.f32 %v13249_v58, %v7435_v9  ;;  %v7447_v6 = vld [vmem:[#allocation2 + $0x2f0] sm:$0xff] }
 0x6ff   : > { %v8224_v16 = vmul.f32 0.01, %v7712_v47  ;;  %v8477_v1 = vsel %vm7965_vm9, %v7709_v55, %v8221_v10  ;;  %v8478_v35 = vsel %vm7966_vm10, %v7710_v29, %v8222_v37  ;;  %v7714_v7 = vadd.f32 %v13251_v59, %v7436_v54  ;;  %v7450_v20 = vld [vmem:[#allocation2 + $0x60] sm:$0xff] }
 0x700   : > { %8733 = vst [vmem:[%s10681_s3 + $0x648] sm:$0xff] %v8477_v1  ;;  %8734 = vst [vmem:[%s10681_s3 + $0x650] sm:$0xff] %v8478_v35  ;;  %v8479_v11 = vsel %vm7967_vm11, %v7711_v25, %v8223_v61  ;;  %v7715_v18 = vadd.f32 %v13253_v21, %v7437_v44  ;;  %v7716_v50 = vadd.f32 %v13247_v63, %v7438_v14  ;;  %vm7969_vm13 = vcmp.ge.f32.partialorder %v7713_v13, 0.0  ;;  %v7452_v37 = vld [vmem:[#allocation2 + $0x4a0] sm:$0xff]  ;;  %v7453_v61 = vld [vmem:[#allocation2 + $0x748] sm:$0xff] }
 0x701   : > { %v8480_v32 = vsel %vm7968_vm12, %v7712_v47, %v8224_v16  ;;  %8735 = vst [vmem:[%s10681_s3 + $0x658] sm:$0xff] %v8479_v11  ;;  %v8225_v42 = vmul.f32 0.01, %v7713_v13  ;;  %vm7970_vm14 = vcmp.ge.f32.partialorder %v7714_v7, 0.0  ;;  %v8226_v8 = vmul.f32 0.01, %v7714_v7 }
 0x702   : > { %8736 = vst [vmem:[%s10681_s3 + $0x660] sm:$0xff] %v8480_v32  ;;  %vm7971_vm15 = vcmp.ge.f32.partialorder %v7715_v18, 0.0  ;;  %v8227_v43 = vmul.f32 0.01, %v7715_v18  ;;  %vm7972_vm0 = vcmp.ge.f32.partialorder %v7716_v50, 0.0  ;;  %v7717_v19 = vadd.f32 %v13249_v58, %v7439_v15  ;;  %v7451_v47 = vld [vmem:[#allocation2 + $0x210] sm:$0xff] }
 0x703   : > { %v8228_v17 = vmul.f32 0.01, %v7716_v50  ;;  %v8481_v27 = vsel %vm7969_vm13, %v7713_v13, %v8225_v42  ;;  %v8482_v30 = vsel %vm7970_vm14, %v7714_v7, %v8226_v8  ;;  %v7718_v39 = vadd.f32 %v13251_v59, %v7440_v36  ;;  %v7454_v16 = vld [vmem:[#allocation2 + $0x168] sm:$0xff]  ;;  %v7456_v8 = vld [vmem:[#allocation2 + $0x270] sm:$0xff] }
 0x704   : > { %8737 = vst [vmem:[%s10681_s3 + $0x668] sm:$0xff] %v8481_v27  ;;  %8738 = vst [vmem:[%s10681_s3 + $0x670] sm:$0xff] %v8482_v30  ;;  %v8483_v2 = vsel %vm7971_vm15, %v7715_v18, %v8227_v43  ;;  %v7719_v56 = vadd.f32 %v13253_v21, %v7441_v33  ;;  %v7720_v3 = vadd.f32 %v13247_v63, %v7442_v52  ;;  %vm7973_vm1 = vcmp.ge.f32.partialorder %v7717_v19, 0.0  ;;  %v7457_v43 = vld [vmem:[#allocation2 + $0x2d8] sm:$0xff] }
 0x705   : > { %v8484_v0 = vsel %vm7972_vm0, %v7716_v50, %v8228_v17  ;;  %8739 = vst [vmem:[%s10681_s3 + $0x678] sm:$0xff] %v8483_v2  ;;  %v8229_v26 = vmul.f32 0.01, %v7717_v19  ;;  %vm7974_vm2 = vcmp.ge.f32.partialorder %v7718_v39, 0.0  ;;  %v8230_v12 = vmul.f32 0.01, %v7718_v39 }
 0x706   : > { %8740 = vst [vmem:[%s10681_s3 + $0x680] sm:$0xff] %v8484_v0  ;;  %vm7975_vm3 = vcmp.ge.f32.partialorder %v7719_v56, 0.0  ;;  %v8231_v40 = vmul.f32 0.01, %v7719_v56  ;;  %vm7976_vm4 = vcmp.ge.f32.partialorder %v7720_v3, 0.0  ;;  %v7721_v62 = vadd.f32 %v13249_v58, %v7443_v28  ;;  %v7455_v50 = vld [vmem:[#allocation2 + $0x668] sm:$0xff] }
 0x707   : > { %v8232_v46 = vmul.f32 0.01, %v7720_v3  ;;  %v8485_v57 = vsel %vm7973_vm1, %v7717_v19, %v8229_v26  ;;  %v8486_v45 = vsel %vm7974_vm2, %v7718_v39, %v8230_v12  ;;  %v7722_v4 = vadd.f32 %v13251_v59, %v7444_v48  ;;  %v7458_v17 = vld [vmem:[#allocation2 + $0xc8] sm:$0xff] }
 0x708   : > { %8741 = vst [vmem:[%s10681_s3 + $0x688] sm:$0xff] %v8485_v57  ;;  %8742 = vst [vmem:[%s10681_s3 + $0x690] sm:$0xff] %v8486_v45  ;;  %v8487_v49 = vsel %vm7975_vm3, %v7719_v56, %v8231_v40  ;;  %v7723_v34 = vadd.f32 %v13253_v21, %v7445_v22  ;;  %v7724_v24 = vadd.f32 %v13247_v63, %v7446_v51  ;;  %vm7977_vm5 = vcmp.ge.f32.partialorder %v7721_v62, 0.0  ;;  %v7460_v12 = vld [vmem:[#allocation2 + $0x48] sm:$0xff] }
 0x709   : > { %v8488_v60 = vsel %vm7976_vm4, %v7720_v3, %v8232_v46  ;;  %8743 = vst [vmem:[%s10681_s3 + $0x698] sm:$0xff] %v8487_v49  ;;  %v8233_v53 = vmul.f32 0.01, %v7721_v62  ;;  %vm7978_vm6 = vcmp.ge.f32.partialorder %v7722_v4, 0.0  ;;  %v8234_v5 = vmul.f32 0.01, %v7722_v4 }
 0x70a   : > { %8744 = vst [vmem:[%s10681_s3 + $0x6a0] sm:$0xff] %v8488_v60  ;;  %vm7979_vm7 = vcmp.ge.f32.partialorder %v7723_v34, 0.0  ;;  %v8235_v55 = vmul.f32 0.01, %v7723_v34  ;;  %vm7980_vm8 = vcmp.ge.f32.partialorder %v7724_v24, 0.0  ;;  %v7725_v41 = vadd.f32 %v13249_v58, %v7447_v6  ;;  %v7459_v3 = vld [vmem:[#allocation2 + $0xa0] sm:$0xff] }
 0x70b   : > { %v8236_v29 = vmul.f32 0.01, %v7724_v24  ;;  %v8489_v9 = vsel %vm7977_vm5, %v7721_v62, %v8233_v53  ;;  %v8490_v38 = vsel %vm7978_vm6, %v7722_v4, %v8234_v5  ;;  %v7726_v25 = vadd.f32 %v13251_v59, %v7448_v23  ;;  %v7461_v40 = vld [vmem:[#allocation2 + $0x328] sm:$0xff]  ;;  %v7464_v5 = vld [vmem:[#allocation2 + $0x578] sm:$0xff] }
 0x70c   : > { %8745 = vst [vmem:[%s10681_s3 + $0x6a8] sm:$0xff] %v8489_v9  ;;  %8746 = vst [vmem:[%s10681_s3 + $0x6b0] sm:$0xff] %v8490_v38  ;;  %v8491_v54 = vsel %vm7979_vm7, %v7723_v34, %v8235_v55  ;;  %v7727_v14 = vadd.f32 %v13253_v21, %v7449_v31  ;;  %v7728_v10 = vadd.f32 %v13247_v63, %v7450_v20  ;;  %vm7981_vm9 = vcmp.ge.f32.partialorder %v7725_v41, 0.0  ;;  %v7462_v46 = vld [vmem:[#allocation2 + $0x7c8] sm:$0xff] }
 0x70d   : > { %v8492_v44 = vsel %vm7980_vm8, %v7724_v24, %v8236_v29  ;;  %8747 = vst [vmem:[%s10681_s3 + $0x6b8] sm:$0xff] %v8491_v54  ;;  %v8237_v1 = vmul.f32 0.01, %v7725_v41  ;;  %vm7982_vm10 = vcmp.ge.f32.partialorder %v7726_v25, 0.0  ;;  %v8238_v35 = vmul.f32 0.01, %v7726_v25 }
 0x70e   : > { %8748 = vst [vmem:[%s10681_s3 + $0x6c0] sm:$0xff] %v8492_v44  ;;  %vm7983_vm11 = vcmp.ge.f32.partialorder %v7727_v14, 0.0  ;;  %v8239_v13 = vmul.f32 0.01, %v7727_v14  ;;  %vm7984_vm12 = vcmp.ge.f32.partialorder %v7728_v10, 0.0  ;;  %v7729_v32 = vadd.f32 %v13249_v58, %v7451_v47  ;;  %v7463_v24 = vld [vmem:[#allocation2 + $0x430] sm:$0xff] }
 0x70f   : > { %v8240_v7 = vmul.f32 0.01, %v7728_v10  ;;  %v8493_v15 = vsel %vm7981_vm9, %v7725_v41, %v8237_v1  ;;  %v8494_v11 = vsel %vm7982_vm10, %v7726_v25, %v8238_v35  ;;  %v7730_v18 = vadd.f32 %v13251_v59, %v7452_v37  ;;  %v7465_v55 = vld [vmem:[#allocation2 + $0x608] sm:$0xff]  ;;  %v7466_v29 = vld [vmem:[#allocation2 + $0x638] sm:$0xff] }
 0x710   : > { %8749 = vst [vmem:[%s10681_s3 + $0x6c8] sm:$0xff] %v8493_v15  ;;  %8750 = vst [vmem:[%s10681_s3 + $0x6d0] sm:$0xff] %v8494_v11  ;;  %v8495_v36 = vsel %vm7983_vm11, %v7727_v14, %v8239_v13  ;;  %v7731_v52 = vadd.f32 %v13253_v21, %v7453_v61  ;;  %v7732_v42 = vadd.f32 %v13247_v63, %v7454_v16  ;;  %vm7985_vm13 = vcmp.ge.f32.partialorder %v7729_v32, 0.0  ;;  %v7468_v35 = vld [vmem:[#allocation2 + $0x298] sm:$0xff]  ;;  %v7469_v13 = vld [vmem:[#allocation2 + $0x1f0] sm:$0xff] }
 0x711   : > { %v8496_v33 = vsel %vm7984_vm12, %v7728_v10, %v8240_v7  ;;  %8751 = vst [vmem:[%s10681_s3 + $0x6d8] sm:$0xff] %v8495_v36  ;;  %v8241_v27 = vmul.f32 0.01, %v7729_v32  ;;  %vm7986_vm14 = vcmp.ge.f32.partialorder %v7730_v18, 0.0  ;;  %v8242_v30 = vmul.f32 0.01, %v7730_v18 }
 0x712   : > { %8752 = vst [vmem:[%s10681_s3 + $0x6e0] sm:$0xff] %v8496_v33  ;;  %vm7987_vm15 = vcmp.ge.f32.partialorder %v7731_v52, 0.0  ;;  %v8243_v19 = vmul.f32 0.01, %v7731_v52  ;;  %vm7988_vm0 = vcmp.ge.f32.partialorder %v7732_v42, 0.0  ;;  %v7733_v0 = vadd.f32 %v13249_v58, %v7455_v50  ;;  %v7467_v10 = vld [vmem:[#allocation2 + $0x4b8] sm:$0xff] }
 0x713   : > { %v8244_v39 = vmul.f32 0.01, %v7732_v42  ;;  %v8497_v28 = vsel %vm7985_vm13, %v7729_v32, %v8241_v27  ;;  %v8498_v2 = vsel %vm7986_vm14, %v7730_v18, %v8242_v30  ;;  %v7734_v56 = vadd.f32 %v13251_v59, %v7456_v8  ;;  %v7470_v7 = vld [vmem:[#allocation2] sm:$0xff]  ;;  %v7472_v30 = vld [vmem:[#allocation2 + $0x650] sm:$0xff] }
 0x714   : > { %8753 = vst [vmem:[%s10681_s3 + $0x6e8] sm:$0xff] %v8497_v28  ;;  %8754 = vst [vmem:[%s10681_s3 + $0x6f0] sm:$0xff] %v8498_v2  ;;  %v8499_v48 = vsel %vm7987_vm15, %v7731_v52, %v8243_v19  ;;  %v7735_v51 = vadd.f32 %v13253_v21, %v7457_v43  ;;  %v7736_v26 = vadd.f32 %v13247_v63, %v7458_v17  ;;  %vm7989_vm1 = vcmp.ge.f32.partialorder %v7733_v0, 0.0  ;;  %v7473_v19 = vld [vmem:[#allocation2 + $0x480] sm:$0xff] }
 0x715   : > { %v8500_v22 = vsel %vm7988_vm0, %v7732_v42, %v8244_v39  ;;  %8755 = vst [vmem:[%s10681_s3 + $0x6f8] sm:$0xff] %v8499_v48  ;;  %v8245_v57 = vmul.f32 0.01, %v7733_v0  ;;  %vm7990_vm2 = vcmp.ge.f32.partialorder %v7734_v56, 0.0  ;;  %v8246_v45 = vmul.f32 0.01, %v7734_v56 }
 0x716   : > { %8756 = vst [vmem:[%s10681_s3 + $0x700] sm:$0xff] %v8500_v22  ;;  %vm7991_vm3 = vcmp.ge.f32.partialorder %v7735_v51, 0.0  ;;  %v8247_v62 = vmul.f32 0.01, %v7735_v51  ;;  %vm7992_vm4 = vcmp.ge.f32.partialorder %v7736_v26, 0.0  ;;  %v7737_v60 = vadd.f32 %v13249_v58, %v7459_v3  ;;  %v7471_v42 = vld [vmem:[#allocation2 + $0x2d0] sm:$0xff] }
 0x717   : > { %v8248_v4 = vmul.f32 0.01, %v7736_v26  ;;  %v8501_v6 = vsel %vm7989_vm1, %v7733_v0, %v8245_v57  ;;  %v8502_v49 = vsel %vm7990_vm2, %v7734_v56, %v8246_v45  ;;  %v7738_v34 = vadd.f32 %v13251_v59, %v7460_v12  ;;  %v7474_v39 = vld [vmem:[#allocation2 + $0x3d8] sm:$0xff]  ;;  %v7476_v45 = vld [vmem:[#allocation2 + $0x7d0] sm:$0xff] }
 0x718   : > { %8757 = vst [vmem:[%s10681_s3 + $0x708] sm:$0xff] %v8501_v6  ;;  %8758 = vst [vmem:[%s10681_s3 + $0x710] sm:$0xff] %v8502_v49  ;;  %v8503_v23 = vsel %vm7991_vm3, %v7735_v51, %v8247_v62  ;;  %v7739_v20 = vadd.f32 %v13253_v21, %v7461_v40  ;;  %v7740_v53 = vadd.f32 %v13247_v63, %v7462_v46  ;;  %vm7993_vm5 = vcmp.ge.f32.partialorder %v7737_v60, 0.0  ;;  %v7477_v62 = vld [vmem:[#allocation2 + $0x190] sm:$0xff] }
 0x719   : > { %v8504_v31 = vsel %vm7992_vm4, %v7736_v26, %v8248_v4  ;;  %8759 = vst [vmem:[%s10681_s3 + $0x718] sm:$0xff] %v8503_v23  ;;  %v8249_v9 = vmul.f32 0.01, %v7737_v60  ;;  %vm7994_vm6 = vcmp.ge.f32.partialorder %v7738_v34, 0.0  ;;  %v8250_v38 = vmul.f32 0.01, %v7738_v34 }
 0x71a   : > { %8760 = vst [vmem:[%s10681_s3 + $0x720] sm:$0xff] %v8504_v31  ;;  %vm7995_vm7 = vcmp.ge.f32.partialorder %v7739_v20, 0.0  ;;  %v8251_v41 = vmul.f32 0.01, %v7739_v20  ;;  %vm7996_vm8 = vcmp.ge.f32.partialorder %v7740_v53, 0.0  ;;  %v7741_v44 = vadd.f32 %v13249_v58, %v7463_v24  ;;  %v7475_v26 = vld [vmem:[#allocation2 + $0x718] sm:$0xff] }
 0x71b   : > { %v8252_v25 = vmul.f32 0.01, %v7740_v53  ;;  %v8505_v47 = vsel %vm7993_vm5, %v7737_v60, %v8249_v9  ;;  %v8506_v54 = vsel %vm7994_vm6, %v7738_v34, %v8250_v38  ;;  %v7742_v14 = vadd.f32 %v13251_v59, %v7464_v5  ;;  %v7478_v4 = vld [vmem:[#allocation2 + $0x710] sm:$0xff]  ;;  %v7480_v38 = vld [vmem:[#allocation2 + $0x2b8] sm:$0xff] }
 0x71c   : > { %8761 = vst [vmem:[%s10681_s3 + $0x728] sm:$0xff] %v8505_v47  ;;  %8762 = vst [vmem:[%s10681_s3 + $0x730] sm:$0xff] %v8506_v54  ;;  %v8507_v37 = vsel %vm7995_vm7, %v7739_v20, %v8251_v41  ;;  %v7743_v16 = vadd.f32 %v13253_v21, %v7465_v55  ;;  %v7744_v1 = vadd.f32 %v13247_v63, %v7466_v29  ;;  %vm7997_vm9 = vcmp.ge.f32.partialorder %v7741_v44, 0.0  ;;  %v7481_v41 = vld [vmem:[#allocation2 + $0x238] sm:$0xff] }
 0x71d   : > { %v8508_v61 = vsel %vm7996_vm8, %v7740_v53, %v8252_v25  ;;  %8763 = vst [vmem:[%s10681_s3 + $0x738] sm:$0xff] %v8507_v37  ;;  %v8253_v15 = vmul.f32 0.01, %v7741_v44  ;;  %vm7998_vm10 = vcmp.ge.f32.partialorder %v7742_v14, 0.0  ;;  %v8254_v11 = vmul.f32 0.01, %v7742_v14 }
 0x71e   : > { %8764 = vst [vmem:[%s10681_s3 + $0x740] sm:$0xff] %v8508_v61  ;;  %vm7999_vm11 = vcmp.ge.f32.partialorder %v7743_v16, 0.0  ;;  %v8255_v32 = vmul.f32 0.01, %v7743_v16  ;;  %vm8000_vm12 = vcmp.ge.f32.partialorder %v7744_v1, 0.0  ;;  %v7745_v33 = vadd.f32 %v13249_v58, %v7467_v10  ;;  %v7479_v53 = vld [vmem:[#allocation2 + $0xa8] sm:$0xff] }
 0x71f   : > { %v8256_v18 = vmul.f32 0.01, %v7744_v1  ;;  %v8509_v50 = vsel %vm7997_vm9, %v7741_v44, %v8253_v15  ;;  %v8510_v36 = vsel %vm7998_vm10, %v7742_v14, %v8254_v11  ;;  %v7746_v52 = vadd.f32 %v13251_v59, %v7468_v35  ;;  %v7482_v25 = vld [vmem:[#allocation2 + $0x1b0] sm:$0xff]  ;;  %v7483_v15 = vld [vmem:[#allocation2 + $0x5e0] sm:$0xff] }
 0x720   : > { %8765 = vst [vmem:[%s10681_s3 + $0x748] sm:$0xff] %v8509_v50  ;;  %8766 = vst [vmem:[%s10681_s3 + $0x750] sm:$0xff] %v8510_v36  ;;  %v8511_v8 = vsel %vm7999_vm11, %v7743_v16, %v8255_v32  ;;  %v7747_v17 = vadd.f32 %v13253_v21, %v7469_v13  ;;  %v7748_v27 = vadd.f32 %v13247_v63, %v7470_v7  ;;  %vm8001_vm13 = vcmp.ge.f32.partialorder %v7745_v33, 0.0  ;;  %v7484_v11 = vld [vmem:[#allocation2 + $0x580] sm:$0xff]  ;;  %v7485_v32 = vld [vmem:[#allocation2 + $0x150] sm:$0xff] }
 0x721   : > { %v8512_v43 = vsel %vm8000_vm12, %v7744_v1, %v8256_v18  ;;  %8767 = vst [vmem:[%s10681_s3 + $0x758] sm:$0xff] %v8511_v8  ;;  %v8257_v28 = vmul.f32 0.01, %v7745_v33  ;;  %vm8002_vm14 = vcmp.ge.f32.partialorder %v7746_v52, 0.0  ;;  %v8258_v2 = vmul.f32 0.01, %v7746_v52 }
 0x722   : > { %8768 = vst [vmem:[%s10681_s3 + $0x760] sm:$0xff] %v8512_v43  ;;  %vm8003_vm15 = vcmp.ge.f32.partialorder %v7747_v17, 0.0  ;;  %v8259_v0 = vmul.f32 0.01, %v7747_v17  ;;  %vm8004_vm0 = vcmp.ge.f32.partialorder %v7748_v27, 0.0  ;;  %v7749_v22 = vadd.f32 %v13249_v58, %v7471_v42 }
 0x723   : > { %v8260_v56 = vmul.f32 0.01, %v7748_v27  ;;  %v8513_v3 = vsel %vm8001_vm13, %v7745_v33, %v8257_v28  ;;  %v8514_v48 = vsel %vm8002_vm14, %v7746_v52, %v8258_v2  ;;  %v7750_v51 = vadd.f32 %v13251_v59, %v7472_v30 }
 0x724   : > { %8769 = vst [vmem:[%s10681_s3 + $0x768] sm:$0xff] %v8513_v3  ;;  %8770 = vst [vmem:[%s10681_s3 + $0x770] sm:$0xff] %v8514_v48  ;;  %v8515_v12 = vsel %vm8003_vm15, %v7747_v17, %v8259_v0  ;;  %v7751_v46 = vadd.f32 %v13253_v21, %v7473_v19  ;;  %v7752_v57 = vadd.f32 %v13247_v63, %v7474_v39  ;;  %vm8005_vm1 = vcmp.ge.f32.partialorder %v7749_v22, 0.0 }
 0x725   : > { %v8516_v40 = vsel %vm8004_vm0, %v7748_v27, %v8260_v56  ;;  %8771 = vst [vmem:[%s10681_s3 + $0x778] sm:$0xff] %v8515_v12  ;;  %v8261_v6 = vmul.f32 0.01, %v7749_v22  ;;  %vm8006_vm2 = vcmp.ge.f32.partialorder %v7750_v51, 0.0  ;;  %v8262_v49 = vmul.f32 0.01, %v7750_v51 }
 0x726   : > { %8772 = vst [vmem:[%s10681_s3 + $0x780] sm:$0xff] %v8516_v40  ;;  %vm8007_vm3 = vcmp.ge.f32.partialorder %v7751_v46, 0.0  ;;  %v8263_v60 = vmul.f32 0.01, %v7751_v46  ;;  %vm8008_vm4 = vcmp.ge.f32.partialorder %v7752_v57, 0.0  ;;  %v7753_v31 = vadd.f32 %v13249_v58, %v7475_v26 }
 0x727   : > { %v8264_v34 = vmul.f32 0.01, %v7752_v57  ;;  %v8517_v24 = vsel %vm8005_vm1, %v7749_v22, %v8261_v6  ;;  %v8518_v23 = vsel %vm8006_vm2, %v7750_v51, %v8262_v49  ;;  %v7754_v20 = vadd.f32 %v13251_v59, %v7476_v45 }
 0x728   : > { %8773 = vst [vmem:[%s10681_s3 + $0x788] sm:$0xff] %v8517_v24  ;;  %8774 = vst [vmem:[%s10681_s3 + $0x790] sm:$0xff] %v8518_v23  ;;  %v8519_v5 = vsel %vm8007_vm3, %v7751_v46, %v8263_v60  ;;  %v7755_v29 = vadd.f32 %v13253_v21, %v7477_v62  ;;  %v7756_v9 = vadd.f32 %v13247_v63, %v7478_v4  ;;  %vm8009_vm5 = vcmp.ge.f32.partialorder %v7753_v31, 0.0 }
 0x729   : > { %v8520_v55 = vsel %vm8008_vm4, %v7752_v57, %v8264_v34  ;;  %8775 = vst [vmem:[%s10681_s3 + $0x798] sm:$0xff] %v8519_v5  ;;  %v8265_v47 = vmul.f32 0.01, %v7753_v31  ;;  %vm8010_vm6 = vcmp.ge.f32.partialorder %v7754_v20, 0.0  ;;  %v8266_v54 = vmul.f32 0.01, %v7754_v20 }
 0x72a   : > { %8776 = vst [vmem:[%s10681_s3 + $0x7a0] sm:$0xff] %v8520_v55  ;;  %vm8011_vm7 = vcmp.ge.f32.partialorder %v7755_v29, 0.0  ;;  %v8267_v44 = vmul.f32 0.01, %v7755_v29  ;;  %vm8012_vm8 = vcmp.ge.f32.partialorder %v7756_v9, 0.0  ;;  %v7757_v61 = vadd.f32 %v13249_v58, %v7479_v53 }
 0x72b   : > { %v8268_v14 = vmul.f32 0.01, %v7756_v9  ;;  %v8521_v10 = vsel %vm8009_vm5, %v7753_v31, %v8265_v47  ;;  %v8522_v37 = vsel %vm8010_vm6, %v7754_v20, %v8266_v54  ;;  %v7758_v16 = vadd.f32 %v13251_v59, %v7480_v38 }
 0x72c   : > { %8777 = vst [vmem:[%s10681_s3 + $0x7a8] sm:$0xff] %v8521_v10  ;;  %8778 = vst [vmem:[%s10681_s3 + $0x7b0] sm:$0xff] %v8522_v37  ;;  %v8523_v1 = vsel %vm8011_vm7, %v7755_v29, %v8267_v44  ;;  %v7759_v13 = vadd.f32 %v13253_v21, %v7481_v41  ;;  %v7760_v7 = vadd.f32 %v13247_v63, %v7482_v25  ;;  %vm8013_vm9 = vcmp.ge.f32.partialorder %v7757_v61, 0.0 }
 0x72d   : > { %v8524_v35 = vsel %vm8012_vm8, %v7756_v9, %v8268_v14  ;;  %8779 = vst [vmem:[%s10681_s3 + $0x7b8] sm:$0xff] %v8523_v1  ;;  %v8269_v18 = vmul.f32 0.01, %v7757_v61  ;;  %vm8014_vm10 = vcmp.ge.f32.partialorder %v7758_v16, 0.0  ;;  %v8270_v50 = vmul.f32 0.01, %v7758_v16 }
 0x72e   : > { %8780 = vst [vmem:[%s10681_s3 + $0x7c0] sm:$0xff] %v8524_v35  ;;  %vm8015_vm11 = vcmp.ge.f32.partialorder %v7759_v13, 0.0  ;;  %v8271_v36 = vmul.f32 0.01, %v7759_v13  ;;  %vm8016_vm12 = vcmp.ge.f32.partialorder %v7760_v7, 0.0  ;;  %v7761_v63 = vadd.f32 %v13249_v58, %v7483_v15 }
 0x72f   : > { %v8272_v33 = vmul.f32 0.01, %v7760_v7  ;;  %v8525_v52 = vsel %vm8013_vm9, %v7757_v61, %v8269_v18  ;;  %v8526_v42 = vsel %vm8014_vm10, %v7758_v16, %v8270_v50  ;;  %v7762_v8 = vadd.f32 %v13251_v59, %v7484_v11 }
 0x730   : > { %8781 = vst [vmem:[%s10681_s3 + $0x7c8] sm:$0xff] %v8525_v52  ;;  %8782 = vst [vmem:[%s10681_s3 + $0x7d0] sm:$0xff] %v8526_v42  ;;  %v8527_v43 = vsel %vm8015_vm11, %v7759_v13, %v8271_v36  ;;  %v7763_v27 = vadd.f32 %v13253_v21, %v7485_v32  ;;  %vm8017_vm13 = vcmp.ge.f32.partialorder %v7761_v63, 0.0  ;;  %v8273_v30 = vmul.f32 0.01, %v7761_v63 }
 0x731   : > { %v8528_v17 = vsel %vm8016_vm12, %v7760_v7, %v8272_v33  ;;  %8783 = vst [vmem:[%s10681_s3 + $0x7d8] sm:$0xff] %v8527_v43  ;;  %vm8018_vm14 = vcmp.ge.f32.partialorder %v7762_v8, 0.0  ;;  %v8274_v19 = vmul.f32 0.01, %v7762_v8 }
 0x732   : > { %8784 = vst [vmem:[%s10681_s3 + $0x7e0] sm:$0xff] %v8528_v17  ;;  %vm8019_vm15 = vcmp.ge.f32.partialorder %v7763_v27, 0.0  ;;  %v8275_v39 = vmul.f32 0.01, %v7763_v27  ;;  %v8529_v58 = vsel %vm8017_vm13, %v7761_v63, %v8273_v30 }
 0x733   : > { %v8530_v28 = vsel %vm8018_vm14, %v7762_v8, %v8274_v19  ;;  %8785 = vst [vmem:[%s10681_s3 + $0x7e8] sm:$0xff] %v8529_v58 }
 0x734   : > { %8786 = vst [vmem:[%s10681_s3 + $0x7f0] sm:$0xff] %v8530_v28  ;;  %v8531_v59 = vsel %vm8019_vm15, %v7763_v27, %v8275_v39 }
 0x735   : > { %8787 = vst [vmem:[%s10681_s3 + $0x7f8] sm:$0xff] %v8531_v59 }
 0x736 PF: > { %s15031_s2 = sld [smem:[#allocation22_spill]]  ;;  %s8805_s19 = sshll.u32 %s10681_s3, 4  ;;  %s13770_s19 = int_to_ptr.vmem [resolvable:$true] %s8805_s19 }
 0x737   : > { %s15032_s12 = sld [smem:[#allocation23_spill]]  ;;  %s13779_s7 = scalar_lea.sflag [#allocation5], %s292_s6 }
 0x738   : > { %s15034_s16 = sld [smem:[#allocation358_spill]]  ;;  %s10147_s21 = scalar_lea.vmem %s13770_s19, 32768 }
 0x739   : > { %p10148_p9 = scmp.ne.s32.totalorder %s13770_s19, %s10147_s21  ;;  %p15036_p11 = scmp.ne.s32.totalorder %s14158_s11, 0 }
 0x73a   : > { %s10350_s3 = smov [#allocation9]  }
 0x73b   : > { %p10149_p0 = pnand %p10148_p9, %p15036_p11 }
 0x73c   : > { %s9485_s26 = sshll.u32 %s15031_s2, 2  ;;  %s10151_s2 = sshll.u32 %s10350_s3, 4  ;;  %s10152_s2 = int_to_ptr.vmem [resolvable:$false] %s10151_s2 }
 0x73d   : > { %s9493_s24 = sshll.u32 %s15032_s12, 9  ;;  %p10150_p3 = pneg %p10149_p0 }
 0x73e   : > { %s8802_s9 = sadd.s32 %s9493_s24, %s9485_s26  ;;  %s15035_s10 = smov %s15034_s16 }
 0x73f   : > { %s9487_s4 = sshll.u32 %s8802_s9, 7  ;;  %s10153_s12 = scalar_lea.vmem %s10152_s2, 65536 }
 0x740   : > { %s13775_s15 = scalar_lea.hbm %s15034_s16, %s9487_s4  ;;  %p10154_p1 = scmp.lt.s32.totalorder %s13770_s19, %s10152_s2 }
 0x741   : > { %p10155_p2 = scmp.lt.s32.totalorder %s10153_s12, %s10147_s21 }
 0x743   : > { %p10156_p12 = por %p10155_p2, %p10154_p1 }
 0x745   : > { %p10157_p4 = pnand %p10156_p12, %p10150_p3 }
 0x747   : > { %10160 = shalt.err (!%p10157_p4)
}
 0x748   : > { %s10161_s6 = scalar_lea.hbm %s13775_s15, 32768  ;;  %s10165_s24 = scalar_lea.hbm %s15035_s10, 131072 }
 0x749   : > { %p10162_p13 = scmp.ne.s32.totalorder %s13775_s15, %s10161_s6  ;;  %p10166_p6 = scmp.lt.s32.totalorder %s13775_s15, %s15035_s10 }
 0x74a   : > { %p10167_p10 = scmp.lt.s32.totalorder %s10165_s24, %s10161_s6 }
 0x74b   : > { %p10163_p5 = pnand %p10162_p13, %p15036_p11 }
 0x74c   : > { %p10168_p7 = por %p10167_p10, %p10166_p6 }
 0x74d   : > { %p10164_p8 = pneg %p10163_p5 }
 0x74f   : > { %p10169_p9 = pnand %p10168_p7, %p10164_p8 }
 0x751   : > { %10172 = shalt.err (!%p10169_p9)
}
 0x752   : > { %s10351_s27 = smov 512   ;;  %s10352_s13 = smov 1024  }
 0x753   : > { %s10353_s16 = smov 32  }
 0x754   : > { %9500 = dma.vmem_to_hbm [thread:$0]  (%p15036_p11), %s13770_s19, 32768, %s13775_s15, %s13779_s7, %s10351_s27, %s10352_s13, %s10353_s16  }
 0x755 PF: > { %s15037_s21 = sld [smem:[#allocation14_spill]]  ;;  %p9517_p0 = scmp.ge.s32.totalorder %s10339_s30, 2 }
 0x756   : > { %p15038_p3 = scmp.ne.s32.totalorder %s14159_s1, 0 }
 0x758   : > { %p9513_p1 = pnand %p9517_p0, %p15038_p3 }
 0x75a   : > { %p9514_p2 = pneg %p9513_p1 }
 0x75b   : > { %s8820_s3 = sand.u32 1, %s15037_s21  }
 0x75c   : > { %s8821_s2 = scalar_lea.sflag [#allocation5], %s8820_s3 }
 0x75d   : > { %10262 = dma.done.wait (%p9514_p2), %s8821_s2, 32768  }
 0x75e   : > { %10264 = vsyncadd (%p9514_p2), %s8821_s2, 4294934528  ;;  %s22_s30 = sadd.s32 1, %s10339_s30   ;;  %s15041_s12 = sld [smem:[#allocation15_spill]] }
 0x75f   : > { %p13807_p12 = scmp.ge.s32.totalorder %s22_s30, 10   ;;  %s15042_s15 = sld [smem:[#allocation17_spill]] }
 0x760   : > { %s15043_s11 = sld [smem:[#allocation19_spill]]  ;;  %s15046_s7 = smov %s10563_s18 }
 0x761   : > { %s15044_s19 = sld [smem:[#allocation20_spill]]  ;;  %s15050_s13 = smov %s10275_s14 }
 0x762   : > { %s15045_s1 = sld [smem:[#allocation27_spill]]  ;;  %s15051_s14 = smov %s10566_s25 }
 0x763   : > { %s15047_s24 = sld [smem:[#allocation24_spill]]  ;;  %s15052_s16 = smov %s10287_s17 }
 0x764   : > { %s15048_s27 = sld [smem:[#allocation25_spill]]  ;;  %s15053_s17 = smov %s10608_s20 }
 0x765   : > { %s15049_s5 = sld [smem:[#allocation26_spill]]  ;;  %s15056_s21 = smov %s10307_s22 }
 0x766   : > { %s15054_s18 = smov %s15043_s11  ;;  %s15057_s22 = smov %s10311_s23 }
 0x767   : > { %s15058_s23 = smov %s15046_s7  ;;  %s15059_s25 = smov %s10331_s28 }
 0x768   : > { %s15055_s20 = smov %s15045_s1  ;;  %s15060_s26 = smov %s10335_s29 }
 0x769   : > { %s15062_s29 = smov %s15070_s8  ;;  %21 = sbr.rel (!%p13807_p12) target bundleno = 19 (0x13), region = 109 }
 0x76b   : > { %s15061_s28 = smov %s15049_s5 }
 0x76e   :  { %8826 = vsyncpa [#allocation4], 1 }
 0x76f   :  { %8828 = vsyncpa [#allocation4 + $0x1], 1 }
 0x770   :  { %8829 = vsyncpa [#allocation7], 1 }
 0x771   :  { %8831 = vsyncpa [#allocation7 + $0x1], 1 }
 0x772   :  { %8832 = vsyncpa [#allocation5], 1 }
 0x773   :  { %8834 = vsyncpa [#allocation5 + $0x1], 1 }

</bundles_post_ra>
